<compile_context>
chip_gen: v7x
topology: tpu7x:2x2x1
jax: 0.10.0
libtpu: 0.0.40
codegen_flags: <defaults>
</compile_context>

<pallas_src>
import jax
import jax.numpy as jnp
from jax import lax
from jax.experimental import pallas as pl
from jax.experimental.pallas import tpu as pltpu

EMBED_DIM = 32
NUM_LAYERS = 6
BN_EPS = 1e-5


def gcn_kernel(x_in_ref, ev_ref, wemb_ref, eUw_ref, nWw_ref, small_ref, out_ref):
    """Whole model in one invocation. Layer loop runs in-kernel (fully unrolled)."""
    B, V = ev_ref.shape[0], ev_ref.shape[1]
    H = x_in_ref.shape[1]
    L = eUw_ref.shape[0]
    BV = B * V

    # ---- input embeddings -----------------------------------------------------
    x0 = x_in_ref[...]                                        # (B*V, H) f32
    ev = ev_ref[...]                                          # (B, V, V) f32
    w_emb = wemb_ref[...]                                     # (1, H) f32
    # edges_values_embedding: nn.Linear(1, H, bias=False) on edge_value[..., None]
    e0 = (ev[:, :, :, None] * w_emb[None, None, :, :]).reshape(BV * V, H)

    def layer_body(l, carry):
        x, e = carry                                          # (B*V,H), (B*V*V,H) f32
        eUw = eUw_ref[l]                                      # (H, H)   bf16
        nWw = nWw_ref[l]                                      # (H, 128) bf16 [Ve|Un|Vn|0]
        sm = small_ref[l]                                     # (8, H)   f32 packed
        eUb, eVb, nUb, nVb = sm[0:1, :], sm[1:2, :], sm[2:3, :], sm[3:4, :]
        g_e, b_e, g_n, b_n = sm[4:5, :], sm[5:6, :], sm[6:7, :], sm[7:8, :]

        # ---- linears on the MXU (bf16 operands, f32 accumulation) -------------
        Ue = jnp.dot(e.astype(jnp.bfloat16), eUw,
                     preferred_element_type=jnp.float32) + eUb        # (B*V*V, H)
        nlin = jnp.dot(x.astype(jnp.bfloat16), nWw,
                       preferred_element_type=jnp.float32)            # (B*V, 128)
        Vex = nlin[:, 0 * H:1 * H] + eVb       # edge-side V(x)
        Ux = nlin[:, 1 * H:2 * H] + nUb        # node-side U(x)
        Vnx = nlin[:, 2 * H:3 * H] + nVb       # node-side V(x)

        # ---- EdgeFeatures: e_tmp[b,i,j] = Ue[b,i,j] + Vx[b,i] + Vx[b,j] --------
        Ue4 = Ue.reshape(B, V, V, H)
        Vex4 = Vex.reshape(B, V, H)
        e_tmp = Ue4 + Vex4[:, :, None, :] + Vex4[:, None, :, :]       # (B,V,V,H)

        # ---- sigmoid edge gate (exact; exp on EUP) -----------------------------
        gate = 1.0 / (1.0 + jnp.exp(-e_tmp))                          # (B,V,V,H)

        # ---- NodeFeatures, "mean" aggregation ----------------------------------
        Vnx4 = Vnx.reshape(B, V, H)
        num = jnp.sum(gate * Vnx4[:, None, :, :], axis=2)             # (B,V,H)
        den = jnp.sum(gate, axis=2) + 1e-20                           # (B,V,H)
        x_tmp = (Ux.reshape(B, V, H) + num / den).reshape(BV, H)

        # ---- BatchNorm1d (batch statistics, centered variance) -----------------
        e_flat = e_tmp.reshape(BV * V, H)
        mu_e = jnp.mean(e_flat, axis=0, keepdims=True)
        ce = e_flat - mu_e
        var_e = jnp.mean(ce * ce, axis=0, keepdims=True)
        e_bn = ce * (g_e * lax.rsqrt(var_e + BN_EPS)) + b_e           # (B*V*V, H)

        mu_n = jnp.mean(x_tmp, axis=0, keepdims=True)
        cn = x_tmp - mu_n
        var_n = jnp.mean(cn * cn, axis=0, keepdims=True)
        x_bn = cn * (g_n * lax.rsqrt(var_n + BN_EPS)) + b_n           # (B*V, H)

        # ---- ReLU + residual ----------------------------------------------------
        x_new = x + jnp.maximum(x_bn, 0.0)
        e_new = e + jnp.maximum(e_bn, 0.0)
        return x_new, e_new

    x_fin, _ = lax.fori_loop(0, L, layer_body, (x0, e0), unroll=True)
    out_ref[...] = x_fin.astype(out_ref.dtype)


def residual_gated_gcn(node_embeddings, edge_value, params):
    B, V, H = node_embeddings.shape
    L = params["eUw"].shape[0]

    x_in = node_embeddings.reshape(B * V, H).astype(jnp.float32)
    ev = edge_value.astype(jnp.float32)

    # Fused node-side linears [V_edge | U_node | V_node], zero-padded to a
    # lane-dense multiple of 128 output columns; pre-cast to bf16 for the MXU.
    n_out = pl.cdiv(3 * H, 128) * 128
    pieces = [params["eVw"], params["nUw"], params["nVw"]]
    if n_out > 3 * H:
        pieces.append(jnp.zeros((L, H, n_out - 3 * H), jnp.float32))
    nWw = jnp.concatenate(pieces, axis=-1).astype(jnp.bfloat16)       # (L, H, 128)
    eUw = params["eUw"].astype(jnp.bfloat16)                          # (L, H, H)

    # Pack all small per-layer vectors into one (L, 8, H) block:
    # rows = [eUb, eVb, nUb, nVb, bn_e_gamma, bn_e_beta, bn_n_gamma, bn_n_beta]
    small = jnp.concatenate(
        [params["eUb"], params["eVb"], params["nUb"], params["nVb"],
         params["bn_e_g"], params["bn_e_b"], params["bn_n_g"], params["bn_n_b"]],
        axis=1).astype(jnp.float32)                                   # (L, 8, H)

    vmem = pl.BlockSpec(memory_space=pltpu.MemorySpace.VMEM)
    out = pl.pallas_call(
        gcn_kernel,
        out_shape=jax.ShapeDtypeStruct((B * V, H), jnp.float32),
        in_specs=[vmem] * 6,
        out_specs=vmem,
    )(x_in, ev, params["w_emb"], eUw, nWw, small)
    return out.reshape(B, V, H)


def init_params(key, H=EMBED_DIM, L=NUM_LAYERS):
    keys = jax.random.split(key, 9)

    # nn.Linear stores weight as (out, in) and computes x @ W.T; we store the
    # already-transposed (in, out) matrix so the kernel does x @ W directly.
    def lin_w(k):
        return (jax.random.normal(k, (L, H, H), jnp.float32) / jnp.sqrt(H)).astype(jnp.float32)

    def lin_b(k):
        return (jax.random.normal(k, (L, 1, H), jnp.float32) * 0.01).astype(jnp.float32)

    return dict(
        # edges_values_embedding: Linear(1, H, bias=False) -> weight (H, 1), stored as (1, H)
        w_emb=(jax.random.normal(keys[0], (1, H), jnp.float32) * 0.1).astype(jnp.float32),
        eUw=lin_w(keys[1]), eUb=lin_b(keys[2]),
        eVw=lin_w(keys[3]), eVb=lin_b(keys[4]),
        nUw=lin_w(keys[5]), nUb=lin_b(keys[6]),
        nVw=lin_w(keys[7]), nVb=lin_b(keys[8]),
        # BatchNorm affine params: PyTorch defaults (gamma=1, beta=0)
        bn_n_g=jnp.ones((L, 1, H), jnp.float32),
        bn_n_b=jnp.zeros((L, 1, H), jnp.float32),
        bn_e_g=jnp.ones((L, 1, H), jnp.float32),
        bn_e_b=jnp.zeros((L, 1, H), jnp.float32),
    )


if __name__ == "__main__":
    key = jax.random.PRNGKey(0)
    k_param, k_x, k_e = jax.random.split(key, 3)

    B, V, H = 2, 8, EMBED_DIM
    node_embeddings = jax.random.normal(k_x, (B, V, H), jnp.float32)
    edge_value = jax.random.uniform(k_e, (B, V, V), jnp.float32)

    params = init_params(k_param, H=H, L=NUM_LAYERS)

    out = residual_gated_gcn(node_embeddings, edge_value, params)
    jax.block_until_ready(out)
    assert out.shape == (B, V, H) and out.dtype == jnp.float32
    assert bool(jnp.all(jnp.isfinite(out)))
    print("KERNEL_OK")
</pallas_src>

<mosaic_0001>
module attributes {stable_mosaic.version = 11 : i64} {
  func.func @gcn_kernel(%arg0: memref<16x32xf32, #tpu.memory_space<vmem>>, %arg1: memref<2x8x8xf32, #tpu.memory_space<vmem>>, %arg2: memref<1x32xf32, #tpu.memory_space<vmem>>, %arg3: memref<6x32x32xbf16, #tpu.memory_space<vmem>>, %arg4: memref<6x32x128xbf16, #tpu.memory_space<vmem>>, %arg5: memref<6x8x32xf32, #tpu.memory_space<vmem>>, %arg6: memref<16x32xf32, #tpu.memory_space<vmem>>) attributes {dimension_semantics = [], scalar_prefetch = 0 : i64, scratch_operands = 0 : i64, tpu.core_type = #tpu.core_type<tc>} {
    %c0 = arith.constant 0 : index
    %c0_0 = arith.constant 0 : index
    %0 = vector.load %arg0[%c0, %c0_0] : memref<16x32xf32, #tpu.memory_space<vmem>>, vector<16x32xf32>
    %c0_1 = arith.constant 0 : index
    %c0_2 = arith.constant 0 : index
    %c0_3 = arith.constant 0 : index
    %1 = vector.load %arg1[%c0_1, %c0_2, %c0_3] : memref<2x8x8xf32, #tpu.memory_space<vmem>>, vector<2x8x8xf32>
    %c0_4 = arith.constant 0 : index
    %c0_5 = arith.constant 0 : index
    %2 = vector.load %arg2[%c0_4, %c0_5] : memref<1x32xf32, #tpu.memory_space<vmem>>, vector<1x32xf32>
    %3 = vector.shape_cast %1 : vector<2x8x8xf32> to vector<2x8x8x1xf32>
    %4 = vector.shape_cast %2 : vector<1x32xf32> to vector<1x1x1x32xf32>
    %5 = vector.broadcast %3 : vector<2x8x8x1xf32> to vector<2x8x8x32xf32>
    %6 = vector.broadcast %4 : vector<1x1x1x32xf32> to vector<2x8x8x32xf32>
    %7 = arith.mulf %5, %6 : vector<2x8x8x32xf32>
    %8 = vector.shape_cast %7 : vector<2x8x8x32xf32> to vector<128x32xf32>
    %c0_i32 = arith.constant 0 : i32
    %9 = arith.index_cast %c0_i32 : i32 to index
    %c0_6 = arith.constant 0 : index
    %c0_7 = arith.constant 0 : index
    %10 = vector.load %arg3[%9, %c0_6, %c0_7] : memref<6x32x32xbf16, #tpu.memory_space<vmem>>, vector<1x32x32xbf16>
    %11 = vector.shape_cast %10 : vector<1x32x32xbf16> to vector<32x32xbf16>
    %12 = arith.index_cast %c0_i32 : i32 to index
    %c0_8 = arith.constant 0 : index
    %c0_9 = arith.constant 0 : index
    %13 = vector.load %arg4[%12, %c0_8, %c0_9] : memref<6x32x128xbf16, #tpu.memory_space<vmem>>, vector<1x32x128xbf16>
    %14 = vector.shape_cast %13 : vector<1x32x128xbf16> to vector<32x128xbf16>
    %15 = arith.index_cast %c0_i32 : i32 to index
    %c0_10 = arith.constant 0 : index
    %c0_11 = arith.constant 0 : index
    %16 = vector.load %arg5[%15, %c0_10, %c0_11] : memref<6x8x32xf32, #tpu.memory_space<vmem>>, vector<1x8x32xf32>
    %17 = vector.shape_cast %16 : vector<1x8x32xf32> to vector<8x32xf32>
    %18 = vector.extract_strided_slice %17 {offsets = [0, 0], sizes = [1, 32], strides = [1, 1]} : vector<8x32xf32> to vector<1x32xf32>
    %19 = vector.extract_strided_slice %17 {offsets = [1, 0], sizes = [1, 32], strides = [1, 1]} : vector<8x32xf32> to vector<1x32xf32>
    %20 = vector.extract_strided_slice %17 {offsets = [2, 0], sizes = [1, 32], strides = [1, 1]} : vector<8x32xf32> to vector<1x32xf32>
    %21 = vector.extract_strided_slice %17 {offsets = [3, 0], sizes = [1, 32], strides = [1, 1]} : vector<8x32xf32> to vector<1x32xf32>
    %22 = vector.extract_strided_slice %17 {offsets = [4, 0], sizes = [1, 32], strides = [1, 1]} : vector<8x32xf32> to vector<1x32xf32>
    %23 = vector.extract_strided_slice %17 {offsets = [5, 0], sizes = [1, 32], strides = [1, 1]} : vector<8x32xf32> to vector<1x32xf32>
    %24 = vector.extract_strided_slice %17 {offsets = [6, 0], sizes = [1, 32], strides = [1, 1]} : vector<8x32xf32> to vector<1x32xf32>
    %25 = vector.extract_strided_slice %17 {offsets = [7, 0], sizes = [1, 32], strides = [1, 1]} : vector<8x32xf32> to vector<1x32xf32>
    %26 = arith.truncf %8 : vector<128x32xf32> to vector<128x32xbf16>
    %cst = arith.constant dense<0.000000e+00> : vector<128x32xf32>
    %27 = tpu.matmul %26, %11, %cst {dimension_numbers = #tpu.dot_dimension_numbers<[1], [0], [0], [1], [0, 0, 1, 1], [], []>} : vector<128x32xbf16>, vector<32x32xbf16>, vector<128x32xf32> -> vector<128x32xf32>
    %28 = vector.broadcast %18 : vector<1x32xf32> to vector<128x32xf32>
    %29 = arith.addf %27, %28 : vector<128x32xf32>
    %30 = arith.truncf %0 : vector<16x32xf32> to vector<16x32xbf16>
    %cst_12 = arith.constant dense<0.000000e+00> : vector<16x128xf32>
    %31 = tpu.matmul %30, %14, %cst_12 {dimension_numbers = #tpu.dot_dimension_numbers<[1], [0], [0], [1], [0, 0, 1, 1], [], []>} : vector<16x32xbf16>, vector<32x128xbf16>, vector<16x128xf32> -> vector<16x128xf32>
    %32 = vector.extract_strided_slice %31 {offsets = [0, 0], sizes = [16, 32], strides = [1, 1]} : vector<16x128xf32> to vector<16x32xf32>
    %33 = vector.broadcast %19 : vector<1x32xf32> to vector<16x32xf32>
    %34 = arith.addf %32, %33 : vector<16x32xf32>
    %35 = vector.extract_strided_slice %31 {offsets = [0, 32], sizes = [16, 32], strides = [1, 1]} : vector<16x128xf32> to vector<16x32xf32>
    %36 = vector.broadcast %20 : vector<1x32xf32> to vector<16x32xf32>
    %37 = arith.addf %35, %36 : vector<16x32xf32>
    %38 = vector.extract_strided_slice %31 {offsets = [0, 64], sizes = [16, 32], strides = [1, 1]} : vector<16x128xf32> to vector<16x32xf32>
    %39 = vector.broadcast %21 : vector<1x32xf32> to vector<16x32xf32>
    %40 = arith.addf %38, %39 : vector<16x32xf32>
    %41 = vector.shape_cast %29 : vector<128x32xf32> to vector<2x8x8x32xf32>
    %42 = vector.shape_cast %34 : vector<16x32xf32> to vector<2x8x32xf32>
    %43 = vector.shape_cast %42 : vector<2x8x32xf32> to vector<2x8x1x32xf32>
    %44 = vector.broadcast %43 : vector<2x8x1x32xf32> to vector<2x8x8x32xf32>
    %45 = arith.addf %41, %44 : vector<2x8x8x32xf32>
    %46 = vector.shape_cast %42 : vector<2x8x32xf32> to vector<2x1x8x32xf32>
    %47 = vector.broadcast %46 : vector<2x1x8x32xf32> to vector<2x8x8x32xf32>
    %48 = arith.addf %45, %47 : vector<2x8x8x32xf32>
    %cst_13 = arith.constant 0.000000e+00 : f32
    %49 = vector.broadcast %cst_13 : f32 to vector<2x8x8x32xf32>
    %50 = arith.subf %49, %48 : vector<2x8x8x32xf32>
    %51 = math.exp %50 : vector<2x8x8x32xf32>
    %cst_14 = arith.constant 1.000000e+00 : f32
    %52 = vector.broadcast %cst_14 : f32 to vector<2x8x8x32xf32>
    %53 = arith.addf %52, %51 : vector<2x8x8x32xf32>
    %cst_15 = arith.constant 1.000000e+00 : f32
    %54 = vector.broadcast %cst_15 : f32 to vector<2x8x8x32xf32>
    %55 = arith.divf %54, %53 : vector<2x8x8x32xf32>
    %56 = vector.shape_cast %40 : vector<16x32xf32> to vector<2x8x32xf32>
    %57 = vector.shape_cast %56 : vector<2x8x32xf32> to vector<2x1x8x32xf32>
    %58 = vector.broadcast %57 : vector<2x1x8x32xf32> to vector<2x8x8x32xf32>
    %59 = arith.mulf %55, %58 : vector<2x8x8x32xf32>
    %cst_16 = arith.constant dense<0.000000e+00> : vector<2x8x32xf32>
    %60 = vector.multi_reduction <add>, %59, %cst_16 [2] : vector<2x8x8x32xf32> to vector<2x8x32xf32>
    %cst_17 = arith.constant dense<0.000000e+00> : vector<2x8x32xf32>
    %61 = vector.multi_reduction <add>, %55, %cst_17 [2] : vector<2x8x8x32xf32> to vector<2x8x32xf32>
    %cst_18 = arith.constant 9.99999968E-21 : f32
    %62 = vector.broadcast %cst_18 : f32 to vector<2x8x32xf32>
    %63 = arith.addf %61, %62 : vector<2x8x32xf32>
    %64 = vector.shape_cast %37 : vector<16x32xf32> to vector<2x8x32xf32>
    %65 = arith.divf %60, %63 : vector<2x8x32xf32>
    %66 = arith.addf %64, %65 : vector<2x8x32xf32>
    %67 = vector.shape_cast %66 : vector<2x8x32xf32> to vector<16x32xf32>
    %68 = vector.shape_cast %48 : vector<2x8x8x32xf32> to vector<128x32xf32>
    %cst_19 = arith.constant dense<0.000000e+00> : vector<32xf32>
    %69 = vector.multi_reduction <add>, %68, %cst_19 [0] : vector<128x32xf32> to vector<32xf32>
    %70 = vector.shape_cast %69 : vector<32xf32> to vector<1x32xf32>
    %cst_20 = arith.constant 1.280000e+02 : f32
    %71 = vector.broadcast %cst_20 : f32 to vector<1x32xf32>
    %72 = arith.divf %70, %71 : vector<1x32xf32>
    %73 = vector.broadcast %72 : vector<1x32xf32> to vector<128x32xf32>
    %74 = arith.subf %68, %73 : vector<128x32xf32>
    %75 = arith.mulf %74, %74 : vector<128x32xf32>
    %cst_21 = arith.constant dense<0.000000e+00> : vector<32xf32>
    %76 = vector.multi_reduction <add>, %75, %cst_21 [0] : vector<128x32xf32> to vector<32xf32>
    %77 = vector.shape_cast %76 : vector<32xf32> to vector<1x32xf32>
    %cst_22 = arith.constant 1.280000e+02 : f32
    %78 = vector.broadcast %cst_22 : f32 to vector<1x32xf32>
    %79 = arith.divf %77, %78 : vector<1x32xf32>
    %cst_23 = arith.constant 9.99999974E-6 : f32
    %80 = vector.broadcast %cst_23 : f32 to vector<1x32xf32>
    %81 = arith.addf %79, %80 : vector<1x32xf32>
    %82 = math.rsqrt %81 : vector<1x32xf32>
    %83 = arith.mulf %22, %82 : vector<1x32xf32>
    %84 = vector.broadcast %83 : vector<1x32xf32> to vector<128x32xf32>
    %85 = arith.mulf %74, %84 : vector<128x32xf32>
    %86 = vector.broadcast %23 : vector<1x32xf32> to vector<128x32xf32>
    %87 = arith.addf %85, %86 : vector<128x32xf32>
    %cst_24 = arith.constant dense<0.000000e+00> : vector<32xf32>
    %88 = vector.multi_reduction <add>, %67, %cst_24 [0] : vector<16x32xf32> to vector<32xf32>
    %89 = vector.shape_cast %88 : vector<32xf32> to vector<1x32xf32>
    %cst_25 = arith.constant 1.600000e+01 : f32
    %90 = vector.broadcast %cst_25 : f32 to vector<1x32xf32>
    %91 = arith.divf %89, %90 : vector<1x32xf32>
    %92 = vector.broadcast %91 : vector<1x32xf32> to vector<16x32xf32>
    %93 = arith.subf %67, %92 : vector<16x32xf32>
    %94 = arith.mulf %93, %93 : vector<16x32xf32>
    %cst_26 = arith.constant dense<0.000000e+00> : vector<32xf32>
    %95 = vector.multi_reduction <add>, %94, %cst_26 [0] : vector<16x32xf32> to vector<32xf32>
    %96 = vector.shape_cast %95 : vector<32xf32> to vector<1x32xf32>
    %cst_27 = arith.constant 1.600000e+01 : f32
    %97 = vector.broadcast %cst_27 : f32 to vector<1x32xf32>
    %98 = arith.divf %96, %97 : vector<1x32xf32>
    %cst_28 = arith.constant 9.99999974E-6 : f32
    %99 = vector.broadcast %cst_28 : f32 to vector<1x32xf32>
    %100 = arith.addf %98, %99 : vector<1x32xf32>
    %101 = math.rsqrt %100 : vector<1x32xf32>
    %102 = arith.mulf %24, %101 : vector<1x32xf32>
    %103 = vector.broadcast %102 : vector<1x32xf32> to vector<16x32xf32>
    %104 = arith.mulf %93, %103 : vector<16x32xf32>
    %105 = vector.broadcast %25 : vector<1x32xf32> to vector<16x32xf32>
    %106 = arith.addf %104, %105 : vector<16x32xf32>
    %cst_29 = arith.constant 0.000000e+00 : f32
    %107 = vector.broadcast %cst_29 : f32 to vector<16x32xf32>
    %108 = arith.maximumf %106, %107 : vector<16x32xf32>
    %109 = arith.addf %0, %108 : vector<16x32xf32>
    %cst_30 = arith.constant 0.000000e+00 : f32
    %110 = vector.broadcast %cst_30 : f32 to vector<128x32xf32>
    %111 = arith.maximumf %87, %110 : vector<128x32xf32>
    %112 = arith.addf %8, %111 : vector<128x32xf32>
    %c1_i32 = arith.constant 1 : i32
    %113 = arith.index_cast %c1_i32 : i32 to index
    %c0_31 = arith.constant 0 : index
    %c0_32 = arith.constant 0 : index
    %114 = vector.load %arg3[%113, %c0_31, %c0_32] : memref<6x32x32xbf16, #tpu.memory_space<vmem>>, vector<1x32x32xbf16>
    %115 = vector.shape_cast %114 : vector<1x32x32xbf16> to vector<32x32xbf16>
    %116 = arith.index_cast %c1_i32 : i32 to index
    %c0_33 = arith.constant 0 : index
    %c0_34 = arith.constant 0 : index
    %117 = vector.load %arg4[%116, %c0_33, %c0_34] : memref<6x32x128xbf16, #tpu.memory_space<vmem>>, vector<1x32x128xbf16>
    %118 = vector.shape_cast %117 : vector<1x32x128xbf16> to vector<32x128xbf16>
    %119 = arith.index_cast %c1_i32 : i32 to index
    %c0_35 = arith.constant 0 : index
    %c0_36 = arith.constant 0 : index
    %120 = vector.load %arg5[%119, %c0_35, %c0_36] : memref<6x8x32xf32, #tpu.memory_space<vmem>>, vector<1x8x32xf32>
    %121 = vector.shape_cast %120 : vector<1x8x32xf32> to vector<8x32xf32>
    %122 = vector.extract_strided_slice %121 {offsets = [0, 0], sizes = [1, 32], strides = [1, 1]} : vector<8x32xf32> to vector<1x32xf32>
    %123 = vector.extract_strided_slice %121 {offsets = [1, 0], sizes = [1, 32], strides = [1, 1]} : vector<8x32xf32> to vector<1x32xf32>
    %124 = vector.extract_strided_slice %121 {offsets = [2, 0], sizes = [1, 32], strides = [1, 1]} : vector<8x32xf32> to vector<1x32xf32>
    %125 = vector.extract_strided_slice %121 {offsets = [3, 0], sizes = [1, 32], strides = [1, 1]} : vector<8x32xf32> to vector<1x32xf32>
    %126 = vector.extract_strided_slice %121 {offsets = [4, 0], sizes = [1, 32], strides = [1, 1]} : vector<8x32xf32> to vector<1x32xf32>
    %127 = vector.extract_strided_slice %121 {offsets = [5, 0], sizes = [1, 32], strides = [1, 1]} : vector<8x32xf32> to vector<1x32xf32>
    %128 = vector.extract_strided_slice %121 {offsets = [6, 0], sizes = [1, 32], strides = [1, 1]} : vector<8x32xf32> to vector<1x32xf32>
    %129 = vector.extract_strided_slice %121 {offsets = [7, 0], sizes = [1, 32], strides = [1, 1]} : vector<8x32xf32> to vector<1x32xf32>
    %130 = arith.truncf %112 : vector<128x32xf32> to vector<128x32xbf16>
    %cst_37 = arith.constant dense<0.000000e+00> : vector<128x32xf32>
    %131 = tpu.matmul %130, %115, %cst_37 {dimension_numbers = #tpu.dot_dimension_numbers<[1], [0], [0], [1], [0, 0, 1, 1], [], []>} : vector<128x32xbf16>, vector<32x32xbf16>, vector<128x32xf32> -> vector<128x32xf32>
    %132 = vector.broadcast %122 : vector<1x32xf32> to vector<128x32xf32>
    %133 = arith.addf %131, %132 : vector<128x32xf32>
    %134 = arith.truncf %109 : vector<16x32xf32> to vector<16x32xbf16>
    %cst_38 = arith.constant dense<0.000000e+00> : vector<16x128xf32>
    %135 = tpu.matmul %134, %118, %cst_38 {dimension_numbers = #tpu.dot_dimension_numbers<[1], [0], [0], [1], [0, 0, 1, 1], [], []>} : vector<16x32xbf16>, vector<32x128xbf16>, vector<16x128xf32> -> vector<16x128xf32>
    %136 = vector.extract_strided_slice %135 {offsets = [0, 0], sizes = [16, 32], strides = [1, 1]} : vector<16x128xf32> to vector<16x32xf32>
    %137 = vector.broadcast %123 : vector<1x32xf32> to vector<16x32xf32>
    %138 = arith.addf %136, %137 : vector<16x32xf32>
    %139 = vector.extract_strided_slice %135 {offsets = [0, 32], sizes = [16, 32], strides = [1, 1]} : vector<16x128xf32> to vector<16x32xf32>
    %140 = vector.broadcast %124 : vector<1x32xf32> to vector<16x32xf32>
    %141 = arith.addf %139, %140 : vector<16x32xf32>
    %142 = vector.extract_strided_slice %135 {offsets = [0, 64], sizes = [16, 32], strides = [1, 1]} : vector<16x128xf32> to vector<16x32xf32>
    %143 = vector.broadcast %125 : vector<1x32xf32> to vector<16x32xf32>
    %144 = arith.addf %142, %143 : vector<16x32xf32>
    %145 = vector.shape_cast %133 : vector<128x32xf32> to vector<2x8x8x32xf32>
    %146 = vector.shape_cast %138 : vector<16x32xf32> to vector<2x8x32xf32>
    %147 = vector.shape_cast %146 : vector<2x8x32xf32> to vector<2x8x1x32xf32>
    %148 = vector.broadcast %147 : vector<2x8x1x32xf32> to vector<2x8x8x32xf32>
    %149 = arith.addf %145, %148 : vector<2x8x8x32xf32>
    %150 = vector.shape_cast %146 : vector<2x8x32xf32> to vector<2x1x8x32xf32>
    %151 = vector.broadcast %150 : vector<2x1x8x32xf32> to vector<2x8x8x32xf32>
    %152 = arith.addf %149, %151 : vector<2x8x8x32xf32>
    %cst_39 = arith.constant 0.000000e+00 : f32
    %153 = vector.broadcast %cst_39 : f32 to vector<2x8x8x32xf32>
    %154 = arith.subf %153, %152 : vector<2x8x8x32xf32>
    %155 = math.exp %154 : vector<2x8x8x32xf32>
    %cst_40 = arith.constant 1.000000e+00 : f32
    %156 = vector.broadcast %cst_40 : f32 to vector<2x8x8x32xf32>
    %157 = arith.addf %156, %155 : vector<2x8x8x32xf32>
    %cst_41 = arith.constant 1.000000e+00 : f32
    %158 = vector.broadcast %cst_41 : f32 to vector<2x8x8x32xf32>
    %159 = arith.divf %158, %157 : vector<2x8x8x32xf32>
    %160 = vector.shape_cast %144 : vector<16x32xf32> to vector<2x8x32xf32>
    %161 = vector.shape_cast %160 : vector<2x8x32xf32> to vector<2x1x8x32xf32>
    %162 = vector.broadcast %161 : vector<2x1x8x32xf32> to vector<2x8x8x32xf32>
    %163 = arith.mulf %159, %162 : vector<2x8x8x32xf32>
    %cst_42 = arith.constant dense<0.000000e+00> : vector<2x8x32xf32>
    %164 = vector.multi_reduction <add>, %163, %cst_42 [2] : vector<2x8x8x32xf32> to vector<2x8x32xf32>
    %cst_43 = arith.constant dense<0.000000e+00> : vector<2x8x32xf32>
    %165 = vector.multi_reduction <add>, %159, %cst_43 [2] : vector<2x8x8x32xf32> to vector<2x8x32xf32>
    %cst_44 = arith.constant 9.99999968E-21 : f32
    %166 = vector.broadcast %cst_44 : f32 to vector<2x8x32xf32>
    %167 = arith.addf %165, %166 : vector<2x8x32xf32>
    %168 = vector.shape_cast %141 : vector<16x32xf32> to vector<2x8x32xf32>
    %169 = arith.divf %164, %167 : vector<2x8x32xf32>
    %170 = arith.addf %168, %169 : vector<2x8x32xf32>
    %171 = vector.shape_cast %170 : vector<2x8x32xf32> to vector<16x32xf32>
    %172 = vector.shape_cast %152 : vector<2x8x8x32xf32> to vector<128x32xf32>
    %cst_45 = arith.constant dense<0.000000e+00> : vector<32xf32>
    %173 = vector.multi_reduction <add>, %172, %cst_45 [0] : vector<128x32xf32> to vector<32xf32>
    %174 = vector.shape_cast %173 : vector<32xf32> to vector<1x32xf32>
    %cst_46 = arith.constant 1.280000e+02 : f32
    %175 = vector.broadcast %cst_46 : f32 to vector<1x32xf32>
    %176 = arith.divf %174, %175 : vector<1x32xf32>
    %177 = vector.broadcast %176 : vector<1x32xf32> to vector<128x32xf32>
    %178 = arith.subf %172, %177 : vector<128x32xf32>
    %179 = arith.mulf %178, %178 : vector<128x32xf32>
    %cst_47 = arith.constant dense<0.000000e+00> : vector<32xf32>
    %180 = vector.multi_reduction <add>, %179, %cst_47 [0] : vector<128x32xf32> to vector<32xf32>
    %181 = vector.shape_cast %180 : vector<32xf32> to vector<1x32xf32>
    %cst_48 = arith.constant 1.280000e+02 : f32
    %182 = vector.broadcast %cst_48 : f32 to vector<1x32xf32>
    %183 = arith.divf %181, %182 : vector<1x32xf32>
    %cst_49 = arith.constant 9.99999974E-6 : f32
    %184 = vector.broadcast %cst_49 : f32 to vector<1x32xf32>
    %185 = arith.addf %183, %184 : vector<1x32xf32>
    %186 = math.rsqrt %185 : vector<1x32xf32>
    %187 = arith.mulf %126, %186 : vector<1x32xf32>
    %188 = vector.broadcast %187 : vector<1x32xf32> to vector<128x32xf32>
    %189 = arith.mulf %178, %188 : vector<128x32xf32>
    %190 = vector.broadcast %127 : vector<1x32xf32> to vector<128x32xf32>
    %191 = arith.addf %189, %190 : vector<128x32xf32>
    %cst_50 = arith.constant dense<0.000000e+00> : vector<32xf32>
    %192 = vector.multi_reduction <add>, %171, %cst_50 [0] : vector<16x32xf32> to vector<32xf32>
    %193 = vector.shape_cast %192 : vector<32xf32> to vector<1x32xf32>
    %cst_51 = arith.constant 1.600000e+01 : f32
    %194 = vector.broadcast %cst_51 : f32 to vector<1x32xf32>
    %195 = arith.divf %193, %194 : vector<1x32xf32>
    %196 = vector.broadcast %195 : vector<1x32xf32> to vector<16x32xf32>
    %197 = arith.subf %171, %196 : vector<16x32xf32>
    %198 = arith.mulf %197, %197 : vector<16x32xf32>
    %cst_52 = arith.constant dense<0.000000e+00> : vector<32xf32>
    %199 = vector.multi_reduction <add>, %198, %cst_52 [0] : vector<16x32xf32> to vector<32xf32>
    %200 = vector.shape_cast %199 : vector<32xf32> to vector<1x32xf32>
    %cst_53 = arith.constant 1.600000e+01 : f32
    %201 = vector.broadcast %cst_53 : f32 to vector<1x32xf32>
    %202 = arith.divf %200, %201 : vector<1x32xf32>
    %cst_54 = arith.constant 9.99999974E-6 : f32
    %203 = vector.broadcast %cst_54 : f32 to vector<1x32xf32>
    %204 = arith.addf %202, %203 : vector<1x32xf32>
    %205 = math.rsqrt %204 : vector<1x32xf32>
    %206 = arith.mulf %128, %205 : vector<1x32xf32>
    %207 = vector.broadcast %206 : vector<1x32xf32> to vector<16x32xf32>
    %208 = arith.mulf %197, %207 : vector<16x32xf32>
    %209 = vector.broadcast %129 : vector<1x32xf32> to vector<16x32xf32>
    %210 = arith.addf %208, %209 : vector<16x32xf32>
    %cst_55 = arith.constant 0.000000e+00 : f32
    %211 = vector.broadcast %cst_55 : f32 to vector<16x32xf32>
    %212 = arith.maximumf %210, %211 : vector<16x32xf32>
    %213 = arith.addf %109, %212 : vector<16x32xf32>
    %cst_56 = arith.constant 0.000000e+00 : f32
    %214 = vector.broadcast %cst_56 : f32 to vector<128x32xf32>
    %215 = arith.maximumf %191, %214 : vector<128x32xf32>
    %216 = arith.addf %112, %215 : vector<128x32xf32>
    %c2_i32 = arith.constant 2 : i32
    %217 = arith.index_cast %c2_i32 : i32 to index
    %c0_57 = arith.constant 0 : index
    %c0_58 = arith.constant 0 : index
    %218 = vector.load %arg3[%217, %c0_57, %c0_58] : memref<6x32x32xbf16, #tpu.memory_space<vmem>>, vector<1x32x32xbf16>
    %219 = vector.shape_cast %218 : vector<1x32x32xbf16> to vector<32x32xbf16>
    %220 = arith.index_cast %c2_i32 : i32 to index
    %c0_59 = arith.constant 0 : index
    %c0_60 = arith.constant 0 : index
    %221 = vector.load %arg4[%220, %c0_59, %c0_60] : memref<6x32x128xbf16, #tpu.memory_space<vmem>>, vector<1x32x128xbf16>
    %222 = vector.shape_cast %221 : vector<1x32x128xbf16> to vector<32x128xbf16>
    %223 = arith.index_cast %c2_i32 : i32 to index
    %c0_61 = arith.constant 0 : index
    %c0_62 = arith.constant 0 : index
    %224 = vector.load %arg5[%223, %c0_61, %c0_62] : memref<6x8x32xf32, #tpu.memory_space<vmem>>, vector<1x8x32xf32>
    %225 = vector.shape_cast %224 : vector<1x8x32xf32> to vector<8x32xf32>
    %226 = vector.extract_strided_slice %225 {offsets = [0, 0], sizes = [1, 32], strides = [1, 1]} : vector<8x32xf32> to vector<1x32xf32>
    %227 = vector.extract_strided_slice %225 {offsets = [1, 0], sizes = [1, 32], strides = [1, 1]} : vector<8x32xf32> to vector<1x32xf32>
    %228 = vector.extract_strided_slice %225 {offsets = [2, 0], sizes = [1, 32], strides = [1, 1]} : vector<8x32xf32> to vector<1x32xf32>
    %229 = vector.extract_strided_slice %225 {offsets = [3, 0], sizes = [1, 32], strides = [1, 1]} : vector<8x32xf32> to vector<1x32xf32>
    %230 = vector.extract_strided_slice %225 {offsets = [4, 0], sizes = [1, 32], strides = [1, 1]} : vector<8x32xf32> to vector<1x32xf32>
    %231 = vector.extract_strided_slice %225 {offsets = [5, 0], sizes = [1, 32], strides = [1, 1]} : vector<8x32xf32> to vector<1x32xf32>
    %232 = vector.extract_strided_slice %225 {offsets = [6, 0], sizes = [1, 32], strides = [1, 1]} : vector<8x32xf32> to vector<1x32xf32>
    %233 = vector.extract_strided_slice %225 {offsets = [7, 0], sizes = [1, 32], strides = [1, 1]} : vector<8x32xf32> to vector<1x32xf32>
    %234 = arith.truncf %216 : vector<128x32xf32> to vector<128x32xbf16>
    %cst_63 = arith.constant dense<0.000000e+00> : vector<128x32xf32>
    %235 = tpu.matmul %234, %219, %cst_63 {dimension_numbers = #tpu.dot_dimension_numbers<[1], [0], [0], [1], [0, 0, 1, 1], [], []>} : vector<128x32xbf16>, vector<32x32xbf16>, vector<128x32xf32> -> vector<128x32xf32>
    %236 = vector.broadcast %226 : vector<1x32xf32> to vector<128x32xf32>
    %237 = arith.addf %235, %236 : vector<128x32xf32>
    %238 = arith.truncf %213 : vector<16x32xf32> to vector<16x32xbf16>
    %cst_64 = arith.constant dense<0.000000e+00> : vector<16x128xf32>
    %239 = tpu.matmul %238, %222, %cst_64 {dimension_numbers = #tpu.dot_dimension_numbers<[1], [0], [0], [1], [0, 0, 1, 1], [], []>} : vector<16x32xbf16>, vector<32x128xbf16>, vector<16x128xf32> -> vector<16x128xf32>
    %240 = vector.extract_strided_slice %239 {offsets = [0, 0], sizes = [16, 32], strides = [1, 1]} : vector<16x128xf32> to vector<16x32xf32>
    %241 = vector.broadcast %227 : vector<1x32xf32> to vector<16x32xf32>
    %242 = arith.addf %240, %241 : vector<16x32xf32>
    %243 = vector.extract_strided_slice %239 {offsets = [0, 32], sizes = [16, 32], strides = [1, 1]} : vector<16x128xf32> to vector<16x32xf32>
    %244 = vector.broadcast %228 : vector<1x32xf32> to vector<16x32xf32>
    %245 = arith.addf %243, %244 : vector<16x32xf32>
    %246 = vector.extract_strided_slice %239 {offsets = [0, 64], sizes = [16, 32], strides = [1, 1]} : vector<16x128xf32> to vector<16x32xf32>
    %247 = vector.broadcast %229 : vector<1x32xf32> to vector<16x32xf32>
    %248 = arith.addf %246, %247 : vector<16x32xf32>
    %249 = vector.shape_cast %237 : vector<128x32xf32> to vector<2x8x8x32xf32>
    %250 = vector.shape_cast %242 : vector<16x32xf32> to vector<2x8x32xf32>
    %251 = vector.shape_cast %250 : vector<2x8x32xf32> to vector<2x8x1x32xf32>
    %252 = vector.broadcast %251 : vector<2x8x1x32xf32> to vector<2x8x8x32xf32>
    %253 = arith.addf %249, %252 : vector<2x8x8x32xf32>
    %254 = vector.shape_cast %250 : vector<2x8x32xf32> to vector<2x1x8x32xf32>
    %255 = vector.broadcast %254 : vector<2x1x8x32xf32> to vector<2x8x8x32xf32>
    %256 = arith.addf %253, %255 : vector<2x8x8x32xf32>
    %cst_65 = arith.constant 0.000000e+00 : f32
    %257 = vector.broadcast %cst_65 : f32 to vector<2x8x8x32xf32>
    %258 = arith.subf %257, %256 : vector<2x8x8x32xf32>
    %259 = math.exp %258 : vector<2x8x8x32xf32>
    %cst_66 = arith.constant 1.000000e+00 : f32
    %260 = vector.broadcast %cst_66 : f32 to vector<2x8x8x32xf32>
    %261 = arith.addf %260, %259 : vector<2x8x8x32xf32>
    %cst_67 = arith.constant 1.000000e+00 : f32
    %262 = vector.broadcast %cst_67 : f32 to vector<2x8x8x32xf32>
    %263 = arith.divf %262, %261 : vector<2x8x8x32xf32>
    %264 = vector.shape_cast %248 : vector<16x32xf32> to vector<2x8x32xf32>
    %265 = vector.shape_cast %264 : vector<2x8x32xf32> to vector<2x1x8x32xf32>
    %266 = vector.broadcast %265 : vector<2x1x8x32xf32> to vector<2x8x8x32xf32>
    %267 = arith.mulf %263, %266 : vector<2x8x8x32xf32>
    %cst_68 = arith.constant dense<0.000000e+00> : vector<2x8x32xf32>
    %268 = vector.multi_reduction <add>, %267, %cst_68 [2] : vector<2x8x8x32xf32> to vector<2x8x32xf32>
    %cst_69 = arith.constant dense<0.000000e+00> : vector<2x8x32xf32>
    %269 = vector.multi_reduction <add>, %263, %cst_69 [2] : vector<2x8x8x32xf32> to vector<2x8x32xf32>
    %cst_70 = arith.constant 9.99999968E-21 : f32
    %270 = vector.broadcast %cst_70 : f32 to vector<2x8x32xf32>
    %271 = arith.addf %269, %270 : vector<2x8x32xf32>
    %272 = vector.shape_cast %245 : vector<16x32xf32> to vector<2x8x32xf32>
    %273 = arith.divf %268, %271 : vector<2x8x32xf32>
    %274 = arith.addf %272, %273 : vector<2x8x32xf32>
    %275 = vector.shape_cast %274 : vector<2x8x32xf32> to vector<16x32xf32>
    %276 = vector.shape_cast %256 : vector<2x8x8x32xf32> to vector<128x32xf32>
    %cst_71 = arith.constant dense<0.000000e+00> : vector<32xf32>
    %277 = vector.multi_reduction <add>, %276, %cst_71 [0] : vector<128x32xf32> to vector<32xf32>
    %278 = vector.shape_cast %277 : vector<32xf32> to vector<1x32xf32>
    %cst_72 = arith.constant 1.280000e+02 : f32
    %279 = vector.broadcast %cst_72 : f32 to vector<1x32xf32>
    %280 = arith.divf %278, %279 : vector<1x32xf32>
    %281 = vector.broadcast %280 : vector<1x32xf32> to vector<128x32xf32>
    %282 = arith.subf %276, %281 : vector<128x32xf32>
    %283 = arith.mulf %282, %282 : vector<128x32xf32>
    %cst_73 = arith.constant dense<0.000000e+00> : vector<32xf32>
    %284 = vector.multi_reduction <add>, %283, %cst_73 [0] : vector<128x32xf32> to vector<32xf32>
    %285 = vector.shape_cast %284 : vector<32xf32> to vector<1x32xf32>
    %cst_74 = arith.constant 1.280000e+02 : f32
    %286 = vector.broadcast %cst_74 : f32 to vector<1x32xf32>
    %287 = arith.divf %285, %286 : vector<1x32xf32>
    %cst_75 = arith.constant 9.99999974E-6 : f32
    %288 = vector.broadcast %cst_75 : f32 to vector<1x32xf32>
    %289 = arith.addf %287, %288 : vector<1x32xf32>
    %290 = math.rsqrt %289 : vector<1x32xf32>
    %291 = arith.mulf %230, %290 : vector<1x32xf32>
    %292 = vector.broadcast %291 : vector<1x32xf32> to vector<128x32xf32>
    %293 = arith.mulf %282, %292 : vector<128x32xf32>
    %294 = vector.broadcast %231 : vector<1x32xf32> to vector<128x32xf32>
    %295 = arith.addf %293, %294 : vector<128x32xf32>
    %cst_76 = arith.constant dense<0.000000e+00> : vector<32xf32>
    %296 = vector.multi_reduction <add>, %275, %cst_76 [0] : vector<16x32xf32> to vector<32xf32>
    %297 = vector.shape_cast %296 : vector<32xf32> to vector<1x32xf32>
    %cst_77 = arith.constant 1.600000e+01 : f32
    %298 = vector.broadcast %cst_77 : f32 to vector<1x32xf32>
    %299 = arith.divf %297, %298 : vector<1x32xf32>
    %300 = vector.broadcast %299 : vector<1x32xf32> to vector<16x32xf32>
    %301 = arith.subf %275, %300 : vector<16x32xf32>
    %302 = arith.mulf %301, %301 : vector<16x32xf32>
    %cst_78 = arith.constant dense<0.000000e+00> : vector<32xf32>
    %303 = vector.multi_reduction <add>, %302, %cst_78 [0] : vector<16x32xf32> to vector<32xf32>
    %304 = vector.shape_cast %303 : vector<32xf32> to vector<1x32xf32>
    %cst_79 = arith.constant 1.600000e+01 : f32
    %305 = vector.broadcast %cst_79 : f32 to vector<1x32xf32>
    %306 = arith.divf %304, %305 : vector<1x32xf32>
    %cst_80 = arith.constant 9.99999974E-6 : f32
    %307 = vector.broadcast %cst_80 : f32 to vector<1x32xf32>
    %308 = arith.addf %306, %307 : vector<1x32xf32>
    %309 = math.rsqrt %308 : vector<1x32xf32>
    %310 = arith.mulf %232, %309 : vector<1x32xf32>
    %311 = vector.broadcast %310 : vector<1x32xf32> to vector<16x32xf32>
    %312 = arith.mulf %301, %311 : vector<16x32xf32>
    %313 = vector.broadcast %233 : vector<1x32xf32> to vector<16x32xf32>
    %314 = arith.addf %312, %313 : vector<16x32xf32>
    %cst_81 = arith.constant 0.000000e+00 : f32
    %315 = vector.broadcast %cst_81 : f32 to vector<16x32xf32>
    %316 = arith.maximumf %314, %315 : vector<16x32xf32>
    %317 = arith.addf %213, %316 : vector<16x32xf32>
    %cst_82 = arith.constant 0.000000e+00 : f32
    %318 = vector.broadcast %cst_82 : f32 to vector<128x32xf32>
    %319 = arith.maximumf %295, %318 : vector<128x32xf32>
    %320 = arith.addf %216, %319 : vector<128x32xf32>
    %c3_i32 = arith.constant 3 : i32
    %321 = arith.index_cast %c3_i32 : i32 to index
    %c0_83 = arith.constant 0 : index
    %c0_84 = arith.constant 0 : index
    %322 = vector.load %arg3[%321, %c0_83, %c0_84] : memref<6x32x32xbf16, #tpu.memory_space<vmem>>, vector<1x32x32xbf16>
    %323 = vector.shape_cast %322 : vector<1x32x32xbf16> to vector<32x32xbf16>
    %324 = arith.index_cast %c3_i32 : i32 to index
    %c0_85 = arith.constant 0 : index
    %c0_86 = arith.constant 0 : index
    %325 = vector.load %arg4[%324, %c0_85, %c0_86] : memref<6x32x128xbf16, #tpu.memory_space<vmem>>, vector<1x32x128xbf16>
    %326 = vector.shape_cast %325 : vector<1x32x128xbf16> to vector<32x128xbf16>
    %327 = arith.index_cast %c3_i32 : i32 to index
    %c0_87 = arith.constant 0 : index
    %c0_88 = arith.constant 0 : index
    %328 = vector.load %arg5[%327, %c0_87, %c0_88] : memref<6x8x32xf32, #tpu.memory_space<vmem>>, vector<1x8x32xf32>
    %329 = vector.shape_cast %328 : vector<1x8x32xf32> to vector<8x32xf32>
    %330 = vector.extract_strided_slice %329 {offsets = [0, 0], sizes = [1, 32], strides = [1, 1]} : vector<8x32xf32> to vector<1x32xf32>
    %331 = vector.extract_strided_slice %329 {offsets = [1, 0], sizes = [1, 32], strides = [1, 1]} : vector<8x32xf32> to vector<1x32xf32>
    %332 = vector.extract_strided_slice %329 {offsets = [2, 0], sizes = [1, 32], strides = [1, 1]} : vector<8x32xf32> to vector<1x32xf32>
    %333 = vector.extract_strided_slice %329 {offsets = [3, 0], sizes = [1, 32], strides = [1, 1]} : vector<8x32xf32> to vector<1x32xf32>
    %334 = vector.extract_strided_slice %329 {offsets = [4, 0], sizes = [1, 32], strides = [1, 1]} : vector<8x32xf32> to vector<1x32xf32>
    %335 = vector.extract_strided_slice %329 {offsets = [5, 0], sizes = [1, 32], strides = [1, 1]} : vector<8x32xf32> to vector<1x32xf32>
    %336 = vector.extract_strided_slice %329 {offsets = [6, 0], sizes = [1, 32], strides = [1, 1]} : vector<8x32xf32> to vector<1x32xf32>
    %337 = vector.extract_strided_slice %329 {offsets = [7, 0], sizes = [1, 32], strides = [1, 1]} : vector<8x32xf32> to vector<1x32xf32>
    %338 = arith.truncf %320 : vector<128x32xf32> to vector<128x32xbf16>
    %cst_89 = arith.constant dense<0.000000e+00> : vector<128x32xf32>
    %339 = tpu.matmul %338, %323, %cst_89 {dimension_numbers = #tpu.dot_dimension_numbers<[1], [0], [0], [1], [0, 0, 1, 1], [], []>} : vector<128x32xbf16>, vector<32x32xbf16>, vector<128x32xf32> -> vector<128x32xf32>
    %340 = vector.broadcast %330 : vector<1x32xf32> to vector<128x32xf32>
    %341 = arith.addf %339, %340 : vector<128x32xf32>
    %342 = arith.truncf %317 : vector<16x32xf32> to vector<16x32xbf16>
    %cst_90 = arith.constant dense<0.000000e+00> : vector<16x128xf32>
    %343 = tpu.matmul %342, %326, %cst_90 {dimension_numbers = #tpu.dot_dimension_numbers<[1], [0], [0], [1], [0, 0, 1, 1], [], []>} : vector<16x32xbf16>, vector<32x128xbf16>, vector<16x128xf32> -> vector<16x128xf32>
    %344 = vector.extract_strided_slice %343 {offsets = [0, 0], sizes = [16, 32], strides = [1, 1]} : vector<16x128xf32> to vector<16x32xf32>
    %345 = vector.broadcast %331 : vector<1x32xf32> to vector<16x32xf32>
    %346 = arith.addf %344, %345 : vector<16x32xf32>
    %347 = vector.extract_strided_slice %343 {offsets = [0, 32], sizes = [16, 32], strides = [1, 1]} : vector<16x128xf32> to vector<16x32xf32>
    %348 = vector.broadcast %332 : vector<1x32xf32> to vector<16x32xf32>
    %349 = arith.addf %347, %348 : vector<16x32xf32>
    %350 = vector.extract_strided_slice %343 {offsets = [0, 64], sizes = [16, 32], strides = [1, 1]} : vector<16x128xf32> to vector<16x32xf32>
    %351 = vector.broadcast %333 : vector<1x32xf32> to vector<16x32xf32>
    %352 = arith.addf %350, %351 : vector<16x32xf32>
    %353 = vector.shape_cast %341 : vector<128x32xf32> to vector<2x8x8x32xf32>
    %354 = vector.shape_cast %346 : vector<16x32xf32> to vector<2x8x32xf32>
    %355 = vector.shape_cast %354 : vector<2x8x32xf32> to vector<2x8x1x32xf32>
    %356 = vector.broadcast %355 : vector<2x8x1x32xf32> to vector<2x8x8x32xf32>
    %357 = arith.addf %353, %356 : vector<2x8x8x32xf32>
    %358 = vector.shape_cast %354 : vector<2x8x32xf32> to vector<2x1x8x32xf32>
    %359 = vector.broadcast %358 : vector<2x1x8x32xf32> to vector<2x8x8x32xf32>
    %360 = arith.addf %357, %359 : vector<2x8x8x32xf32>
    %cst_91 = arith.constant 0.000000e+00 : f32
    %361 = vector.broadcast %cst_91 : f32 to vector<2x8x8x32xf32>
    %362 = arith.subf %361, %360 : vector<2x8x8x32xf32>
    %363 = math.exp %362 : vector<2x8x8x32xf32>
    %cst_92 = arith.constant 1.000000e+00 : f32
    %364 = vector.broadcast %cst_92 : f32 to vector<2x8x8x32xf32>
    %365 = arith.addf %364, %363 : vector<2x8x8x32xf32>
    %cst_93 = arith.constant 1.000000e+00 : f32
    %366 = vector.broadcast %cst_93 : f32 to vector<2x8x8x32xf32>
    %367 = arith.divf %366, %365 : vector<2x8x8x32xf32>
    %368 = vector.shape_cast %352 : vector<16x32xf32> to vector<2x8x32xf32>
    %369 = vector.shape_cast %368 : vector<2x8x32xf32> to vector<2x1x8x32xf32>
    %370 = vector.broadcast %369 : vector<2x1x8x32xf32> to vector<2x8x8x32xf32>
    %371 = arith.mulf %367, %370 : vector<2x8x8x32xf32>
    %cst_94 = arith.constant dense<0.000000e+00> : vector<2x8x32xf32>
    %372 = vector.multi_reduction <add>, %371, %cst_94 [2] : vector<2x8x8x32xf32> to vector<2x8x32xf32>
    %cst_95 = arith.constant dense<0.000000e+00> : vector<2x8x32xf32>
    %373 = vector.multi_reduction <add>, %367, %cst_95 [2] : vector<2x8x8x32xf32> to vector<2x8x32xf32>
    %cst_96 = arith.constant 9.99999968E-21 : f32
    %374 = vector.broadcast %cst_96 : f32 to vector<2x8x32xf32>
    %375 = arith.addf %373, %374 : vector<2x8x32xf32>
    %376 = vector.shape_cast %349 : vector<16x32xf32> to vector<2x8x32xf32>
    %377 = arith.divf %372, %375 : vector<2x8x32xf32>
    %378 = arith.addf %376, %377 : vector<2x8x32xf32>
    %379 = vector.shape_cast %378 : vector<2x8x32xf32> to vector<16x32xf32>
    %380 = vector.shape_cast %360 : vector<2x8x8x32xf32> to vector<128x32xf32>
    %cst_97 = arith.constant dense<0.000000e+00> : vector<32xf32>
    %381 = vector.multi_reduction <add>, %380, %cst_97 [0] : vector<128x32xf32> to vector<32xf32>
    %382 = vector.shape_cast %381 : vector<32xf32> to vector<1x32xf32>
    %cst_98 = arith.constant 1.280000e+02 : f32
    %383 = vector.broadcast %cst_98 : f32 to vector<1x32xf32>
    %384 = arith.divf %382, %383 : vector<1x32xf32>
    %385 = vector.broadcast %384 : vector<1x32xf32> to vector<128x32xf32>
    %386 = arith.subf %380, %385 : vector<128x32xf32>
    %387 = arith.mulf %386, %386 : vector<128x32xf32>
    %cst_99 = arith.constant dense<0.000000e+00> : vector<32xf32>
    %388 = vector.multi_reduction <add>, %387, %cst_99 [0] : vector<128x32xf32> to vector<32xf32>
    %389 = vector.shape_cast %388 : vector<32xf32> to vector<1x32xf32>
    %cst_100 = arith.constant 1.280000e+02 : f32
    %390 = vector.broadcast %cst_100 : f32 to vector<1x32xf32>
    %391 = arith.divf %389, %390 : vector<1x32xf32>
    %cst_101 = arith.constant 9.99999974E-6 : f32
    %392 = vector.broadcast %cst_101 : f32 to vector<1x32xf32>
    %393 = arith.addf %391, %392 : vector<1x32xf32>
    %394 = math.rsqrt %393 : vector<1x32xf32>
    %395 = arith.mulf %334, %394 : vector<1x32xf32>
    %396 = vector.broadcast %395 : vector<1x32xf32> to vector<128x32xf32>
    %397 = arith.mulf %386, %396 : vector<128x32xf32>
    %398 = vector.broadcast %335 : vector<1x32xf32> to vector<128x32xf32>
    %399 = arith.addf %397, %398 : vector<128x32xf32>
    %cst_102 = arith.constant dense<0.000000e+00> : vector<32xf32>
    %400 = vector.multi_reduction <add>, %379, %cst_102 [0] : vector<16x32xf32> to vector<32xf32>
    %401 = vector.shape_cast %400 : vector<32xf32> to vector<1x32xf32>
    %cst_103 = arith.constant 1.600000e+01 : f32
    %402 = vector.broadcast %cst_103 : f32 to vector<1x32xf32>
    %403 = arith.divf %401, %402 : vector<1x32xf32>
    %404 = vector.broadcast %403 : vector<1x32xf32> to vector<16x32xf32>
    %405 = arith.subf %379, %404 : vector<16x32xf32>
    %406 = arith.mulf %405, %405 : vector<16x32xf32>
    %cst_104 = arith.constant dense<0.000000e+00> : vector<32xf32>
    %407 = vector.multi_reduction <add>, %406, %cst_104 [0] : vector<16x32xf32> to vector<32xf32>
    %408 = vector.shape_cast %407 : vector<32xf32> to vector<1x32xf32>
    %cst_105 = arith.constant 1.600000e+01 : f32
    %409 = vector.broadcast %cst_105 : f32 to vector<1x32xf32>
    %410 = arith.divf %408, %409 : vector<1x32xf32>
    %cst_106 = arith.constant 9.99999974E-6 : f32
    %411 = vector.broadcast %cst_106 : f32 to vector<1x32xf32>
    %412 = arith.addf %410, %411 : vector<1x32xf32>
    %413 = math.rsqrt %412 : vector<1x32xf32>
    %414 = arith.mulf %336, %413 : vector<1x32xf32>
    %415 = vector.broadcast %414 : vector<1x32xf32> to vector<16x32xf32>
    %416 = arith.mulf %405, %415 : vector<16x32xf32>
    %417 = vector.broadcast %337 : vector<1x32xf32> to vector<16x32xf32>
    %418 = arith.addf %416, %417 : vector<16x32xf32>
    %cst_107 = arith.constant 0.000000e+00 : f32
    %419 = vector.broadcast %cst_107 : f32 to vector<16x32xf32>
    %420 = arith.maximumf %418, %419 : vector<16x32xf32>
    %421 = arith.addf %317, %420 : vector<16x32xf32>
    %cst_108 = arith.constant 0.000000e+00 : f32
    %422 = vector.broadcast %cst_108 : f32 to vector<128x32xf32>
    %423 = arith.maximumf %399, %422 : vector<128x32xf32>
    %424 = arith.addf %320, %423 : vector<128x32xf32>
    %c4_i32 = arith.constant 4 : i32
    %425 = arith.index_cast %c4_i32 : i32 to index
    %c0_109 = arith.constant 0 : index
    %c0_110 = arith.constant 0 : index
    %426 = vector.load %arg3[%425, %c0_109, %c0_110] : memref<6x32x32xbf16, #tpu.memory_space<vmem>>, vector<1x32x32xbf16>
    %427 = vector.shape_cast %426 : vector<1x32x32xbf16> to vector<32x32xbf16>
    %428 = arith.index_cast %c4_i32 : i32 to index
    %c0_111 = arith.constant 0 : index
    %c0_112 = arith.constant 0 : index
    %429 = vector.load %arg4[%428, %c0_111, %c0_112] : memref<6x32x128xbf16, #tpu.memory_space<vmem>>, vector<1x32x128xbf16>
    %430 = vector.shape_cast %429 : vector<1x32x128xbf16> to vector<32x128xbf16>
    %431 = arith.index_cast %c4_i32 : i32 to index
    %c0_113 = arith.constant 0 : index
    %c0_114 = arith.constant 0 : index
    %432 = vector.load %arg5[%431, %c0_113, %c0_114] : memref<6x8x32xf32, #tpu.memory_space<vmem>>, vector<1x8x32xf32>
    %433 = vector.shape_cast %432 : vector<1x8x32xf32> to vector<8x32xf32>
    %434 = vector.extract_strided_slice %433 {offsets = [0, 0], sizes = [1, 32], strides = [1, 1]} : vector<8x32xf32> to vector<1x32xf32>
    %435 = vector.extract_strided_slice %433 {offsets = [1, 0], sizes = [1, 32], strides = [1, 1]} : vector<8x32xf32> to vector<1x32xf32>
    %436 = vector.extract_strided_slice %433 {offsets = [2, 0], sizes = [1, 32], strides = [1, 1]} : vector<8x32xf32> to vector<1x32xf32>
    %437 = vector.extract_strided_slice %433 {offsets = [3, 0], sizes = [1, 32], strides = [1, 1]} : vector<8x32xf32> to vector<1x32xf32>
    %438 = vector.extract_strided_slice %433 {offsets = [4, 0], sizes = [1, 32], strides = [1, 1]} : vector<8x32xf32> to vector<1x32xf32>
    %439 = vector.extract_strided_slice %433 {offsets = [5, 0], sizes = [1, 32], strides = [1, 1]} : vector<8x32xf32> to vector<1x32xf32>
    %440 = vector.extract_strided_slice %433 {offsets = [6, 0], sizes = [1, 32], strides = [1, 1]} : vector<8x32xf32> to vector<1x32xf32>
    %441 = vector.extract_strided_slice %433 {offsets = [7, 0], sizes = [1, 32], strides = [1, 1]} : vector<8x32xf32> to vector<1x32xf32>
    %442 = arith.truncf %424 : vector<128x32xf32> to vector<128x32xbf16>
    %cst_115 = arith.constant dense<0.000000e+00> : vector<128x32xf32>
    %443 = tpu.matmul %442, %427, %cst_115 {dimension_numbers = #tpu.dot_dimension_numbers<[1], [0], [0], [1], [0, 0, 1, 1], [], []>} : vector<128x32xbf16>, vector<32x32xbf16>, vector<128x32xf32> -> vector<128x32xf32>
    %444 = vector.broadcast %434 : vector<1x32xf32> to vector<128x32xf32>
    %445 = arith.addf %443, %444 : vector<128x32xf32>
    %446 = arith.truncf %421 : vector<16x32xf32> to vector<16x32xbf16>
    %cst_116 = arith.constant dense<0.000000e+00> : vector<16x128xf32>
    %447 = tpu.matmul %446, %430, %cst_116 {dimension_numbers = #tpu.dot_dimension_numbers<[1], [0], [0], [1], [0, 0, 1, 1], [], []>} : vector<16x32xbf16>, vector<32x128xbf16>, vector<16x128xf32> -> vector<16x128xf32>
    %448 = vector.extract_strided_slice %447 {offsets = [0, 0], sizes = [16, 32], strides = [1, 1]} : vector<16x128xf32> to vector<16x32xf32>
    %449 = vector.broadcast %435 : vector<1x32xf32> to vector<16x32xf32>
    %450 = arith.addf %448, %449 : vector<16x32xf32>
    %451 = vector.extract_strided_slice %447 {offsets = [0, 32], sizes = [16, 32], strides = [1, 1]} : vector<16x128xf32> to vector<16x32xf32>
    %452 = vector.broadcast %436 : vector<1x32xf32> to vector<16x32xf32>
    %453 = arith.addf %451, %452 : vector<16x32xf32>
    %454 = vector.extract_strided_slice %447 {offsets = [0, 64], sizes = [16, 32], strides = [1, 1]} : vector<16x128xf32> to vector<16x32xf32>
    %455 = vector.broadcast %437 : vector<1x32xf32> to vector<16x32xf32>
    %456 = arith.addf %454, %455 : vector<16x32xf32>
    %457 = vector.shape_cast %445 : vector<128x32xf32> to vector<2x8x8x32xf32>
    %458 = vector.shape_cast %450 : vector<16x32xf32> to vector<2x8x32xf32>
    %459 = vector.shape_cast %458 : vector<2x8x32xf32> to vector<2x8x1x32xf32>
    %460 = vector.broadcast %459 : vector<2x8x1x32xf32> to vector<2x8x8x32xf32>
    %461 = arith.addf %457, %460 : vector<2x8x8x32xf32>
    %462 = vector.shape_cast %458 : vector<2x8x32xf32> to vector<2x1x8x32xf32>
    %463 = vector.broadcast %462 : vector<2x1x8x32xf32> to vector<2x8x8x32xf32>
    %464 = arith.addf %461, %463 : vector<2x8x8x32xf32>
    %cst_117 = arith.constant 0.000000e+00 : f32
    %465 = vector.broadcast %cst_117 : f32 to vector<2x8x8x32xf32>
    %466 = arith.subf %465, %464 : vector<2x8x8x32xf32>
    %467 = math.exp %466 : vector<2x8x8x32xf32>
    %cst_118 = arith.constant 1.000000e+00 : f32
    %468 = vector.broadcast %cst_118 : f32 to vector<2x8x8x32xf32>
    %469 = arith.addf %468, %467 : vector<2x8x8x32xf32>
    %cst_119 = arith.constant 1.000000e+00 : f32
    %470 = vector.broadcast %cst_119 : f32 to vector<2x8x8x32xf32>
    %471 = arith.divf %470, %469 : vector<2x8x8x32xf32>
    %472 = vector.shape_cast %456 : vector<16x32xf32> to vector<2x8x32xf32>
    %473 = vector.shape_cast %472 : vector<2x8x32xf32> to vector<2x1x8x32xf32>
    %474 = vector.broadcast %473 : vector<2x1x8x32xf32> to vector<2x8x8x32xf32>
    %475 = arith.mulf %471, %474 : vector<2x8x8x32xf32>
    %cst_120 = arith.constant dense<0.000000e+00> : vector<2x8x32xf32>
    %476 = vector.multi_reduction <add>, %475, %cst_120 [2] : vector<2x8x8x32xf32> to vector<2x8x32xf32>
    %cst_121 = arith.constant dense<0.000000e+00> : vector<2x8x32xf32>
    %477 = vector.multi_reduction <add>, %471, %cst_121 [2] : vector<2x8x8x32xf32> to vector<2x8x32xf32>
    %cst_122 = arith.constant 9.99999968E-21 : f32
    %478 = vector.broadcast %cst_122 : f32 to vector<2x8x32xf32>
    %479 = arith.addf %477, %478 : vector<2x8x32xf32>
    %480 = vector.shape_cast %453 : vector<16x32xf32> to vector<2x8x32xf32>
    %481 = arith.divf %476, %479 : vector<2x8x32xf32>
    %482 = arith.addf %480, %481 : vector<2x8x32xf32>
    %483 = vector.shape_cast %482 : vector<2x8x32xf32> to vector<16x32xf32>
    %484 = vector.shape_cast %464 : vector<2x8x8x32xf32> to vector<128x32xf32>
    %cst_123 = arith.constant dense<0.000000e+00> : vector<32xf32>
    %485 = vector.multi_reduction <add>, %484, %cst_123 [0] : vector<128x32xf32> to vector<32xf32>
    %486 = vector.shape_cast %485 : vector<32xf32> to vector<1x32xf32>
    %cst_124 = arith.constant 1.280000e+02 : f32
    %487 = vector.broadcast %cst_124 : f32 to vector<1x32xf32>
    %488 = arith.divf %486, %487 : vector<1x32xf32>
    %489 = vector.broadcast %488 : vector<1x32xf32> to vector<128x32xf32>
    %490 = arith.subf %484, %489 : vector<128x32xf32>
    %491 = arith.mulf %490, %490 : vector<128x32xf32>
    %cst_125 = arith.constant dense<0.000000e+00> : vector<32xf32>
    %492 = vector.multi_reduction <add>, %491, %cst_125 [0] : vector<128x32xf32> to vector<32xf32>
    %493 = vector.shape_cast %492 : vector<32xf32> to vector<1x32xf32>
    %cst_126 = arith.constant 1.280000e+02 : f32
    %494 = vector.broadcast %cst_126 : f32 to vector<1x32xf32>
    %495 = arith.divf %493, %494 : vector<1x32xf32>
    %cst_127 = arith.constant 9.99999974E-6 : f32
    %496 = vector.broadcast %cst_127 : f32 to vector<1x32xf32>
    %497 = arith.addf %495, %496 : vector<1x32xf32>
    %498 = math.rsqrt %497 : vector<1x32xf32>
    %499 = arith.mulf %438, %498 : vector<1x32xf32>
    %500 = vector.broadcast %499 : vector<1x32xf32> to vector<128x32xf32>
    %501 = arith.mulf %490, %500 : vector<128x32xf32>
    %502 = vector.broadcast %439 : vector<1x32xf32> to vector<128x32xf32>
    %503 = arith.addf %501, %502 : vector<128x32xf32>
    %cst_128 = arith.constant dense<0.000000e+00> : vector<32xf32>
    %504 = vector.multi_reduction <add>, %483, %cst_128 [0] : vector<16x32xf32> to vector<32xf32>
    %505 = vector.shape_cast %504 : vector<32xf32> to vector<1x32xf32>
    %cst_129 = arith.constant 1.600000e+01 : f32
    %506 = vector.broadcast %cst_129 : f32 to vector<1x32xf32>
    %507 = arith.divf %505, %506 : vector<1x32xf32>
    %508 = vector.broadcast %507 : vector<1x32xf32> to vector<16x32xf32>
    %509 = arith.subf %483, %508 : vector<16x32xf32>
    %510 = arith.mulf %509, %509 : vector<16x32xf32>
    %cst_130 = arith.constant dense<0.000000e+00> : vector<32xf32>
    %511 = vector.multi_reduction <add>, %510, %cst_130 [0] : vector<16x32xf32> to vector<32xf32>
    %512 = vector.shape_cast %511 : vector<32xf32> to vector<1x32xf32>
    %cst_131 = arith.constant 1.600000e+01 : f32
    %513 = vector.broadcast %cst_131 : f32 to vector<1x32xf32>
    %514 = arith.divf %512, %513 : vector<1x32xf32>
    %cst_132 = arith.constant 9.99999974E-6 : f32
    %515 = vector.broadcast %cst_132 : f32 to vector<1x32xf32>
    %516 = arith.addf %514, %515 : vector<1x32xf32>
    %517 = math.rsqrt %516 : vector<1x32xf32>
    %518 = arith.mulf %440, %517 : vector<1x32xf32>
    %519 = vector.broadcast %518 : vector<1x32xf32> to vector<16x32xf32>
    %520 = arith.mulf %509, %519 : vector<16x32xf32>
    %521 = vector.broadcast %441 : vector<1x32xf32> to vector<16x32xf32>
    %522 = arith.addf %520, %521 : vector<16x32xf32>
    %cst_133 = arith.constant 0.000000e+00 : f32
    %523 = vector.broadcast %cst_133 : f32 to vector<16x32xf32>
    %524 = arith.maximumf %522, %523 : vector<16x32xf32>
    %525 = arith.addf %421, %524 : vector<16x32xf32>
    %cst_134 = arith.constant 0.000000e+00 : f32
    %526 = vector.broadcast %cst_134 : f32 to vector<128x32xf32>
    %527 = arith.maximumf %503, %526 : vector<128x32xf32>
    %528 = arith.addf %424, %527 : vector<128x32xf32>
    %c5_i32 = arith.constant 5 : i32
    %529 = arith.index_cast %c5_i32 : i32 to index
    %c0_135 = arith.constant 0 : index
    %c0_136 = arith.constant 0 : index
    %530 = vector.load %arg3[%529, %c0_135, %c0_136] : memref<6x32x32xbf16, #tpu.memory_space<vmem>>, vector<1x32x32xbf16>
    %531 = vector.shape_cast %530 : vector<1x32x32xbf16> to vector<32x32xbf16>
    %532 = arith.index_cast %c5_i32 : i32 to index
    %c0_137 = arith.constant 0 : index
    %c0_138 = arith.constant 0 : index
    %533 = vector.load %arg4[%532, %c0_137, %c0_138] : memref<6x32x128xbf16, #tpu.memory_space<vmem>>, vector<1x32x128xbf16>
    %534 = vector.shape_cast %533 : vector<1x32x128xbf16> to vector<32x128xbf16>
    %535 = arith.index_cast %c5_i32 : i32 to index
    %c0_139 = arith.constant 0 : index
    %c0_140 = arith.constant 0 : index
    %536 = vector.load %arg5[%535, %c0_139, %c0_140] : memref<6x8x32xf32, #tpu.memory_space<vmem>>, vector<1x8x32xf32>
    %537 = vector.shape_cast %536 : vector<1x8x32xf32> to vector<8x32xf32>
    %538 = vector.extract_strided_slice %537 {offsets = [0, 0], sizes = [1, 32], strides = [1, 1]} : vector<8x32xf32> to vector<1x32xf32>
    %539 = vector.extract_strided_slice %537 {offsets = [1, 0], sizes = [1, 32], strides = [1, 1]} : vector<8x32xf32> to vector<1x32xf32>
    %540 = vector.extract_strided_slice %537 {offsets = [2, 0], sizes = [1, 32], strides = [1, 1]} : vector<8x32xf32> to vector<1x32xf32>
    %541 = vector.extract_strided_slice %537 {offsets = [3, 0], sizes = [1, 32], strides = [1, 1]} : vector<8x32xf32> to vector<1x32xf32>
    %542 = vector.extract_strided_slice %537 {offsets = [4, 0], sizes = [1, 32], strides = [1, 1]} : vector<8x32xf32> to vector<1x32xf32>
    %543 = vector.extract_strided_slice %537 {offsets = [5, 0], sizes = [1, 32], strides = [1, 1]} : vector<8x32xf32> to vector<1x32xf32>
    %544 = vector.extract_strided_slice %537 {offsets = [6, 0], sizes = [1, 32], strides = [1, 1]} : vector<8x32xf32> to vector<1x32xf32>
    %545 = vector.extract_strided_slice %537 {offsets = [7, 0], sizes = [1, 32], strides = [1, 1]} : vector<8x32xf32> to vector<1x32xf32>
    %546 = arith.truncf %528 : vector<128x32xf32> to vector<128x32xbf16>
    %cst_141 = arith.constant dense<0.000000e+00> : vector<128x32xf32>
    %547 = tpu.matmul %546, %531, %cst_141 {dimension_numbers = #tpu.dot_dimension_numbers<[1], [0], [0], [1], [0, 0, 1, 1], [], []>} : vector<128x32xbf16>, vector<32x32xbf16>, vector<128x32xf32> -> vector<128x32xf32>
    %548 = vector.broadcast %538 : vector<1x32xf32> to vector<128x32xf32>
    %549 = arith.addf %547, %548 : vector<128x32xf32>
    %550 = arith.truncf %525 : vector<16x32xf32> to vector<16x32xbf16>
    %cst_142 = arith.constant dense<0.000000e+00> : vector<16x128xf32>
    %551 = tpu.matmul %550, %534, %cst_142 {dimension_numbers = #tpu.dot_dimension_numbers<[1], [0], [0], [1], [0, 0, 1, 1], [], []>} : vector<16x32xbf16>, vector<32x128xbf16>, vector<16x128xf32> -> vector<16x128xf32>
    %552 = vector.extract_strided_slice %551 {offsets = [0, 0], sizes = [16, 32], strides = [1, 1]} : vector<16x128xf32> to vector<16x32xf32>
    %553 = vector.broadcast %539 : vector<1x32xf32> to vector<16x32xf32>
    %554 = arith.addf %552, %553 : vector<16x32xf32>
    %555 = vector.extract_strided_slice %551 {offsets = [0, 32], sizes = [16, 32], strides = [1, 1]} : vector<16x128xf32> to vector<16x32xf32>
    %556 = vector.broadcast %540 : vector<1x32xf32> to vector<16x32xf32>
    %557 = arith.addf %555, %556 : vector<16x32xf32>
    %558 = vector.extract_strided_slice %551 {offsets = [0, 64], sizes = [16, 32], strides = [1, 1]} : vector<16x128xf32> to vector<16x32xf32>
    %559 = vector.broadcast %541 : vector<1x32xf32> to vector<16x32xf32>
    %560 = arith.addf %558, %559 : vector<16x32xf32>
    %561 = vector.shape_cast %549 : vector<128x32xf32> to vector<2x8x8x32xf32>
    %562 = vector.shape_cast %554 : vector<16x32xf32> to vector<2x8x32xf32>
    %563 = vector.shape_cast %562 : vector<2x8x32xf32> to vector<2x8x1x32xf32>
    %564 = vector.broadcast %563 : vector<2x8x1x32xf32> to vector<2x8x8x32xf32>
    %565 = arith.addf %561, %564 : vector<2x8x8x32xf32>
    %566 = vector.shape_cast %562 : vector<2x8x32xf32> to vector<2x1x8x32xf32>
    %567 = vector.broadcast %566 : vector<2x1x8x32xf32> to vector<2x8x8x32xf32>
    %568 = arith.addf %565, %567 : vector<2x8x8x32xf32>
    %cst_143 = arith.constant 0.000000e+00 : f32
    %569 = vector.broadcast %cst_143 : f32 to vector<2x8x8x32xf32>
    %570 = arith.subf %569, %568 : vector<2x8x8x32xf32>
    %571 = math.exp %570 : vector<2x8x8x32xf32>
    %cst_144 = arith.constant 1.000000e+00 : f32
    %572 = vector.broadcast %cst_144 : f32 to vector<2x8x8x32xf32>
    %573 = arith.addf %572, %571 : vector<2x8x8x32xf32>
    %cst_145 = arith.constant 1.000000e+00 : f32
    %574 = vector.broadcast %cst_145 : f32 to vector<2x8x8x32xf32>
    %575 = arith.divf %574, %573 : vector<2x8x8x32xf32>
    %576 = vector.shape_cast %560 : vector<16x32xf32> to vector<2x8x32xf32>
    %577 = vector.shape_cast %576 : vector<2x8x32xf32> to vector<2x1x8x32xf32>
    %578 = vector.broadcast %577 : vector<2x1x8x32xf32> to vector<2x8x8x32xf32>
    %579 = arith.mulf %575, %578 : vector<2x8x8x32xf32>
    %cst_146 = arith.constant dense<0.000000e+00> : vector<2x8x32xf32>
    %580 = vector.multi_reduction <add>, %579, %cst_146 [2] : vector<2x8x8x32xf32> to vector<2x8x32xf32>
    %cst_147 = arith.constant dense<0.000000e+00> : vector<2x8x32xf32>
    %581 = vector.multi_reduction <add>, %575, %cst_147 [2] : vector<2x8x8x32xf32> to vector<2x8x32xf32>
    %cst_148 = arith.constant 9.99999968E-21 : f32
    %582 = vector.broadcast %cst_148 : f32 to vector<2x8x32xf32>
    %583 = arith.addf %581, %582 : vector<2x8x32xf32>
    %584 = vector.shape_cast %557 : vector<16x32xf32> to vector<2x8x32xf32>
    %585 = arith.divf %580, %583 : vector<2x8x32xf32>
    %586 = arith.addf %584, %585 : vector<2x8x32xf32>
    %587 = vector.shape_cast %586 : vector<2x8x32xf32> to vector<16x32xf32>
    %588 = vector.shape_cast %568 : vector<2x8x8x32xf32> to vector<128x32xf32>
    %cst_149 = arith.constant dense<0.000000e+00> : vector<32xf32>
    %589 = vector.multi_reduction <add>, %588, %cst_149 [0] : vector<128x32xf32> to vector<32xf32>
    %590 = vector.shape_cast %589 : vector<32xf32> to vector<1x32xf32>
    %cst_150 = arith.constant 1.280000e+02 : f32
    %591 = vector.broadcast %cst_150 : f32 to vector<1x32xf32>
    %592 = arith.divf %590, %591 : vector<1x32xf32>
    %593 = vector.broadcast %592 : vector<1x32xf32> to vector<128x32xf32>
    %594 = arith.subf %588, %593 : vector<128x32xf32>
    %595 = arith.mulf %594, %594 : vector<128x32xf32>
    %cst_151 = arith.constant dense<0.000000e+00> : vector<32xf32>
    %596 = vector.multi_reduction <add>, %595, %cst_151 [0] : vector<128x32xf32> to vector<32xf32>
    %597 = vector.shape_cast %596 : vector<32xf32> to vector<1x32xf32>
    %cst_152 = arith.constant 1.280000e+02 : f32
    %598 = vector.broadcast %cst_152 : f32 to vector<1x32xf32>
    %599 = arith.divf %597, %598 : vector<1x32xf32>
    %cst_153 = arith.constant 9.99999974E-6 : f32
    %600 = vector.broadcast %cst_153 : f32 to vector<1x32xf32>
    %601 = arith.addf %599, %600 : vector<1x32xf32>
    %602 = math.rsqrt %601 : vector<1x32xf32>
    %603 = arith.mulf %542, %602 : vector<1x32xf32>
    %604 = vector.broadcast %603 : vector<1x32xf32> to vector<128x32xf32>
    %605 = arith.mulf %594, %604 : vector<128x32xf32>
    %606 = vector.broadcast %543 : vector<1x32xf32> to vector<128x32xf32>
    %607 = arith.addf %605, %606 : vector<128x32xf32>
    %cst_154 = arith.constant dense<0.000000e+00> : vector<32xf32>
    %608 = vector.multi_reduction <add>, %587, %cst_154 [0] : vector<16x32xf32> to vector<32xf32>
    %609 = vector.shape_cast %608 : vector<32xf32> to vector<1x32xf32>
    %cst_155 = arith.constant 1.600000e+01 : f32
    %610 = vector.broadcast %cst_155 : f32 to vector<1x32xf32>
    %611 = arith.divf %609, %610 : vector<1x32xf32>
    %612 = vector.broadcast %611 : vector<1x32xf32> to vector<16x32xf32>
    %613 = arith.subf %587, %612 : vector<16x32xf32>
    %614 = arith.mulf %613, %613 : vector<16x32xf32>
    %cst_156 = arith.constant dense<0.000000e+00> : vector<32xf32>
    %615 = vector.multi_reduction <add>, %614, %cst_156 [0] : vector<16x32xf32> to vector<32xf32>
    %616 = vector.shape_cast %615 : vector<32xf32> to vector<1x32xf32>
    %cst_157 = arith.constant 1.600000e+01 : f32
    %617 = vector.broadcast %cst_157 : f32 to vector<1x32xf32>
    %618 = arith.divf %616, %617 : vector<1x32xf32>
    %cst_158 = arith.constant 9.99999974E-6 : f32
    %619 = vector.broadcast %cst_158 : f32 to vector<1x32xf32>
    %620 = arith.addf %618, %619 : vector<1x32xf32>
    %621 = math.rsqrt %620 : vector<1x32xf32>
    %622 = arith.mulf %544, %621 : vector<1x32xf32>
    %623 = vector.broadcast %622 : vector<1x32xf32> to vector<16x32xf32>
    %624 = arith.mulf %613, %623 : vector<16x32xf32>
    %625 = vector.broadcast %545 : vector<1x32xf32> to vector<16x32xf32>
    %626 = arith.addf %624, %625 : vector<16x32xf32>
    %cst_159 = arith.constant 0.000000e+00 : f32
    %627 = vector.broadcast %cst_159 : f32 to vector<16x32xf32>
    %628 = arith.maximumf %626, %627 : vector<16x32xf32>
    %629 = arith.addf %525, %628 : vector<16x32xf32>
    %cst_160 = arith.constant 0.000000e+00 : f32
    %630 = vector.broadcast %cst_160 : f32 to vector<128x32xf32>
    %631 = arith.maximumf %607, %630 : vector<128x32xf32>
    %632 = arith.addf %528, %631 : vector<128x32xf32>
    %c6_i32 = arith.constant 6 : i32
    %c0_161 = arith.constant 0 : index
    %c0_162 = arith.constant 0 : index
    %633 = vector.load %arg6[%c0_161, %c0_162] : memref<16x32xf32, #tpu.memory_space<vmem>>, vector<16x32xf32>
    tpu.vector_store %arg6[%c0_161, %c0_162], %629 {strides = array<i32>} : memref<16x32xf32, #tpu.memory_space<vmem>>, vector<16x32xf32>,
    return
  }
}

</mosaic_0001>

<bundles_post_ra>
// kernel: tpu_custom_call.1
= control target key start
LH: loop header
LB: loop body
LE: loop exit
PB: predicated region body
PF: predicated region fallthrough
CT: control target
= control target key end

     0   :  { %11 = vsyncpa [#allocation3], 0  ;;  %s11918_s0 = inlined_call_operand.hbm [shape: f32[16,32], index: 0, kind: input, shape index: {}]   ;;  %s11919_s1 = inlined_call_operand.hbm [shape: f32[2,8,8], index: 1, kind: input, shape index: {}]   ;;  %s11920_s2 = inlined_call_operand.vmem [shape: f32[1,32], index: 2, kind: input, shape index: {}]   ;;  %s11921_s3 = inlined_call_operand.hbm [shape: bf16[6,32,32], index: 3, kind: input, shape index: {}]   ;;  %s11922_s4 = inlined_call_operand.hbm [shape: bf16[6,32,128], index: 4, kind: input, shape index: {}]   ;;  %s11923_s5 = inlined_call_operand.hbm [shape: f32[6,8,32], index: 5, kind: input, shape index: {}]   ;;  %s11924_s6 = inlined_call_operand.hbm [shape: f32[16,32], index: 6, kind: output, shape index: {}]  }
   0x1   :  { %12 = vsyncpa [#allocation6], 0 }
   0x2   :  { %13 = vsyncpa [#allocation9], 0 }
   0x3   :  { %14 = vsyncpa [#allocation4], 0  ;;  %s7956_s21 = smov [#allocation5]   ;;  %s7816_s25 = scalar_lea.hbm %s11919_s1, 256 }
   0x4   :  { %s32_s22 = sshll.u32 %s7956_s21, 4  ;;  %p7817_p0 = scmp.ne.s32.totalorder %s11919_s1, %s7816_s25  ;;  %s33_s22 = int_to_ptr.vmem [resolvable:$true] %s32_s22 }
   0x5   :  { %p7820_p1 = scmp.lt.u32.totalorder %s7816_s25, %s11919_s1 }
   0x7   :  { %p7822_p2 = pnand %p7820_p1, %p7817_p0 }
   0x9   :  { %7825 = shalt.err (!%p7822_p2)
}
   0xa   :  { %s7826_s30 = scalar_lea.vmem %s33_s22, 256  ;;  %p7831_p4 = scmp.lt.s32.totalorder %s33_s22, %s33_s22 }
   0xb   :  { %p7827_p3 = scmp.ne.s32.totalorder %s33_s22, %s7826_s30  ;;  %p7832_p5 = scmp.lt.s32.totalorder %s7826_s30, %s7826_s30 }
   0xd   :  { %p7833_p6 = por %p7832_p5, %p7831_p4 }
   0xf   :  { %p7834_p7 = pnand %p7833_p6, %p7827_p3 }
  0x11   :  { %7837 = shalt.err (!%p7834_p7)
}
  0x12   :  { %s7957_s7 = smov 128   ;;  %s7958_s8 = smov 8  }
  0x13   :  { %38 = dma.hbm_to_vmem [thread:$0]  %s11919_s1, 256, %s33_s22, [#allocation6], %s7957_s7, %s7957_s7, %s7958_s8  }
  0x14   :  { %s7959_s11 = smov [#allocation8]   ;;  %s7960_s13 = smov [#allocation2]  }
  0x15   :  { %s58_s12 = sshll.u32 %s7959_s11, 4  ;;  %s20_s14 = sshll.u32 %s7960_s13, 4  ;;  %s59_s12 = int_to_ptr.vmem [resolvable:$true] %s58_s12  ;;  %s21_s14 = int_to_ptr.vmem [resolvable:$true] %s20_s14 }
  0x16   :  { %s7838_s17 = scalar_lea.hbm %s11922_s4, 1536 }
  0x17   :  { %p7839_p8 = scmp.ne.s32.totalorder %s11922_s4, %s7838_s17  ;;  %p7842_p9 = scmp.lt.u32.totalorder %s7838_s17, %s11922_s4 }
  0x19   :  { %p7844_p10 = pnand %p7842_p9, %p7839_p8 }
  0x1b   :  { %7847 = shalt.err (!%p7844_p10)
}
  0x1c   :  { %s7848_s1 = scalar_lea.vmem %s59_s12, 1536  ;;  %p7853_p12 = scmp.lt.s32.totalorder %s59_s12, %s59_s12 }
  0x1d   :  { %p7849_p11 = scmp.ne.s32.totalorder %s59_s12, %s7848_s1  ;;  %p7854_p13 = scmp.lt.s32.totalorder %s7848_s1, %s7848_s1 }
  0x1f   :  { %p7855_p0 = por %p7854_p13, %p7853_p12 }
  0x21   :  { %p7856_p1 = pnand %p7855_p0, %p7849_p11 }
  0x23   :  { %7859 = shalt.err (!%p7856_p1)
}
  0x24   :  { %s7961_s22 = smov 64   ;;  %s7962_s23 = smov 4  }
  0x25   :  { %64 = dma.hbm_to_vmem [thread:$0]  %s11922_s4, 1536, %s59_s12, [#allocation9], %s7961_s22, %s7961_s22, %s7962_s23  }
  0x26   :  { %s7860_s28 = scalar_lea.hbm %s11918_s0, 256 }
  0x27   :  { %p7861_p2 = scmp.ne.s32.totalorder %s11918_s0, %s7860_s28  ;;  %p7864_p3 = scmp.lt.u32.totalorder %s7860_s28, %s11918_s0 }
  0x29   :  { %p7866_p4 = pnand %p7864_p3, %p7861_p2 }
  0x2b   :  { %7869 = shalt.err (!%p7866_p4)
}
  0x2c   :  { %s7870_s11 = scalar_lea.vmem %s21_s14, 256  ;;  %p7875_p6 = scmp.lt.s32.totalorder %s21_s14, %s21_s14 }
  0x2d   :  { %p7871_p5 = scmp.ne.s32.totalorder %s21_s14, %s7870_s11  ;;  %p7876_p7 = scmp.lt.s32.totalorder %s7870_s11, %s7870_s11 }
  0x2f   :  { %p7877_p8 = por %p7876_p7, %p7875_p6 }
  0x31   :  { %p7878_p9 = pnand %p7877_p8, %p7871_p5 }
  0x33   :  { %7881 = shalt.err (!%p7878_p9)
}
  0x34   :  { %26 = dma.hbm_to_vmem [thread:$0]  %s11918_s0, 256, %s21_s14, [#allocation3], %s7957_s7, %s7957_s7, %s7958_s8  }
  0x35   :  { %s7963_s13 = smov [#allocation7]   ;;  %s7964_s16 = smov [#allocation10]  }
  0x36   :  { %s46_s15 = sshll.u32 %s7963_s13, 4  ;;  %s70_s17 = sshll.u32 %s7964_s16, 4  ;;  %s47_s15 = int_to_ptr.vmem [resolvable:$true] %s46_s15  ;;  %s71_s17 = int_to_ptr.vmem [resolvable:$true] %s70_s17 }
  0x37   :  { %s7882_s20 = scalar_lea.hbm %s11921_s3, 1536 }
  0x38   :  { %p7883_p10 = scmp.ne.s32.totalorder %s11921_s3, %s7882_s20  ;;  %p7886_p11 = scmp.lt.u32.totalorder %s7882_s20, %s11921_s3 }
  0x3a   :  { %p7888_p12 = pnand %p7886_p11, %p7883_p10 }
  0x3c   :  { %7891 = shalt.err (!%p7888_p12)
}
  0x3d   :  { %s7892_s0 = scalar_lea.vmem %s47_s15, 1536  ;;  %p7897_p0 = scmp.lt.s32.totalorder %s47_s15, %s47_s15 }
  0x3e   :  { %p7893_p13 = scmp.ne.s32.totalorder %s47_s15, %s7892_s0  ;;  %p7898_p1 = scmp.lt.s32.totalorder %s7892_s0, %s7892_s0 }
  0x40   :  { %p7899_p2 = por %p7898_p1, %p7897_p0 }
  0x42   :  { %p7900_p3 = pnand %p7899_p2, %p7893_p13 }
  0x44   :  { %7903 = shalt.err (!%p7900_p3)
}
  0x45   :  { %52 = dma.hbm_to_vmem [thread:$0]  %s11921_s3, 1536, %s47_s15, [#allocation6], %s7961_s22, %s7961_s22, %s7962_s23  }
  0x46   :  { %s7904_s29 = scalar_lea.hbm %s11923_s5, 768 }
  0x47   :  { %p7905_p4 = scmp.ne.s32.totalorder %s11923_s5, %s7904_s29  ;;  %p7908_p5 = scmp.lt.u32.totalorder %s7904_s29, %s11923_s5 }
  0x49   :  { %p7910_p6 = pnand %p7908_p5, %p7905_p4 }
  0x4b   :  { %7913 = shalt.err (!%p7910_p6)
}
  0x4c   :  { %s7914_s4 = scalar_lea.vmem %s71_s17, 768  ;;  %p7919_p8 = scmp.lt.s32.totalorder %s71_s17, %s71_s17 }
  0x4d   :  { %p7915_p7 = scmp.ne.s32.totalorder %s71_s17, %s7914_s4  ;;  %p7920_p9 = scmp.lt.s32.totalorder %s7914_s4, %s7914_s4 }
  0x4f   :  { %p7921_p10 = por %p7920_p9, %p7919_p8 }
  0x51   :  { %p7922_p11 = pnand %p7921_p10, %p7915_p7 }
  0x53   :  { %7925 = shalt.err (!%p7922_p11)
}
  0x54   :  { %76 = dma.hbm_to_vmem [thread:$0]  %s11923_s5, 768, %s71_s17, [#allocation9], %s7957_s7, %s7957_s7, %s7958_s8  }
  0x55   :  { %7948 = dma.done.wait [#allocation3], 256  }
  0x56   :  { %7949 = vsyncadd [#allocation3], 4294967040 }
  0x57   :  { %7950 = dma.done.wait [#allocation6], 1792  }
  0x58   :  { %7951 = vsyncadd [#allocation6], 4294965504 }
  0x59   :  { %7952 = dma.done.wait [#allocation9], 2304  }
  0x5a   :  { %7953 = vsyncadd [#allocation9], 4294964992  ;;  %v98_v0 = vlaneseq  ;;  %v11925_v1 = vmov 0.0   ;;  %vm7966_vm0 = vmmov 0   ;;  %v7186_v6 = vld [vmem:[#allocation8] sm:$0xff]   ;;  %v95_v8 = vld [vmem:[#allocation5] sm:$0xff] }
  0x5b   :  { %7023 = vmatprep.subr.bf16.mxu1 %v11925_v1  ;;  %7027 = vmatprep.mubr.msk.bf16.mxu1 %vm7966_vm0, %v11925_v1  ;;  %v7187_v11 = vld [vmem:[#allocation8 + $0x8] sm:$0xff]   ;;  %v93_v12 = vld [vmem:[#allocation2] sm:$0xff]  ;;  %vm265_vm1 = vcmask 261120   ;;  %v96_v25 = vld [vmem:[#allocation5 + $0x8] sm:$0xff]  ;;  %vm1090_vm2 = vcmask 1041409   ;;  %vm1092_vm3 = vcmask 1042434  }
  0x5c   :  { %v8084_v2 = vshrl.u32 %v98_v0, 7  ;;  %7024 = vmatpush3.bf16.msra.mxu1 %v7186_v6  ;;  %v94_v13 = vld [vmem:[#allocation2 + $0x8] sm:$0xff]  ;;  %v7188_v20 = vld [vmem:[#allocation7] sm:$0xff]   ;;  %vm1094_vm4 = vcmask 1043459   ;;  %vm1096_vm5 = vcmask 1044484   ;;  %vm1098_vm6 = vcmask 1045509  }
  0x5d   :  { %7025 = vmatprep.subr.bf16.mxu1 %v11925_v1  ;;  %v387_v18 = vpack.c.bf16 %v94_v13, %v93_v12  ;;  %v7189_v22 = vld [vmem:[#allocation7 + $0x8] sm:$0xff]   ;;  %7003 = vmatprep.subr.bf16.mxu0 %v7188_v20  ;;  %v8129_v36 = vld [vmem:[#allocation10] sm:$0xff]  ;;  %vm1100_vm7 = vcmask 1046534   ;;  %vm1102_vm8 = vcmask 1047559   ;;  %vm1271_vm9 = vcmask 523520   ;;  %s7969_s13 = smov 96  }
  0x5e   :  { %v8087_v3 = vsub.s32 0, %v8084_v2  ;;  %v8090_v4 = vsub.s32 2, %v8084_v2  ;;  %v8093_v5 = vsub.s32 3, %v8084_v2  ;;  %v8096_v7 = vsub.s32 1, %v8084_v2  ;;  %7004 = vmatpush3.bf16.msra.mxu0 %v7188_v20  ;;  %v6846_v40 = vld [vmem:[%s11920_s2] ss:$0 sm:$0xff] }
  0x5f   :  { %v8102_v14 = vsub.s32 5, %v8084_v2  ;;  %v8105_v15 = vsub.s32 4, %v8084_v2  ;;  %v8110_v19 = vsub.s32 7, %v8084_v2  ;;  %v8113_v21 = vsub.s32 6, %v8084_v2  ;;  %7005 = vmatprep.subr.bf16.mxu0 %v7189_v22  ;;  %s7967_s2 = smov 32  }
  0x60   :  { %12121 = vst [vmem:[#allocation16_spill] sm:$0xff] %v8087_v3  ;;  %12122 = vst [vmem:[#allocation17_spill] sm:$0xff] %v8090_v4  ;;  %v115_v9 = vrot.slane %v95_v8, %v8090_v4  ;;  %v101_v10 = vrot.slane %v95_v8, %v8087_v3  ;;  %v122_v16 = vrot.slane %v95_v8, %v8093_v5  ;;  %7026 = vmatpush3.bf16.msra.mxu1 %v7187_v11 }
  0x61   :  { %12123 = vst [vmem:[#allocation18_spill] sm:$0xff] %v8093_v5  ;;  %12124 = vst [vmem:[#allocation19_spill] sm:$0xff] %v8096_v7  ;;  %v108_v17 = vrot.slane %v95_v8, %v8096_v7  ;;  %v136_v23 = vrot.slane %v95_v8, %v8102_v14  ;;  %v129_v24 = vrot.slane %v95_v8, %v8105_v15 }
  0x62   :  { %12125 = vst [vmem:[#allocation20_spill] sm:$0xff] %v8102_v14  ;;  %12126 = vst [vmem:[#allocation21_spill] sm:$0xff] %v8105_v15  ;;  %117 = vbcast.lane.b32.xlu1 %v115_v9, 256  ;;  %103 = vbcast.lane.b32.xlu0 %v101_v10, 256  ;;  %v150_v26 = vrot.slane %v95_v8, %v8110_v19  ;;  %v143_v27 = vrot.slane %v95_v8, %v8113_v21 }
  0x63   :  { %12127 = vst [vmem:[#allocation22_spill] sm:$0xff] %v8110_v19  ;;  %12128 = vst [vmem:[#allocation23_spill] sm:$0xff] %v8113_v21  ;;  %7028 = vmatmul.mubr.msk.bf16.vlgmr.msra.gmra.mrb[0].mxu1 %vm265_vm1, %v387_v18  ;;  %7006 = vmatpush3.bf16.msra.mxu0 %v7189_v22  ;;  %v164_v28 = vrot.slane %v96_v25, %v8096_v7  ;;  %v157_v29 = vrot.slane %v96_v25, %v8087_v3 }
  0x64   :  { %7051 = vmatprep.subr.bf16.mxu0 %v11925_v1  ;;  %v178_v30 = vrot.slane %v96_v25, %v8093_v5  ;;  %v171_v31 = vrot.slane %v96_v25, %v8090_v4  ;;  %v192_v32 = vrot.slane %v96_v25, %v8102_v14  ;;  %v185_v33 = vrot.slane %v96_v25, %v8105_v15 }
  0x65   :  { %v206_v34 = vrot.slane %v96_v25, %v8110_v19  ;;  %v199_v35 = vrot.slane %v96_v25, %v8113_v21  ;;  %v463_v37 = vrot.slane %v8129_v36, %v8093_v5 }
  0x66   :  { %124 = vbcast.lane.b32.xlu1 %v122_v16, 256  ;;  %110 = vbcast.lane.b32.xlu0 %v108_v17, 256 }
  0x6a   :  { %138 = vbcast.lane.b32.xlu1 %v136_v23, 256  ;;  %131 = vbcast.lane.b32.xlu0 %v129_v24, 256 }
  0x6e   :  { %152 = vbcast.lane.b32.xlu1 %v150_v26, 256  ;;  %145 = vbcast.lane.b32.xlu0 %v143_v27, 256 }
  0x72   :  { %166 = vbcast.lane.b32.xlu1 %v164_v28, 256  ;;  %159 = vbcast.lane.b32.xlu0 %v157_v29, 256 }
  0x76   :  { %180 = vbcast.lane.b32.xlu1 %v178_v30, 256  ;;  %173 = vbcast.lane.b32.xlu0 %v171_v31, 256  ;;  %v453_v30 = vrot.slane %v8129_v36, %v8090_v4 }
  0x7a   :  { %194 = vbcast.lane.b32.xlu1 %v192_v32, 256  ;;  %187 = vbcast.lane.b32.xlu0 %v185_v33, 256  ;;  %v7968_v33 = vmov 1966171168  }
  0x7e   :  { %208 = vbcast.lane.b32.xlu1 %v206_v34, 256  ;;  %201 = vbcast.lane.b32.xlu0 %v199_v35, 256  ;;  %v474_v34 = vunpack.c.l.s4 %v7968_v33 }
  0x80   :  { %v475_v35 = vunpack.c.0.s8 %v474_v34 }
  0x82   :  { %465 = vrot.lane.b32.xlu0 %v463_v37, %s7961_s22  ;;  %v447_v37 = vrot.slane %v8129_v36, %v8096_v7 }
  0xd4   :  { %v118_v38 = vpop.permute.xlu1 %117  ;;  %v104_v39 = vpop.permute.xlu0 %103 }
  0xd5   :  { %v8137_v43 = vmul.f32 %v6846_v40, %v118_v38  ;;  %v8139_v44 = vmul.f32 %v6846_v40, %v104_v39  ;;  %v8209_v38 = vsub.s32 %v475_v35, %v8084_v2 }
  0xd7   :  { %12129 = vst [vmem:[#allocation24_spill] sm:$0xff] %v8137_v43  ;;  %12130 = vst [vmem:[#allocation25_spill] sm:$0xff] %v8139_v44 }
  0xd8   :  { %v125_v41 = vpop.permute.xlu1 %124  ;;  %v111_v42 = vpop.permute.xlu0 %110  ;;  %12147 = vst [vmem:[#allocation42_spill] sm:$0xff] %v8209_v38 }
  0xd9   :  { %v8141_v45 = vmul.f32 %v6846_v40, %v125_v41  ;;  %v8143_v46 = vmul.f32 %v6846_v40, %v111_v42 }
  0xdb   :  { %12131 = vst [vmem:[#allocation26_spill] sm:$0xff] %v8141_v45  ;;  %12132 = vst [vmem:[#allocation27_spill] sm:$0xff] %v8143_v46  ;;  %v242_v47 = vpack.c.bf16 %v8141_v45, %v8137_v43  ;;  %v241_v48 = vpack.c.bf16 %v8143_v46, %v8139_v44 }
  0xdc   :  { %v139_v49 = vpop.permute.xlu1 %138  ;;  %v132_v50 = vpop.permute.xlu0 %131 }
  0xdd   :  { %v8149_v51 = vmul.f32 %v6846_v40, %v139_v49  ;;  %7007 = vmatprep.mubr.msk.bf16.mxu0 %vm265_vm1, %v241_v48  ;;  %v8152_v52 = vmul.f32 %v6846_v40, %v132_v50 }
  0xde   :  { %7008 = vmatmul.mubr.msk.bf16.vlgmr.msra.gmra.mrb[0].mxu0 %vm265_vm1, %v242_v47 }
  0xdf   :  { %12133 = vst [vmem:[#allocation28_spill] sm:$0xff] %v8149_v51  ;;  %12134 = vst [vmem:[#allocation29_spill] sm:$0xff] %v8152_v52  ;;  %v243_v53 = vpack.c.bf16 %v8149_v51, %v8152_v52 }
  0xe0   :  { %v153_v54 = vpop.permute.xlu1 %152  ;;  %v146_v55 = vpop.permute.xlu0 %145 }
  0xe1   :  { %v8157_v56 = vmul.f32 %v6846_v40, %v153_v54  ;;  %v8159_v57 = vmul.f32 %v6846_v40, %v146_v55  ;;  %7011 = vmatprep.mubr.msk.bf16.mxu0 %vm265_vm1, %v243_v53 }
  0xe3   :  { %12135 = vst [vmem:[#allocation30_spill] sm:$0xff] %v8157_v56  ;;  %12136 = vst [vmem:[#allocation31_spill] sm:$0xff] %v8159_v57  ;;  %v244_v58 = vpack.c.bf16 %v8157_v56, %v8159_v57 }
  0xe4   :  { %v167_v59 = vpop.permute.xlu1 %166  ;;  %v160_v60 = vpop.permute.xlu0 %159 }
  0xe5   :  { %v8164_v61 = vmul.f32 %v6846_v40, %v167_v59  ;;  %v8166_v62 = vmul.f32 %v6846_v40, %v160_v60  ;;  %v8233_v60 = vrot.slane %v8129_v36, %v8087_v3 }
  0xe6   :  { %7012 = vmatmul.mubr.msk.bf16.gmra.mrb[4].mxu0 %vm265_vm1, %v244_v58 }
  0xe7   :  { %12137 = vst [vmem:[#allocation32_spill] sm:$0xff] %v8164_v61  ;;  %12138 = vst [vmem:[#allocation33_spill] sm:$0xff] %v8166_v62  ;;  %v245_v63 = vpack.c.bf16 %v8164_v61, %v8166_v62 }
  0xe8   :  { %v181_v0 = vpop.permute.xlu1 %180  ;;  %v174_v6 = vpop.permute.xlu0 %173 }
  0xe9   :  { %v8171_v8 = vmul.f32 %v6846_v40, %v181_v0  ;;  %v8173_v9 = vmul.f32 %v6846_v40, %v174_v6  ;;  %7015 = vmatprep.mubr.msk.bf16.mxu0 %vm265_vm1, %v245_v63 }
  0xeb   :  { %12139 = vst [vmem:[#allocation34_spill] sm:$0xff] %v8171_v8  ;;  %12140 = vst [vmem:[#allocation35_spill] sm:$0xff] %v8173_v9  ;;  %v246_v10 = vpack.c.bf16 %v8171_v8, %v8173_v9 }
  0xec   :  { %v195_v11 = vpop.permute.xlu1 %194  ;;  %v188_v12 = vpop.permute.xlu0 %187 }
  0xed   :  { %v8178_v13 = vmul.f32 %v6846_v40, %v195_v11  ;;  %v8180_v16 = vmul.f32 %v6846_v40, %v188_v12 }
  0xee   :  { %7016 = vmatmul.mubr.msk.bf16.gmra.mrb[8].mxu0 %vm265_vm1, %v246_v10 }
  0xef   :  { %12141 = vst [vmem:[#allocation36_spill] sm:$0xff] %v8178_v13  ;;  %12142 = vst [vmem:[#allocation37_spill] sm:$0xff] %v8180_v16  ;;  %v247_v17 = vpack.c.bf16 %v8178_v13, %v8180_v16 }
  0xf0   :  { %v209_v18 = vpop.permute.xlu1 %208  ;;  %v202_v20 = vpop.permute.xlu0 %201 }
  0xf1   :  { %v8185_v22 = vmul.f32 %v6846_v40, %v209_v18  ;;  %v8187_v23 = vmul.f32 %v6846_v40, %v202_v20  ;;  %7019 = vmatprep.mubr.msk.bf16.mxu0 %vm265_vm1, %v247_v17 }
  0xf3   :  { %12143 = vst [vmem:[#allocation38_spill] sm:$0xff] %v8185_v22  ;;  %12144 = vst [vmem:[#allocation39_spill] sm:$0xff] %v8187_v23  ;;  %v248_v24 = vpack.c.bf16 %v8185_v22, %v8187_v23 }
  0xf4   :  { %v466_v25 = vpop.permute.xlu0 %465 }
  0xf6   :  { %7020 = vmatmul.mubr.msk.bf16.gmra.mrb[12].mxu0 %vm265_vm1, %v248_v24 }
  0xf7   :  { %7055 = vmatprep.mubr.msk.bf16.mxu0 %vm7966_vm0, %v11925_v1 }
 0x136   :  { %v8195_v26 = vpop.f32.mrb[0].mxu1 }
 0x137   :  { %12145 = vst [vmem:[#allocation40_spill] sm:$0xff] %v8195_v26  ;;  %v468_v27 = vadd.f32 %v466_v25, %v8195_v26  ;;  %v7029_v28 = vpop.f32.mrb[1].mxu1  ;;  %v8212_v39 = vadd.f32 %v447_v37, %v8195_v26 }
 0x138   :  { %v8198_v29 = vpop.f32.mrb[2].mxu1 }
 0x139   :  { %12146 = vst [vmem:[#allocation41_spill] sm:$0xff] %v8198_v29  ;;  %780 = vrot.lane.b32.xlu1 %v468_v27, %s7961_s22  ;;  %v469_v31 = vadd.f32 %v466_v25, %v8198_v29  ;;  %v7030_v32 = vpop.f32.mrb[3].mxu1  ;;  %v479_v40 = vrot.slane %v8212_v39, %v8209_v38  ;;  %v472_v41 = vcombine.high %v8212_v39, %v8212_v39 }
 0x13a   :  { %v8219_v42 = vadd.f32 %v447_v37, %v8198_v29 }
 0x13b   :  { %782 = vrot.lane.b32.xlu0 %v469_v31, %s7961_s22  ;;  %v487_v47 = vcombine.high %v479_v40, %v479_v40  ;;  %v486_v48 = vrot.slane %v472_v41, %v8209_v38  ;;  %v495_v49 = vrot.slane %v479_v40, %v8209_v38 }
 0x13c   :  { %v528_v2 = vrot.slane %v8219_v42, %v8209_v38  ;;  %v521_v54 = vcombine.high %v8219_v42, %v8219_v42 }
 0x13d   :  { %455 = vrot.lane.b32.xlu1 %v453_v30, %s7967_s2  ;;  %v509_v50 = vrot.slane %v487_v47, %v8209_v38  ;;  %v8227_v53 = vrot.slane %v486_v48, %v8209_v38  ;;  %v488_v55 = vcombine.high %v486_v48, %v486_v48  ;;  %v517_v58 = vcombine.high %v495_v49, %v495_v49 }
 0x13e   :  { %v536_v59 = vcombine.high %v528_v2, %v528_v2  ;;  %v8236_v63 = vrot.slane %v528_v2, %v8209_v38  ;;  %v535_v10 = vrot.slane %v521_v54, %v8209_v38  ;;  %v573_v18 = vrot.slane %v495_v49, %v8087_v3 }
 0x13f   :  { %v519_v0 = vcombine.high %v509_v50, %v509_v50  ;;  %v518_v6 = vcombine.high %v8227_v53, %v8227_v53  ;;  %v8242_v11 = vrot.slane %v488_v55, %v8209_v38  ;;  %v581_v17 = vrot.slane %v517_v58, %v8087_v3 }
 0x140   :  { %v577_v36 = vrot.slane %v509_v50, %v8087_v3  ;;  %v8248_v20 = vrot.slane %v536_v59, %v8209_v38  ;;  %v589_v27 = vrot.slane %v8227_v53, %v8087_v3  ;;  %v566_v28 = vcombine.high %v8236_v63, %v8236_v63 }
 0x141   :  { %v585_v33 = vrot.slane %v519_v0, %v8087_v3  ;;  %v597_v34 = vrot.slane %v518_v6, %v8087_v3  ;;  %v8261_v35 = vrot.slane %v535_v10, %v8209_v38  ;;  %v520_v47 = vcombine.high %v8242_v11, %v8242_v11 }
 0x142   :  { %v537_v48 = vcombine.high %v535_v10, %v535_v10  ;;  %v593_v50 = vrot.slane %v8242_v11, %v8087_v3  ;;  %v568_v53 = vcombine.high %v8248_v20, %v8248_v20  ;;  %v8275_v58 = vrot.slane %v566_v28, %v8087_v3 }
 0x143   :  { %v567_v10 = vcombine.high %v8261_v35, %v8261_v35 }
 0x1ab   :  { %v8402_v21 = vpop.permute.xlu1 %780 }
 0x1ad   :  { %v8472_v46 = vpop.permute.xlu0 %782 }
 0x1b1   :  { %v7009_v12 = vpop.f32.mrb[0].mxu0 }
 0x1b2   :  { %v333_v24 = vadd.f32 %v7009_v12, %v8233_v60  ;;  %v324_v25 = vpop.f32.mrb[1].mxu0 }
 0x1b3   :  { %v325_v31 = vadd.f32 %v324_v25, %v8233_v60  ;;  %v7010_v32 = vpop.f32.mrb[2].mxu0 }
 0x1b4   :  { %v652_v37 = vadd.f32 %v581_v17, %v333_v24  ;;  %v336_v40 = vadd.f32 %v7010_v32, %v8233_v60  ;;  %v327_v41 = vpop.f32.mrb[3].mxu0  ;;  %v8292_v24 = vrot.slane %v537_v48, %v8209_v38  ;;  %v8301_v32 = vrot.slane %v568_v53, %v8087_v3 }
 0x1b5   :  { %v650_v49 = vadd.f32 %v573_v18, %v325_v31  ;;  %v328_v2 = vadd.f32 %v327_v41, %v8233_v60  ;;  %v601_v18 = vrot.slane %v520_v47, %v8087_v3 }
 0x1b6   :  { %v8272_v54 = vadd.f32 %v652_v37, %v8212_v39  ;;  %v653_v55 = vadd.f32 %v585_v33, %v336_v40 }
 0x1b7   :  { %v8280_v0 = vadd.f32 %v650_v49, %v8212_v39  ;;  %v651_v6 = vadd.f32 %v577_v36, %v328_v2 }
 0x1b8   :  { %v684_v12 = vsub.f32 0.0, %v8272_v54  ;;  %v8288_v17 = vadd.f32 %v653_v55, %v8212_v39  ;;  %v1122_v25 = vsel %vm265_vm1, %v8272_v54, 0.0 }
 0x1b9   :  { %v682_v36 = vsub.f32 0.0, %v8280_v0  ;;  %v8298_v28 = vadd.f32 %v651_v6, %v8212_v39  ;;  %v7013_v31 = vpop.f32.mrb[4].mxu0  ;;  %v1119_v37 = vsel %vm265_vm1, %v8280_v0, 0.0 }
 0x1ba   :  { %v702_v33 = vmul.f32 1.442695, %v684_v12  ;;  %v685_v40 = vsub.f32 0.0, %v8288_v17  ;;  %v349_v41 = vadd.f32 %v7013_v31, %v8233_v60  ;;  %v340_v47 = vpop.f32.mrb[5].mxu0 }
 0x1bb   :  { %v698_v48 = vmul.f32 1.442695, %v682_v36  ;;  %v683_v49 = vsub.f32 0.0, %v8298_v28  ;;  %v1120_v2 = vsel %vm265_vm1, %v8298_v28, 0.0  ;;  %v341_v55 = vadd.f32 %v340_v47, %v8233_v60  ;;  %v7014_v6 = vpop.f32.mrb[6].mxu0 }
 0x1bc   :  { %7210 = vpow2.f32 %v702_v33  ;;  %v704_v53 = vmul.f32 1.442695, %v685_v40  ;;  %v1121_v12 = vadd.f32 %v1120_v2, %v1119_v37  ;;  %v656_v1 = vadd.f32 %v597_v34, %v349_v41  ;;  %v343_v11 = vpop.f32.mrb[7].mxu0 }
 0x1bd   :  { %7212 = vpow2.f32 %v698_v48  ;;  %v700_v59 = vmul.f32 1.442695, %v683_v49  ;;  %v654_v30 = vadd.f32 %v589_v27, %v341_v55  ;;  %v352_v31 = vadd.f32 %v7014_v6, %v8233_v60 }
 0x1be   :  { %7214 = vpow2.f32 %v704_v53  ;;  %v1123_v36 = vadd.f32 %v1122_v25, %v1121_v12  ;;  %v8313_v38 = vadd.f32 %v656_v1, %v8212_v39  ;;  %v344_v4 = vadd.f32 %v343_v11, %v8233_v60 }
 0x1bf   :  { %v1124_v47 = vsel %vm265_vm1, %v8288_v17, 0.0  ;;  %7216 = vpow2.f32 %v700_v59  ;;  %v8319_v33 = vadd.f32 %v654_v30, %v8212_v39  ;;  %v657_v34 = vadd.f32 %v601_v18, %v352_v31 }
 0x1c0   :  { %v688_v37 = vsub.f32 0.0, %v8313_v38  ;;  %v1125_v27 = vadd.f32 %v1124_v47, %v1123_v36  ;;  %v655_v40 = vadd.f32 %v593_v50, %v344_v4  ;;  %v8323_v41 = vrot.slane %v567_v10, %v8087_v3 }
 0x1c1   :  { %v686_v1 = vsub.f32 0.0, %v8319_v33  ;;  %v1126_v11 = vsel %vm265_vm1, %v8319_v33, 0.0  ;;  %v8329_v25 = vadd.f32 %v657_v34, %v8212_v39  ;;  %v7017_v59 = vpop.f32.mrb[8].mxu0  ;;  %v569_v30 = vcombine.high %v8292_v24, %v8292_v24 }
 0x1c2   :  { %v710_v18 = vmul.f32 1.442695, %v688_v37  ;;  %v1127_v48 = vadd.f32 %v1126_v11, %v1125_v27  ;;  %v8334_v49 = vadd.f32 %v655_v40, %v8212_v39  ;;  %v365_v4 = vadd.f32 %v7017_v59, %v8233_v60  ;;  %v356_v50 = vpop.f32.mrb[9].mxu0 }
 0x1c3   :  { %v1130_v10 = vsel %vm265_vm1, %v8313_v38, 0.0  ;;  %v706_v2 = vmul.f32 1.442695, %v686_v1  ;;  %v689_v55 = vsub.f32 0.0, %v8329_v25  ;;  %v357_v6 = vadd.f32 %v356_v50, %v8233_v60  ;;  %v7018_v53 = vpop.f32.mrb[10].mxu0 }
 0x1c4   :  { %v1132_v12 = vsel %vm265_vm1, %v8329_v25, 0.0  ;;  %v687_v31 = vsub.f32 0.0, %v8334_v49  ;;  %v1128_v39 = vsel %vm265_vm1, %v8334_v49, 0.0  ;;  %v660_v36 = vadd.f32 %v8275_v58, %v365_v4  ;;  %v359_v47 = vpop.f32.mrb[11].mxu0 }
 0x1c5   :  { %7218 = vpow2.f32 %v706_v2  ;;  %v712_v34 = vmul.f32 1.442695, %v689_v55  ;;  %v1129_v37 = vadd.f32 %v1128_v39, %v1127_v48  ;;  %v12148_v27 = vrot.slane %v8236_v63, %v8087_v3 }
 0x1c6   :  { %v7211_v1 = vpop.eup %7210  ;;  %7220 = vpow2.f32 %v710_v18  ;;  %v708_v11 = vmul.f32 1.442695, %v687_v31  ;;  %v8351_v59 = vadd.f32 %v660_v36, %v8219_v42  ;;  %v368_v50 = vadd.f32 %v7018_v53, %v8233_v60 }
 0x1c7   :  { %v658_v40 = vadd.f32 %v12148_v27, %v357_v6  ;;  %v7213_v7 = vpop.eup %7212  ;;  %v732_v5 = vadd.f32 1.0, %v7211_v1  ;;  %7222 = vpow2.f32 %v712_v34  ;;  %v1131_v58 = vadd.f32 %v1130_v10, %v1129_v37 }
 0x1c8   :  { %v7215_v48 = vpop.eup %7214  ;;  %v730_v2 = vadd.f32 1.0, %v7213_v7  ;;  %7224 = vpow2.f32 %v708_v11  ;;  %v692_v63 = vsub.f32 0.0, %v8351_v59  ;;  %v360_v18 = vadd.f32 %v359_v47, %v8233_v60 }
 0x1c9   :  { %v8355_v4 = vadd.f32 %v658_v40, %v8219_v42  ;;  %v7217_v55 = vpop.eup %7216  ;;  %7226 = vrcp.f32 %v732_v5  ;;  %v733_v6 = vadd.f32 1.0, %v7215_v48  ;;  %v1133_v53 = vadd.f32 %v1132_v12, %v1131_v58  ;;  %v7021_v39 = vpop.f32.mrb[12].mxu0 }
 0x1ca   :  { %7228 = vrcp.f32 %v730_v2  ;;  %v731_v36 = vadd.f32 1.0, %v7217_v55  ;;  %v718_v10 = vmul.f32 1.442695, %v692_v63  ;;  %v372_v37 = vpop.f32.mrb[13].mxu0  ;;  %v661_v40 = vadd.f32 %v8301_v32, %v368_v50  ;;  %v7190_v55 = vld [vmem:[#allocation7 + $0x10] sm:$0xff]  }
 0x1cb   :  { %v690_v31 = vsub.f32 0.0, %v8355_v4  ;;  %v1134_v34 = vsel %vm265_vm1, %v8355_v4, 0.0  ;;  %7230 = vrcp.f32 %v733_v6  ;;  %v7022_v47 = vpop.f32.mrb[14].mxu0  ;;  %v12149_v5 = vrot.slane %v8248_v20, %v8087_v3  ;;  %v7191_v6 = vld [vmem:[#allocation7 + $0x18] sm:$0xff]   ;;  %7031 = vmatprep.subr.bf16.mxu1 %v7190_v55 }
 0x1cc   :  { %v1135_v27 = vadd.f32 %v1134_v34, %v1133_v53  ;;  %7232 = vrcp.f32 %v731_v36  ;;  %v381_v12 = vadd.f32 %v7021_v39, %v8233_v60  ;;  %v373_v11 = vadd.f32 %v372_v37, %v8233_v60  ;;  %v8368_v58 = vpop.f32.mrb[15].mxu0  ;;  %7032 = vmatpush3.bf16.msra.mxu1 %v7190_v55 }
 0x1cd   :  { %v714_v7 = vmul.f32 1.442695, %v690_v31  ;;  %v659_v1 = vadd.f32 %v12149_v5, %v360_v18  ;;  %7234 = vpow2.f32 %v718_v10  ;;  %v8371_v48 = vadd.f32 %v661_v40, %v8219_v42  ;;  %7033 = vmatprep.subr.bf16.mxu1 %v7191_v6 }
 0x1ce   :  { %v384_v2 = vadd.f32 %v7022_v47, %v8233_v60  ;;  %v633_v32 = vrot.slane %v569_v30, %v8087_v3  ;;  %v664_v20 = vadd.f32 %v8323_v41, %v381_v12  ;;  %v12150_v63 = vrot.slane %v8261_v35, %v8087_v3 }
 0x1cf   :  { %7236 = vpow2.f32 %v714_v7  ;;  %v8376_v50 = vadd.f32 %v659_v1, %v8219_v42  ;;  %v7219_v31 = vpop.eup %7218  ;;  %v693_v53 = vsub.f32 0.0, %v8371_v48  ;;  %v1138_v5 = vsel %vm265_vm1, %v8351_v59, 0.0 }
 0x1d0   :  { %v662_v18 = vadd.f32 %v12150_v63, %v373_v11  ;;  %v8383_v39 = vadd.f32 %v633_v32, %v384_v2  ;;  %v7221_v36 = vpop.eup %7220  ;;  %v8389_v34 = vadd.f32 %v664_v20, %v8219_v42  ;;  %v734_v35 = vadd.f32 1.0, %v7219_v31  ;;  %7034 = vmatpush3.bf16.msra.mxu1 %v7191_v6 }
 0x1d1   :  { %v691_v30 = vsub.f32 0.0, %v8376_v50  ;;  %v1136_v10 = vsel %vm265_vm1, %v8376_v50, 0.0  ;;  %v7223_v41 = vpop.eup %7222  ;;  %v720_v37 = vmul.f32 1.442695, %v693_v53  ;;  %v736_v20 = vadd.f32 1.0, %v7221_v36 }
 0x1d2   :  { %v1137_v7 = vadd.f32 %v1136_v10, %v1135_v27  ;;  %v8392_v40 = vadd.f32 %v662_v18, %v8219_v42  ;;  %v7225_v47 = vpop.eup %7224 }
 0x1d3   :  { %v716_v1 = vmul.f32 1.442695, %v691_v30  ;;  %v7227_v12 = vpop.eup %7226  ;;  %7238 = vpow2.f32 %v720_v37  ;;  %v735_v53 = vadd.f32 1.0, %v7225_v47  ;;  %v12151_v30 = vmov 0.0  }
 0x1d4   :  { %v1139_v11 = vadd.f32 %v1138_v5, %v1137_v7  ;;  %v7229_v2 = vpop.eup %7228  ;;  %v928_v32 = vsel %vm265_vm1, %v7227_v12, 0.0  ;;  %7240 = vrcp.f32 %v734_v35  ;;  %7079 = vmatprep.subr.bf16.mxu1 %v12151_v30  ;;  %v737_v37 = vadd.f32 1.0, %v7223_v41 }
 0x1d5   :  { %v8397_v63 = vpop.eup %7230  ;;  %v914_v27 = vsel %vm265_vm1, %v7229_v2, 0.0  ;;  %v929_v55 = vrot.slane %v928_v32, 4  ;;  %7242 = vpow2.f32 %v716_v1  ;;  %v696_v7 = vsub.f32 0.0, %v8389_v34 }
 0x1d6   :  { %v7233_v18 = vpop.eup %7232  ;;  %v915_v31 = vrot.slane %v914_v27, 4  ;;  %v935_v19 = vsel %vm265_vm1, %v8397_v63, 0.0  ;;  %7244 = vrcp.f32 %v736_v20  ;;  %v788_v35 = vmul.f32 %v7227_v12, %v8402_v21 }
 0x1d7   :  { %v7235_v10 = vpop.eup %7234  ;;  %v921_v6 = vsel %vm265_vm1, %v7233_v18, 0.0  ;;  %v930_v1 = vadd.f32 %v929_v55, %v928_v32  ;;  %7246 = vrcp.f32 %v735_v53  ;;  %v936_v30 = vrot.slane %v935_v19, 4 }
 0x1d8   :  { %v916_v36 = vadd.f32 %v915_v31, %v914_v27  ;;  %v922_v47 = vrot.slane %v921_v6, 4  ;;  %v740_v29 = vadd.f32 1.0, %v7235_v10  ;;  %7248 = vrcp.f32 %v737_v37 }
 0x1d9   :  { %v7237_v5 = vpop.eup %7236  ;;  %v726_v22 = vmul.f32 1.442695, %v696_v7  ;;  %v694_v27 = vsub.f32 0.0, %v8392_v40  ;;  %v625_v31 = vrot.slane %v8292_v24, %v8087_v3  ;;  %v816_v20 = vsel %vm265_vm1, %v788_v35, 0.0 }
 0x1da   :  { %v738_v26 = vadd.f32 1.0, %v7237_v5  ;;  %v917_v41 = vrot.slane %v916_v36, 2  ;;  %7250 = vrcp.f32 %v740_v29  ;;  %v786_v12 = vmul.f32 %v7229_v2, %v8402_v21 }
 0x1db   :  { %v787_v32 = vmul.f32 %v7233_v18, %v8402_v21  ;;  %v923_v55 = vadd.f32 %v922_v47, %v921_v6  ;;  %v931_v53 = vrot.slane %v930_v1, 2  ;;  %v376_v37 = vadd.f32 %v8368_v58, %v8233_v60 }
 0x1dc   :  { %7252 = vrcp.f32 %v738_v26  ;;  %v918_v7 = vadd.f32 %v917_v41, %v916_v36  ;;  %v937_v5 = vadd.f32 %v936_v30, %v935_v19  ;;  %v1140_v24 = vsel %vm265_vm1, %v8371_v48, 0.0 }
 0x1dd   :  { %v7239_v23 = vpop.eup %7238  ;;  %7254 = vpow2.f32 %v726_v22  ;;  %v817_v3 = vrot.slane %v816_v20, 4  ;;  %v1146_v2 = vsel %vm265_vm1, %v8389_v34, 0.0  ;;  %v722_v18 = vmul.f32 1.442695, %v694_v27 }
 0x1de   :  { %v741_v10 = vadd.f32 1.0, %v7239_v23  ;;  %v8416_v29 = vpop.eup %7240  ;;  %v8423_v23 = vsel %vm265_vm1, %v786_v12, 0.0  ;;  %v8426_v26 = vsel %vm265_vm1, %v787_v32, 0.0  ;;  %v924_v60 = vrot.slane %v923_v55, 2 }
 0x1df   :  { %v7243_v35 = vpop.eup %7242  ;;  %v8430_v30 = vadd.f32 %v931_v53, %v930_v1  ;;  %v1141_v22 = vadd.f32 %v1140_v24, %v1139_v11  ;;  %v1142_v36 = vsel %vm265_vm1, %v8392_v40, 0.0  ;;  %v919_v6 = vrot.slane %v918_v7, 1 }
 0x1e0   :  { %7256 = vrcp.f32 %v741_v10  ;;  %v739_v58 = vadd.f32 1.0, %v7243_v35  ;;  %v8428_v19 = vpop.eup %7244  ;;  %v938_v47 = vrot.slane %v937_v5, 2  ;;  %v942_v41 = vsel %vm265_vm1, %v8416_v29, 0.0 }
 0x1e1   :  { %7258 = vpow2.f32 %v722_v18  ;;  %v8436_v27 = vpop.eup %7246  ;;  %v1143_v32 = vadd.f32 %v1142_v36, %v1141_v22  ;;  %v8441_v1 = vadd.f32 %v8383_v39, %v8219_v42  ;;  %v663_v53 = vadd.f32 %v625_v31, %v376_v37 }
 0x1e2   :  { %7260 = vrcp.f32 %v739_v58  ;;  %v8443_v11 = vpop.eup %7248  ;;  %v8445_v10 = vadd.f32 %v817_v3, %v816_v20  ;;  %v925_v35 = vadd.f32 %v924_v60, %v923_v55  ;;  %v8450_v18 = vsel %vm265_vm1, %v8428_v19, 0.0 }
 0x1e3   :  { %v933_v12 = vrot.slane %v8430_v30, 1  ;;  %v943_v22 = vrot.slane %v942_v41, 4  ;;  %v697_v36 = vsub.f32 0.0, %v8441_v1  ;;  %v8455_v39 = vadd.f32 %v663_v53, %v8219_v42 }
 0x1e4   :  { %v7251_v58 = vpop.eup %7250  ;;  %v920_v31 = vadd.f32 %v919_v6, %v918_v7  ;;  %v8457_v37 = vadd.f32 %v938_v47, %v937_v5  ;;  %v949_v3 = vsel %vm265_vm1, %v8436_v27, 0.0  ;;  %v926_v9 = vrot.slane %v925_v35, 1 }
 0x1e5   :  { %v984_v20 = vsel %vm265_vm1, %v7251_v58, 0.0  ;;  %v728_v24 = vmul.f32 1.442695, %v697_v36  ;;  %v695_v13 = vsub.f32 0.0, %v8455_v39  ;;  %v1144_v16 = vsel %vm265_vm1, %v8455_v39, 0.0 }
 0x1e6   :  { %v7253_v55 = vpop.eup %7252  ;;  %v985_v60 = vrot.slane %v984_v20, 4  ;;  %v1145_v5 = vadd.f32 %v1144_v16, %v1143_v32  ;;  %v8467_v47 = vadd.f32 %v943_v22, %v942_v41  ;;  %v950_v56 = vrot.slane %v949_v3, 4 }
 0x1e7   :  { %v7255_v8 = vpop.eup %7254  ;;  %v970_v7 = vsel %vm265_vm1, %v7253_v55, 0.0  ;;  %v724_v57 = vmul.f32 1.442695, %v695_v13  ;;  %v1026_v45 = vadd.f32 1e-20, %v920_v31  ;;  %7262 = vpow2.f32 %v728_v24 }
 0x1e8   :  { %v986_v53 = vadd.f32 %v985_v60, %v984_v20  ;;  %v971_v61 = vrot.slane %v970_v7, 4  ;;  %v744_v62 = vadd.f32 1.0, %v7255_v8  ;;  %v1147_v51 = vadd.f32 %v1146_v2, %v1145_v5 }
 0x1e9   :  { %v1148_v42 = vsel %vm265_vm1, %v8441_v1, 0.0  ;;  %7264 = vpow2.f32 %v724_v57  ;;  %v8477_v24 = vadd.f32 %v933_v12, %v8430_v30  ;;  %v927_v31 = vadd.f32 %v926_v9, %v925_v35 }
 0x1ea   :  { %v7257_v6 = vpop.eup %7256  ;;  %v972_v43 = vadd.f32 %v971_v61, %v970_v7  ;;  %v987_v41 = vrot.slane %v986_v53, 2  ;;  %v1149_v22 = vadd.f32 %v1148_v42, %v1147_v51  ;;  %7266 = vrcp.f32 %v744_v62 }
 0x1eb   :  { %v991_v36 = vsel %vm265_vm1, %v7257_v6, 0.0  ;;  %v7259_v52 = vpop.eup %7258  ;;  %v794_v61 = vmul.f32 %v7253_v55, %v8472_v46  ;;  %v796_v42 = vmul.f32 %v7251_v58, %v8472_v46  ;;  %v8482_v62 = vadd.f32 %v950_v56, %v949_v3 }
 0x1ec   :  { %v7261_v16 = vpop.eup %7260  ;;  %v742_v32 = vadd.f32 1.0, %v7259_v52  ;;  %v973_v8 = vrot.slane %v972_v43, 2  ;;  %v992_v20 = vrot.slane %v991_v36, 4  ;;  %v1150_v2 = vrot.slane %v1149_v22, 4 }
 0x1ed   :  { %v977_v60 = vsel %vm265_vm1, %v7261_v16, 0.0  ;;  %v795_v5 = vmul.f32 %v7261_v16, %v8472_v46  ;;  %v858_v30 = vsel %vm265_vm1, %v794_v61, 0.0  ;;  %v1027_v9 = vadd.f32 1e-20, %v927_v31 }
 0x1ee   :  { %v978_v13 = vrot.slane %v977_v60, 4  ;;  %7268 = vrcp.f32 %v742_v32  ;;  %v974_v7 = vadd.f32 %v973_v8, %v972_v43  ;;  %v1151_v57 = vadd.f32 %v1150_v2, %v1149_v22 }
 0x1ef   :  { %7270 = vrcp.f32 %v1026_v45  ;;  %v988_v32 = vadd.f32 %v987_v41, %v986_v53  ;;  %v993_v44 = vadd.f32 %v992_v20, %v991_v36  ;;  %v865_v43 = vsel %vm265_vm1, %v795_v5, 0.0 }
 0x1f0   :  { %v979_v51 = vadd.f32 %v978_v13, %v977_v60  ;;  %v975_v15 = vrot.slane %v974_v7, 1  ;;  %v1152_v14 = vrot.slane %v1151_v57, 2  ;;  %v8488_v12 = vmul.f32 %v8397_v63, %v8402_v21 }
 0x1f1   :  { %v8492_v35 = vmul.f32 %v8416_v29, %v8402_v21  ;;  %v872_v58 = vsel %vm265_vm1, %v796_v42, 0.0  ;;  %v12152_v3 = vrot.slane %v8423_v23, 4  ;;  %v7263_v36 = vpop.eup %7262  ;;  %v989_v16 = vrot.slane %v988_v32, 1 }
 0x1f2   :  { %v980_v55 = vrot.slane %v979_v51, 2  ;;  %v1153_v56 = vadd.f32 %v1152_v14, %v1151_v57  ;;  %v994_v41 = vrot.slane %v993_v44, 2  ;;  %v797_v22 = vmul.f32 %v7257_v6, %v8472_v46 }
 0x1f3   :  { %v804_v53 = vadd.f32 %v12152_v3, %v8423_v23  ;;  %v859_v8 = vrot.slane %v858_v30, 4  ;;  %v7265_v63 = vpop.eup %7264  ;;  %v976_v20 = vadd.f32 %v975_v15, %v974_v7  ;;  %v866_v13 = vrot.slane %v865_v43, 4 }
 0x1f4   :  { %v981_v45 = vadd.f32 %v980_v55, %v979_v51  ;;  %v1154_v60 = vrot.slane %v1153_v56, 1  ;;  %v8501_v29 = vmul.f32 %v8436_v27, %v8402_v21  ;;  %v8503_v14 = vpop.eup %7266  ;;  %7272 = vrcp.f32 %v1027_v9 }
 0x1f5   :  { %v8507_v23 = vmul.f32 %v8428_v19, %v8402_v21  ;;  %v8511_v6 = vmul.f32 %v8443_v11, %v8402_v21  ;;  %v743_v15 = vadd.f32 1.0, %v7265_v63  ;;  %v873_v7 = vrot.slane %v872_v58, 4 }
 0x1f6   :  { %v982_v2 = vrot.slane %v981_v45, 1  ;;  %v1155_v31 = vadd.f32 %v1154_v60, %v1153_v56  ;;  %v805_v5 = vrot.slane %v804_v53, 2  ;;  %v8513_v51 = vadd.f32 %v989_v16, %v988_v32 }
 0x1f7   :  { %v8515_v27 = vadd.f32 %v994_v41, %v993_v44  ;;  %v8517_v57 = vadd.f32 %v859_v8, %v858_v30  ;;  %v8520_v42 = vsel %vm265_vm1, %v797_v22, 0.0  ;;  %v1034_v19 = vadd.f32 1e-20, %v976_v20 }
 0x1f8   :  { %v7269_v61 = vpop.eup %7268  ;;  %v745_v55 = vadd.f32 1.0, %v7263_v36  ;;  %v1157_v9 = vmul.f32 0.0078125, %v1155_v31  ;;  %v8522_v3 = vadd.f32 %v866_v13, %v865_v43  ;;  %v983_v63 = vadd.f32 %v982_v2, %v981_v45 }
 0x1f9   :  { %v8524_v21 = vpop.eup %7270  ;;  %v8528_v56 = vsel %vm265_vm1, %v8503_v14, 0.0  ;;  %v998_v44 = vsel %vm265_vm1, %v7269_v61, 0.0  ;;  %v12153_v32 = vrot.slane %v8426_v26, 4  ;;  %7274 = vrcp.f32 %v743_v15 }
 0x1fa   :  { %v8535_v16 = vsub.f32 %v8280_v0, %v1157_v9  ;;  %v8538_v43 = vsub.f32 %v8298_v28, %v1157_v9  ;;  %v8540_v36 = vadd.f32 %v805_v5, %v804_v53  ;;  %v8543_v45 = vsub.f32 %v8272_v54, %v1157_v9 }
 0x1fb   :  { %v811_v30 = vadd.f32 %v12153_v32, %v8426_v26  ;;  %v8546_v41 = vsub.f32 %v8288_v17, %v1157_v9  ;;  %v8549_v22 = vsub.f32 %v8319_v33, %v1157_v9  ;;  %v8552_v26 = vsub.f32 %v8334_v49, %v1157_v9 }
 0x1fc   :  { %12154 = vst [vmem:[#allocation43_spill] sm:$0xff] %v8535_v16  ;;  %12155 = vst [vmem:[#allocation44_spill] sm:$0xff] %v8538_v43  ;;  %v999_v8 = vrot.slane %v998_v44, 4  ;;  %v8555_v0 = vsub.f32 %v8313_v38, %v1157_v9  ;;  %v8558_v28 = vsub.f32 %v8329_v25, %v1157_v9  ;;  %v8561_v53 = vsub.f32 %v8355_v4, %v1157_v9 }
 0x1fd   :  { %12156 = vst [vmem:[#allocation45_spill] sm:$0xff] %v8543_v45  ;;  %12157 = vst [vmem:[#allocation46_spill] sm:$0xff] %v8546_v41  ;;  %v8564_v54 = vsub.f32 %v8376_v50, %v1157_v9  ;;  %v8567_v17 = vsub.f32 %v8351_v59, %v1157_v9  ;;  %v8570_v33 = vsub.f32 %v8371_v48, %v1157_v9  ;;  %v812_v50 = vrot.slane %v811_v30, 2 }
 0x1fe   :  { %12158 = vst [vmem:[#allocation47_spill] sm:$0xff] %v8549_v22  ;;  %12159 = vst [vmem:[#allocation48_spill] sm:$0xff] %v8552_v26  ;;  %v8573_v49 = vsub.f32 %v8392_v40, %v1157_v9  ;;  %v8576_v38 = vsub.f32 %v8455_v39, %v1157_v9  ;;  %v8579_v25 = vsub.f32 %v8389_v34, %v1157_v9  ;;  %v8584_v20 = vpop.eup %7272  ;;  %v819_v39 = vrot.slane %v8445_v10, 2 }
 0x1ff   :  { %12160 = vst [vmem:[#allocation49_spill] sm:$0xff] %v8555_v0  ;;  %12161 = vst [vmem:[#allocation50_spill] sm:$0xff] %v8558_v28  ;;  %v8582_v4 = vsub.f32 %v8441_v1, %v1157_v9  ;;  %v1174_v59 = vmul.f32 %v8535_v16, %v8535_v16  ;;  %v1175_v48 = vmul.f32 %v8538_v43, %v8538_v43  ;;  %v1035_v60 = vadd.f32 1e-20, %v983_v63 }
 0x200   :  { %12162 = vst [vmem:[#allocation51_spill] sm:$0xff] %v8561_v53  ;;  %12163 = vst [vmem:[#allocation52_spill] sm:$0xff] %v8564_v54  ;;  %v8590_v40 = vadd.f32 %v873_v7, %v872_v58  ;;  %7276 = vrcp.f32 %v745_v55  ;;  %v8596_v2 = vadd.f32 %v999_v8, %v998_v44  ;;  %v1176_v15 = vmul.f32 %v8543_v45, %v8543_v45 }
 0x201   :  { %12164 = vst [vmem:[#allocation53_spill] sm:$0xff] %v8567_v17  ;;  %12165 = vst [vmem:[#allocation54_spill] sm:$0xff] %v8570_v33  ;;  %7278 = vrcp.f32 %v1034_v19  ;;  %v8601_v31 = vmul.f32 %v7269_v61, %v8472_v46  ;;  %v8605_v5 = vadd.f32 %v812_v50, %v811_v30  ;;  %v1177_v55 = vmul.f32 %v8546_v41, %v8546_v41 }
 0x202   :  { %12166 = vst [vmem:[#allocation55_spill] sm:$0xff] %v8573_v49  ;;  %12167 = vst [vmem:[#allocation56_spill] sm:$0xff] %v8576_v38  ;;  %v1190_v19 = vsel %vm265_vm1, %v1174_v59, 0.0  ;;  %v1191_v9 = vsel %vm265_vm1, %v1175_v48, 0.0  ;;  %v8612_v63 = vadd.f32 %v819_v39, %v8445_v10  ;;  %7280 = vrcp.f32 %v1035_v60 }
 0x203   :  { %12168 = vst [vmem:[#allocation57_spill] sm:$0xff] %v8579_v25  ;;  %12169 = vst [vmem:[#allocation58_spill] sm:$0xff] %v8582_v4  ;;  %v8614_v44 = vpop.eup %7274  ;;  %v1192_v61 = vadd.f32 %v1191_v9, %v1190_v19  ;;  %v823_v32 = vsel %vm265_vm1, %v8488_v12, 0.0  ;;  %v830_v30 = vsel %vm265_vm1, %v8492_v35, 0.0  ;;  %v1178_v50 = vmul.f32 %v8549_v22, %v8549_v22 }
 0x204   :  { %v1179_v59 = vmul.f32 %v8552_v26, %v8552_v26  ;;  %v1193_v10 = vsel %vm265_vm1, %v1176_v15, 0.0  ;;  %v1180_v48 = vmul.f32 %v8555_v0, %v8555_v0  ;;  %v1181_v39 = vmul.f32 %v8558_v28, %v8558_v28 }
 0x205   :  { %v1182_v12 = vmul.f32 %v8561_v53, %v8561_v53  ;;  %v1194_v35 = vadd.f32 %v1193_v10, %v1192_v61  ;;  %v8634_v60 = vsel %vm265_vm1, %v8614_v44, 0.0  ;;  %v1183_v19 = vmul.f32 %v8564_v54, %v8564_v54 }
 0x206   :  { %v1184_v15 = vmul.f32 %v8567_v17, %v8567_v17  ;;  %v1195_v9 = vsel %vm265_vm1, %v1177_v55, 0.0  ;;  %v1185_v13 = vmul.f32 %v8570_v33, %v8570_v33  ;;  %v1186_v8 = vmul.f32 %v8573_v49, %v8573_v49 }
 0x207   :  { %v1187_v61 = vmul.f32 %v8576_v38, %v8576_v38  ;;  %v1196_v10 = vadd.f32 %v1195_v9, %v1194_v35  ;;  %v1197_v1 = vsel %vm265_vm1, %v1178_v50, 0.0  ;;  %v824_v58 = vrot.slane %v823_v32, 4 }
 0x208   :  { %v831_v34 = vrot.slane %v830_v30, 4  ;;  %v837_v7 = vsel %vm265_vm1, %v8501_v29, 0.0  ;;  %v8655_v33 = vmul.f32 %v8579_v25, %v8579_v25  ;;  %v8659_v49 = vmul.f32 %v8582_v4, %v8582_v4 }
 0x209   :  { %v1198_v35 = vadd.f32 %v1197_v1, %v1196_v10  ;;  %v1199_v50 = vsel %vm265_vm1, %v1179_v59, 0.0  ;;  %v1201_v17 = vsel %vm265_vm1, %v1180_v48, 0.0  ;;  %v838_v29 = vrot.slane %v837_v7, 4 }
 0x20a   :  { %v8650_v52 = vpop.eup %7276  ;;  %v844_v54 = vsel %vm265_vm1, %v8507_v23, 0.0  ;;  %v1203_v53 = vsel %vm265_vm1, %v1181_v39, 0.0  ;;  %v1205_v25 = vsel %vm265_vm1, %v1182_v12, 0.0  ;;  %v825_v28 = vadd.f32 %v824_v58, %v823_v32 }
 0x20b   :  { %v8661_v9 = vpop.eup %7278  ;;  %v1200_v55 = vadd.f32 %v1199_v50, %v1198_v35  ;;  %v1207_v4 = vsel %vm265_vm1, %v1183_v19, 0.0  ;;  %v832_v0 = vadd.f32 %v831_v34, %v830_v30  ;;  %v851_v1 = vsel %vm265_vm1, %v8511_v6, 0.0 }
 0x20c   :  { %v12170_v59 = vrot.slane %v8467_v47, 2  ;;  %v8675_v10 = vpop.eup %7280  ;;  %v1209_v23 = vsel %vm265_vm1, %v1184_v15, 0.0  ;;  %v814_v39 = vrot.slane %v8605_v5, 1  ;;  %v845_v35 = vrot.slane %v844_v54, 4 }
 0x20d   :  { %v1202_v26 = vadd.f32 %v1201_v17, %v1200_v55  ;;  %v1211_v58 = vsel %vm265_vm1, %v1185_v13, 0.0  ;;  %v839_v32 = vadd.f32 %v838_v29, %v837_v7  ;;  %v940_v34 = vrot.slane %v8457_v37, 1 }
 0x20e   :  { %v946_v48 = vadd.f32 %v12170_v59, %v8467_v47  ;;  %v826_v12 = vrot.slane %v825_v28, 2  ;;  %v852_v19 = vrot.slane %v851_v1, 4  ;;  %v952_v47 = vrot.slane %v8482_v62, 2 }
 0x20f   :  { %v1204_v6 = vadd.f32 %v1203_v53, %v1202_v26  ;;  %v1213_v50 = vsel %vm265_vm1, %v1186_v8, 0.0  ;;  %v1215_v17 = vsel %vm265_vm1, %v1187_v61, 0.0  ;;  %v12171_v15 = vrot.slane %v8540_v36, 1 }
 0x210   :  { %v947_v30 = vrot.slane %v946_v48, 1  ;;  %v833_v59 = vrot.slane %v832_v0, 2  ;;  %v815_v7 = vadd.f32 %v814_v39, %v8605_v5  ;;  %v846_v29 = vadd.f32 %v845_v35, %v844_v54 }
 0x211   :  { %v808_v55 = vadd.f32 %v12171_v15, %v8540_v36  ;;  %v1206_v13 = vadd.f32 %v1205_v25, %v1204_v6  ;;  %v953_v22 = vadd.f32 %v952_v47, %v8482_v62  ;;  %v840_v26 = vrot.slane %v839_v32, 2 }
 0x212   :  { %v941_v53 = vadd.f32 %v940_v34, %v8457_v37  ;;  %v948_v41 = vadd.f32 %v947_v30, %v946_v48  ;;  %v12172_v8 = vrot.slane %v8450_v18, 4  ;;  %v827_v43 = vadd.f32 %v826_v12, %v825_v28 }
 0x213   :  { %v1208_v61 = vadd.f32 %v1207_v4, %v1206_v13  ;;  %v853_v16 = vadd.f32 %v852_v19, %v851_v1  ;;  %v954_v38 = vrot.slane %v953_v22, 1  ;;  %v834_v36 = vadd.f32 %v833_v59, %v832_v0 }
 0x214   :  { %v958_v45 = vadd.f32 %v12172_v8, %v8450_v18  ;;  %v963_v25 = vsel %vm265_vm1, %v8443_v11, 0.0  ;;  %v1028_v54 = vadd.f32 1e-20, %v8477_v24  ;;  %v847_v5 = vrot.slane %v846_v29, 2 }
 0x215   :  { %v1210_v62 = vadd.f32 %v1209_v23, %v1208_v61  ;;  %v955_v39 = vadd.f32 %v954_v38, %v953_v22  ;;  %v964_v37 = vrot.slane %v963_v25, 4  ;;  %v1029_v35 = vadd.f32 1e-20, %v941_v53 }
 0x216   :  { %v959_v15 = vrot.slane %v958_v45, 2  ;;  %v1030_v34 = vadd.f32 1e-20, %v948_v41  ;;  %v1043_v18 = vmul.f32 %v8524_v21, %v808_v55  ;;  %v1045_v0 = vmul.f32 %v8584_v20, %v815_v7 }
 0x217   :  { %v1212_v4 = vadd.f32 %v1211_v58, %v1210_v62  ;;  %v965_v28 = vadd.f32 %v964_v37, %v963_v25  ;;  %v1031_v1 = vadd.f32 1e-20, %v955_v39  ;;  %v841_v30 = vadd.f32 %v840_v26, %v839_v32 }
 0x218   :  { %v960_v48 = vadd.f32 %v959_v15, %v958_v45  ;;  %v854_v6 = vrot.slane %v853_v16, 2  ;;  %7282 = vrcp.f32 %v1028_v54  ;;  %v1091_v22 = vsel %vm1090_vm2, %v1045_v0, %v1043_v18 }
 0x219   :  { %v1214_v11 = vadd.f32 %v1213_v50, %v1212_v4  ;;  %v966_v24 = vrot.slane %v965_v28, 2  ;;  %7284 = vrcp.f32 %v1029_v35  ;;  %v821_v45 = vrot.slane %v8612_v63, 1 }
 0x21a   :  { %v961_v12 = vrot.slane %v960_v48, 1  ;;  %v848_v38 = vadd.f32 %v847_v5, %v846_v29  ;;  %7286 = vrcp.f32 %v1030_v34  ;;  %v1217_v23 = vsel %vm265_vm1, %v8655_v33, 0.0 }
 0x21b   :  { %v1216_v21 = vadd.f32 %v1215_v17, %v1214_v11  ;;  %v967_v20 = vadd.f32 %v966_v24, %v965_v28  ;;  %7288 = vrcp.f32 %v1031_v1  ;;  %v828_v58 = vrot.slane %v827_v43, 1 }
 0x21c   :  { %v962_v41 = vadd.f32 %v961_v12, %v960_v48  ;;  %v835_v32 = vrot.slane %v834_v36, 1  ;;  %v842_v19 = vrot.slane %v841_v30, 1  ;;  %v12173_v50 = vrot.slane %v8634_v60, 4 }
 0x21d   :  { %v1218_v59 = vadd.f32 %v1217_v23, %v1216_v21  ;;  %v855_v13 = vadd.f32 %v854_v6, %v853_v16  ;;  %v968_v7 = vrot.slane %v967_v20, 1  ;;  %v1219_v33 = vsel %vm265_vm1, %v8659_v49, 0.0 }
 0x21e   :  { %v1032_v47 = vadd.f32 1e-20, %v962_v41  ;;  %v8705_v55 = vadd.f32 %v12173_v50, %v8634_v60  ;;  %v822_v17 = vadd.f32 %v821_v45, %v8612_v63  ;;  %v849_v29 = vrot.slane %v848_v38, 1 }
 0x21f   :  { %v1220_v26 = vadd.f32 %v1219_v33, %v1218_v59  ;;  %v969_v53 = vadd.f32 %v968_v7, %v967_v20  ;;  %v12174_v8 = vrot.slane %v8517_v57, 2  ;;  %v886_v60 = vsel %vm265_vm1, %v8601_v31, 0.0 }
 0x220   :  { %7290 = vrcp.f32 %v1032_v47  ;;  %v829_v15 = vadd.f32 %v828_v58, %v827_v43  ;;  %v836_v16 = vadd.f32 %v835_v32, %v834_v36  ;;  %v843_v25 = vadd.f32 %v842_v19, %v841_v30 }
 0x221   :  { %v862_v61 = vadd.f32 %v12174_v8, %v8517_v57  ;;  %v12175_v49 = vrot.slane %v8522_v3, 2  ;;  %v1221_v63 = vrot.slane %v1220_v26, 4  ;;  %v856_v62 = vrot.slane %v855_v13, 1 }
 0x222   :  { %v1033_v5 = vadd.f32 1e-20, %v969_v53  ;;  %v799_v39 = vmul.f32 %v8614_v44, %v8472_v46  ;;  %v7283_v37 = vpop.eup %7282  ;;  %v850_v48 = vadd.f32 %v849_v29, %v848_v38  ;;  %v800_v57 = vmul.f32 %v8503_v14, %v8472_v46 }
 0x223   :  { %v869_v54 = vadd.f32 %v12175_v49, %v8522_v3  ;;  %v801_v43 = vmul.f32 %v8650_v52, %v8472_v46  ;;  %v887_v31 = vrot.slane %v886_v60, 4  ;;  %v7285_v36 = vpop.eup %7284  ;;  %v1222_v35 = vadd.f32 %v1221_v63, %v1220_v26 }
 0x224   :  { %v1047_v34 = vmul.f32 %v7283_v37, %v822_v17  ;;  %7292 = vrcp.f32 %v1033_v5  ;;  %v863_v3 = vrot.slane %v862_v61, 1  ;;  %v7287_v18 = vpop.eup %7286  ;;  %v1049_v4 = vmul.f32 %v7285_v36, %v829_v15 }
 0x225   :  { %v870_v28 = vrot.slane %v869_v54, 1  ;;  %v875_v1 = vrot.slane %v8590_v40, 2  ;;  %v12176_v44 = vrot.slane %v8520_v42, 4  ;;  %v7289_v14 = vpop.eup %7288  ;;  %v1223_v30 = vrot.slane %v1222_v35, 2 }
 0x226   :  { %v1051_v6 = vmul.f32 %v7287_v18, %v836_v16  ;;  %v1093_v46 = vsel %vm1092_vm3, %v1047_v34, %v1091_v22  ;;  %v893_v12 = vsel %vm265_vm1, %v799_v39, 0.0  ;;  %v1053_v11 = vmul.f32 %v7289_v14, %v843_v25 }
 0x227   :  { %v8728_v0 = vadd.f32 %v12176_v44, %v8520_v42  ;;  %v1095_v24 = vsel %vm1094_vm4, %v1049_v4, %v1093_v46  ;;  %v8733_v45 = vadd.f32 %v887_v31, %v886_v60  ;;  %v900_v38 = vsel %vm265_vm1, %v800_v57, 0.0 }
 0x228   :  { %v1224_v41 = vadd.f32 %v1223_v30, %v1222_v35  ;;  %v857_v21 = vadd.f32 %v856_v62, %v855_v13  ;;  %v1097_v42 = vsel %vm1096_vm5, %v1051_v6, %v1095_v24  ;;  %v864_v23 = vadd.f32 %v863_v3, %v862_v61 }
 0x229   :  { %v1099_v58 = vsel %vm1098_vm6, %v1053_v11, %v1097_v42  ;;  %v894_v32 = vrot.slane %v893_v12, 4  ;;  %v907_v22 = vsel %vm265_vm1, %v801_v43, 0.0  ;;  %v996_v19 = vrot.slane %v8515_v27, 1 }
 0x22a   :  { %v7291_v20 = vpop.eup %7290  ;;  %v1225_v47 = vrot.slane %v1224_v41, 1  ;;  %v8741_v59 = vadd.f32 %v875_v1, %v8590_v40  ;;  %v901_v7 = vrot.slane %v900_v38, 4  ;;  %v871_v33 = vadd.f32 %v870_v28, %v869_v54 }
 0x22b   :  { %v1055_v50 = vmul.f32 %v7291_v20, %v850_v48  ;;  %v882_v13 = vrot.slane %v8728_v0, 2  ;;  %v889_v17 = vrot.slane %v8733_v45, 2  ;;  %v12177_v29 = vrot.slane %v8596_v2, 2 }
 0x22c   :  { %v1226_v53 = vadd.f32 %v1225_v47, %v1224_v41  ;;  %v908_v61 = vrot.slane %v907_v22, 4  ;;  %v1008_v60 = vrot.slane %v8705_v55, 2  ;;  %v895_v15 = vadd.f32 %v894_v32, %v893_v12 }
 0x22d   :  { %v1002_v26 = vadd.f32 %v12177_v29, %v8596_v2  ;;  %v1101_v8 = vsel %vm1100_vm7, %v1055_v50, %v1099_v58  ;;  %v997_v40 = vadd.f32 %v996_v19, %v8515_v27  ;;  %v12178_v25 = vrot.slane %v8528_v56, 4  ;;  %v8766_v50 = vld [vmem:[#allocation10] sm:$0xff] }
 0x22e   :  { %v7293_v54 = vpop.eup %7292  ;;  %v1227_v63 = vmul.f32 0.0078125, %v1226_v53  ;;  %v902_v62 = vadd.f32 %v901_v7, %v900_v38  ;;  %v1009_v5 = vadd.f32 %v1008_v60, %v8705_v55  ;;  %v1019_v2 = vsel %vm265_vm1, %v8650_v52, 0.0  ;;  %v12179_v29 = vld [vmem:[#allocation20_spill] sm:$0xff]  ;;  %v12180_v53 = vld [vmem:[#allocation21_spill] sm:$0xff] }
 0x22f   :  { %v1003_v16 = vrot.slane %v1002_v26, 1  ;;  %v1014_v49 = vadd.f32 %v12178_v25, %v8528_v56  ;;  %v1057_v39 = vmul.f32 %v7293_v54, %v857_v21  ;;  %v1020_v57 = vrot.slane %v1019_v2, 4 }
 0x230   :  { %v1228_v43 = vadd.f32 1e-05, %v1227_v63  ;;  %v909_v31 = vadd.f32 %v908_v61, %v907_v22  ;;  %v1010_v27 = vrot.slane %v1009_v5, 1  ;;  %v1036_v36 = vadd.f32 1e-20, %v8513_v51 }
 0x231   :  { %v1004_v37 = vadd.f32 %v1003_v16, %v1002_v26  ;;  %v1015_v48 = vrot.slane %v1014_v49, 2  ;;  %v1103_v35 = vsel %vm1102_vm8, %v1057_v39, %v1101_v8  ;;  %v1021_v34 = vadd.f32 %v1020_v57, %v1019_v2  ;;  %v12182_v2 = vld [vmem:[#allocation43_spill] sm:$0xff]  ;;  %v12183_v57 = vld [vmem:[#allocation44_spill] sm:$0xff] }
 0x232   :  { %v1037_v3 = vadd.f32 1e-20, %v997_v40  ;;  %7294 = vrsqrt.f32 %v1228_v43  ;;  %1111 = vrot.lane.b32.xlu0 %v1103_v35, %s7967_s2  ;;  %v896_v55 = vrot.slane %v895_v15, 2  ;;  %v1011_v18 = vadd.f32 %v1010_v27, %v1009_v5 }
 0x233   :  { %v1016_v56 = vadd.f32 %v1015_v48, %v1014_v49  ;;  %v1038_v52 = vadd.f32 1e-20, %v1004_v37  ;;  %v1022_v28 = vrot.slane %v1021_v34, 2  ;;  %v1059_v1 = vmul.f32 %v8661_v9, %v864_v23 }
 0x234   :  { %v1061_v44 = vmul.f32 %v8675_v10, %v871_v33  ;;  %v903_v14 = vrot.slane %v902_v62, 2  ;;  %v910_v30 = vrot.slane %v909_v31, 2  ;;  %v1039_v51 = vadd.f32 1e-20, %v1011_v18 }
 0x235   :  { %v1017_v4 = vrot.slane %v1016_v56, 1  ;;  %7296 = vrcp.f32 %v1036_v36  ;;  %v1023_v46 = vadd.f32 %v1022_v28, %v1021_v34  ;;  %v883_v11 = vadd.f32 %v882_v13, %v8728_v0  ;;  %v12185_v34 = vld [vmem:[#allocation46_spill] sm:$0xff] }
 0x236   :  { %7298 = vrcp.f32 %v1037_v3  ;;  %v1104_v12 = vsel %vm1090_vm2, %v1061_v44, %v1059_v1  ;;  %v890_v24 = vadd.f32 %v889_v17, %v8733_v45  ;;  %v897_v9 = vadd.f32 %v896_v55, %v895_v15  ;;  %v12186_v55 = vld [vmem:[#allocation47_spill] sm:$0xff] }
 0x237   :  { %v1018_v6 = vadd.f32 %v1017_v4, %v1016_v56  ;;  %7300 = vrcp.f32 %v1038_v52  ;;  %v1024_v38 = vrot.slane %v1023_v46, 1  ;;  %v904_v21 = vadd.f32 %v903_v14, %v902_v62 }
 0x238   :  { %7302 = vrcp.f32 %v1039_v51  ;;  %v911_v10 = vadd.f32 %v910_v30, %v909_v31  ;;  %v877_v42 = vrot.slane %v8741_v59, 1  ;;  %v884_v20 = vrot.slane %v883_v11, 1  ;;  %v12184_v31 = vld [vmem:[#allocation45_spill] sm:$0xff]  ;;  %v12187_v30 = vld [vmem:[#allocation48_spill] sm:$0xff] }
 0x239   :  { %v1040_v41 = vadd.f32 1e-20, %v1018_v6  ;;  %v1025_v23 = vadd.f32 %v1024_v38, %v1023_v46  ;;  %v891_v58 = vrot.slane %v890_v24, 1  ;;  %v898_v19 = vrot.slane %v897_v9, 1 }
 0x23a   :  { %v905_v47 = vrot.slane %v904_v21, 1  ;;  %v912_v0 = vrot.slane %v911_v10, 1  ;;  %v878_v7 = vadd.f32 %v877_v42, %v8741_v59  ;;  %v885_v13 = vadd.f32 %v884_v20, %v883_v11  ;;  %v12181_v59 = vld [vmem:[#allocation56_spill] sm:$0xff] }
 0x23b   :  { %7304 = vrcp.f32 %v1040_v41  ;;  %v1041_v32 = vadd.f32 1e-20, %v1025_v23  ;;  %v8772_v26 = vrot.slane %v8766_v50, %v12179_v29  ;;  %v892_v61 = vadd.f32 %v891_v58, %v890_v24  ;;  %v12188_v24 = vld [vmem:[#allocation49_spill] sm:$0xff]  ;;  %v12191_v58 = vld [vmem:[#allocation27_spill] sm:$0xff] }
 0x23c   :  { %v7295_v22 = vpop.eup %7294  ;;  %v899_v40 = vadd.f32 %v898_v19, %v897_v9  ;;  %v906_v16 = vadd.f32 %v905_v47, %v904_v21  ;;  %v913_v25 = vadd.f32 %v912_v0, %v911_v10  ;;  %v12189_v9 = vld [vmem:[#allocation25_spill] sm:$0xff]  ;;  %v12195_v47 = vld [vmem:[#allocation50_spill] sm:$0xff] }
 0x23d   :  { %v1230_v45 = vmul.f32 %v8766_v50, %v7295_v22  ;;  %7306 = vrcp.f32 %v1041_v32  ;;  %v12193_v22 = vld [vmem:[#allocation24_spill] sm:$0xff] }
 0x23f   :  { %v7297_v33 = vpop.eup %7296  ;;  %v8775_v8 = vrot.slane %v1230_v45, %v12180_v53  ;;  %v12196_v45 = vld [vmem:[#allocation26_spill] sm:$0xff] }
 0x240   :  { %v7299_v17 = vpop.eup %7298  ;;  %v1063_v60 = vmul.f32 %v7297_v33, %v878_v7 }
 0x241   :  { %v7301_v15 = vpop.eup %7300  ;;  %v1065_v49 = vmul.f32 %v7299_v17, %v885_v13  ;;  %v8779_v63 = vmul.f32 %v8775_v8, %v12181_v59  ;;  %v1235_v39 = vmul.f32 %v8775_v8, %v12182_v2  ;;  %v1236_v43 = vmul.f32 %v8775_v8, %v12183_v57  ;;  %v12198_v13 = vld [vmem:[#allocation29_spill] sm:$0xff] }
 0x242   :  { %v7303_v54 = vpop.eup %7302  ;;  %v1067_v62 = vmul.f32 %v7301_v15, %v892_v61  ;;  %v1105_v5 = vsel %vm1092_vm3, %v1063_v60, %v1104_v12  ;;  %v1237_v27 = vmul.f32 %v8775_v8, %v12184_v31  ;;  %v1238_v3 = vmul.f32 %v8775_v8, %v12185_v34  ;;  %v12207_v34 = vld [vmem:[#allocation31_spill] sm:$0xff] }
 0x243   :  { %v1069_v37 = vmul.f32 %v7303_v54, %v899_v40  ;;  %v1106_v48 = vsel %vm1094_vm4, %v1065_v49, %v1105_v5  ;;  %v1255_v56 = vadd.f32 %v8772_v26, %v1235_v39  ;;  %v1239_v18 = vmul.f32 %v8775_v8, %v12186_v55  ;;  %v12201_v54 = vld [vmem:[#allocation28_spill] sm:$0xff]  ;;  %v12209_v55 = vld [vmem:[#allocation30_spill] sm:$0xff] }
 0x244   :  { %v1107_v35 = vsel %vm1096_vm5, %v1067_v62, %v1106_v48  ;;  %v1256_v28 = vadd.f32 %v8772_v26, %v1236_v43  ;;  %v1257_v1 = vadd.f32 %v8772_v26, %v1237_v27  ;;  %v1258_v14 = vadd.f32 %v8772_v26, %v1238_v3  ;;  %v12203_v5 = vld [vmem:[#allocation52_spill] sm:$0xff]  ;;  %v12204_v48 = vld [vmem:[#allocation53_spill] sm:$0xff]  ;;  %v12205_v43 = vld [vmem:[#allocation54_spill] sm:$0xff] }
 0x245   :  { %v7305_v36 = vpop.eup %7304  ;;  %v1108_v4 = vsel %vm1098_vm6, %v1069_v37, %v1107_v35  ;;  %v1336_v44 = vmax.f32 %v1255_v56, 0.0  ;;  %v1240_v51 = vmul.f32 %v8775_v8, %v12187_v30  ;;  %v1259_v6 = vadd.f32 %v8772_v26, %v1239_v18  ;;  %v12206_v35 = vld [vmem:[#allocation55_spill] sm:$0xff]  ;;  %v12212_v30 = vld [vmem:[#allocation33_spill] sm:$0xff] }
 0x246   :  { %v1071_v52 = vmul.f32 %v7305_v36, %v906_v16  ;;  %v1337_v12 = vmax.f32 %v1256_v28, 0.0  ;;  %v1338_v11 = vmax.f32 %v1257_v1, 0.0  ;;  %v1241_v38 = vmul.f32 %v8775_v8, %v12188_v24  ;;  %v12200_v16 = vld [vmem:[#allocation51_spill] sm:$0xff]  ;;  %v12216_v24 = vld [vmem:[#allocation58_spill] sm:$0xff] }
 0x247   :  { %v7307_v41 = vpop.eup %7306  ;;  %v8806_v21 = vadd.f32 %v1336_v44, %v12189_v9  ;;  %v1339_v10 = vmax.f32 %v1258_v14, 0.0  ;;  %v1260_v42 = vadd.f32 %v8772_v26, %v1240_v51  ;;  %v1340_v23 = vmax.f32 %v1259_v6, 0.0  ;;  %v12211_v44 = vld [vmem:[#allocation57_spill] sm:$0xff] }
 0x248   :  { %v1109_v46 = vsel %vm1100_vm7, %v1071_v52, %v1108_v4  ;;  %v1073_v20 = vmul.f32 %v7307_v41, %v913_v25  ;;  %v8810_v32 = vadd.f32 %v1337_v12, %v12191_v58  ;;  %v8813_v19 = vadd.f32 %v1338_v11, %v12193_v22  ;;  %v12214_v12 = vld [vmem:[#allocation32_spill] sm:$0xff]  ;;  %v12219_v22 = vld [vmem:[#allocation34_spill] sm:$0xff] }
 0x249   :  { %12190 = vst [vmem:[#allocation56_spill] sm:$0xff] %v8806_v21  ;;  %v1242_v0 = vmul.f32 %v8775_v8, %v12195_v47  ;;  %v8818_v7 = vadd.f32 %v1339_v10, %v12196_v45  ;;  %v1341_v33 = vmax.f32 %v1260_v42, 0.0  ;;  %v8821_v17 = vadd.f32 %v1340_v23, %v12198_v13  ;;  %v12221_v45 = vld [vmem:[#allocation37_spill] sm:$0xff]  ;;  %v12223_v13 = vld [vmem:[#allocation36_spill] sm:$0xff] }
 0x24a   :  { %12192 = vst [vmem:[#allocation43_spill] sm:$0xff] %v8810_v32  ;;  %12194 = vst [vmem:[#allocation44_spill] sm:$0xff] %v8813_v19  ;;  %v1261_v61 = vadd.f32 %v8772_v26, %v1241_v38  ;;  %v1110_v60 = vsel %vm1102_vm8, %v1073_v20, %v1109_v46  ;;  %v1380_v15 = vpack.c.bf16 %v8810_v32, %v8806_v21 }
 0x24b   :  { %12197 = vst [vmem:[#allocation45_spill] sm:$0xff] %v8818_v7  ;;  %12199 = vst [vmem:[#allocation46_spill] sm:$0xff] %v8821_v17  ;;  %v1262_v40 = vadd.f32 %v8772_v26, %v1242_v0  ;;  %v1243_v25 = vmul.f32 %v8775_v8, %v12200_v16  ;;  %1113 = vrot.lane.b32.xlu1 %v1110_v60, %s7967_s2  ;;  %v1381_v49 = vpack.c.bf16 %v8818_v7, %v8813_v19 }
 0x24c   :  { %v8834_v59 = vadd.f32 %v1341_v33, %v12201_v54  ;;  %v1342_v62 = vmax.f32 %v1261_v61, 0.0  ;;  %v1244_v2 = vmul.f32 %v8775_v8, %v12203_v5  ;;  %7035 = vmatprep.mubr.msk.bf16.mxu1 %vm265_vm1, %v1380_v15  ;;  %v1245_v57 = vmul.f32 %v8775_v8, %v12204_v48 }
 0x24d   :  { %v1343_v39 = vmax.f32 %v1262_v40, 0.0  ;;  %v1263_v37 = vadd.f32 %v8772_v26, %v1243_v25  ;;  %v1246_v31 = vmul.f32 %v8775_v8, %v12205_v43  ;;  %7036 = vmatmul.mubr.msk.bf16.vlgmr.msra.gmra.mrb[4].mxu1 %vm265_vm1, %v1381_v49  ;;  %v1247_v56 = vmul.f32 %v8775_v8, %v12206_v35  ;;  %v12225_v25 = vld [vmem:[#allocation39_spill] sm:$0xff]  ;;  %v12227_v49 = vld [vmem:[#allocation38_spill] sm:$0xff] }
 0x24e   :  { %12202 = vst [vmem:[#allocation47_spill] sm:$0xff] %v8834_v59  ;;  %v1382_v27 = vpack.c.bf16 %v8834_v59, %v8821_v17  ;;  %v1264_v36 = vadd.f32 %v8772_v26, %v1244_v2  ;;  %v8851_v3 = vadd.f32 %v1342_v62, %v12207_v34  ;;  %v1265_v28 = vadd.f32 %v8772_v26, %v1245_v57  ;;  %v456_v2 = vpop.permute.xlu1 %455  ;;  %v12231_v57 = vld [vmem:[#allocation41_spill] sm:$0xff] }
 0x24f   :  { %v8854_v18 = vadd.f32 %v1343_v39, %v12209_v55  ;;  %v1344_v52 = vmax.f32 %v1263_v37, 0.0  ;;  %v1266_v1 = vadd.f32 %v8772_v26, %v1246_v31  ;;  %v1249_v14 = vmul.f32 %v8775_v8, %v12211_v44  ;;  %v12230_v37 = vld [vmem:[#allocation40_spill] sm:$0xff] }
 0x250   :  { %12208 = vst [vmem:[#allocation48_spill] sm:$0xff] %v8851_v3  ;;  %7039 = vmatprep.mubr.msk.bf16.mxu1 %vm265_vm1, %v1382_v27  ;;  %v1345_v4 = vmax.f32 %v1264_v36, 0.0  ;;  %v1267_v6 = vadd.f32 %v8772_v26, %v1247_v56  ;;  %v1268_v46 = vadd.f32 %v8772_v26, %v8779_v63  ;;  %v1250_v38 = vmul.f32 %v8775_v8, %v12216_v24  ;;  %v12217_v63 = vld [vmem:[#allocation35_spill] sm:$0xff] }
 0x251   :  { %12210 = vst [vmem:[#allocation49_spill] sm:$0xff] %v8854_v18  ;;  %v8862_v51 = vadd.f32 %v1344_v52, %v12212_v30  ;;  %v1383_v41 = vpack.c.bf16 %v8854_v18, %v8851_v3  ;;  %v1346_v9 = vmax.f32 %v1265_v28, 0.0  ;;  %v1347_v10 = vmax.f32 %v1266_v1, 0.0 }
 0x252   :  { %v8868_v11 = vadd.f32 %v1345_v4, %v12214_v12  ;;  %v1348_v23 = vmax.f32 %v1267_v6, 0.0  ;;  %v1349_v20 = vmax.f32 %v1268_v46, 0.0  ;;  %v1269_v8 = vadd.f32 %v8772_v26, %v1249_v14 }
 0x253   :  { %12213 = vst [vmem:[#allocation25_spill] sm:$0xff] %v8862_v51  ;;  %v8879_v58 = vadd.f32 %v1346_v9, %v12217_v63  ;;  %v8882_v47 = vadd.f32 %v1347_v10, %v12219_v22  ;;  %v1270_v0 = vadd.f32 %v8772_v26, %v1250_v38  ;;  %v12229_v5 = vmov 0.0  }
 0x254   :  { %12215 = vst [vmem:[#allocation27_spill] sm:$0xff] %v8868_v11  ;;  %v1384_v42 = vpack.c.bf16 %v8868_v11, %v8862_v51  ;;  %v8887_v33 = vadd.f32 %v1348_v23, %v12221_v45  ;;  %v8890_v61 = vadd.f32 %v1349_v20, %v12223_v13  ;;  %v1350_v15 = vmax.f32 %v1269_v8, 0.0  ;;  %v12232_v45 = vld [vmem:[#allocation22_spill] sm:$0xff] }
 0x255   :  { %7040 = vmatmul.mubr.msk.bf16.gmra.mrb[8].mxu1 %vm265_vm1, %v1383_v41  ;;  %12218 = vst [vmem:[#allocation24_spill] sm:$0xff] %v8879_v58  ;;  %12220 = vst [vmem:[#allocation50_spill] sm:$0xff] %v8882_v47  ;;  %v1385_v60 = vpack.c.bf16 %v8882_v47, %v8879_v58  ;;  %v1351_v40 = vmax.f32 %v1270_v0, 0.0  ;;  %v458_v48 = vadd.f32 %v456_v2, %v12230_v37 }
 0x256   :  { %7043 = vmatprep.mubr.msk.bf16.mxu1 %vm265_vm1, %v1384_v42  ;;  %12222 = vst [vmem:[#allocation26_spill] sm:$0xff] %v8887_v33  ;;  %12224 = vst [vmem:[#allocation29_spill] sm:$0xff] %v8890_v61  ;;  %v1386_v16 = vpack.c.bf16 %v8890_v61, %v8887_v33  ;;  %v8899_v26 = vadd.f32 %v1350_v15, %v12225_v25  ;;  %v459_v43 = vadd.f32 %v456_v2, %v12231_v57 }
 0x257   :  { %v8902_v54 = vadd.f32 %v1351_v40, %v12227_v49  ;;  %v1317_v13 = vrot.slane %v8766_v50, %v12232_v45 }
 0x258   :  { %12226 = vst [vmem:[#allocation51_spill] sm:$0xff] %v8899_v26 }
 0x259   :  { %12228 = vst [vmem:[#allocation28_spill] sm:$0xff] %v8902_v54  ;;  %v1387_v62 = vpack.c.bf16 %v8902_v54, %v8899_v26 }
 0x25d   :  { %7044 = vmatmul.mubr.msk.bf16.gmra.mrb[12].mxu1 %vm265_vm1, %v1385_v60 }
 0x25e   :  { %7047 = vmatprep.mubr.msk.bf16.mxu1 %vm265_vm1, %v1386_v16 }
 0x265   :  { %7048 = vmatmul.mubr.msk.bf16.gmra.mrb[16].mxu1 %vm265_vm1, %v1387_v62 }
 0x266   :  { %7083 = vmatprep.mubr.msk.bf16.mxu1 %vm7966_vm0, %v12229_v5 }
 0x2a4   :  { %v1112_v39 = vpop.permute.xlu0 %1111 }
 0x2a5   :  { %v1117_v31 = vadd.f32 %v1112_v39, %v458_v48 }
 0x2a7   :  { %v1272_v35 = vsel %vm1271_vm9, %v1117_v31, 0.0 }
 0x2bd   :  { %v1114_v27 = vpop.permute.xlu1 %1113 }
 0x2be   :  { %v1118_v36 = vadd.f32 %v1114_v27, %v459_v43 }
 0x2c0   :  { %v1273_v56 = vsel %vm1271_vm9, %v1118_v36, 0.0 }
 0x2c1   :  { %v1274_v34 = vadd.f32 %v1273_v56, %v1272_v35  ;;  %v7192_v35 = vld [vmem:[#allocation8 + $0x10] sm:$0xff]  }
 0x2c2   :  { %7052 = vmatpush3.bf16.msra.mxu0 %v7192_v35 }
 0x2c3   :  { %v1275_v55 = vrot.slane %v1274_v34, 4  ;;  %7053 = vmatprep.subr.bf16.mxu0 %v12229_v5 }
 0x2c5   :  { %v1276_v52 = vadd.f32 %v1275_v55, %v1274_v34  ;;  %v7193_v34 = vld [vmem:[#allocation8 + $0x18] sm:$0xff]  }
 0x2c6   :  { %7054 = vmatpush3.bf16.msra.mxu0 %v7193_v34 }
 0x2c7   :  { %v1277_v4 = vrot.slane %v1276_v52, 2 }
 0x2c9   :  { %v1278_v28 = vadd.f32 %v1277_v4, %v1276_v52  ;;  %v12233_v52 = vld [vmem:[#allocation23_spill] sm:$0xff] }
 0x2cb   :  { %v1279_v1 = vrot.slane %v1278_v28, 1 }
 0x2cd   :  { %v1280_v44 = vadd.f32 %v1279_v1, %v1278_v28 }
 0x2cf   :  { %v1282_v14 = vmul.f32 0.0625, %v1280_v44 }
 0x2d1   :  { %v1283_v30 = vsub.f32 %v1117_v31, %v1282_v14  ;;  %v1284_v6 = vsub.f32 %v1118_v36, %v1282_v14 }
 0x2d3   :  { %v1285_v46 = vmul.f32 %v1283_v30, %v1283_v30  ;;  %v1286_v12 = vmul.f32 %v1284_v6, %v1284_v6 }
 0x2d5   :  { %v1287_v24 = vsel %vm1271_vm9, %v1285_v46, 0.0  ;;  %v1288_v38 = vsel %vm1271_vm9, %v1286_v12, 0.0 }
 0x2d6   :  { %v1289_v41 = vadd.f32 %v1288_v38, %v1287_v24 }
 0x2d8   :  { %v1290_v9 = vrot.slane %v1289_v41, 4 }
 0x2da   :  { %v1291_v10 = vadd.f32 %v1290_v9, %v1289_v41  ;;  %v8935_v41 = vld [vmem:[#allocation10 + $0x8] sm:$0xff] }
 0x2dc   :  { %v1292_v42 = vrot.slane %v1291_v10, 2 }
 0x2de   :  { %v1293_v23 = vadd.f32 %v1292_v42, %v1291_v10 }
 0x2e0   :  { %v1294_v20 = vrot.slane %v1293_v23, 1 }
 0x2e2   :  { %v1295_v63 = vadd.f32 %v1294_v20, %v1293_v23  ;;  %v7809_v23 = vld [vmem:[#allocation2 + $0x8] sm:$0xff] }
 0x2e4   :  { %v1296_v22 = vmul.f32 0.0625, %v1295_v63 }
 0x2e6   :  { %v1297_v8 = vadd.f32 1e-05, %v1296_v22  ;;  %v12237_v22 = vld [vmem:[#allocation16_spill] sm:$0xff] }
 0x2e8   :  { %7308 = vrsqrt.f32 %v1297_v8  ;;  %v8951_v8 = vrot.slane %v8935_v41, %v12237_v22 }
 0x2f2   :  { %v7309_v0 = vpop.eup %7308 }
 0x2f3   :  { %1300 = vrot.lane.b32.xlu0 %v7309_v0, %s7969_s13  ;;  %v12238_v0 = vld [vmem:[#allocation19_spill] sm:$0xff] }
 0x2f7   :  { %1319 = vrot.lane.b32.xlu0 %v1317_v13, %s7967_s2  ;;  %v1585_v13 = vrot.slane %v8935_v41, %v12238_v0 }
 0x320   :  { %v7037_v60 = vpop.f32.mrb[4].mxu1 }
 0x321   :  { %v1462_v15 = vpop.f32.mrb[5].mxu1 }
 0x322   :  { %v7038_v40 = vpop.f32.mrb[6].mxu1 }
 0x323   :  { %v1465_v16 = vpop.f32.mrb[7].mxu1 }
 0x328   :  { %v8919_v25 = vpop.f32.mrb[8].mxu1 }
 0x329   :  { %v1478_v49 = vpop.f32.mrb[9].mxu1 }
 0x32a   :  { %v8921_v62 = vpop.f32.mrb[10].mxu1 }
 0x32b   :  { %v8923_v2 = vpop.f32.mrb[11].mxu1 }
 0x330   :  { %v7045_v39 = vpop.f32.mrb[12].mxu1 }
 0x331   :  { %v1494_v37 = vpop.f32.mrb[13].mxu1 }
 0x332   :  { %v7046_v48 = vpop.f32.mrb[14].mxu1 }
 0x333   :  { %v1497_v57 = vpop.f32.mrb[15].mxu1 }
 0x338   :  { %v7049_v43 = vpop.f32.mrb[16].mxu1 }
 0x339   :  { %v8925_v31 = vpop.f32.mrb[17].mxu1 }
 0x33a   :  { %v8927_v27 = vpop.f32.mrb[18].mxu1 }
 0x33b   :  { %v8929_v36 = vpop.f32.mrb[19].mxu1 }
 0x365   :  { %v1301_v56 = vpop.permute.xlu0 %1300 }
 0x366   :  { %v1303_v55 = vmul.f32 %v8766_v50, %v1301_v56  ;;  %v12234_v50 = vld [vmem:[#allocation18_spill] sm:$0xff]  ;;  %v1471_v56 = vadd.f32 %v7037_v60, %v8951_v8 }
 0x367   :  { %v1601_v9 = vrot.slane %v8935_v41, %v12234_v50 }
 0x368   :  { %v1307_v4 = vrot.slane %v1303_v55, %v12233_v52  ;;  %v1463_v55 = vadd.f32 %v1462_v15, %v8951_v8 }
 0x369   :  { %v1320_v1 = vpop.permute.xlu0 %1319 }
 0x36a   :  { %1309 = vrot.lane.b32.xlu1 %v1307_v4, %s7967_s2  ;;  %v1474_v4 = vadd.f32 %v7038_v40, %v8951_v8 }
 0x3dc   :  { %v1310_v28 = vpop.permute.xlu1 %1309 }
 0x3dd   :  { %v1312_v44 = vmul.f32 %v1310_v28, %v1283_v30  ;;  %v1313_v14 = vmul.f32 %v1310_v28, %v1284_v6  ;;  %v7810_v6 = vld [vmem:[#allocation2] sm:$0xff] }
 0x3df   :  { %v1322_v46 = vadd.f32 %v1320_v1, %v1312_v44  ;;  %v1323_v12 = vadd.f32 %v1320_v1, %v1313_v14  ;;  %v7194_v14 = vld [vmem:[#allocation7 + $0x20] sm:$0xff]  }
 0x3e0   :  { %7059 = vmatprep.subr.bf16.mxu0 %v7194_v14 }
 0x3e1   :  { %v1324_v24 = vmax.f32 %v1322_v46, 0.0  ;;  %v1325_v38 = vmax.f32 %v1323_v12, 0.0  ;;  %v1466_v46 = vadd.f32 %v1465_v16, %v8951_v8  ;;  %v1479_v12 = vadd.f32 %v1478_v49, %v8951_v8  ;;  %v12242_v49 = vld [vmem:[#allocation42_spill] sm:$0xff] }
 0x3e3   :  { %1330 = vrot.lane.b32.xlu0 %v1325_v38, %s7969_s13  ;;  %1328 = vrot.lane.b32.xlu1 %v1324_v24, %s7969_s13  ;;  %v8967_v24 = vadd.f32 %v7045_v39, %v8951_v8  ;;  %v12241_v38 = vld [vmem:[#allocation17_spill] sm:$0xff] }
 0x3e4   :  { %v1591_v15 = vrot.slane %v8935_v41, %v12241_v38 }
 0x3e7   :  { %1603 = vrot.lane.b32.xlu1 %v1601_v9, %s7961_s22 }
 0x455   :  { %v1331_v10 = vpop.permute.xlu0 %1330  ;;  %v1329_v42 = vpop.permute.xlu1 %1328 }
 0x456   :  { %v8942_v30 = vadd.f32 %v7809_v23, %v1331_v10  ;;  %v8944_v20 = vadd.f32 %v7810_v6, %v1329_v42  ;;  %v8983_v42 = vadd.f32 %v1494_v37, %v8951_v8  ;;  %v8986_v23 = vadd.f32 %v7046_v48, %v8951_v8 }
 0x457   :  { %v8989_v6 = vadd.f32 %v1497_v57, %v8951_v8  ;;  %v9003_v57 = vadd.f32 %v8925_v31, %v8951_v8 }
 0x458   :  { %12235 = vst [vmem:[#allocation52_spill] sm:$0xff] %v8942_v30  ;;  %12236 = vst [vmem:[#allocation53_spill] sm:$0xff] %v8944_v20  ;;  %v1525_v63 = vpack.c.bf16 %v8942_v30, %v8944_v20 }
 0x459   :  { %v1604_v35 = vpop.permute.xlu1 %1603 }
 0x45a   :  { %7056 = vmatmul.mubr.msk.bf16.vlgmr.msra.gmra.mrb[16].mxu0 %vm265_vm1, %v1525_v63  ;;  %v8992_v63 = vadd.f32 %v7049_v43, %v8951_v8  ;;  %v9007_v43 = vadd.f32 %v8927_v27, %v8951_v8 }
 0x45b   :  { %7060 = vmatpush3.bf16.msra.mxu0 %v7194_v14 }
 0x52d   :  { %v8956_v34 = vpop.f32.mrb[16].mxu0 }
 0x52e   :  { %12239 = vst [vmem:[#allocation54_spill] sm:$0xff] %v8956_v34  ;;  %v8961_v28 = vadd.f32 %v1585_v13, %v8956_v34  ;;  %v7057_v1 = vpop.f32.mrb[17].mxu0  ;;  %v1606_v44 = vadd.f32 %v1604_v35, %v8956_v34 }
 0x52f   :  { %v8969_v60 = vpop.f32.mrb[18].mxu0 }
 0x530   :  { %12240 = vst [vmem:[#allocation55_spill] sm:$0xff] %v8969_v60  ;;  %v8974_v40 = vadd.f32 %v1585_v13, %v8969_v60  ;;  %v7058_v9 = vpop.f32.mrb[19].mxu0  ;;  %1918 = vrot.lane.b32.xlu0 %v1606_v44, %s7961_s22  ;;  %v1607_v10 = vadd.f32 %v1604_v35, %v8969_v60  ;;  %v1610_v16 = vcombine.high %v8961_v28, %v8961_v28  ;;  %v7195_v13 = vld [vmem:[#allocation7 + $0x28] sm:$0xff]  }
 0x531   :  { %v1617_v39 = vrot.slane %v8961_v28, %v12242_v49  ;;  %v9011_v44 = vadd.f32 %v8929_v36, %v8951_v8  ;;  %7061 = vmatprep.subr.bf16.mxu0 %v7195_v13 }
 0x532   :  { %1920 = vrot.lane.b32.xlu1 %v1607_v10, %s7961_s22  ;;  %v8996_v35 = vrot.slane %v1610_v16, %v12242_v49  ;;  %v1659_v48 = vcombine.high %v8974_v40, %v8974_v40  ;;  %v1666_v9 = vrot.slane %v8974_v40, %v12242_v49  ;;  %7062 = vmatpush3.bf16.msra.mxu0 %v7195_v13 }
 0x533   :  { %v1625_v1 = vcombine.high %v1617_v39, %v1617_v39  ;;  %v1633_v37 = vrot.slane %v1617_v39, %v12242_v49  ;;  %7107 = vmatprep.subr.bf16.mxu0 %v12229_v5 }
 0x534   :  { %1593 = vrot.lane.b32.xlu0 %v1591_v15, %s7967_s2  ;;  %v9018_v10 = vrot.slane %v8996_v35, %v12242_v49  ;;  %v1673_v39 = vrot.slane %v1659_v48, %v12242_v49  ;;  %v1674_v38 = vcombine.high %v1666_v9, %v1666_v9  ;;  %v1682_v36 = vrot.slane %v1666_v9, %v12242_v49 }
 0x535   :  { %v1647_v31 = vrot.slane %v1625_v1, %v12242_v49  ;;  %v1655_v16 = vcombine.high %v1633_v37, %v1633_v37  ;;  %v1711_v27 = vrot.slane %v1633_v37, %v12237_v22 }
 0x536   :  { %v1727_v1 = vrot.slane %v9018_v10, %v12237_v22  ;;  %v1675_v50 = vcombine.high %v1673_v39, %v1673_v39  ;;  %v1689_v37 = vrot.slane %v1673_v39, %v12242_v49  ;;  %v1696_v48 = vrot.slane %v1674_v38, %v12242_v49 }
 0x537   :  { %v1657_v0 = vcombine.high %v1647_v31, %v1647_v31  ;;  %v1715_v15 = vrot.slane %v1647_v31, %v12237_v22  ;;  %v1719_v20 = vrot.slane %v1655_v16, %v12237_v22  ;;  %v1788_v30 = vadd.f32 %v1711_v27, %v1463_v55 }
 0x538   :  { %v1792_v14 = vadd.f32 %v1727_v1, %v1479_v12  ;;  %v1703_v16 = vrot.slane %v1675_v50, %v12242_v49  ;;  %v1704_v60 = vcombine.high %v1682_v36, %v1682_v36  ;;  %v1705_v55 = vcombine.high %v1689_v37, %v1689_v37 }
 0x539   :  { %v1723_v9 = vrot.slane %v1657_v0, %v12237_v22  ;;  %v1789_v52 = vadd.f32 %v1715_v15, %v1466_v46  ;;  %v1790_v45 = vadd.f32 %v1719_v20, %v1471_v56  ;;  %v9035_v31 = vadd.f32 %v1788_v30, %v8961_v28 }
 0x53a   :  { %v9045_v0 = vadd.f32 %v1792_v14, %v8961_v28  ;;  %v1706_v56 = vcombine.high %v1696_v48, %v1696_v48  ;;  %v1707_v46 = vcombine.high %v1703_v16, %v1703_v16  ;;  %v1747_v33 = vrot.slane %v1696_v48, %v12237_v22 }
 0x53b   :  { %v1791_v27 = vadd.f32 %v1723_v9, %v1474_v4  ;;  %v9039_v39 = vadd.f32 %v1789_v52, %v8961_v28  ;;  %v9042_v38 = vadd.f32 %v1790_v45, %v8961_v28  ;;  %v1820_v20 = vsub.f32 0.0, %v9035_v31 }
 0x53c   :  { %v2250_v30 = vsel %vm265_vm1, %v9035_v31, 0.0  ;;  %v1824_v45 = vsub.f32 0.0, %v9045_v0  ;;  %v2257_v15 = vsel %vm265_vm1, %v9045_v0, 0.0  ;;  %v1751_v47 = vrot.slane %v1704_v60, %v12237_v22 }
 0x53d   :  { %v9051_v50 = vadd.f32 %v1791_v27, %v8961_v28  ;;  %v1821_v4 = vsub.f32 0.0, %v9039_v39  ;;  %v1822_v52 = vsub.f32 0.0, %v9042_v38  ;;  %v1836_v12 = vmul.f32 1.442695, %v1820_v20 }
 0x53e   :  { %v2251_v13 = vsel %vm265_vm1, %v9039_v39, 0.0  ;;  %v2253_v14 = vsel %vm265_vm1, %v9042_v38, 0.0  ;;  %v1844_v5 = vmul.f32 1.442695, %v1824_v45  ;;  %v1743_v20 = vrot.slane %v1682_v36, %v12237_v22 }
 0x53f   :  { %v1823_v1 = vsub.f32 0.0, %v9051_v50  ;;  %v1838_v9 = vmul.f32 1.442695, %v1821_v4  ;;  %v1840_v27 = vmul.f32 1.442695, %v1822_v52  ;;  %v2252_v34 = vadd.f32 %v2251_v13, %v2250_v30 }
 0x540   :  { %7310 = vpow2.f32 %v1836_v12  ;;  %v2255_v54 = vsel %vm265_vm1, %v9051_v50, 0.0  ;;  %v1755_v58 = vrot.slane %v1706_v56, %v12237_v22  ;;  %v1759_v4 = vrot.slane %v1689_v37, %v12237_v22 }
 0x541   :  { %7312 = vpow2.f32 %v1838_v9  ;;  %v1842_v26 = vmul.f32 1.442695, %v1823_v1  ;;  %v2254_v61 = vadd.f32 %v2253_v14, %v2252_v34  ;;  %v1763_v52 = vrot.slane %v1703_v16, %v12237_v22 }
 0x542   :  { %7314 = vpow2.f32 %v1840_v27  ;;  %v1767_v45 = vrot.slane %v1705_v55, %v12237_v22  ;;  %v1771_v36 = vrot.slane %v1707_v46, %v12237_v22  ;;  %v1796_v34 = vadd.f32 %v1743_v20, %v8983_v42 }
 0x543   :  { %7316 = vpow2.f32 %v1842_v26  ;;  %v2256_v30 = vadd.f32 %v2255_v54, %v2254_v61  ;;  %v1797_v48 = vadd.f32 %v1747_v33, %v8989_v6  ;;  %v1798_v60 = vadd.f32 %v1751_v47, %v8967_v24 }
 0x544   :  { %7318 = vpow2.f32 %v1844_v5  ;;  %v1799_v56 = vadd.f32 %v1755_v58, %v8986_v23  ;;  %v1800_v37 = vadd.f32 %v1759_v4, %v9003_v57  ;;  %v1801_v61 = vadd.f32 %v1763_v52, %v9011_v44 }
 0x545   :  { %v2258_v12 = vadd.f32 %v2257_v15, %v2256_v30  ;;  %v1802_v26 = vadd.f32 %v1767_v45, %v8992_v63  ;;  %v1803_v54 = vadd.f32 %v1771_v36, %v9007_v43  ;;  %v9082_v5 = vadd.f32 %v1796_v34, %v8974_v40 }
 0x546   :  { %v9085_v42 = vadd.f32 %v1797_v48, %v8974_v40  ;;  %v9088_v33 = vadd.f32 %v1798_v60, %v8974_v40  ;;  %v9091_v47 = vadd.f32 %v1799_v56, %v8974_v40  ;;  %v9094_v58 = vadd.f32 %v1800_v37, %v8974_v40 }
 0x547   :  { %v9097_v24 = vadd.f32 %v1802_v26, %v8974_v40  ;;  %v1828_v23 = vsub.f32 0.0, %v9082_v5  ;;  %v12243_v43 = vcombine.high %v8996_v35, %v8996_v35  ;;  %v1487_v55 = vadd.f32 %v8919_v25, %v8951_v8 }
 0x548   :  { %v1829_v6 = vsub.f32 0.0, %v9085_v42  ;;  %v1490_v46 = vadd.f32 %v8921_v62, %v8951_v8  ;;  %v1482_v15 = vadd.f32 %v8923_v2, %v8951_v8  ;;  %v1830_v9 = vsub.f32 0.0, %v9088_v33 }
 0x549   :  { %v1852_v57 = vmul.f32 1.442695, %v1828_v23  ;;  %v1654_v44 = vrot.slane %v12243_v43, %v12242_v49  ;;  %v1656_v4 = vcombine.high %v9018_v10, %v9018_v10  ;;  %v9117_v8 = vadd.f32 %v1801_v61, %v8974_v40 }
 0x54a   :  { %v7311_v63 = vpop.eup %7310  ;;  %v1854_v35 = vmul.f32 1.442695, %v1829_v6  ;;  %v9121_v48 = vadd.f32 %v1803_v54, %v8974_v40  ;;  %v1856_v37 = vmul.f32 1.442695, %v1830_v9 }
 0x54b   :  { %v7313_v16 = vpop.eup %7312  ;;  %v1868_v13 = vadd.f32 1.0, %v7311_v63  ;;  %7320 = vpow2.f32 %v1852_v57  ;;  %v1658_v62 = vcombine.high %v1654_v44, %v1654_v44  ;;  %v1731_v52 = vrot.slane %v1654_v44, %v12237_v22 }
 0x54c   :  { %v7315_v14 = vpop.eup %7314  ;;  %v1869_v1 = vadd.f32 1.0, %v7313_v16  ;;  %v1735_v2 = vrot.slane %v1656_v4, %v12237_v22  ;;  %v1831_v57 = vsub.f32 0.0, %v9091_v47 }
 0x54d   :  { %v7317_v27 = vpop.eup %7316  ;;  %v1870_v20 = vadd.f32 1.0, %v7315_v14  ;;  %7322 = vrcp.f32 %v1868_v13  ;;  %v1739_v36 = vrot.slane %v1658_v62, %v12237_v22  ;;  %v1793_v34 = vadd.f32 %v1731_v52, %v1482_v15 }
 0x54e   :  { %v7319_v25 = vpop.eup %7318  ;;  %v1871_v30 = vadd.f32 1.0, %v7317_v27  ;;  %7324 = vrcp.f32 %v1869_v1  ;;  %v1794_v10 = vadd.f32 %v1735_v2, %v1487_v55  ;;  %v1832_v1 = vsub.f32 0.0, %v9094_v58 }
 0x54f   :  { %v1872_v45 = vadd.f32 1.0, %v7319_v25  ;;  %7326 = vrcp.f32 %v1870_v20  ;;  %v1795_v60 = vadd.f32 %v1739_v36, %v1490_v46  ;;  %v9124_v56 = vadd.f32 %v1793_v34, %v8961_v28 }
 0x550   :  { %7328 = vrcp.f32 %v1871_v30  ;;  %v9127_v26 = vadd.f32 %v1794_v10, %v8961_v28  ;;  %v1858_v4 = vmul.f32 1.442695, %v1831_v57  ;;  %v2265_v25 = vsel %vm265_vm1, %v9082_v5, 0.0 }
 0x551   :  { %7330 = vrcp.f32 %v1872_v45  ;;  %v9130_v61 = vadd.f32 %v1795_v60, %v8961_v28  ;;  %v2259_v23 = vsel %vm265_vm1, %v9124_v56, 0.0  ;;  %v1825_v40 = vsub.f32 0.0, %v9124_v56 }
 0x552   :  { %7332 = vpow2.f32 %v1854_v35  ;;  %v2260_v54 = vadd.f32 %v2259_v23, %v2258_v12  ;;  %v1826_v6 = vsub.f32 0.0, %v9127_v26  ;;  %v2261_v43 = vsel %vm265_vm1, %v9127_v26, 0.0 }
 0x553   :  { %v1846_v44 = vmul.f32 1.442695, %v1825_v40  ;;  %7334 = vpow2.f32 %v1856_v37  ;;  %v1827_v55 = vsub.f32 0.0, %v9130_v61  ;;  %v2263_v12 = vsel %vm265_vm1, %v9130_v61, 0.0 }
 0x554   :  { %v2262_v28 = vadd.f32 %v2261_v43, %v2260_v54  ;;  %v1848_v46 = vmul.f32 1.442695, %v1826_v6  ;;  %v2267_v52 = vsel %vm265_vm1, %v9085_v42, 0.0  ;;  %v2269_v60 = vsel %vm265_vm1, %v9088_v33, 0.0 }
 0x555   :  { %v7321_v63 = vpop.eup %7320  ;;  %7336 = vpow2.f32 %v1846_v44  ;;  %v1850_v2 = vmul.f32 1.442695, %v1827_v55  ;;  %v1860_v40 = vmul.f32 1.442695, %v1832_v1  ;;  %v1833_v6 = vsub.f32 0.0, %v9117_v8 }
 0x556   :  { %v2264_v9 = vadd.f32 %v2263_v12, %v2262_v28  ;;  %7338 = vpow2.f32 %v1848_v46  ;;  %v1876_v10 = vadd.f32 1.0, %v7321_v63  ;;  %v1834_v57 = vsub.f32 0.0, %v9097_v24 }
 0x557   :  { %v9139_v16 = vpop.eup %7322  ;;  %7340 = vpow2.f32 %v1858_v4  ;;  %v2271_v12 = vsel %vm265_vm1, %v9091_v47, 0.0  ;;  %v2277_v22 = vsel %vm265_vm1, %v9097_v24, 0.0 }
 0x558   :  { %v9142_v13 = vpop.eup %7324  ;;  %v2052_v14 = vsel %vm265_vm1, %v9139_v16, 0.0  ;;  %v2266_v45 = vadd.f32 %v2265_v25, %v2264_v9  ;;  %7342 = vpow2.f32 %v1850_v2  ;;  %v2273_v9 = vsel %vm265_vm1, %v9094_v58, 0.0 }
 0x559   :  { %v9148_v15 = vpop.eup %7326  ;;  %v2053_v27 = vrot.slane %v2052_v14, 4  ;;  %v2059_v20 = vsel %vm265_vm1, %v9142_v13, 0.0  ;;  %7344 = vrcp.f32 %v1876_v10 }
 0x55a   :  { %v9153_v35 = vpop.eup %7328  ;;  %v2060_v30 = vrot.slane %v2059_v20, 4  ;;  %v2066_v36 = vsel %vm265_vm1, %v9148_v15, 0.0  ;;  %v2268_v54 = vadd.f32 %v2267_v52, %v2266_v45  ;;  %7346 = vpow2.f32 %v1860_v40 }
 0x55b   :  { %v9157_v62 = vpop.eup %7330  ;;  %v2054_v37 = vadd.f32 %v2053_v27, %v2052_v14  ;;  %v2073_v23 = vsel %vm265_vm1, %v9153_v35, 0.0  ;;  %v2067_v44 = vrot.slane %v2066_v36, 4 }
 0x55c   :  { %v7333_v34 = vpop.eup %7332  ;;  %v2061_v43 = vadd.f32 %v2060_v30, %v2059_v20  ;;  %v2074_v28 = vrot.slane %v2073_v23, 4  ;;  %v2270_v46 = vadd.f32 %v2269_v60, %v2268_v54  ;;  %v2080_v63 = vsel %vm265_vm1, %v9157_v62, 0.0 }
 0x55d   :  { %v1877_v55 = vadd.f32 1.0, %v7333_v34  ;;  %v2055_v14 = vrot.slane %v2054_v37, 2  ;;  %v7335_v1 = vpop.eup %7334  ;;  %v1862_v20 = vmul.f32 1.442695, %v1833_v6  ;;  %v2068_v30 = vadd.f32 %v2067_v44, %v2066_v36 }
 0x55e   :  { %v2272_v27 = vadd.f32 %v2271_v12, %v2270_v46  ;;  %v2062_v25 = vrot.slane %v2061_v43, 2  ;;  %v2075_v52 = vadd.f32 %v2074_v28, %v2073_v23  ;;  %v2081_v45 = vrot.slane %v2080_v63, 4 }
 0x55f   :  { %v7337_v4 = vpop.eup %7336  ;;  %7348 = vrcp.f32 %v1877_v55  ;;  %v1864_v34 = vmul.f32 1.442695, %v1834_v57  ;;  %v2275_v60 = vsel %vm265_vm1, %v9117_v8, 0.0  ;;  %v2056_v49 = vadd.f32 %v2055_v14, %v2054_v37 }
 0x560   :  { %v2274_v2 = vadd.f32 %v2273_v9, %v2272_v27  ;;  %v7339_v10 = vpop.eup %7338  ;;  %v1873_v54 = vadd.f32 1.0, %v7337_v4  ;;  %v1878_v40 = vadd.f32 1.0, %v7335_v1  ;;  %7350 = vpow2.f32 %v1862_v20 }
 0x561   :  { %v2063_v6 = vadd.f32 %v2062_v25, %v2061_v43  ;;  %v2069_v12 = vrot.slane %v2068_v30, 2  ;;  %v2076_v36 = vrot.slane %v2075_v52, 2  ;;  %v2082_v23 = vadd.f32 %v2081_v45, %v2080_v63  ;;  %v7341_v57 = vpop.eup %7340 }
 0x562   :  { %v2276_v46 = vadd.f32 %v2275_v60, %v2274_v2  ;;  %v1874_v28 = vadd.f32 1.0, %v7339_v10  ;;  %7352 = vpow2.f32 %v1864_v34  ;;  %v2279_v55 = vsel %vm265_vm1, %v9121_v48, 0.0  ;;  %v7343_v37 = vpop.eup %7342 }
 0x563   :  { %7354 = vrcp.f32 %v1873_v54  ;;  %v2057_v9 = vrot.slane %v2056_v49, 1  ;;  %v9181_v1 = vpop.eup %7344  ;;  %v2064_v27 = vrot.slane %v2063_v6, 1  ;;  %v2070_v20 = vadd.f32 %v2069_v12, %v2068_v30 }
 0x564   :  { %v2278_v44 = vadd.f32 %v2277_v22, %v2276_v46  ;;  %7356 = vrcp.f32 %v1878_v40  ;;  %v2077_v43 = vadd.f32 %v2076_v36, %v2075_v52  ;;  %v2083_v4 = vrot.slane %v2082_v23, 2  ;;  %v7347_v25 = vpop.eup %7346 }
 0x565   :  { %7358 = vrcp.f32 %v1874_v28  ;;  %v1875_v22 = vadd.f32 1.0, %v7343_v37  ;;  %v2058_v45 = vadd.f32 %v2057_v9, %v2056_v49  ;;  %v1879_v34 = vadd.f32 1.0, %v7341_v57 }
 0x566   :  { %v2280_v14 = vadd.f32 %v2279_v55, %v2278_v44  ;;  %v1835_v60 = vsub.f32 0.0, %v9121_v48  ;;  %v2108_v54 = vsel %vm265_vm1, %v9181_v1, 0.0  ;;  %v2065_v40 = vadd.f32 %v2064_v27, %v2063_v6 }
 0x567   :  { %v2071_v46 = vrot.slane %v2070_v20, 1  ;;  %v2078_v44 = vrot.slane %v2077_v43, 1  ;;  %v2084_v30 = vadd.f32 %v2083_v4, %v2082_v23  ;;  %v1880_v12 = vadd.f32 1.0, %v7347_v25 }
 0x568   :  { %v2281_v63 = vrot.slane %v2280_v14, 4  ;;  %7360 = vrcp.f32 %v1875_v22  ;;  %v2164_v28 = vadd.f32 1e-20, %v2058_v45  ;;  %v2109_v55 = vrot.slane %v2108_v54, 4 }
 0x569   :  { %v9183_v2 = vpop.eup %7348  ;;  %7362 = vrcp.f32 %v1879_v34  ;;  %v1866_v37 = vmul.f32 1.442695, %v1835_v60  ;;  %v2079_v6 = vadd.f32 %v2078_v44, %v2077_v43  ;;  %v2085_v27 = vrot.slane %v2084_v30, 1 }
 0x56a   :  { %v2282_v10 = vadd.f32 %v2281_v63, %v2280_v14  ;;  %v7351_v52 = vpop.eup %7350  ;;  %v2115_v49 = vsel %vm265_vm1, %v9183_v2, 0.0  ;;  %v2072_v63 = vadd.f32 %v2071_v46, %v2070_v20  ;;  %v2165_v11 = vadd.f32 1e-20, %v2065_v40 }
 0x56b   :  { %7364 = vrcp.f32 %v1880_v12  ;;  %v1881_v25 = vadd.f32 1.0, %v7351_v52  ;;  %v2116_v22 = vrot.slane %v2115_v49, 4  ;;  %v2110_v51 = vadd.f32 %v2109_v55, %v2108_v54 }
 0x56c   :  { %v2283_v36 = vrot.slane %v2282_v10, 2  ;;  %v7353_v57 = vpop.eup %7352  ;;  %7366 = vrcp.f32 %v2164_v28  ;;  %v2086_v20 = vadd.f32 %v2085_v27, %v2084_v30  ;;  %v2166_v43 = vadd.f32 1e-20, %v2072_v63 }
 0x56d   :  { %v9190_v14 = vpop.eup %7354  ;;  %v1882_v45 = vadd.f32 1.0, %v7353_v57  ;;  %7368 = vpow2.f32 %v1866_v37  ;;  %v2167_v60 = vadd.f32 1e-20, %v2079_v6  ;;  %v2117_v46 = vadd.f32 %v2116_v22, %v2115_v49 }
 0x56e   :  { %v2284_v9 = vadd.f32 %v2283_v36, %v2282_v10  ;;  %v9192_v23 = vpop.eup %7356  ;;  %v2087_v10 = vsel %vm265_vm1, %v9190_v14, 0.0  ;;  %7370 = vrcp.f32 %v2165_v11  ;;  %v2111_v12 = vrot.slane %v2110_v51, 2 }
 0x56f   :  { %v9194_v18 = vpop.eup %7358  ;;  %7372 = vrcp.f32 %v1881_v25  ;;  %v2122_v44 = vsel %vm265_vm1, %v9192_v23, 0.0  ;;  %v2088_v52 = vrot.slane %v2087_v10, 4  ;;  %v2168_v6 = vadd.f32 1e-20, %v2086_v20 }
 0x570   :  { %v2285_v4 = vrot.slane %v2284_v9, 1  ;;  %v2094_v54 = vsel %vm265_vm1, %v9194_v18, 0.0  ;;  %7374 = vrcp.f32 %v1882_v45  ;;  %v2123_v63 = vrot.slane %v2122_v44, 4 }
 0x571   :  { %7376 = vrcp.f32 %v2166_v43  ;;  %v2089_v45 = vadd.f32 %v2088_v52, %v2087_v10 }
 0x572   :  { %v2286_v34 = vadd.f32 %v2285_v4, %v2284_v9  ;;  %v9214_v55 = vpop.eup %7360  ;;  %v2095_v4 = vrot.slane %v2094_v54, 4  ;;  %7378 = vrcp.f32 %v2167_v60  ;;  %v2124_v17 = vadd.f32 %v2123_v63, %v2122_v44 }
 0x573   :  { %v9228_v9 = vpop.eup %7362  ;;  %7380 = vrcp.f32 %v2168_v6 }
 0x574   :  { %v2287_v40 = vmul.f32 0.0078125, %v2286_v34  ;;  %v2129_v25 = vsel %vm265_vm1, %v9228_v9, 0.0  ;;  %v2096_v21 = vadd.f32 %v2095_v4, %v2094_v54 }
 0x575   :  { %v2130_v52 = vrot.slane %v2129_v25, 4 }
 0x576   :  { %v9203_v36 = vsub.f32 %v9035_v31, %v2287_v40  ;;  %v9206_v30 = vsub.f32 %v9039_v39, %v2287_v40  ;;  %v9209_v11 = vsub.f32 %v9042_v38, %v2287_v40  ;;  %v9212_v28 = vsub.f32 %v9051_v50, %v2287_v40 }
 0x577   :  { %v9217_v49 = vsub.f32 %v9045_v0, %v2287_v40  ;;  %v9220_v57 = vsub.f32 %v9124_v56, %v2287_v40  ;;  %v9223_v31 = vsub.f32 %v9127_v26, %v2287_v40  ;;  %v9226_v39 = vsub.f32 %v9130_v61, %v2287_v40 }
 0x578   :  { %12244 = vst [vmem:[#allocation31_spill] sm:$0xff] %v9203_v36  ;;  %12245 = vst [vmem:[#allocation30_spill] sm:$0xff] %v9206_v30  ;;  %v9231_v38 = vsub.f32 %v9082_v5, %v2287_v40  ;;  %v9234_v50 = vsub.f32 %v9085_v42, %v2287_v40  ;;  %v9237_v0 = vsub.f32 %v9088_v33, %v2287_v40  ;;  %v9254_v42 = vpop.eup %7364 }
 0x579   :  { %12246 = vst [vmem:[#allocation57_spill] sm:$0xff] %v9209_v11  ;;  %12247 = vst [vmem:[#allocation33_spill] sm:$0xff] %v9212_v28  ;;  %v9240_v56 = vsub.f32 %v9091_v47, %v2287_v40  ;;  %v9243_v26 = vsub.f32 %v9094_v58, %v2287_v40  ;;  %v9246_v61 = vsub.f32 %v9117_v8, %v2287_v40  ;;  %v2101_v58 = vsel %vm265_vm1, %v9214_v55, 0.0  ;;  %v9262_v8 = vpop.eup %7366 }
 0x57a   :  { %12248 = vst [vmem:[#allocation32_spill] sm:$0xff] %v9217_v49  ;;  %12249 = vst [vmem:[#allocation58_spill] sm:$0xff] %v9220_v57  ;;  %v9249_v37 = vsub.f32 %v9097_v24, %v2287_v40  ;;  %v9252_v5 = vsub.f32 %v9121_v48, %v2287_v40  ;;  %v2304_v33 = vmul.f32 %v9203_v36, %v9203_v36  ;;  %v2118_v24 = vrot.slane %v2117_v46, 2  ;;  %v7369_v27 = vpop.eup %7368 }
 0x57b   :  { %12250 = vst [vmem:[#allocation35_spill] sm:$0xff] %v9223_v31  ;;  %12251 = vst [vmem:[#allocation34_spill] sm:$0xff] %v9226_v39  ;;  %v2305_v47 = vmul.f32 %v9206_v30, %v9206_v30  ;;  %v2306_v48 = vmul.f32 %v9209_v11, %v9209_v11  ;;  %v9268_v22 = vpop.eup %7370  ;;  %v2102_v34 = vrot.slane %v2101_v58, 4  ;;  %v2112_v40 = vadd.f32 %v2111_v12, %v2110_v51 }
 0x57c   :  { %12252 = vst [vmem:[#allocation37_spill] sm:$0xff] %v9234_v50  ;;  %12253 = vst [vmem:[#allocation36_spill] sm:$0xff] %v9237_v0  ;;  %v2136_v3 = vsel %vm265_vm1, %v9254_v42, 0.0  ;;  %v9272_v20 = vpop.eup %7372  ;;  %v2307_v43 = vmul.f32 %v9212_v28, %v9212_v28  ;;  %v2320_v59 = vsel %vm265_vm1, %v2304_v33, 0.0  ;;  %v1883_v32 = vadd.f32 1.0, %v7369_v27 }
 0x57d   :  { %12254 = vst [vmem:[#allocation39_spill] sm:$0xff] %v9240_v56  ;;  %v2321_v60 = vsel %vm265_vm1, %v2305_v47, 0.0  ;;  %v9278_v7 = vpop.eup %7374  ;;  %v2119_v10 = vadd.f32 %v2118_v24, %v2117_v46  ;;  %v2308_v51 = vmul.f32 %v9217_v49, %v9217_v49  ;;  %v2323_v12 = vsel %vm265_vm1, %v2306_v48, 0.0 }
 0x57e   :  { %v2322_v19 = vadd.f32 %v2321_v60, %v2320_v59  ;;  %v2090_v28 = vrot.slane %v2089_v45, 2  ;;  %v2103_v30 = vadd.f32 %v2102_v34, %v2101_v58  ;;  %v2113_v33 = vrot.slane %v2112_v40, 1  ;;  %v9291_v6 = vpop.eup %7376 }
 0x57f   :  { %v2309_v44 = vmul.f32 %v9220_v57, %v9220_v57  ;;  %v2325_v47 = vsel %vm265_vm1, %v2307_v43, 0.0  ;;  %v2125_v59 = vrot.slane %v2124_v17, 2  ;;  %v2137_v63 = vrot.slane %v2136_v3, 4 }
 0x580   :  { %v2324_v11 = vadd.f32 %v2323_v12, %v2322_v19  ;;  %7382 = vrcp.f32 %v1883_v32  ;;  %v2120_v24 = vrot.slane %v2119_v10, 1  ;;  %v2131_v27 = vadd.f32 %v2130_v52, %v2129_v25  ;;  %v9293_v12 = vpop.eup %7378 }
 0x581   :  { %v2310_v48 = vmul.f32 %v9223_v31, %v9223_v31  ;;  %v2327_v54 = vsel %vm265_vm1, %v2308_v51, 0.0  ;;  %v2097_v19 = vrot.slane %v2096_v21, 2  ;;  %v2143_v58 = vsel %vm265_vm1, %v9272_v20, 0.0 }
 0x582   :  { %v2326_v46 = vadd.f32 %v2325_v47, %v2324_v11  ;;  %v2091_v34 = vadd.f32 %v2090_v28, %v2089_v45  ;;  %v2104_v43 = vrot.slane %v2103_v30, 2  ;;  %v2144_v60 = vrot.slane %v2143_v58, 4 }
 0x583   :  { %v2311_v32 = vmul.f32 %v9226_v39, %v9226_v39  ;;  %v2329_v11 = vsel %vm265_vm1, %v2309_v44, 0.0  ;;  %v2138_v25 = vadd.f32 %v2137_v63, %v2136_v3  ;;  %v2150_v52 = vsel %vm265_vm1, %v9278_v7, 0.0  ;;  %v9303_v44 = vpop.eup %7380 }
 0x584   :  { %v2328_v4 = vadd.f32 %v2327_v54, %v2326_v46  ;;  %v2126_v47 = vadd.f32 %v2125_v59, %v2124_v17  ;;  %v2145_v31 = vadd.f32 %v2144_v60, %v2143_v58  ;;  %v2151_v57 = vrot.slane %v2150_v52, 4 }
 0x585   :  { %v2312_v28 = vmul.f32 %v9231_v38, %v9231_v38  ;;  %v2331_v45 = vsel %vm265_vm1, %v2310_v48, 0.0  ;;  %v2098_v46 = vadd.f32 %v2097_v19, %v2096_v21  ;;  %v2114_v54 = vadd.f32 %v2113_v33, %v2112_v40 }
 0x586   :  { %v2330_v51 = vadd.f32 %v2329_v11, %v2328_v4  ;;  %v2105_v36 = vadd.f32 %v2104_v43, %v2103_v30  ;;  %v2132_v39 = vrot.slane %v2131_v27, 2  ;;  %v2152_v53 = vadd.f32 %v2151_v57, %v2150_v52 }
 0x587   :  { %v2313_v3 = vmul.f32 %v9234_v50, %v9234_v50  ;;  %v2333_v17 = vsel %vm265_vm1, %v2311_v32, 0.0  ;;  %v2092_v59 = vrot.slane %v2091_v34, 1  ;;  %v2139_v63 = vrot.slane %v2138_v25, 2 }
 0x588   :  { %v2332_v49 = vadd.f32 %v2331_v45, %v2330_v51  ;;  %v2121_v4 = vadd.f32 %v2120_v24, %v2119_v10  ;;  %v2127_v60 = vrot.slane %v2126_v47, 1  ;;  %v2146_v11 = vrot.slane %v2145_v31, 2 }
 0x589   :  { %v2314_v21 = vmul.f32 %v9237_v0, %v9237_v0  ;;  %v2335_v30 = vsel %vm265_vm1, %v2312_v28, 0.0  ;;  %v2099_v40 = vrot.slane %v2098_v46, 1  ;;  %v2153_v57 = vrot.slane %v2152_v53, 2 }
 0x58a   :  { %v2334_v58 = vadd.f32 %v2333_v17, %v2332_v49  ;;  %v9311_v33 = vpop.eup %7382  ;;  %v2315_v48 = vmul.f32 %v9240_v56, %v9240_v56  ;;  %v2106_v43 = vrot.slane %v2105_v36, 1  ;;  %v2133_v32 = vadd.f32 %v2132_v39, %v2131_v27 }
 0x58b   :  { %v2337_v49 = vsel %vm265_vm1, %v2313_v3, 0.0  ;;  %v2093_v10 = vadd.f32 %v2092_v59, %v2091_v34  ;;  %v2140_v24 = vadd.f32 %v2139_v63, %v2138_v25  ;;  %v2157_v52 = vsel %vm265_vm1, %v9311_v33, 0.0 }
 0x58c   :  { %v2336_v19 = vadd.f32 %v2335_v30, %v2334_v58  ;;  %v2128_v45 = vadd.f32 %v2127_v60, %v2126_v47  ;;  %v2147_v28 = vadd.f32 %v2146_v11, %v2145_v31  ;;  %v2158_v17 = vrot.slane %v2157_v52, 4 }
 0x58d   :  { %v2316_v0 = vmul.f32 %v9243_v26, %v9243_v26  ;;  %v2339_v50 = vsel %vm265_vm1, %v2314_v21, 0.0  ;;  %v2100_v56 = vadd.f32 %v2099_v40, %v2098_v46  ;;  %v2154_v58 = vadd.f32 %v2153_v57, %v2152_v53 }
 0x58e   :  { %v2338_v51 = vadd.f32 %v2337_v49, %v2336_v19  ;;  %v2107_v39 = vadd.f32 %v2106_v43, %v2105_v36  ;;  %v2134_v27 = vrot.slane %v2133_v32, 1  ;;  %v2159_v3 = vadd.f32 %v2158_v17, %v2157_v52 }
 0x58f   :  { %v2317_v34 = vmul.f32 %v9246_v61, %v9246_v61  ;;  %v2341_v25 = vsel %vm265_vm1, %v2315_v48, 0.0  ;;  %v2169_v59 = vadd.f32 1e-20, %v2093_v10  ;;  %v2141_v47 = vrot.slane %v2140_v24, 1 }
 0x590   :  { %v2340_v30 = vadd.f32 %v2339_v50, %v2338_v51  ;;  %v2318_v31 = vmul.f32 %v9249_v37, %v9249_v37  ;;  %v2148_v60 = vrot.slane %v2147_v28, 1  ;;  %v2160_v11 = vrot.slane %v2159_v3, 2 }
 0x591   :  { %v2319_v53 = vmul.f32 %v9252_v5, %v9252_v5  ;;  %v2343_v36 = vsel %vm265_vm1, %v2316_v0, 0.0  ;;  %v2170_v50 = vadd.f32 1e-20, %v2100_v56  ;;  %v2155_v46 = vrot.slane %v2154_v58, 1 }
 0x592   :  { %v2342_v63 = vadd.f32 %v2341_v25, %v2340_v30  ;;  %v2171_v40 = vadd.f32 1e-20, %v2107_v39  ;;  %v2135_v57 = vadd.f32 %v2134_v27, %v2133_v32  ;;  %v2161_v19 = vadd.f32 %v2160_v11, %v2159_v3 }
 0x593   :  { %v2345_v48 = vsel %vm265_vm1, %v2317_v34, 0.0  ;;  %7384 = vrcp.f32 %v2169_v59  ;;  %v2142_v43 = vadd.f32 %v2141_v47, %v2140_v24  ;;  %v2172_v49 = vadd.f32 1e-20, %v2114_v54 }
 0x594   :  { %v2344_v21 = vadd.f32 %v2343_v36, %v2342_v63  ;;  %v2149_v52 = vadd.f32 %v2148_v60, %v2147_v28  ;;  %v2162_v51 = vrot.slane %v2161_v19, 1  ;;  %v2173_v17 = vadd.f32 1e-20, %v2121_v4 }
 0x595   :  { %v2347_v30 = vsel %vm265_vm1, %v2318_v31, 0.0  ;;  %7386 = vrcp.f32 %v2170_v50  ;;  %v2156_v25 = vadd.f32 %v2155_v46, %v2154_v58  ;;  %v2174_v0 = vadd.f32 1e-20, %v2128_v45 }
 0x596   :  { %v2346_v10 = vadd.f32 %v2345_v48, %v2344_v21  ;;  %7388 = vrcp.f32 %v2171_v40  ;;  %v2175_v63 = vadd.f32 1e-20, %v2135_v57  ;;  %v2349_v32 = vsel %vm265_vm1, %v2319_v53, 0.0 }
 0x597   :  { %v2163_v39 = vadd.f32 %v2162_v51, %v2161_v19  ;;  %v2176_v27 = vadd.f32 1e-20, %v2142_v43  ;;  %7390 = vrcp.f32 %v2172_v49  ;;  %v2177_v24 = vadd.f32 1e-20, %v2149_v52 }
 0x598   :  { %v2348_v56 = vadd.f32 %v2347_v30, %v2346_v10  ;;  %7392 = vrcp.f32 %v2173_v17  ;;  %v2178_v54 = vadd.f32 1e-20, %v2156_v25  ;;  %v9345_v46 = vrot.slane %v8935_v41, %v12179_v29 }
 0x599   :  { %7394 = vrcp.f32 %v2174_v0  ;;  %v2179_v4 = vadd.f32 1e-20, %v2163_v39 }
 0x59a   :  { %v2350_v3 = vadd.f32 %v2349_v32, %v2348_v56  ;;  %7396 = vrcp.f32 %v2175_v63 }
 0x59b   :  { %7398 = vrcp.f32 %v2176_v27 }
 0x59c   :  { %v2351_v28 = vrot.slane %v2350_v3, 4  ;;  %7400 = vrcp.f32 %v2177_v24 }
 0x59d   :  { %v9332_v45 = vpop.eup %7384  ;;  %7402 = vrcp.f32 %v2178_v54 }
 0x59e   :  { %v2352_v34 = vadd.f32 %v2351_v28, %v2350_v3  ;;  %7404 = vrcp.f32 %v2179_v4 }
 0x59f   :  { %v9338_v11 = vpop.eup %7386 }
 0x5a0   :  { %v2353_v50 = vrot.slane %v2352_v34, 2  ;;  %v9347_v21 = vpop.eup %7388 }
 0x5a1   :  { %v9353_v40 = vpop.eup %7390 }
 0x5a2   :  { %v1919_v58 = vpop.permute.xlu0 %1918  ;;  %v9356_v41 = vpop.eup %7392 }
 0x5a3   :  { %v1924_v59 = vmul.f32 %v9139_v16, %v1919_v58  ;;  %v1925_v47 = vmul.f32 %v9142_v13, %v1919_v58  ;;  %v1926_v31 = vmul.f32 %v9148_v15, %v1919_v58  ;;  %v1927_v60 = vmul.f32 %v9153_v35, %v1919_v58  ;;  %v9366_v51 = vpop.eup %7394 }
 0x5a4   :  { %v1928_v53 = vmul.f32 %v9157_v62, %v1919_v58  ;;  %v9341_v36 = vpop.permute.xlu1 %1920  ;;  %v1929_v48 = vmul.f32 %v9190_v14, %v1919_v58  ;;  %v9368_v0 = vpop.eup %7396  ;;  %v1930_v4 = vmul.f32 %v9194_v18, %v1919_v58 }
 0x5a5   :  { %v1940_v16 = vsel %vm265_vm1, %v1924_v59, 0.0  ;;  %v1947_v13 = vsel %vm265_vm1, %v1925_v47, 0.0  ;;  %v1954_v15 = vsel %vm265_vm1, %v1926_v31, 0.0  ;;  %v1961_v35 = vsel %vm265_vm1, %v1927_v60, 0.0 }
 0x5a6   :  { %v1941_v62 = vrot.slane %v1940_v16, 4  ;;  %v1948_v57 = vrot.slane %v1947_v13, 4  ;;  %v1955_v19 = vrot.slane %v1954_v15, 4  ;;  %v1932_v43 = vmul.f32 %v9181_v1, %v9341_v36 }
 0x5a7   :  { %v1933_v49 = vmul.f32 %v9183_v2, %v9341_v36  ;;  %v1934_v10 = vmul.f32 %v9192_v23, %v9341_v36  ;;  %v1935_v52 = vmul.f32 %v9228_v9, %v9341_v36  ;;  %v1962_v14 = vrot.slane %v1961_v35, 4  ;;  %v9376_v23 = vpop.eup %7398 }
 0x5a8   :  { %v1942_v17 = vadd.f32 %v1941_v62, %v1940_v16  ;;  %v1949_v30 = vadd.f32 %v1948_v57, %v1947_v13  ;;  %v1956_v25 = vadd.f32 %v1955_v19, %v1954_v15  ;;  %v1996_v56 = vsel %vm265_vm1, %v1932_v43, 0.0  ;;  %v9378_v3 = vpop.eup %7400 }
 0x5a9   :  { %v2003_v1 = vsel %vm265_vm1, %v1933_v49, 0.0  ;;  %v2010_v2 = vsel %vm265_vm1, %v1934_v10, 0.0  ;;  %v9374_v63 = vsel %vm265_vm1, %v1935_v52, 0.0  ;;  %v1997_v39 = vrot.slane %v1996_v56, 4  ;;  %v9386_v59 = vpop.eup %7402 }
 0x5aa   :  { %v1943_v9 = vrot.slane %v1942_v17, 2  ;;  %v1950_v32 = vrot.slane %v1949_v30, 2  ;;  %v2004_v27 = vrot.slane %v2003_v1, 4  ;;  %v9382_v24 = vmul.f32 %v9254_v42, %v9341_v36  ;;  %v9395_v57 = vpop.eup %7404 }
 0x5ab   :  { %v2011_v54 = vrot.slane %v2010_v2, 4  ;;  %v9388_v47 = vadd.f32 %v1997_v39, %v1996_v56  ;;  %v2354_v60 = vadd.f32 %v2353_v50, %v2352_v34  ;;  %v1931_v16 = vmul.f32 %v9214_v55, %v1919_v58 }
 0x5ac   :  { %v9390_v31 = vadd.f32 %v2004_v27, %v2003_v1  ;;  %v1944_v15 = vadd.f32 %v1943_v9, %v1942_v17  ;;  %v1951_v62 = vadd.f32 %v1950_v32, %v1949_v30  ;;  %v1957_v42 = vrot.slane %v1956_v25, 2 }
 0x5ad   :  { %v9393_v13 = vadd.f32 %v2011_v54, %v2010_v2  ;;  %v1999_v19 = vrot.slane %v9388_v47, 2  ;;  %v2355_v43 = vrot.slane %v2354_v60, 1  ;;  %v1963_v49 = vadd.f32 %v1962_v14, %v1961_v35 }
 0x5ae   :  { %v2006_v18 = vrot.slane %v9390_v31, 2  ;;  %v1945_v10 = vrot.slane %v1944_v15, 1  ;;  %v1952_v52 = vrot.slane %v1951_v62, 1  ;;  %v1958_v56 = vadd.f32 %v1957_v42, %v1956_v25 }
 0x5af   :  { %v1968_v34 = vsel %vm265_vm1, %v1928_v53, 0.0  ;;  %v2356_v50 = vadd.f32 %v2355_v43, %v2354_v60  ;;  %v1964_v55 = vrot.slane %v1963_v49, 2  ;;  %v1975_v17 = vsel %vm265_vm1, %v1929_v48, 0.0 }
 0x5b0   :  { %v1969_v58 = vrot.slane %v1968_v34, 4  ;;  %v1946_v30 = vadd.f32 %v1945_v10, %v1944_v15  ;;  %v1953_v1 = vadd.f32 %v1952_v52, %v1951_v62  ;;  %v1959_v2 = vrot.slane %v1958_v56, 1 }
 0x5b1   :  { %v1976_v9 = vrot.slane %v1975_v17, 4  ;;  %v2357_v32 = vmul.f32 0.0078125, %v2356_v50  ;;  %v1965_v39 = vadd.f32 %v1964_v55, %v1963_v49  ;;  %v1982_v54 = vsel %vm265_vm1, %v1930_v4, 0.0 }
 0x5b2   :  { %v1970_v27 = vadd.f32 %v1969_v58, %v1968_v34  ;;  %v1960_v35 = vadd.f32 %v1959_v2, %v1958_v56  ;;  %v1983_v28 = vrot.slane %v1982_v54, 4  ;;  %v1989_v25 = vsel %vm265_vm1, %v1931_v16, 0.0 }
 0x5b3   :  { %v1977_v14 = vadd.f32 %v1976_v9, %v1975_v17  ;;  %v2358_v53 = vadd.f32 1e-05, %v2357_v32  ;;  %v1966_v60 = vrot.slane %v1965_v39, 1  ;;  %v1990_v43 = vrot.slane %v1989_v25, 4 }
 0x5b4   :  { %v1971_v42 = vrot.slane %v1970_v27, 2  ;;  %v1984_v48 = vadd.f32 %v1983_v28, %v1982_v54  ;;  %v2181_v15 = vmul.f32 %v9262_v8, %v1946_v30  ;;  %v2183_v62 = vmul.f32 %v9268_v22, %v1953_v1 }
 0x5b5   :  { %v1978_v29 = vrot.slane %v1977_v14, 2  ;;  %7406 = vrsqrt.f32 %v2358_v53  ;;  %v1967_v49 = vadd.f32 %v1966_v60, %v1965_v39  ;;  %v1991_v52 = vadd.f32 %v1990_v43, %v1989_v25 }
 0x5b6   :  { %v1972_v10 = vadd.f32 %v1971_v42, %v1970_v27  ;;  %v1985_v56 = vrot.slane %v1984_v48, 2  ;;  %v2185_v34 = vmul.f32 %v9291_v6, %v1960_v35  ;;  %v2228_v16 = vsel %vm1090_vm2, %v2183_v62, %v2181_v15  ;;  %v9431_v62 = vld [vmem:[#allocation10 + $0x8] sm:$0xff] }
 0x5b7   :  { %v1979_v4 = vadd.f32 %v1978_v29, %v1977_v14  ;;  %v1992_v55 = vrot.slane %v1991_v52, 2  ;;  %v2187_v58 = vmul.f32 %v9293_v12, %v1967_v49  ;;  %v1937_v28 = vmul.f32 %v9272_v20, %v9341_v36 }
 0x5b8   :  { %v1973_v50 = vrot.slane %v1972_v10, 1  ;;  %v1986_v17 = vadd.f32 %v1985_v56, %v1984_v48  ;;  %v2229_v22 = vsel %vm1092_vm3, %v2185_v34, %v2228_v16  ;;  %v1938_v30 = vmul.f32 %v9278_v7, %v9341_v36 }
 0x5b9   :  { %v1980_v8 = vrot.slane %v1979_v4, 1  ;;  %v1993_v1 = vadd.f32 %v1992_v55, %v1991_v52  ;;  %v2230_v6 = vsel %vm1094_vm4, %v2187_v58, %v2229_v22  ;;  %v1939_v2 = vmul.f32 %v9311_v33, %v9341_v36 }
 0x5ba   :  { %v1974_v29 = vadd.f32 %v1973_v50, %v1972_v10  ;;  %v1987_v32 = vrot.slane %v1986_v17, 1  ;;  %v2000_v12 = vadd.f32 %v1999_v19, %v9388_v47  ;;  %v2007_v20 = vadd.f32 %v2006_v18, %v9390_v31 }
 0x5bb   :  { %v1981_v9 = vadd.f32 %v1980_v8, %v1979_v4  ;;  %v1994_v39 = vrot.slane %v1993_v1, 1  ;;  %v2013_v54 = vrot.slane %v9393_v13, 2  ;;  %v12255_v7 = vrot.slane %v9374_v63, 4 }
 0x5bc   :  { %v2189_v27 = vmul.f32 %v9303_v44, %v1974_v29  ;;  %v1988_v14 = vadd.f32 %v1987_v32, %v1986_v17  ;;  %v2001_v53 = vrot.slane %v2000_v12, 1  ;;  %v2008_v33 = vrot.slane %v2007_v20, 1 }
 0x5bd   :  { %v2019_v35 = vadd.f32 %v12255_v7, %v9374_v63  ;;  %v2191_v25 = vmul.f32 %v9332_v45, %v1981_v9  ;;  %v1995_v36 = vadd.f32 %v1994_v39, %v1993_v1  ;;  %v2014_v47 = vadd.f32 %v2013_v54, %v9393_v13  ;;  %v12258_v1 = vld [vmem:[#allocation30_spill] sm:$0xff]  ;;  %v12259_v9 = vld [vmem:[#allocation57_spill] sm:$0xff]  ;;  %v12261_v39 = vld [vmem:[#allocation32_spill] sm:$0xff] }
 0x5be   :  { %v2231_v60 = vsel %vm1096_vm5, %v2189_v27, %v2230_v6  ;;  %v2193_v19 = vmul.f32 %v9338_v11, %v1988_v14  ;;  %v2002_v18 = vadd.f32 %v2001_v53, %v2000_v12  ;;  %v2009_v42 = vadd.f32 %v2008_v33, %v2007_v20  ;;  %v12260_v12 = vld [vmem:[#allocation33_spill] sm:$0xff] }
 0x5bf   :  { %v2020_v31 = vrot.slane %v2019_v35, 2  ;;  %v2232_v44 = vsel %vm1098_vm6, %v2191_v25, %v2231_v60  ;;  %v7407_v43 = vpop.eup %7406  ;;  %v2195_v63 = vmul.f32 %v9347_v21, %v1995_v36  ;;  %v2015_v48 = vrot.slane %v2014_v47, 1  ;;  %v12256_v21 = vld [vmem:[#allocation21_spill] sm:$0xff] }
 0x5c0   :  { %v2024_v45 = vsel %vm265_vm1, %v9382_v24, 0.0  ;;  %v2360_v49 = vmul.f32 %v9431_v62, %v7407_v43  ;;  %v2233_v13 = vsel %vm1100_vm7, %v2193_v19, %v2232_v44  ;;  %v2031_v11 = vsel %vm265_vm1, %v1937_v28, 0.0  ;;  %v12257_v28 = vld [vmem:[#allocation31_spill] sm:$0xff] }
 0x5c1   :  { %v2021_v15 = vadd.f32 %v2020_v31, %v2019_v35  ;;  %v2025_v10 = vrot.slane %v2024_v45, 4  ;;  %v2234_v52 = vsel %vm1102_vm8, %v2195_v63, %v2233_v13  ;;  %v2016_v4 = vadd.f32 %v2015_v48, %v2014_v47 }
 0x5c2   :  { %v2032_v34 = vrot.slane %v2031_v11, 4  ;;  %v9438_v16 = vrot.slane %v2360_v49, %v12256_v21  ;;  %2242 = vrot.lane.b32.xlu1 %v2234_v52, %s7967_s2  ;;  %v2038_v50 = vsel %vm265_vm1, %v1938_v30, 0.0  ;;  %v2045_v55 = vsel %vm265_vm1, %v1939_v2, 0.0  ;;  %v12262_v2 = vld [vmem:[#allocation58_spill] sm:$0xff]  ;;  %v12263_v49 = vld [vmem:[#allocation56_spill] sm:$0xff] }
 0x5c3   :  { %v2022_v56 = vrot.slane %v2021_v15, 1  ;;  %v2026_v24 = vadd.f32 %v2025_v10, %v2024_v45  ;;  %v2039_v17 = vrot.slane %v2038_v50, 4  ;;  %v2046_v22 = vrot.slane %v2045_v55, 4  ;;  %v12265_v10 = vld [vmem:[#allocation43_spill] sm:$0xff]  ;;  %v12267_v52 = vld [vmem:[#allocation44_spill] sm:$0xff] }
 0x5c4   :  { %v2033_v8 = vadd.f32 %v2032_v34, %v2031_v11  ;;  %v2365_v29 = vmul.f32 %v9438_v16, %v12257_v28  ;;  %v2366_v6 = vmul.f32 %v9438_v16, %v12258_v1  ;;  %v2367_v32 = vmul.f32 %v9438_v16, %v12259_v9  ;;  %v12269_v34 = vld [vmem:[#allocation45_spill] sm:$0xff] }
 0x5c5   :  { %v2023_v58 = vadd.f32 %v2022_v56, %v2021_v15  ;;  %v2368_v20 = vmul.f32 %v9438_v16, %v12260_v12  ;;  %v2369_v30 = vmul.f32 %v9438_v16, %v12261_v39  ;;  %v2370_v27 = vmul.f32 %v9438_v16, %v12262_v2 }
 0x5c6   :  { %v2027_v54 = vrot.slane %v2026_v24, 2  ;;  %v2034_v7 = vrot.slane %v2033_v8, 2  ;;  %v2385_v35 = vadd.f32 %v9345_v46, %v2365_v29  ;;  %v2386_v14 = vadd.f32 %v9345_v46, %v2366_v6  ;;  %v12273_v29 = vld [vmem:[#allocation47_spill] sm:$0xff] }
 0x5c7   :  { %v2387_v25 = vadd.f32 %v9345_v46, %v2367_v32  ;;  %v2388_v53 = vadd.f32 %v9345_v46, %v2368_v20  ;;  %v2389_v33 = vadd.f32 %v9345_v46, %v2369_v30  ;;  %v2390_v36 = vadd.f32 %v9345_v46, %v2370_v27 }
 0x5c8   :  { %v2028_v60 = vadd.f32 %v2027_v54, %v2026_v24  ;;  %v2035_v47 = vadd.f32 %v2034_v7, %v2033_v8  ;;  %v2464_v31 = vmax.f32 %v2385_v35, 0.0  ;;  %v2465_v19 = vmax.f32 %v2386_v14, 0.0  ;;  %v12271_v8 = vld [vmem:[#allocation46_spill] sm:$0xff] }
 0x5c9   :  { %v2466_v44 = vmax.f32 %v2387_v25, 0.0  ;;  %v2467_v43 = vmax.f32 %v2388_v53, 0.0  ;;  %v2468_v63 = vmax.f32 %v2389_v33, 0.0  ;;  %v2469_v48 = vmax.f32 %v2390_v36, 0.0 }
 0x5ca   :  { %v2029_v15 = vrot.slane %v2028_v60, 1  ;;  %v2036_v45 = vrot.slane %v2035_v47, 1  ;;  %v9462_v13 = vadd.f32 %v2464_v31, %v12263_v49  ;;  %v9465_v11 = vadd.f32 %v2465_v19, %v12265_v10  ;;  %v12279_v49 = vld [vmem:[#allocation48_spill] sm:$0xff] }
 0x5cb   :  { %v9468_v56 = vadd.f32 %v2466_v44, %v12267_v52  ;;  %v9471_v24 = vadd.f32 %v2467_v43, %v12269_v34  ;;  %v9474_v28 = vadd.f32 %v2468_v63, %v12271_v8  ;;  %v9477_v1 = vadd.f32 %v2469_v48, %v12273_v29  ;;  %v12281_v52 = vld [vmem:[#allocation49_spill] sm:$0xff]  ;;  %v12283_v29 = vld [vmem:[#allocation39_spill] sm:$0xff] }
 0x5cc   :  { %12264 = vst [vmem:[#allocation38_spill] sm:$0xff] %v9462_v13  ;;  %12266 = vst [vmem:[#allocation40_spill] sm:$0xff] %v9465_v11  ;;  %v2030_v6 = vadd.f32 %v2029_v15, %v2028_v60  ;;  %v2037_v9 = vadd.f32 %v2036_v45, %v2035_v47  ;;  %v2508_v32 = vpack.c.bf16 %v9465_v11, %v9462_v13  ;;  %v12278_v15 = vld [vmem:[#allocation36_spill] sm:$0xff] }
 0x5cd   :  { %12268 = vst [vmem:[#allocation41_spill] sm:$0xff] %v9468_v56  ;;  %12270 = vst [vmem:[#allocation21_spill] sm:$0xff] %v9471_v24  ;;  %v2509_v12 = vpack.c.bf16 %v9471_v24, %v9468_v56  ;;  %v2040_v20 = vadd.f32 %v2039_v17, %v2038_v50  ;;  %v2047_v39 = vadd.f32 %v2046_v22, %v2045_v55  ;;  %v12275_v17 = vld [vmem:[#allocation35_spill] sm:$0xff]  ;;  %v12277_v22 = vld [vmem:[#allocation37_spill] sm:$0xff] }
 0x5ce   :  { %12272 = vst [vmem:[#allocation31_spill] sm:$0xff] %v9474_v28  ;;  %12274 = vst [vmem:[#allocation30_spill] sm:$0xff] %v9477_v1  ;;  %v2510_v30 = vpack.c.bf16 %v9477_v1, %v9474_v28  ;;  %v2197_v2 = vmul.f32 %v9353_v40, %v2002_v18  ;;  %v2199_v27 = vmul.f32 %v9356_v41, %v2009_v42  ;;  %7063 = vmatprep.mubr.msk.bf16.mxu0 %vm265_vm1, %v2508_v32  ;;  %v12276_v41 = vld [vmem:[#allocation34_spill] sm:$0xff] }
 0x5cf   :  { %v2201_v54 = vmul.f32 %v9366_v51, %v2016_v4  ;;  %v2041_v7 = vrot.slane %v2040_v20, 2  ;;  %v2048_v35 = vrot.slane %v2047_v39, 2  ;;  %v2203_v14 = vmul.f32 %v9368_v0, %v2023_v58  ;;  %7064 = vmatmul.mubr.msk.bf16.vlgmr.msra.gmra.mrb[20].mxu0 %vm265_vm1, %v2509_v12  ;;  %v12284_v12 = vld [vmem:[#allocation25_spill] sm:$0xff] }
 0x5d0   :  { %v2205_v25 = vmul.f32 %v9376_v23, %v2030_v6  ;;  %v2207_v50 = vmul.f32 %v9378_v3, %v2037_v9  ;;  %v2235_v55 = vsel %vm1090_vm2, %v2199_v27, %v2197_v2  ;;  %v2371_v40 = vmul.f32 %v9438_v16, %v12275_v17  ;;  %7067 = vmatprep.mubr.msk.bf16.mxu0 %vm265_vm1, %v2510_v30  ;;  %v12286_v2 = vld [vmem:[#allocation27_spill] sm:$0xff] }
 0x5d1   :  { %v2372_v51 = vmul.f32 %v9438_v16, %v12276_v41  ;;  %v2042_v18 = vadd.f32 %v2041_v7, %v2040_v20  ;;  %v2049_v42 = vadd.f32 %v2048_v35, %v2047_v39  ;;  %v2236_v0 = vsel %vm1092_vm3, %v2201_v54, %v2235_v55  ;;  %v12290_v41 = vld [vmem:[#allocation50_spill] sm:$0xff] }
 0x5d2   :  { %v2373_v23 = vmul.f32 %v9438_v16, %v9231_v38  ;;  %v2237_v4 = vsel %vm1094_vm4, %v2203_v14, %v2236_v0  ;;  %v2391_v3 = vadd.f32 %v9345_v46, %v2371_v40  ;;  %v2374_v53 = vmul.f32 %v9438_v16, %v12277_v22 }
 0x5d3   :  { %v2392_v58 = vadd.f32 %v9345_v46, %v2372_v51  ;;  %v2043_v33 = vrot.slane %v2042_v18, 1  ;;  %v2050_v36 = vrot.slane %v2049_v42, 1  ;;  %v2238_v60 = vsel %vm1096_vm5, %v2205_v25, %v2237_v4  ;;  %v12292_v4 = vld [vmem:[#allocation26_spill] sm:$0xff] }
 0x5d4   :  { %v2393_v47 = vadd.f32 %v9345_v46, %v2373_v23  ;;  %v2239_v31 = vsel %vm1098_vm6, %v2207_v50, %v2238_v60  ;;  %v2470_v19 = vmax.f32 %v2391_v3, 0.0  ;;  %v2394_v38 = vadd.f32 %v9345_v46, %v2374_v53  ;;  %v12298_v60 = vld [vmem:[#allocation28_spill] sm:$0xff] }
 0x5d5   :  { %v2471_v44 = vmax.f32 %v2392_v58, 0.0  ;;  %v2044_v43 = vadd.f32 %v2043_v33, %v2042_v18  ;;  %v2051_v63 = vadd.f32 %v2050_v36, %v2049_v42  ;;  %v2375_v45 = vmul.f32 %v9438_v16, %v12278_v15  ;;  %v12294_v58 = vld [vmem:[#allocation29_spill] sm:$0xff]  ;;  %v12296_v36 = vld [vmem:[#allocation51_spill] sm:$0xff] }
 0x5d6   :  { %v2472_v48 = vmax.f32 %v2393_v47, 0.0  ;;  %v9514_v10 = vadd.f32 %v2470_v19, %v12279_v49  ;;  %v2473_v8 = vmax.f32 %v2394_v38, 0.0  ;;  %v2376_v6 = vmul.f32 %v9438_v16, %v12283_v29 }
 0x5d7   :  { %v9517_v34 = vadd.f32 %v2471_v44, %v12281_v52  ;;  %v2209_v9 = vmul.f32 %v9386_v59, %v2044_v43  ;;  %v2211_v32 = vmul.f32 %v9395_v57, %v2051_v63  ;;  %v2395_v39 = vadd.f32 %v9345_v46, %v2375_v45  ;;  %v1594_v44 = vpop.permute.xlu0 %1593  ;;  %v12301_v43 = vld [vmem:[#allocation54_spill] sm:$0xff] }
 0x5d8   :  { %12280 = vst [vmem:[#allocation57_spill] sm:$0xff] %v9514_v10  ;;  %v9524_v20 = vadd.f32 %v2472_v48, %v12284_v12  ;;  %v9530_v27 = vadd.f32 %v2473_v8, %v12286_v2  ;;  %v2396_v54 = vadd.f32 %v9345_v46, %v2376_v6  ;;  %v2377_v7 = vmul.f32 %v9438_v16, %v9243_v26  ;;  %v12302_v48 = vld [vmem:[#allocation55_spill] sm:$0xff] }
 0x5d9   :  { %12282 = vst [vmem:[#allocation33_spill] sm:$0xff] %v9517_v34  ;;  %v2511_v30 = vpack.c.bf16 %v9517_v34, %v9514_v10  ;;  %v2240_v59 = vsel %vm1100_vm7, %v2209_v9, %v2239_v31  ;;  %v2474_v35 = vmax.f32 %v2395_v39, 0.0  ;;  %v2378_v57 = vmul.f32 %v9438_v16, %v9246_v61 }
 0x5da   :  { %12285 = vst [vmem:[#allocation32_spill] sm:$0xff] %v9524_v20  ;;  %12287 = vst [vmem:[#allocation58_spill] sm:$0xff] %v9530_v27  ;;  %v2379_v14 = vmul.f32 %v9438_v16, %v9249_v37  ;;  %v2241_v25 = vsel %vm1102_vm8, %v2211_v32, %v2240_v59  ;;  %v2512_v50 = vpack.c.bf16 %v9530_v27, %v9524_v20  ;;  %v2475_v55 = vmax.f32 %v2396_v54, 0.0  ;;  %v12288_v37 = vld [vmem:[#allocation24_spill] sm:$0xff] }
 0x5db   :  { %7068 = vmatmul.mubr.msk.bf16.gmra.mrb[24].mxu0 %vm265_vm1, %v2511_v30  ;;  %v2397_v17 = vadd.f32 %v9345_v46, %v2377_v7  ;;  %2244 = vrot.lane.b32.xlu0 %v2241_v25, %s7967_s2  ;;  %v2398_v26 = vadd.f32 %v9345_v46, %v2378_v57  ;;  %v2380_v61 = vmul.f32 %v9438_v16, %v9252_v5  ;;  %v12300_v19 = vmov 0.0  }
 0x5dc   :  { %7071 = vmatprep.mubr.msk.bf16.mxu0 %vm265_vm1, %v2512_v50  ;;  %v9551_v40 = vadd.f32 %v2474_v35, %v12288_v37  ;;  %v9554_v51 = vadd.f32 %v2475_v55, %v12290_v41  ;;  %v2399_v42 = vadd.f32 %v9345_v46, %v2379_v14  ;;  %v1596_v63 = vadd.f32 %v1594_v44, %v12301_v43 }
 0x5dd   :  { %v2476_v18 = vmax.f32 %v2397_v17, 0.0  ;;  %v2477_v0 = vmax.f32 %v2398_v26, 0.0  ;;  %v2400_v23 = vadd.f32 %v9345_v46, %v2380_v61  ;;  %v1597_v15 = vadd.f32 %v1594_v44, %v12302_v48 }
 0x5de   :  { %12289 = vst [vmem:[#allocation56_spill] sm:$0xff] %v9551_v40  ;;  %12291 = vst [vmem:[#allocation43_spill] sm:$0xff] %v9554_v51  ;;  %v2513_v5 = vpack.c.bf16 %v9554_v51, %v9551_v40  ;;  %v2478_v16 = vmax.f32 %v2399_v42, 0.0 }
 0x5df   :  { %v9559_v3 = vadd.f32 %v2476_v18, %v12292_v4  ;;  %v9562_v22 = vadd.f32 %v2477_v0, %v12294_v58  ;;  %v2479_v53 = vmax.f32 %v2400_v23, 0.0  ;;  %v12303_v23 = vld [vmem:[#allocation22_spill] sm:$0xff] }
 0x5e0   :  { %v9571_v46 = vadd.f32 %v2478_v16, %v12296_v36  ;;  %v2445_v4 = vrot.slane %v9431_v62, %v12303_v23 }
 0x5e1   :  { %12293 = vst [vmem:[#allocation44_spill] sm:$0xff] %v9559_v3  ;;  %12295 = vst [vmem:[#allocation45_spill] sm:$0xff] %v9562_v22  ;;  %v2514_v33 = vpack.c.bf16 %v9562_v22, %v9559_v3  ;;  %v9574_v47 = vadd.f32 %v2479_v53, %v12298_v60 }
 0x5e2   :  { %12297 = vst [vmem:[#allocation46_spill] sm:$0xff] %v9571_v46 }
 0x5e3   :  { %7072 = vmatmul.mubr.msk.bf16.gmra.mrb[28].mxu0 %vm265_vm1, %v2513_v5  ;;  %12299 = vst [vmem:[#allocation47_spill] sm:$0xff] %v9574_v47  ;;  %v2515_v31 = vpack.c.bf16 %v9574_v47, %v9571_v46 }
 0x5e4   :  { %7075 = vmatprep.mubr.msk.bf16.mxu0 %vm265_vm1, %v2514_v33 }
 0x5eb   :  { %7076 = vmatmul.mubr.msk.bf16.gmra.mrb[32].mxu0 %vm265_vm1, %v2515_v31 }
 0x5ec   :  { %7111 = vmatprep.mubr.msk.bf16.mxu0 %vm7966_vm0, %v12300_v19 }
 0x634   :  { %v2243_v38 = vpop.permute.xlu1 %2242 }
 0x635   :  { %v2248_v45 = vadd.f32 %v2243_v38, %v1596_v63 }
 0x637   :  { %v2401_v8 = vsel %vm1271_vm9, %v2248_v45, 0.0 }
 0x64d   :  { %v2245_v49 = vpop.permute.xlu0 %2244 }
 0x64e   :  { %v2249_v52 = vadd.f32 %v2245_v49, %v1597_v15 }
 0x650   :  { %v2402_v29 = vsel %vm1271_vm9, %v2249_v52, 0.0 }
 0x651   :  { %v2403_v6 = vadd.f32 %v2402_v29, %v2401_v8  ;;  %v7197_v29 = vld [vmem:[#allocation8 + $0x28] sm:$0xff]  }
 0x653   :  { %v2404_v9 = vrot.slane %v2403_v6, 4 }
 0x655   :  { %v2405_v32 = vadd.f32 %v2404_v9, %v2403_v6  ;;  %v12304_v9 = vld [vmem:[#allocation23_spill] sm:$0xff] }
 0x657   :  { %v2406_v12 = vrot.slane %v2405_v32, 2 }
 0x659   :  { %v2407_v39 = vadd.f32 %v2406_v12, %v2405_v32 }
 0x65b   :  { %v2408_v30 = vrot.slane %v2407_v39, 1 }
 0x65d   :  { %v2409_v2 = vadd.f32 %v2408_v30, %v2407_v39 }
 0x65f   :  { %v2410_v54 = vmul.f32 0.0625, %v2409_v2 }
 0x661   :  { %v2411_v7 = vsub.f32 %v2248_v45, %v2410_v54  ;;  %v2412_v59 = vsub.f32 %v2249_v52, %v2410_v54  ;;  %v7196_v52 = vld [vmem:[#allocation8 + $0x20] sm:$0xff]  }
 0x662   :  { %7080 = vmatpush3.bf16.msra.mxu1 %v7196_v52 }
 0x663   :  { %v2413_v35 = vmul.f32 %v2411_v7, %v2411_v7  ;;  %v2414_v57 = vmul.f32 %v2412_v59, %v2412_v59  ;;  %7081 = vmatprep.subr.bf16.mxu1 %v12300_v19 }
 0x665   :  { %v2415_v14 = vsel %vm1271_vm9, %v2413_v35, 0.0  ;;  %v2416_v25 = vsel %vm1271_vm9, %v2414_v57, 0.0 }
 0x666   :  { %v2417_v50 = vadd.f32 %v2416_v25, %v2415_v14  ;;  %7082 = vmatpush3.bf16.msra.mxu1 %v7197_v29  ;;  %v9607_v25 = vld [vmem:[#allocation10 + $0x10] sm:$0xff] }
 0x668   :  { %v2418_v55 = vrot.slane %v2417_v50, 4 }
 0x66a   :  { %v2419_v17 = vadd.f32 %v2418_v55, %v2417_v50 }
 0x66c   :  { %v2420_v26 = vrot.slane %v2419_v17, 2 }
 0x66e   :  { %v2421_v61 = vadd.f32 %v2420_v26, %v2419_v17  ;;  %v12306_v26 = vld [vmem:[#allocation52_spill] sm:$0xff] }
 0x670   :  { %v2422_v37 = vrot.slane %v2421_v61, 1 }
 0x672   :  { %v2423_v41 = vadd.f32 %v2422_v37, %v2421_v61 }
 0x674   :  { %v2424_v18 = vmul.f32 0.0625, %v2423_v41  ;;  %v12310_v41 = vld [vmem:[#allocation16_spill] sm:$0xff] }
 0x676   :  { %v2425_v42 = vadd.f32 1e-05, %v2424_v18  ;;  %v9625_v18 = vrot.slane %v9607_v25, %v12310_v41 }
 0x678   :  { %7408 = vrsqrt.f32 %v2425_v42  ;;  %v12311_v42 = vld [vmem:[#allocation19_spill] sm:$0xff] }
 0x682   :  { %v7409_v0 = vpop.eup %7408 }
 0x683   :  { %2428 = vrot.lane.b32.xlu1 %v7409_v0, %s7969_s13  ;;  %v2713_v0 = vrot.slane %v9607_v25, %v12311_v42 }
 0x687   :  { %2447 = vrot.lane.b32.xlu1 %v2445_v4, %s7967_s2 }
 0x6a2   :  { %v7065_v58 = vpop.f32.mrb[20].mxu0 }
 0x6a3   :  { %v2590_v5 = vpop.f32.mrb[21].mxu0  ;;  %v2599_v52 = vadd.f32 %v7065_v58, %v9625_v18 }
 0x6a4   :  { %v7066_v16 = vpop.f32.mrb[22].mxu0  ;;  %v2591_v29 = vadd.f32 %v2590_v5, %v9625_v18 }
 0x6a5   :  { %v2593_v53 = vpop.f32.mrb[23].mxu0 }
 0x6ae   :  { %v9591_v33 = vpop.f32.mrb[24].mxu0 }
 0x6af   :  { %v2606_v36 = vpop.f32.mrb[25].mxu0 }
 0x6b0   :  { %v9593_v60 = vpop.f32.mrb[26].mxu0 }
 0x6b1   :  { %v9595_v31 = vpop.f32.mrb[27].mxu0 }
 0x6b6   :  { %v7073_v44 = vpop.f32.mrb[28].mxu0 }
 0x6b7   :  { %v2622_v38 = vpop.f32.mrb[29].mxu0 }
 0x6b8   :  { %v7074_v43 = vpop.f32.mrb[30].mxu0 }
 0x6b9   :  { %v2625_v63 = vpop.f32.mrb[31].mxu0 }
 0x6be   :  { %v7077_v48 = vpop.f32.mrb[32].mxu0 }
 0x6bf   :  { %v9597_v15 = vpop.f32.mrb[33].mxu0 }
 0x6c0   :  { %v9599_v45 = vpop.f32.mrb[34].mxu0 }
 0x6c1   :  { %v9601_v49 = vpop.f32.mrb[35].mxu0 }
 0x6f5   :  { %v2429_v8 = vpop.permute.xlu1 %2428 }
 0x6f6   :  { %v2431_v6 = vmul.f32 %v9431_v62, %v2429_v8  ;;  %v12305_v62 = vld [vmem:[#allocation18_spill] sm:$0xff] }
 0x6f7   :  { %v2729_v50 = vrot.slane %v9607_v25, %v12305_v62 }
 0x6f8   :  { %v2435_v32 = vrot.slane %v2431_v6, %v12304_v9  ;;  %v2602_v6 = vadd.f32 %v7066_v16, %v9625_v18 }
 0x6f9   :  { %v2448_v39 = vpop.permute.xlu1 %2447 }
 0x6fa   :  { %2437 = vrot.lane.b32.xlu0 %v2435_v32, %s7967_s2 }
 0x76c   :  { %v2438_v12 = vpop.permute.xlu0 %2437 }
 0x76d   :  { %v2440_v30 = vmul.f32 %v2438_v12, %v2411_v7  ;;  %v2441_v2 = vmul.f32 %v2438_v12, %v2412_v59  ;;  %v12308_v59 = vld [vmem:[#allocation53_spill] sm:$0xff] }
 0x76f   :  { %v2450_v54 = vadd.f32 %v2448_v39, %v2440_v30  ;;  %v2451_v35 = vadd.f32 %v2448_v39, %v2441_v2  ;;  %v7198_v30 = vld [vmem:[#allocation7 + $0x30] sm:$0xff]   ;;  %v2594_v2 = vadd.f32 %v2593_v53, %v9625_v18 }
 0x770   :  { %7087 = vmatprep.subr.bf16.mxu1 %v7198_v30 }
 0x771   :  { %v2452_v57 = vmax.f32 %v2450_v54, 0.0  ;;  %v2453_v14 = vmax.f32 %v2451_v35, 0.0  ;;  %v2607_v54 = vadd.f32 %v2606_v36, %v9625_v18  ;;  %v9641_v35 = vadd.f32 %v7073_v44, %v9625_v18  ;;  %v12315_v36 = vld [vmem:[#allocation42_spill] sm:$0xff] }
 0x773   :  { %2458 = vrot.lane.b32.xlu1 %v2453_v14, %s7969_s13  ;;  %2456 = vrot.lane.b32.xlu0 %v2452_v57, %s7969_s13  ;;  %v12314_v57 = vld [vmem:[#allocation17_spill] sm:$0xff] }
 0x774   :  { %v2719_v5 = vrot.slane %v9607_v25, %v12314_v57 }
 0x777   :  { %2731 = vrot.lane.b32.xlu0 %v2729_v50, %s7961_s22 }
 0x7e5   :  { %v2459_v55 = vpop.permute.xlu1 %2458  ;;  %v2457_v17 = vpop.permute.xlu0 %2456 }
 0x7e6   :  { %v9615_v7 = vadd.f32 %v2459_v55, %v12306_v26  ;;  %v9618_v61 = vadd.f32 %v2457_v17, %v12308_v59  ;;  %v9657_v55 = vadd.f32 %v2622_v38, %v9625_v18  ;;  %v9660_v17 = vadd.f32 %v7074_v43, %v9625_v18 }
 0x7e7   :  { %v9663_v26 = vadd.f32 %v2625_v63, %v9625_v18  ;;  %v9666_v59 = vadd.f32 %v7077_v48, %v9625_v18  ;;  %v9677_v63 = vadd.f32 %v9597_v15, %v9625_v18  ;;  %v9681_v48 = vadd.f32 %v9599_v45, %v9625_v18 }
 0x7e8   :  { %12307 = vst [vmem:[#allocation35_spill] sm:$0xff] %v9615_v7  ;;  %12309 = vst [vmem:[#allocation34_spill] sm:$0xff] %v9618_v61  ;;  %v2653_v37 = vpack.c.bf16 %v9615_v7, %v9618_v61 }
 0x7e9   :  { %v2732_v4 = vpop.permute.xlu0 %2731 }
 0x7ea   :  { %7084 = vmatmul.mubr.msk.bf16.vlgmr.msra.gmra.mrb[20].mxu1 %vm265_vm1, %v2653_v37  ;;  %v7199_v37 = vld [vmem:[#allocation7 + $0x38] sm:$0xff]  }
 0x7eb   :  { %7088 = vmatpush3.bf16.msra.mxu1 %v7198_v30 }
 0x7ec   :  { %7089 = vmatprep.subr.bf16.mxu1 %v7199_v37 }
 0x7ef   :  { %7090 = vmatpush3.bf16.msra.mxu1 %v7199_v37 }
 0x7f0   :  { %7135 = vmatprep.subr.bf16.mxu1 %v12300_v19 }
 0x8bd   :  { %v9630_v8 = vpop.f32.mrb[20].mxu1 }
 0x8be   :  { %12312 = vst [vmem:[#allocation37_spill] sm:$0xff] %v9630_v8  ;;  %v9635_v32 = vadd.f32 %v2713_v0, %v9630_v8  ;;  %v7085_v12 = vpop.f32.mrb[21].mxu1  ;;  %v2734_v39 = vadd.f32 %v2732_v4, %v9630_v8 }
 0x8bf   :  { %v9643_v58 = vpop.f32.mrb[22].mxu1  ;;  %v9685_v12 = vadd.f32 %v9601_v49, %v9625_v18 }
 0x8c0   :  { %12313 = vst [vmem:[#allocation36_spill] sm:$0xff] %v9643_v58  ;;  %v9648_v16 = vadd.f32 %v2713_v0, %v9643_v58  ;;  %v7086_v14 = vpop.f32.mrb[23].mxu1  ;;  %3046 = vrot.lane.b32.xlu1 %v2734_v39, %s7961_s22  ;;  %v2735_v50 = vadd.f32 %v2732_v4, %v9643_v58  ;;  %v2738_v53 = vcombine.high %v9635_v32, %v9635_v32 }
 0x8c1   :  { %v2745_v44 = vrot.slane %v9635_v32, %v12315_v36 }
 0x8c2   :  { %3048 = vrot.lane.b32.xlu0 %v2735_v50, %s7961_s22  ;;  %v9670_v0 = vrot.slane %v2738_v53, %v12315_v36  ;;  %v2787_v43 = vcombine.high %v9648_v16, %v9648_v16  ;;  %v2794_v39 = vrot.slane %v9648_v16, %v12315_v36 }
 0x8c3   :  { %v2753_v4 = vcombine.high %v2745_v44, %v2745_v44  ;;  %v2761_v38 = vrot.slane %v2745_v44, %v12315_v36 }
 0x8c4   :  { %2721 = vrot.lane.b32.xlu1 %v2719_v5, %s7967_s2  ;;  %v9692_v14 = vrot.slane %v9670_v0, %v12315_v36  ;;  %v2801_v53 = vrot.slane %v2787_v43, %v12315_v36  ;;  %v2802_v44 = vcombine.high %v2794_v39, %v2794_v39  ;;  %v2810_v49 = vrot.slane %v2794_v39, %v12315_v36 }
 0x8c5   :  { %v2775_v15 = vrot.slane %v2753_v4, %v12315_v36  ;;  %v2783_v50 = vcombine.high %v2761_v38, %v2761_v38  ;;  %v2839_v45 = vrot.slane %v2761_v38, %v12310_v41 }
 0x8c6   :  { %v2855_v4 = vrot.slane %v9692_v14, %v12310_v41  ;;  %v2803_v7 = vcombine.high %v2801_v53, %v2801_v53  ;;  %v2817_v38 = vrot.slane %v2801_v53, %v12315_v36  ;;  %v2824_v43 = vrot.slane %v2802_v44, %v12315_v36 }
 0x8c7   :  { %v2785_v57 = vcombine.high %v2775_v15, %v2775_v15  ;;  %v2843_v5 = vrot.slane %v2775_v15, %v12310_v41  ;;  %v2847_v42 = vrot.slane %v2783_v50, %v12310_v41  ;;  %v2916_v61 = vadd.f32 %v2839_v45, %v2591_v29 }
 0x8c8   :  { %v2920_v30 = vadd.f32 %v2855_v4, %v2607_v54  ;;  %v2831_v50 = vrot.slane %v2803_v7, %v12315_v36  ;;  %v2832_v23 = vcombine.high %v2810_v49, %v2810_v49  ;;  %v2833_v29 = vcombine.high %v2817_v38, %v2817_v38 }
 0x8c9   :  { %v2851_v39 = vrot.slane %v2785_v57, %v12310_v41  ;;  %v2917_v62 = vadd.f32 %v2843_v5, %v2594_v2  ;;  %v2918_v9 = vadd.f32 %v2847_v42, %v2599_v52  ;;  %v9709_v15 = vadd.f32 %v2916_v61, %v9635_v32 }
 0x8ca   :  { %v9719_v2 = vadd.f32 %v2920_v30, %v9635_v32  ;;  %v2834_v52 = vcombine.high %v2824_v43, %v2824_v43  ;;  %v2835_v54 = vcombine.high %v2831_v50, %v2831_v50  ;;  %v2875_v22 = vrot.slane %v2824_v43, %v12310_v41 }
 0x8cb   :  { %v2919_v45 = vadd.f32 %v2851_v39, %v2602_v6  ;;  %v9713_v53 = vadd.f32 %v2917_v62, %v9635_v32  ;;  %v9716_v37 = vadd.f32 %v2918_v9, %v9635_v32  ;;  %v2948_v42 = vsub.f32 0.0, %v9709_v15 }
 0x8cc   :  { %v3378_v61 = vsel %vm265_vm1, %v9709_v15, 0.0  ;;  %v2952_v9 = vsub.f32 0.0, %v9719_v2  ;;  %v3385_v5 = vsel %vm265_vm1, %v9719_v2, 0.0  ;;  %v2879_v3 = vrot.slane %v2832_v23, %v12310_v41 }
 0x8cd   :  { %v9725_v7 = vadd.f32 %v2919_v45, %v9635_v32  ;;  %v2949_v6 = vsub.f32 0.0, %v9713_v53  ;;  %v2950_v62 = vsub.f32 0.0, %v9716_v37  ;;  %v2964_v57 = vmul.f32 1.442695, %v2948_v42 }
 0x8ce   :  { %v3379_v44 = vsel %vm265_vm1, %v9713_v53, 0.0  ;;  %v3381_v30 = vsel %vm265_vm1, %v9716_v37, 0.0  ;;  %v2972_v8 = vmul.f32 1.442695, %v2952_v9  ;;  %v2871_v42 = vrot.slane %v2810_v49, %v12310_v41 }
 0x8cf   :  { %v2951_v4 = vsub.f32 0.0, %v9725_v7  ;;  %v2966_v39 = vmul.f32 1.442695, %v2949_v6  ;;  %v2968_v45 = vmul.f32 1.442695, %v2950_v62  ;;  %v3380_v58 = vadd.f32 %v3379_v44, %v3378_v61 }
 0x8d0   :  { %7410 = vpow2.f32 %v2964_v57  ;;  %v3383_v19 = vsel %vm265_vm1, %v9725_v7, 0.0  ;;  %v2883_v51 = vrot.slane %v2834_v52, %v12310_v41  ;;  %v2887_v6 = vrot.slane %v2817_v38, %v12310_v41 }
 0x8d1   :  { %7412 = vpow2.f32 %v2966_v39  ;;  %v2970_v47 = vmul.f32 1.442695, %v2951_v4  ;;  %v3382_v46 = vadd.f32 %v3381_v30, %v3380_v58  ;;  %v2891_v62 = vrot.slane %v2831_v50, %v12310_v41 }
 0x8d2   :  { %7414 = vpow2.f32 %v2968_v45  ;;  %v2895_v9 = vrot.slane %v2833_v29, %v12310_v41  ;;  %v2899_v49 = vrot.slane %v2835_v54, %v12310_v41  ;;  %v2924_v58 = vadd.f32 %v2871_v42, %v9657_v55 }
 0x8d3   :  { %7416 = vpow2.f32 %v2970_v47  ;;  %v3384_v61 = vadd.f32 %v3383_v19, %v3382_v46  ;;  %v2925_v43 = vadd.f32 %v2875_v22, %v9663_v26  ;;  %v2926_v23 = vadd.f32 %v2879_v3, %v9641_v35 }
 0x8d4   :  { %7418 = vpow2.f32 %v2972_v8  ;;  %v2927_v52 = vadd.f32 %v2883_v51, %v9660_v17  ;;  %v2928_v38 = vadd.f32 %v2887_v6, %v9677_v63  ;;  %v2929_v46 = vadd.f32 %v2891_v62, %v9685_v12 }
 0x8d5   :  { %v3386_v57 = vadd.f32 %v3385_v5, %v3384_v61  ;;  %v2930_v47 = vadd.f32 %v2895_v9, %v9666_v59  ;;  %v2931_v19 = vadd.f32 %v2899_v49, %v9681_v48  ;;  %v9756_v8 = vadd.f32 %v2924_v58, %v9648_v16 }
 0x8d6   :  { %v9759_v55 = vadd.f32 %v2925_v43, %v9648_v16  ;;  %v9762_v22 = vadd.f32 %v2926_v23, %v9648_v16  ;;  %v9765_v3 = vadd.f32 %v2927_v52, %v9648_v16  ;;  %v9768_v51 = vadd.f32 %v2928_v38, %v9648_v16 }
 0x8d7   :  { %v9771_v35 = vadd.f32 %v2930_v47, %v9648_v16  ;;  %v2956_v17 = vsub.f32 0.0, %v9756_v8  ;;  %v12316_v48 = vcombine.high %v9670_v0, %v9670_v0  ;;  %v2615_v29 = vadd.f32 %v9591_v33, %v9625_v18 }
 0x8d8   :  { %v2957_v26 = vsub.f32 0.0, %v9759_v55  ;;  %v2618_v54 = vadd.f32 %v9593_v60, %v9625_v18  ;;  %v2610_v5 = vadd.f32 %v9595_v31, %v9625_v18  ;;  %v2958_v39 = vsub.f32 0.0, %v9762_v22 }
 0x8d9   :  { %v2980_v63 = vmul.f32 1.442695, %v2956_v17  ;;  %v2782_v12 = vrot.slane %v12316_v48, %v12315_v36  ;;  %v2784_v6 = vcombine.high %v9692_v14, %v9692_v14  ;;  %v9791_v18 = vadd.f32 %v2929_v46, %v9648_v16 }
 0x8da   :  { %v7411_v59 = vpop.eup %7410  ;;  %v2982_v0 = vmul.f32 1.442695, %v2957_v26  ;;  %v9795_v43 = vadd.f32 %v2931_v19, %v9648_v16  ;;  %v2984_v38 = vmul.f32 1.442695, %v2958_v39 }
 0x8db   :  { %v7413_v50 = vpop.eup %7412  ;;  %v2996_v44 = vadd.f32 1.0, %v7411_v59  ;;  %7420 = vpow2.f32 %v2980_v63  ;;  %v2786_v60 = vcombine.high %v2782_v12, %v2782_v12  ;;  %v2859_v62 = vrot.slane %v2782_v12, %v12310_v41 }
 0x8dc   :  { %v7415_v30 = vpop.eup %7414  ;;  %v2997_v4 = vadd.f32 1.0, %v7413_v50  ;;  %v2863_v31 = vrot.slane %v2784_v6, %v12310_v41  ;;  %v2959_v63 = vsub.f32 0.0, %v9765_v3 }
 0x8dd   :  { %v7417_v45 = vpop.eup %7416  ;;  %v2998_v42 = vadd.f32 1.0, %v7415_v30  ;;  %7422 = vrcp.f32 %v2996_v44  ;;  %v2867_v49 = vrot.slane %v2786_v60, %v12310_v41  ;;  %v2921_v58 = vadd.f32 %v2859_v62, %v2610_v5 }
 0x8de   :  { %v7419_v33 = vpop.eup %7418  ;;  %v2999_v61 = vadd.f32 1.0, %v7417_v45  ;;  %7424 = vrcp.f32 %v2997_v4  ;;  %v2922_v14 = vadd.f32 %v2863_v31, %v2615_v29  ;;  %v2960_v4 = vsub.f32 0.0, %v9768_v51 }
 0x8df   :  { %v3000_v9 = vadd.f32 1.0, %v7419_v33  ;;  %7426 = vrcp.f32 %v2998_v42  ;;  %v2923_v23 = vadd.f32 %v2867_v49, %v2618_v54  ;;  %v9798_v52 = vadd.f32 %v2921_v58, %v9635_v32 }
 0x8e0   :  { %7428 = vrcp.f32 %v2999_v61  ;;  %v9801_v47 = vadd.f32 %v2922_v14, %v9635_v32  ;;  %v2986_v6 = vmul.f32 1.442695, %v2959_v63  ;;  %v3393_v33 = vsel %vm265_vm1, %v9756_v8, 0.0 }
 0x8e1   :  { %7430 = vrcp.f32 %v3000_v9  ;;  %v9804_v46 = vadd.f32 %v2923_v23, %v9635_v32  ;;  %v3387_v17 = vsel %vm265_vm1, %v9798_v52, 0.0  ;;  %v2953_v16 = vsub.f32 0.0, %v9798_v52 }
 0x8e2   :  { %7432 = vpow2.f32 %v2982_v0  ;;  %v3388_v19 = vadd.f32 %v3387_v17, %v3386_v57  ;;  %v2954_v26 = vsub.f32 0.0, %v9801_v47  ;;  %v3389_v48 = vsel %vm265_vm1, %v9801_v47, 0.0 }
 0x8e3   :  { %v2974_v12 = vmul.f32 1.442695, %v2953_v16  ;;  %7434 = vpow2.f32 %v2984_v38  ;;  %v2955_v29 = vsub.f32 0.0, %v9804_v46  ;;  %v3391_v57 = vsel %vm265_vm1, %v9804_v46, 0.0 }
 0x8e4   :  { %v3390_v32 = vadd.f32 %v3389_v48, %v3388_v19  ;;  %v2976_v54 = vmul.f32 1.442695, %v2954_v26  ;;  %v3395_v62 = vsel %vm265_vm1, %v9759_v55, 0.0  ;;  %v3397_v23 = vsel %vm265_vm1, %v9762_v22, 0.0 }
 0x8e5   :  { %v7421_v59 = vpop.eup %7420  ;;  %7436 = vpow2.f32 %v2974_v12  ;;  %v2978_v31 = vmul.f32 1.442695, %v2955_v29  ;;  %v2988_v16 = vmul.f32 1.442695, %v2960_v4  ;;  %v2961_v26 = vsub.f32 0.0, %v9791_v18 }
 0x8e6   :  { %v3392_v39 = vadd.f32 %v3391_v57, %v3390_v32  ;;  %7438 = vpow2.f32 %v2976_v54  ;;  %v3004_v14 = vadd.f32 1.0, %v7421_v59  ;;  %v2962_v63 = vsub.f32 0.0, %v9771_v35 }
 0x8e7   :  { %v9813_v50 = vpop.eup %7422  ;;  %7440 = vpow2.f32 %v2986_v6  ;;  %v3399_v57 = vsel %vm265_vm1, %v9765_v3, 0.0  ;;  %v3405_v41 = vsel %vm265_vm1, %v9771_v35, 0.0 }
 0x8e8   :  { %v9816_v44 = vpop.eup %7424  ;;  %v3180_v30 = vsel %vm265_vm1, %v9813_v50, 0.0  ;;  %v3394_v9 = vadd.f32 %v3393_v33, %v3392_v39  ;;  %7442 = vpow2.f32 %v2978_v31  ;;  %v3401_v39 = vsel %vm265_vm1, %v9768_v51, 0.0 }
 0x8e9   :  { %v9822_v5 = vpop.eup %7426  ;;  %v3181_v45 = vrot.slane %v3180_v30, 4  ;;  %v3187_v42 = vsel %vm265_vm1, %v9816_v44, 0.0  ;;  %7444 = vrcp.f32 %v3004_v14 }
 0x8ea   :  { %v9827_v0 = vpop.eup %7428  ;;  %v3188_v61 = vrot.slane %v3187_v42, 4  ;;  %v3194_v49 = vsel %vm265_vm1, %v9822_v5, 0.0  ;;  %v3396_v19 = vadd.f32 %v3395_v62, %v3394_v9  ;;  %7446 = vpow2.f32 %v2988_v16 }
 0x8eb   :  { %v9831_v60 = vpop.eup %7430  ;;  %v3182_v38 = vadd.f32 %v3181_v45, %v3180_v30  ;;  %v3201_v17 = vsel %vm265_vm1, %v9827_v0, 0.0  ;;  %v3195_v12 = vrot.slane %v3194_v49, 4 }
 0x8ec   :  { %v7433_v58 = vpop.eup %7432  ;;  %v3189_v48 = vadd.f32 %v3188_v61, %v3187_v42  ;;  %v3202_v32 = vrot.slane %v3201_v17, 4  ;;  %v3398_v54 = vadd.f32 %v3397_v23, %v3396_v19  ;;  %v3208_v59 = vsel %vm265_vm1, %v9831_v60, 0.0 }
 0x8ed   :  { %v3005_v29 = vadd.f32 1.0, %v7433_v58  ;;  %v3183_v30 = vrot.slane %v3182_v38, 2  ;;  %v7435_v4 = vpop.eup %7434  ;;  %v2990_v42 = vmul.f32 1.442695, %v2961_v26  ;;  %v3196_v61 = vadd.f32 %v3195_v12, %v3194_v49 }
 0x8ee   :  { %v3400_v45 = vadd.f32 %v3399_v57, %v3398_v54  ;;  %v3190_v33 = vrot.slane %v3189_v48, 2  ;;  %v3203_v62 = vadd.f32 %v3202_v32, %v3201_v17  ;;  %v3209_v9 = vrot.slane %v3208_v59, 4 }
 0x8ef   :  { %v7437_v6 = vpop.eup %7436  ;;  %7448 = vrcp.f32 %v3005_v29  ;;  %v2992_v58 = vmul.f32 1.442695, %v2962_v63  ;;  %v3403_v23 = vsel %vm265_vm1, %v9791_v18, 0.0  ;;  %v3184_v36 = vadd.f32 %v3183_v30, %v3182_v38 }
 0x8f0   :  { %v3402_v31 = vadd.f32 %v3401_v39, %v3400_v45  ;;  %v7439_v14 = vpop.eup %7438  ;;  %v3001_v19 = vadd.f32 1.0, %v7437_v6  ;;  %v3006_v16 = vadd.f32 1.0, %v7435_v4  ;;  %7450 = vpow2.f32 %v2990_v42 }
 0x8f1   :  { %v3191_v26 = vadd.f32 %v3190_v33, %v3189_v48  ;;  %v3197_v57 = vrot.slane %v3196_v61, 2  ;;  %v3204_v49 = vrot.slane %v3203_v62, 2  ;;  %v3210_v17 = vadd.f32 %v3209_v9, %v3208_v59  ;;  %v7441_v63 = vpop.eup %7440 }
 0x8f2   :  { %v3404_v54 = vadd.f32 %v3403_v23, %v3402_v31  ;;  %v3002_v32 = vadd.f32 1.0, %v7439_v14  ;;  %7452 = vpow2.f32 %v2992_v58  ;;  %v3407_v29 = vsel %vm265_vm1, %v9795_v43, 0.0  ;;  %v7443_v38 = vpop.eup %7442 }
 0x8f3   :  { %7454 = vrcp.f32 %v3001_v19  ;;  %v3185_v39 = vrot.slane %v3184_v36, 1  ;;  %v9855_v4 = vpop.eup %7444  ;;  %v3192_v45 = vrot.slane %v3191_v26, 1  ;;  %v3198_v42 = vadd.f32 %v3197_v57, %v3196_v61 }
 0x8f4   :  { %v3406_v12 = vadd.f32 %v3405_v41, %v3404_v54  ;;  %7456 = vrcp.f32 %v3006_v16  ;;  %v3205_v48 = vadd.f32 %v3204_v49, %v3203_v62  ;;  %v3211_v6 = vrot.slane %v3210_v17, 2  ;;  %v7447_v33 = vpop.eup %7446 }
 0x8f5   :  { %7458 = vrcp.f32 %v3002_v32  ;;  %v3003_v41 = vadd.f32 1.0, %v7443_v38  ;;  %v3186_v9 = vadd.f32 %v3185_v39, %v3184_v36  ;;  %v3007_v58 = vadd.f32 1.0, %v7441_v63 }
 0x8f6   :  { %v3408_v30 = vadd.f32 %v3407_v29, %v3406_v12  ;;  %v2963_v23 = vsub.f32 0.0, %v9795_v43  ;;  %v3236_v19 = vsel %vm265_vm1, %v9855_v4, 0.0  ;;  %v3193_v16 = vadd.f32 %v3192_v45, %v3191_v26 }
 0x8f7   :  { %v3199_v54 = vrot.slane %v3198_v42, 1  ;;  %v3206_v12 = vrot.slane %v3205_v48, 1  ;;  %v3212_v61 = vadd.f32 %v3211_v6, %v3210_v17  ;;  %v3008_v57 = vadd.f32 1.0, %v7447_v33 }
 0x8f8   :  { %v3409_v59 = vrot.slane %v3408_v30, 4  ;;  %7460 = vrcp.f32 %v3003_v41  ;;  %v3292_v32 = vadd.f32 1e-20, %v3186_v9  ;;  %v3237_v29 = vrot.slane %v3236_v19, 4 }
 0x8f9   :  { %v9857_v31 = vpop.eup %7448  ;;  %7462 = vrcp.f32 %v3007_v58  ;;  %v2994_v38 = vmul.f32 1.442695, %v2963_v23  ;;  %v3207_v26 = vadd.f32 %v3206_v12, %v3205_v48  ;;  %v3213_v45 = vrot.slane %v3212_v61, 1 }
 0x8fa   :  { %v3410_v14 = vadd.f32 %v3409_v59, %v3408_v30  ;;  %v7451_v62 = vpop.eup %7450  ;;  %v3243_v36 = vsel %vm265_vm1, %v9857_v31, 0.0  ;;  %v3200_v59 = vadd.f32 %v3199_v54, %v3198_v42  ;;  %v3293_v40 = vadd.f32 1e-20, %v3193_v16 }
 0x8fb   :  { %7464 = vrcp.f32 %v3008_v57  ;;  %v3009_v33 = vadd.f32 1.0, %v7451_v62  ;;  %v3244_v41 = vrot.slane %v3243_v36, 4  ;;  %v3238_v27 = vadd.f32 %v3237_v29, %v3236_v19 }
 0x8fc   :  { %v3411_v49 = vrot.slane %v3410_v14, 2  ;;  %v7453_v63 = vpop.eup %7452  ;;  %7466 = vrcp.f32 %v3292_v32  ;;  %v3214_v42 = vadd.f32 %v3213_v45, %v3212_v61  ;;  %v3294_v48 = vadd.f32 1e-20, %v3200_v59 }
 0x8fd   :  { %v9864_v30 = vpop.eup %7454  ;;  %v3010_v9 = vadd.f32 1.0, %v7453_v63  ;;  %7468 = vpow2.f32 %v2994_v38  ;;  %v3295_v23 = vadd.f32 1e-20, %v3207_v26  ;;  %v3245_v54 = vadd.f32 %v3244_v41, %v3243_v36 }
 0x8fe   :  { %v3412_v39 = vadd.f32 %v3411_v49, %v3410_v14  ;;  %v9866_v17 = vpop.eup %7456  ;;  %v3215_v14 = vsel %vm265_vm1, %v9864_v30, 0.0  ;;  %7470 = vrcp.f32 %v3293_v40  ;;  %v3239_v57 = vrot.slane %v3238_v27, 2 }
 0x8ff   :  { %v9868_v20 = vpop.eup %7458  ;;  %7472 = vrcp.f32 %v3009_v33  ;;  %v3250_v12 = vsel %vm265_vm1, %v9866_v17, 0.0  ;;  %v3216_v62 = vrot.slane %v3215_v14, 4  ;;  %v3296_v26 = vadd.f32 1e-20, %v3214_v42 }
 0x900   :  { %v3413_v6 = vrot.slane %v3412_v39, 1  ;;  %v3222_v19 = vsel %vm265_vm1, %v9868_v20, 0.0  ;;  %7474 = vrcp.f32 %v3010_v9  ;;  %v3251_v59 = vrot.slane %v3250_v12, 4 }
 0x901   :  { %7476 = vrcp.f32 %v3294_v48  ;;  %v3217_v9 = vadd.f32 %v3216_v62, %v3215_v14 }
 0x902   :  { %v3414_v58 = vadd.f32 %v3413_v6, %v3412_v39  ;;  %v9888_v29 = vpop.eup %7460  ;;  %v3223_v6 = vrot.slane %v3222_v19, 4  ;;  %7478 = vrcp.f32 %v3295_v23  ;;  %v3252_v1 = vadd.f32 %v3251_v59, %v3250_v12 }
 0x903   :  { %v9902_v39 = vpop.eup %7462  ;;  %7480 = vrcp.f32 %v3296_v26 }
 0x904   :  { %v3415_v16 = vmul.f32 0.0078125, %v3414_v58  ;;  %v3257_v33 = vsel %vm265_vm1, %v9902_v39, 0.0  ;;  %v3224_v11 = vadd.f32 %v3223_v6, %v3222_v19 }
 0x905   :  { %v3258_v62 = vrot.slane %v3257_v33, 4 }
 0x906   :  { %v9877_v49 = vsub.f32 %v9709_v15, %v3415_v16  ;;  %v9880_v61 = vsub.f32 %v9713_v53, %v3415_v16  ;;  %v9883_v40 = vsub.f32 %v9716_v37, %v3415_v16  ;;  %v9886_v32 = vsub.f32 %v9725_v7, %v3415_v16 }
 0x907   :  { %v9891_v36 = vsub.f32 %v9719_v2, %v3415_v16  ;;  %v9894_v63 = vsub.f32 %v9798_v52, %v3415_v16  ;;  %v9897_v15 = vsub.f32 %v9801_v47, %v3415_v16  ;;  %v9900_v53 = vsub.f32 %v9804_v46, %v3415_v16 }
 0x908   :  { %12317 = vst [vmem:[#allocation48_spill] sm:$0xff] %v9877_v49  ;;  %12318 = vst [vmem:[#allocation49_spill] sm:$0xff] %v9880_v61  ;;  %v9905_v37 = vsub.f32 %v9756_v8, %v3415_v16  ;;  %v9908_v7 = vsub.f32 %v9759_v55, %v3415_v16  ;;  %v9911_v2 = vsub.f32 %v9762_v22, %v3415_v16  ;;  %v9928_v55 = vpop.eup %7464 }
 0x909   :  { %12319 = vst [vmem:[#allocation39_spill] sm:$0xff] %v9883_v40  ;;  %12320 = vst [vmem:[#allocation25_spill] sm:$0xff] %v9886_v32  ;;  %v9914_v52 = vsub.f32 %v9765_v3, %v3415_v16  ;;  %v9917_v47 = vsub.f32 %v9768_v51, %v3415_v16  ;;  %v9920_v46 = vsub.f32 %v9791_v18, %v3415_v16  ;;  %v3229_v51 = vsel %vm265_vm1, %v9888_v29, 0.0  ;;  %v9936_v18 = vpop.eup %7466 }
 0x90a   :  { %12321 = vst [vmem:[#allocation27_spill] sm:$0xff] %v9891_v36  ;;  %12322 = vst [vmem:[#allocation24_spill] sm:$0xff] %v9894_v63  ;;  %v9923_v38 = vsub.f32 %v9771_v35, %v3415_v16  ;;  %v9926_v8 = vsub.f32 %v9795_v43, %v3415_v16  ;;  %v3432_v22 = vmul.f32 %v9877_v49, %v9877_v49  ;;  %v3246_v35 = vrot.slane %v3245_v54, 2  ;;  %v7469_v45 = vpop.eup %7468 }
 0x90b   :  { %12323 = vst [vmem:[#allocation50_spill] sm:$0xff] %v9897_v15  ;;  %12324 = vst [vmem:[#allocation26_spill] sm:$0xff] %v9900_v53  ;;  %v3433_v3 = vmul.f32 %v9880_v61, %v9880_v61  ;;  %v3434_v43 = vmul.f32 %v9883_v40, %v9883_v40  ;;  %v9942_v41 = vpop.eup %7470  ;;  %v3230_v58 = vrot.slane %v3229_v51, 4  ;;  %v3240_v16 = vadd.f32 %v3239_v57, %v3238_v27 }
 0x90c   :  { %12325 = vst [vmem:[#allocation29_spill] sm:$0xff] %v9908_v7  ;;  %12326 = vst [vmem:[#allocation51_spill] sm:$0xff] %v9911_v2  ;;  %v3264_v34 = vsel %vm265_vm1, %v9928_v55, 0.0  ;;  %v9946_v42 = vpop.eup %7472  ;;  %v3435_v48 = vmul.f32 %v9886_v32, %v9886_v32  ;;  %v3448_v10 = vsel %vm265_vm1, %v3432_v22, 0.0  ;;  %v3011_v56 = vadd.f32 1.0, %v7469_v45 }
 0x90d   :  { %12327 = vst [vmem:[#allocation28_spill] sm:$0xff] %v9914_v52  ;;  %12328 = vst [vmem:[#allocation54_spill] sm:$0xff] %v9926_v8  ;;  %v3449_v23 = vsel %vm265_vm1, %v3433_v3, 0.0  ;;  %v9952_v28 = vpop.eup %7474  ;;  %v3247_v14 = vadd.f32 %v3246_v35, %v3245_v54  ;;  %v3436_v27 = vmul.f32 %v9891_v36, %v9891_v36  ;;  %v3451_v57 = vsel %vm265_vm1, %v3434_v43, 0.0 }
 0x90e   :  { %v3450_v24 = vadd.f32 %v3449_v23, %v3448_v10  ;;  %v3218_v32 = vrot.slane %v3217_v9, 2  ;;  %v3231_v40 = vadd.f32 %v3230_v58, %v3229_v51  ;;  %v3241_v22 = vrot.slane %v3240_v16, 1  ;;  %v9965_v26 = vpop.eup %7476 }
 0x90f   :  { %v3437_v12 = vmul.f32 %v9894_v63, %v9894_v63  ;;  %v3453_v3 = vsel %vm265_vm1, %v3435_v48, 0.0  ;;  %v3253_v10 = vrot.slane %v3252_v1, 2  ;;  %v3265_v59 = vrot.slane %v3264_v34, 4 }
 0x910   :  { %v3452_v13 = vadd.f32 %v3451_v57, %v3450_v24  ;;  %7482 = vrcp.f32 %v3011_v56  ;;  %v3248_v35 = vrot.slane %v3247_v14, 1  ;;  %v3259_v45 = vadd.f32 %v3258_v62, %v3257_v33  ;;  %v9967_v57 = vpop.eup %7478 }
 0x911   :  { %v3438_v43 = vmul.f32 %v9897_v15, %v9897_v15  ;;  %v3455_v19 = vsel %vm265_vm1, %v3436_v27, 0.0  ;;  %v3225_v24 = vrot.slane %v3224_v11, 2  ;;  %v3271_v51 = vsel %vm265_vm1, %v9946_v42, 0.0 }
 0x912   :  { %v3454_v54 = vadd.f32 %v3453_v3, %v3452_v13  ;;  %v3219_v58 = vadd.f32 %v3218_v32, %v3217_v9  ;;  %v3232_v48 = vrot.slane %v3231_v40, 2  ;;  %v3272_v23 = vrot.slane %v3271_v51, 4 }
 0x913   :  { %v3439_v13 = vmul.f32 %v9900_v53, %v9900_v53  ;;  %v3457_v56 = vsel %vm265_vm1, %v3437_v12, 0.0  ;;  %v3266_v33 = vadd.f32 %v3265_v59, %v3264_v34  ;;  %v3278_v62 = vsel %vm265_vm1, %v9952_v28, 0.0  ;;  %v9977_v12 = vpop.eup %7480 }
 0x914   :  { %v3456_v6 = vadd.f32 %v3455_v19, %v3454_v54  ;;  %v3254_v3 = vadd.f32 %v3253_v10, %v3252_v1  ;;  %v3273_v15 = vadd.f32 %v3272_v23, %v3271_v51  ;;  %v3279_v63 = vrot.slane %v3278_v62, 4 }
 0x915   :  { %v3440_v32 = vmul.f32 %v9905_v37, %v9905_v37  ;;  %v3459_v9 = vsel %vm265_vm1, %v3438_v43, 0.0  ;;  %v3226_v54 = vadd.f32 %v3225_v24, %v3224_v11  ;;  %v3242_v19 = vadd.f32 %v3241_v22, %v3240_v16 }
 0x916   :  { %v3458_v27 = vadd.f32 %v3457_v56, %v3456_v6  ;;  %v3233_v61 = vadd.f32 %v3232_v48, %v3231_v40  ;;  %v3260_v53 = vrot.slane %v3259_v45, 2  ;;  %v3280_v49 = vadd.f32 %v3279_v63, %v3278_v62 }
 0x917   :  { %v3441_v34 = vmul.f32 %v9908_v7, %v9908_v7  ;;  %v3461_v1 = vsel %vm265_vm1, %v3439_v13, 0.0  ;;  %v3220_v10 = vrot.slane %v3219_v58, 1  ;;  %v3267_v59 = vrot.slane %v3266_v33, 2 }
 0x918   :  { %v3460_v36 = vadd.f32 %v3459_v9, %v3458_v27  ;;  %v3249_v6 = vadd.f32 %v3248_v35, %v3247_v14  ;;  %v3255_v23 = vrot.slane %v3254_v3, 1  ;;  %v3274_v56 = vrot.slane %v3273_v15, 2 }
 0x919   :  { %v3442_v11 = vmul.f32 %v9911_v2, %v9911_v2  ;;  %v3463_v40 = vsel %vm265_vm1, %v3440_v32, 0.0  ;;  %v3227_v16 = vrot.slane %v3226_v54, 1  ;;  %v3281_v63 = vrot.slane %v3280_v49, 2 }
 0x91a   :  { %v3462_v51 = vadd.f32 %v3461_v1, %v3460_v36  ;;  %v9985_v22 = vpop.eup %7482  ;;  %v3443_v43 = vmul.f32 %v9914_v52, %v9914_v52  ;;  %v3234_v48 = vrot.slane %v3233_v61, 1  ;;  %v3261_v13 = vadd.f32 %v3260_v53, %v3259_v45 }
 0x91b   :  { %v3465_v36 = vsel %vm265_vm1, %v3441_v34, 0.0  ;;  %v3221_v14 = vadd.f32 %v3220_v10, %v3219_v58  ;;  %v3268_v35 = vadd.f32 %v3267_v59, %v3266_v33  ;;  %v3285_v62 = vsel %vm265_vm1, %v9985_v22, 0.0 }
 0x91c   :  { %v3464_v24 = vadd.f32 %v3463_v40, %v3462_v51  ;;  %v3256_v9 = vadd.f32 %v3255_v23, %v3254_v3  ;;  %v3275_v32 = vadd.f32 %v3274_v56, %v3273_v15  ;;  %v3286_v1 = vrot.slane %v3285_v62, 4 }
 0x91d   :  { %v3444_v2 = vmul.f32 %v9917_v47, %v9917_v47  ;;  %v3467_v7 = vsel %vm265_vm1, %v3442_v11, 0.0  ;;  %v3228_v52 = vadd.f32 %v3227_v16, %v3226_v54  ;;  %v3282_v51 = vadd.f32 %v3281_v63, %v3280_v49 }
 0x91e   :  { %v3466_v27 = vadd.f32 %v3465_v36, %v3464_v24  ;;  %v3235_v53 = vadd.f32 %v3234_v48, %v3233_v61  ;;  %v3262_v45 = vrot.slane %v3261_v13, 1  ;;  %v3287_v34 = vadd.f32 %v3286_v1, %v3285_v62 }
 0x91f   :  { %v3445_v58 = vmul.f32 %v9920_v46, %v9920_v46  ;;  %v3469_v33 = vsel %vm265_vm1, %v3443_v43, 0.0  ;;  %v3297_v10 = vadd.f32 1e-20, %v3221_v14  ;;  %v3269_v3 = vrot.slane %v3268_v35, 1 }
 0x920   :  { %v3468_v40 = vadd.f32 %v3467_v7, %v3466_v27  ;;  %v3446_v15 = vmul.f32 %v9923_v38, %v9923_v38  ;;  %v3276_v23 = vrot.slane %v3275_v32, 1  ;;  %v3288_v56 = vrot.slane %v3287_v34, 2 }
 0x921   :  { %v3447_v49 = vmul.f32 %v9926_v8, %v9926_v8  ;;  %v3471_v61 = vsel %vm265_vm1, %v3444_v2, 0.0  ;;  %v3298_v7 = vadd.f32 1e-20, %v3228_v52  ;;  %v3283_v54 = vrot.slane %v3282_v51, 1 }
 0x922   :  { %v3470_v59 = vadd.f32 %v3469_v33, %v3468_v40  ;;  %v3299_v16 = vadd.f32 1e-20, %v3235_v53  ;;  %v3263_v63 = vadd.f32 %v3262_v45, %v3261_v13  ;;  %v3289_v24 = vadd.f32 %v3288_v56, %v3287_v34 }
 0x923   :  { %v3473_v43 = vsel %vm265_vm1, %v3445_v58, 0.0  ;;  %7484 = vrcp.f32 %v3297_v10  ;;  %v3270_v48 = vadd.f32 %v3269_v3, %v3268_v35  ;;  %v3300_v36 = vadd.f32 1e-20, %v3242_v19 }
 0x924   :  { %v3472_v11 = vadd.f32 %v3471_v61, %v3470_v59  ;;  %v3277_v62 = vadd.f32 %v3276_v23, %v3275_v32  ;;  %v3290_v27 = vrot.slane %v3289_v24, 1  ;;  %v3301_v1 = vadd.f32 1e-20, %v3249_v6 }
 0x925   :  { %v3475_v40 = vsel %vm265_vm1, %v3446_v15, 0.0  ;;  %7486 = vrcp.f32 %v3298_v7  ;;  %v3284_v33 = vadd.f32 %v3283_v54, %v3282_v51  ;;  %v3302_v2 = vadd.f32 1e-20, %v3256_v9  ;;  %v12329_v54 = vld [vmem:[#allocation20_spill] sm:$0xff] }
 0x926   :  { %v3474_v14 = vadd.f32 %v3473_v43, %v3472_v11  ;;  %7488 = vrcp.f32 %v3299_v16  ;;  %v3303_v59 = vadd.f32 1e-20, %v3263_v63  ;;  %v3477_v13 = vsel %vm265_vm1, %v3447_v49, 0.0 }
 0x927   :  { %v3291_v53 = vadd.f32 %v3290_v27, %v3289_v24  ;;  %v3304_v45 = vadd.f32 1e-20, %v3270_v48  ;;  %7490 = vrcp.f32 %v3300_v36  ;;  %v3305_v35 = vadd.f32 1e-20, %v3277_v62 }
 0x928   :  { %v3476_v52 = vadd.f32 %v3475_v40, %v3474_v14  ;;  %7492 = vrcp.f32 %v3301_v1  ;;  %v3306_v19 = vadd.f32 1e-20, %v3284_v33  ;;  %v10019_v11 = vrot.slane %v9607_v25, %v12329_v54 }
 0x929   :  { %7494 = vrcp.f32 %v3302_v2  ;;  %v3307_v6 = vadd.f32 1e-20, %v3291_v53 }
 0x92a   :  { %v3478_v34 = vadd.f32 %v3477_v13, %v3476_v52  ;;  %7496 = vrcp.f32 %v3303_v59 }
 0x92b   :  { %7498 = vrcp.f32 %v3304_v45 }
 0x92c   :  { %v3479_v32 = vrot.slane %v3478_v34, 4  ;;  %7500 = vrcp.f32 %v3305_v35 }
 0x92d   :  { %v10006_v9 = vpop.eup %7484  ;;  %7502 = vrcp.f32 %v3306_v19 }
 0x92e   :  { %v3480_v58 = vadd.f32 %v3479_v32, %v3478_v34  ;;  %7504 = vrcp.f32 %v3307_v6 }
 0x92f   :  { %v10012_v56 = vpop.eup %7486 }
 0x930   :  { %v3481_v7 = vrot.slane %v3480_v58, 2  ;;  %v10021_v16 = vpop.eup %7488 }
 0x931   :  { %v10027_v63 = vpop.eup %7490 }
 0x932   :  { %v3047_v51 = vpop.permute.xlu1 %3046  ;;  %v10030_v25 = vpop.eup %7492 }
 0x933   :  { %v3052_v10 = vmul.f32 %v9813_v50, %v3047_v51  ;;  %v3053_v3 = vmul.f32 %v9816_v44, %v3047_v51  ;;  %v3054_v15 = vmul.f32 %v9822_v5, %v3047_v51  ;;  %v3055_v23 = vmul.f32 %v9827_v0, %v3047_v51  ;;  %v10040_v1 = vpop.eup %7494 }
 0x934   :  { %v3056_v49 = vmul.f32 %v9831_v60, %v3047_v51  ;;  %v10015_v61 = vpop.permute.xlu0 %3048  ;;  %v3057_v48 = vmul.f32 %v9864_v30, %v3047_v51  ;;  %v10042_v52 = vpop.eup %7496 }
 0x935   :  { %v3068_v50 = vsel %vm265_vm1, %v3052_v10, 0.0  ;;  %v3075_v44 = vsel %vm265_vm1, %v3053_v3, 0.0  ;;  %v3082_v5 = vsel %vm265_vm1, %v3054_v15, 0.0  ;;  %v3089_v0 = vsel %vm265_vm1, %v3055_v23, 0.0 }
 0x936   :  { %v3069_v60 = vrot.slane %v3068_v50, 4  ;;  %v3076_v24 = vrot.slane %v3075_v44, 4  ;;  %v3083_v43 = vrot.slane %v3082_v5, 4  ;;  %v3060_v36 = vmul.f32 %v9855_v4, %v10015_v61 }
 0x937   :  { %v3061_v14 = vmul.f32 %v9857_v31, %v10015_v61  ;;  %v3062_v62 = vmul.f32 %v9866_v17, %v10015_v61  ;;  %v3063_v27 = vmul.f32 %v9902_v39, %v10015_v61  ;;  %v3090_v30 = vrot.slane %v3089_v0, 4  ;;  %v10050_v17 = vpop.eup %7498 }
 0x938   :  { %v3070_v40 = vadd.f32 %v3069_v60, %v3068_v50  ;;  %v3077_v33 = vadd.f32 %v3076_v24, %v3075_v44  ;;  %v3084_v2 = vadd.f32 %v3083_v43, %v3082_v5  ;;  %v3124_v59 = vsel %vm265_vm1, %v3060_v36, 0.0  ;;  %v10052_v35 = vpop.eup %7500 }
 0x939   :  { %v3131_v4 = vsel %vm265_vm1, %v3061_v14, 0.0  ;;  %v3138_v31 = vsel %vm265_vm1, %v3062_v62, 0.0  ;;  %v10048_v13 = vsel %vm265_vm1, %v3063_v27, 0.0  ;;  %v3125_v45 = vrot.slane %v3124_v59, 4  ;;  %v10060_v3 = vpop.eup %7502 }
 0x93a   :  { %v3071_v39 = vrot.slane %v3070_v40, 2  ;;  %v3078_v53 = vrot.slane %v3077_v33, 2  ;;  %v3132_v34 = vrot.slane %v3131_v4, 4  ;;  %v10056_v19 = vmul.f32 %v9928_v55, %v10015_v61  ;;  %v10069_v43 = vpop.eup %7504 }
 0x93b   :  { %v3139_v32 = vrot.slane %v3138_v31, 4  ;;  %v3058_v10 = vmul.f32 %v9868_v20, %v3047_v51  ;;  %v10062_v15 = vadd.f32 %v3125_v45, %v3124_v59  ;;  %v3482_v50 = vadd.f32 %v3481_v7, %v3480_v58 }
 0x93c   :  { %v10064_v23 = vadd.f32 %v3132_v34, %v3131_v4  ;;  %v3059_v44 = vmul.f32 %v9888_v29, %v3047_v51  ;;  %v3072_v60 = vadd.f32 %v3071_v39, %v3070_v40  ;;  %v3079_v24 = vadd.f32 %v3078_v53, %v3077_v33 }
 0x93d   :  { %v10067_v5 = vadd.f32 %v3139_v32, %v3138_v31  ;;  %v3085_v55 = vrot.slane %v3084_v2, 2  ;;  %v3127_v36 = vrot.slane %v10062_v15, 2  ;;  %v3483_v14 = vrot.slane %v3482_v50, 1 }
 0x93e   :  { %v3134_v20 = vrot.slane %v10064_v23, 2  ;;  %v3091_v62 = vadd.f32 %v3090_v30, %v3089_v0  ;;  %v3073_v27 = vrot.slane %v3072_v60, 1  ;;  %v3080_v59 = vrot.slane %v3079_v24, 1 }
 0x93f   :  { %v3086_v4 = vadd.f32 %v3085_v55, %v3084_v2  ;;  %v3096_v58 = vsel %vm265_vm1, %v3056_v49, 0.0  ;;  %v3484_v7 = vadd.f32 %v3483_v14, %v3482_v50  ;;  %v3103_v40 = vsel %vm265_vm1, %v3057_v48, 0.0 }
 0x940   :  { %v3092_v29 = vrot.slane %v3091_v62, 2  ;;  %v3097_v51 = vrot.slane %v3096_v58, 4  ;;  %v3074_v33 = vadd.f32 %v3073_v27, %v3072_v60  ;;  %v3081_v31 = vadd.f32 %v3080_v59, %v3079_v24 }
 0x941   :  { %v3087_v39 = vrot.slane %v3086_v4, 1  ;;  %v3104_v53 = vrot.slane %v3103_v40, 4  ;;  %v3485_v45 = vmul.f32 0.0078125, %v3484_v7  ;;  %v3110_v6 = vsel %vm265_vm1, %v3058_v10, 0.0 }
 0x942   :  { %v3093_v34 = vadd.f32 %v3092_v29, %v3091_v62  ;;  %v3098_v32 = vadd.f32 %v3097_v51, %v3096_v58  ;;  %v3111_v54 = vrot.slane %v3110_v6, 4  ;;  %v3117_v2 = vsel %vm265_vm1, %v3059_v44, 0.0 }
 0x943   :  { %v3088_v0 = vadd.f32 %v3087_v39, %v3086_v4  ;;  %v3105_v30 = vadd.f32 %v3104_v53, %v3103_v40  ;;  %v3486_v49 = vadd.f32 1e-05, %v3485_v45  ;;  %v3118_v14 = vrot.slane %v3117_v2, 4 }
 0x944   :  { %v3094_v50 = vrot.slane %v3093_v34, 1  ;;  %v3099_v55 = vrot.slane %v3098_v32, 2  ;;  %v3112_v48 = vadd.f32 %v3111_v54, %v3110_v6  ;;  %v3309_v60 = vmul.f32 %v9936_v18, %v3074_v33 }
 0x945   :  { %v3106_v8 = vrot.slane %v3105_v30, 2  ;;  %v3311_v24 = vmul.f32 %v9942_v41, %v3081_v31  ;;  %7506 = vrsqrt.f32 %v3486_v49  ;;  %v3119_v59 = vadd.f32 %v3118_v14, %v3117_v2 }
 0x946   :  { %v3095_v62 = vadd.f32 %v3094_v50, %v3093_v34  ;;  %v3100_v27 = vadd.f32 %v3099_v55, %v3098_v32  ;;  %v3113_v4 = vrot.slane %v3112_v48, 2  ;;  %v3313_v58 = vmul.f32 %v9965_v26, %v3088_v0 }
 0x947   :  { %v3107_v10 = vadd.f32 %v3106_v8, %v3105_v30  ;;  %v3356_v44 = vsel %vm1090_vm2, %v3311_v24, %v3309_v60  ;;  %v3120_v29 = vrot.slane %v3119_v59, 2  ;;  %v3065_v54 = vmul.f32 %v9946_v42, %v10015_v61  ;;  %v10105_v24 = vld [vmem:[#allocation10 + $0x10] sm:$0xff] }
 0x948   :  { %v3101_v7 = vrot.slane %v3100_v27, 1  ;;  %v3315_v51 = vmul.f32 %v9967_v57, %v3095_v62  ;;  %v3114_v6 = vadd.f32 %v3113_v4, %v3112_v48  ;;  %v3357_v41 = vsel %vm1092_vm3, %v3313_v58, %v3356_v44 }
 0x949   :  { %v3108_v18 = vrot.slane %v3107_v10, 1  ;;  %v3066_v40 = vmul.f32 %v9952_v28, %v10015_v61  ;;  %v3121_v33 = vadd.f32 %v3120_v29, %v3119_v59  ;;  %v3067_v31 = vmul.f32 %v9985_v22, %v10015_v61 }
 0x94a   :  { %v3102_v8 = vadd.f32 %v3101_v7, %v3100_v27  ;;  %v3358_v26 = vsel %vm1094_vm4, %v3315_v51, %v3357_v41  ;;  %v3115_v53 = vrot.slane %v3114_v6, 1  ;;  %v3128_v57 = vadd.f32 %v3127_v36, %v10062_v15 }
 0x94b   :  { %v3109_v39 = vadd.f32 %v3108_v18, %v3107_v10  ;;  %v3135_v42 = vadd.f32 %v3134_v20, %v10064_v23  ;;  %v3122_v45 = vrot.slane %v3121_v33, 1  ;;  %v3141_v32 = vrot.slane %v10067_v5, 2 }
 0x94c   :  { %v3317_v34 = vmul.f32 %v9977_v12, %v3102_v8  ;;  %v12330_v28 = vrot.slane %v10048_v13, 4  ;;  %v3116_v30 = vadd.f32 %v3115_v53, %v3114_v6  ;;  %v3129_v49 = vrot.slane %v3128_v57, 1  ;;  %v12332_v8 = vld [vmem:[#allocation49_spill] sm:$0xff] }
 0x94d   :  { %v3319_v2 = vmul.f32 %v10006_v9, %v3109_v39  ;;  %v3136_v22 = vrot.slane %v3135_v42, 1  ;;  %v3123_v61 = vadd.f32 %v3122_v45, %v3121_v33  ;;  %v3142_v15 = vadd.f32 %v3141_v32, %v10067_v5  ;;  %v12334_v53 = vld [vmem:[#allocation25_spill] sm:$0xff] }
 0x94e   :  { %v3147_v0 = vadd.f32 %v12330_v28, %v10048_v13  ;;  %v3359_v50 = vsel %vm1096_vm5, %v3317_v34, %v3358_v26  ;;  %v3321_v36 = vmul.f32 %v10012_v56, %v3116_v30  ;;  %v3130_v20 = vadd.f32 %v3129_v49, %v3128_v57  ;;  %v12333_v26 = vld [vmem:[#allocation39_spill] sm:$0xff] }
 0x94f   :  { %v3360_v12 = vsel %vm1098_vm6, %v3319_v2, %v3359_v50  ;;  %v3137_v55 = vadd.f32 %v3136_v22, %v3135_v42  ;;  %v7507_v14 = vpop.eup %7506  ;;  %v3323_v13 = vmul.f32 %v10021_v16, %v3123_v61  ;;  %v3143_v48 = vrot.slane %v3142_v15, 1  ;;  %v12335_v42 = vld [vmem:[#allocation27_spill] sm:$0xff] }
 0x950   :  { %v3148_v23 = vrot.slane %v3147_v0, 2  ;;  %v3152_v9 = vsel %vm265_vm1, %v10056_v19, 0.0  ;;  %v3488_v62 = vmul.f32 %v10105_v24, %v7507_v14  ;;  %v3361_v5 = vsel %vm1100_vm7, %v3321_v36, %v3360_v12 }
 0x951   :  { %v3153_v27 = vrot.slane %v3152_v9, 4  ;;  %v3159_v56 = vsel %vm265_vm1, %v3065_v54, 0.0  ;;  %v3362_v59 = vsel %vm1102_vm8, %v3323_v13, %v3361_v5  ;;  %v3144_v10 = vadd.f32 %v3143_v48, %v3142_v15  ;;  %v12331_v54 = vld [vmem:[#allocation48_spill] sm:$0xff] }
 0x952   :  { %v3149_v60 = vadd.f32 %v3148_v23, %v3147_v0  ;;  %v3160_v58 = vrot.slane %v3159_v56, 4  ;;  %v10112_v16 = vrot.slane %v3488_v62, %v12256_v21  ;;  %3370 = vrot.lane.b32.xlu0 %v3362_v59, %s7967_s2  ;;  %v3166_v44 = vsel %vm265_vm1, %v3066_v40, 0.0  ;;  %v12339_v5 = vld [vmem:[#allocation40_spill] sm:$0xff] }
 0x953   :  { %v3154_v19 = vadd.f32 %v3153_v27, %v3152_v9  ;;  %v3173_v7 = vsel %vm265_vm1, %v3067_v31, 0.0  ;;  %v3167_v18 = vrot.slane %v3166_v44, 4  ;;  %v12336_v31 = vld [vmem:[#allocation24_spill] sm:$0xff]  ;;  %v12337_v9 = vld [vmem:[#allocation38_spill] sm:$0xff] }
 0x954   :  { %v3150_v4 = vrot.slane %v3149_v60, 1  ;;  %v3161_v51 = vadd.f32 %v3160_v58, %v3159_v56  ;;  %v3174_v6 = vrot.slane %v3173_v7, 4  ;;  %v3493_v41 = vmul.f32 %v10112_v16, %v12331_v54  ;;  %v12341_v56 = vld [vmem:[#allocation41_spill] sm:$0xff]  ;;  %v12347_v54 = vld [vmem:[#allocation30_spill] sm:$0xff] }
 0x955   :  { %v3494_v33 = vmul.f32 %v10112_v16, %v12332_v8  ;;  %v3495_v39 = vmul.f32 %v10112_v16, %v12333_v26  ;;  %v3496_v57 = vmul.f32 %v10112_v16, %v12334_v53  ;;  %v3497_v40 = vmul.f32 %v10112_v16, %v12335_v42 }
 0x956   :  { %v3151_v29 = vadd.f32 %v3150_v4, %v3149_v60  ;;  %v3498_v45 = vmul.f32 %v10112_v16, %v12336_v31  ;;  %v3155_v34 = vrot.slane %v3154_v19, 2  ;;  %v3162_v32 = vrot.slane %v3161_v51, 2  ;;  %v12343_v4 = vld [vmem:[#allocation21_spill] sm:$0xff] }
 0x957   :  { %v3513_v28 = vadd.f32 %v10019_v11, %v3493_v41  ;;  %v3514_v0 = vadd.f32 %v10019_v11, %v3494_v33  ;;  %v3515_v30 = vadd.f32 %v10019_v11, %v3495_v39  ;;  %v3516_v2 = vadd.f32 %v10019_v11, %v3496_v57 }
 0x958   :  { %v3517_v49 = vadd.f32 %v10019_v11, %v3497_v40  ;;  %v3518_v22 = vadd.f32 %v10019_v11, %v3498_v45  ;;  %v3156_v61 = vadd.f32 %v3155_v34, %v3154_v19  ;;  %v3163_v50 = vadd.f32 %v3162_v32, %v3161_v51  ;;  %v12345_v19 = vld [vmem:[#allocation31_spill] sm:$0xff] }
 0x959   :  { %v3592_v15 = vmax.f32 %v3513_v28, 0.0  ;;  %v3593_v23 = vmax.f32 %v3514_v0, 0.0  ;;  %v3594_v36 = vmax.f32 %v3515_v30, 0.0  ;;  %v3595_v12 = vmax.f32 %v3516_v2, 0.0 }
 0x95a   :  { %v3596_v14 = vmax.f32 %v3517_v49, 0.0  ;;  %v3597_v13 = vmax.f32 %v3518_v22, 0.0  ;;  %v3157_v48 = vrot.slane %v3156_v61, 1  ;;  %v3164_v60 = vrot.slane %v3163_v50, 1 }
 0x95b   :  { %v10136_v62 = vadd.f32 %v3592_v15, %v12337_v9  ;;  %v10139_v27 = vadd.f32 %v3593_v23, %v12339_v5  ;;  %v10142_v59 = vadd.f32 %v3594_v36, %v12341_v56  ;;  %v10145_v58 = vadd.f32 %v3595_v12, %v12343_v4  ;;  %v12355_v5 = vld [vmem:[#allocation33_spill] sm:$0xff] }
 0x95c   :  { %v10148_v51 = vadd.f32 %v3596_v14, %v12345_v19  ;;  %v10151_v41 = vadd.f32 %v3597_v13, %v12347_v54  ;;  %v3158_v8 = vadd.f32 %v3157_v48, %v3156_v61  ;;  %v3165_v33 = vadd.f32 %v3164_v60, %v3163_v50  ;;  %v12352_v13 = vld [vmem:[#allocation51_spill] sm:$0xff]  ;;  %v12353_v60 = vld [vmem:[#allocation57_spill] sm:$0xff]  ;;  %v12357_v19 = vld [vmem:[#allocation28_spill] sm:$0xff] }
 0x95d   :  { %12338 = vst [vmem:[#allocation55_spill] sm:$0xff] %v10136_v62  ;;  %12340 = vst [vmem:[#allocation52_spill] sm:$0xff] %v10139_v27  ;;  %v3636_v26 = vpack.c.bf16 %v10139_v27, %v10136_v62  ;;  %v3637_v39 = vpack.c.bf16 %v10145_v58, %v10142_v59  ;;  %v3168_v53 = vadd.f32 %v3167_v18, %v3166_v44  ;;  %v12349_v18 = vld [vmem:[#allocation50_spill] sm:$0xff] }
 0x95e   :  { %12342 = vst [vmem:[#allocation53_spill] sm:$0xff] %v10142_v59  ;;  %12344 = vst [vmem:[#allocation48_spill] sm:$0xff] %v10145_v58  ;;  %v3175_v57 = vadd.f32 %v3174_v6, %v3173_v7  ;;  %v3638_v42 = vpack.c.bf16 %v10151_v41, %v10148_v51  ;;  %v3325_v40 = vmul.f32 %v10027_v63, %v3130_v20  ;;  %v12351_v6 = vld [vmem:[#allocation29_spill] sm:$0xff] }
 0x95f   :  { %12346 = vst [vmem:[#allocation49_spill] sm:$0xff] %v10148_v51  ;;  %12348 = vst [vmem:[#allocation39_spill] sm:$0xff] %v10151_v41  ;;  %v3327_v31 = vmul.f32 %v10030_v25, %v3137_v55  ;;  %v3329_v45 = vmul.f32 %v10040_v1, %v3144_v10  ;;  %7091 = vmatprep.mubr.msk.bf16.mxu1 %vm265_vm1, %v3636_v26  ;;  %v3169_v34 = vrot.slane %v3168_v53, 2  ;;  %v12350_v25 = vld [vmem:[#allocation26_spill] sm:$0xff]  ;;  %v12358_v26 = vld [vmem:[#allocation32_spill] sm:$0xff] }
 0x960   :  { %v3176_v32 = vrot.slane %v3175_v57, 2  ;;  %v3331_v28 = vmul.f32 %v10042_v52, %v3151_v29  ;;  %v3333_v0 = vmul.f32 %v10050_v17, %v3158_v8  ;;  %7092 = vmatmul.mubr.msk.bf16.vlgmr.msra.gmra.mrb[24].mxu1 %vm265_vm1, %v3637_v39  ;;  %v3335_v44 = vmul.f32 %v10052_v35, %v3165_v33 }
 0x961   :  { %v3363_v7 = vsel %vm1090_vm2, %v3327_v31, %v3325_v40  ;;  %v3499_v63 = vmul.f32 %v10112_v16, %v12349_v18  ;;  %v3500_v1 = vmul.f32 %v10112_v16, %v12350_v25  ;;  %7095 = vmatprep.mubr.msk.bf16.mxu1 %vm265_vm1, %v3638_v42  ;;  %v3170_v20 = vadd.f32 %v3169_v34, %v3168_v53  ;;  %v12360_v42 = vld [vmem:[#allocation58_spill] sm:$0xff]  ;;  %v12365_v25 = vld [vmem:[#allocation43_spill] sm:$0xff] }
 0x962   :  { %v3177_v55 = vadd.f32 %v3176_v32, %v3175_v57  ;;  %v3364_v52 = vsel %vm1092_vm3, %v3329_v45, %v3363_v7  ;;  %v3501_v17 = vmul.f32 %v10112_v16, %v9905_v37  ;;  %v3502_v30 = vmul.f32 %v10112_v16, %v12351_v6  ;;  %v12362_v18 = vld [vmem:[#allocation54_spill] sm:$0xff] }
 0x963   :  { %v3365_v10 = vsel %vm1094_vm4, %v3331_v28, %v3364_v52  ;;  %v3519_v35 = vadd.f32 %v10019_v11, %v3499_v63  ;;  %v3520_v29 = vadd.f32 %v10019_v11, %v3500_v1  ;;  %v3171_v2 = vrot.slane %v3170_v20, 1 }
 0x964   :  { %v3178_v49 = vrot.slane %v3177_v55, 1  ;;  %v3366_v22 = vsel %vm1096_vm5, %v3333_v0, %v3365_v10  ;;  %v3521_v61 = vadd.f32 %v10019_v11, %v3501_v17  ;;  %v3522_v37 = vadd.f32 %v10019_v11, %v3502_v30  ;;  %v12367_v10 = vld [vmem:[#allocation44_spill] sm:$0xff] }
 0x965   :  { %v3367_v50 = vsel %vm1098_vm6, %v3335_v44, %v3366_v22  ;;  %v3598_v15 = vmax.f32 %v3519_v35, 0.0  ;;  %v3599_v23 = vmax.f32 %v3520_v29, 0.0  ;;  %v3172_v36 = vadd.f32 %v3171_v2, %v3170_v20  ;;  %v12369_v29 = vld [vmem:[#allocation45_spill] sm:$0xff]  ;;  %v12371_v22 = vld [vmem:[#allocation46_spill] sm:$0xff] }
 0x966   :  { %v3179_v12 = vadd.f32 %v3178_v49, %v3177_v55  ;;  %v3600_v14 = vmax.f32 %v3521_v61, 0.0  ;;  %v3503_v48 = vmul.f32 %v10112_v16, %v12352_v13  ;;  %v3601_v4 = vmax.f32 %v3522_v37, 0.0  ;;  %v12373_v61 = vld [vmem:[#allocation47_spill] sm:$0xff]  ;;  %v2722_v37 = vpop.permute.xlu1 %2721  ;;  %v12377_v13 = vld [vmem:[#allocation36_spill] sm:$0xff] }
 0x967   :  { %v10188_v9 = vadd.f32 %v3598_v15, %v12353_v60  ;;  %v10191_v56 = vadd.f32 %v3599_v23, %v12355_v5  ;;  %v3504_v54 = vmul.f32 %v10112_v16, %v12357_v19  ;;  %v3337_v8 = vmul.f32 %v10060_v3, %v3172_v36 }
 0x968   :  { %v3339_v33 = vmul.f32 %v10069_v43, %v3179_v12  ;;  %v10198_v39 = vadd.f32 %v3600_v14, %v12358_v26  ;;  %v3523_v53 = vadd.f32 %v10019_v11, %v3503_v48  ;;  %v10204_v40 = vadd.f32 %v3601_v4, %v12360_v42  ;;  %v12376_v12 = vld [vmem:[#allocation37_spill] sm:$0xff] }
 0x969   :  { %12354 = vst [vmem:[#allocation25_spill] sm:$0xff] %v10188_v9  ;;  %12356 = vst [vmem:[#allocation27_spill] sm:$0xff] %v10191_v56  ;;  %v3639_v57 = vpack.c.bf16 %v10191_v56, %v10188_v9  ;;  %v3524_v31 = vadd.f32 %v10019_v11, %v3504_v54  ;;  %v3505_v45 = vmul.f32 %v10112_v16, %v9917_v47  ;;  %v12375_v23 = vmov 0.0  }
 0x96a   :  { %12359 = vst [vmem:[#allocation24_spill] sm:$0xff] %v10198_v39  ;;  %12361 = vst [vmem:[#allocation38_spill] sm:$0xff] %v10204_v40  ;;  %v3368_v3 = vsel %vm1100_vm7, %v3337_v8, %v3367_v50  ;;  %v3602_v34 = vmax.f32 %v3523_v53, 0.0  ;;  %v3506_v43 = vmul.f32 %v10112_v16, %v9920_v46  ;;  %v3507_v32 = vmul.f32 %v10112_v16, %v9923_v38  ;;  %v12363_v38 = vld [vmem:[#allocation56_spill] sm:$0xff] }
 0x96b   :  { %v3369_v28 = vsel %vm1102_vm8, %v3339_v33, %v3368_v3  ;;  %7096 = vmatmul.mubr.msk.bf16.gmra.mrb[28].mxu1 %vm265_vm1, %v3639_v57  ;;  %v3640_v0 = vpack.c.bf16 %v10204_v40, %v10198_v39  ;;  %v3603_v44 = vmax.f32 %v3524_v31, 0.0  ;;  %v3525_v7 = vadd.f32 %v10019_v11, %v3505_v45 }
 0x96c   :  { %3372 = vrot.lane.b32.xlu1 %v3369_v28, %s7967_s2  ;;  %v3526_v47 = vadd.f32 %v10019_v11, %v3506_v43  ;;  %v3508_v46 = vmul.f32 %v10112_v16, %v12362_v18  ;;  %v10225_v63 = vadd.f32 %v3602_v34, %v12363_v38  ;;  %v3527_v55 = vadd.f32 %v10019_v11, %v3507_v32 }
 0x96d   :  { %7099 = vmatprep.mubr.msk.bf16.mxu1 %vm265_vm1, %v3640_v0  ;;  %v10228_v1 = vadd.f32 %v3603_v44, %v12365_v25  ;;  %v3604_v20 = vmax.f32 %v3525_v7, 0.0  ;;  %v2724_v14 = vadd.f32 %v2722_v37, %v12376_v12  ;;  %v2725_v48 = vadd.f32 %v2722_v37, %v12377_v13 }
 0x96e   :  { %12364 = vst [vmem:[#allocation40_spill] sm:$0xff] %v10225_v63  ;;  %v3605_v52 = vmax.f32 %v3526_v47, 0.0  ;;  %v3528_v17 = vadd.f32 %v10019_v11, %v3508_v46  ;;  %v3606_v30 = vmax.f32 %v3527_v55, 0.0 }
 0x96f   :  { %12366 = vst [vmem:[#allocation41_spill] sm:$0xff] %v10228_v1  ;;  %v10233_v35 = vadd.f32 %v3604_v20, %v12367_v10  ;;  %v3641_v16 = vpack.c.bf16 %v10228_v1, %v10225_v63 }
 0x970   :  { %v10236_v6 = vadd.f32 %v3605_v52, %v12369_v29  ;;  %v3607_v2 = vmax.f32 %v3528_v17, 0.0  ;;  %v10245_v11 = vadd.f32 %v3606_v30, %v12371_v22  ;;  %v12378_v17 = vld [vmem:[#allocation22_spill] sm:$0xff] }
 0x971   :  { %12368 = vst [vmem:[#allocation21_spill] sm:$0xff] %v10233_v35  ;;  %v3573_v10 = vrot.slane %v10105_v24, %v12378_v17 }
 0x972   :  { %12370 = vst [vmem:[#allocation31_spill] sm:$0xff] %v10236_v6  ;;  %v3642_v49 = vpack.c.bf16 %v10236_v6, %v10233_v35  ;;  %12372 = vst [vmem:[#allocation30_spill] sm:$0xff] %v10245_v11  ;;  %v10248_v50 = vadd.f32 %v3607_v2, %v12373_v61 }
 0x973   :  { %7100 = vmatmul.mubr.msk.bf16.gmra.mrb[32].mxu1 %vm265_vm1, %v3641_v16 }
 0x974   :  { %7103 = vmatprep.mubr.msk.bf16.mxu1 %vm265_vm1, %v3642_v49  ;;  %12374 = vst [vmem:[#allocation50_spill] sm:$0xff] %v10248_v50  ;;  %v3643_v15 = vpack.c.bf16 %v10248_v50, %v10245_v11 }
 0x97b   :  { %7104 = vmatmul.mubr.msk.bf16.gmra.mrb[36].mxu1 %vm265_vm1, %v3643_v15 }
 0x97c   :  { %7139 = vmatprep.mubr.msk.bf16.mxu1 %vm7966_vm0, %v12375_v23 }
 0x9c4   :  { %v3371_v36 = vpop.permute.xlu0 %3370 }
 0x9c5   :  { %v3376_v60 = vadd.f32 %v3371_v36, %v2724_v14 }
 0x9c7   :  { %v3529_v19 = vsel %vm1271_vm9, %v3376_v60, 0.0 }
 0x9de   :  { %v3373_v5 = vpop.permute.xlu1 %3372 }
 0x9df   :  { %v3377_v4 = vadd.f32 %v3373_v5, %v2725_v48 }
 0x9e1   :  { %v3530_v54 = vsel %vm1271_vm9, %v3377_v4, 0.0 }
 0x9e2   :  { %v3531_v8 = vadd.f32 %v3530_v54, %v3529_v19  ;;  %v7201_v54 = vld [vmem:[#allocation8 + $0x38] sm:$0xff]  }
 0x9e4   :  { %v3532_v33 = vrot.slane %v3531_v8, 4 }
 0x9e6   :  { %v3533_v26 = vadd.f32 %v3532_v33, %v3531_v8  ;;  %v12379_v33 = vld [vmem:[#allocation23_spill] sm:$0xff] }
 0x9e8   :  { %v3534_v53 = vrot.slane %v3533_v26, 2 }
 0x9ea   :  { %v3535_v57 = vadd.f32 %v3534_v53, %v3533_v26 }
 0x9ec   :  { %v3536_v42 = vrot.slane %v3535_v57, 1 }
 0x9ee   :  { %v3537_v31 = vadd.f32 %v3536_v42, %v3535_v57 }
 0x9f0   :  { %v3538_v45 = vmul.f32 0.0625, %v3537_v31 }
 0x9f2   :  { %v3539_v3 = vsub.f32 %v3376_v60, %v3538_v45  ;;  %v3540_v34 = vsub.f32 %v3377_v4, %v3538_v45  ;;  %v7200_v4 = vld [vmem:[#allocation8 + $0x30] sm:$0xff]  }
 0x9f3   :  { %7108 = vmatpush3.bf16.msra.mxu0 %v7200_v4 }
 0x9f4   :  { %v3541_v43 = vmul.f32 %v3539_v3, %v3539_v3  ;;  %v3542_v32 = vmul.f32 %v3540_v34, %v3540_v34  ;;  %7109 = vmatprep.subr.bf16.mxu0 %v12375_v23 }
 0x9f6   :  { %v3543_v28 = vsel %vm1271_vm9, %v3541_v43, 0.0  ;;  %v3544_v0 = vsel %vm1271_vm9, %v3542_v32, 0.0 }
 0x9f7   :  { %v3545_v44 = vadd.f32 %v3544_v0, %v3543_v28  ;;  %7110 = vmatpush3.bf16.msra.mxu0 %v7201_v54  ;;  %v10281_v0 = vld [vmem:[#allocation10 + $0x18] sm:$0xff] }
 0x9f9   :  { %v3546_v7 = vrot.slane %v3545_v44, 4 }
 0x9fb   :  { %v3547_v47 = vadd.f32 %v3546_v7, %v3545_v44 }
 0x9fd   :  { %v3548_v18 = vrot.slane %v3547_v47, 2 }
 0x9ff   :  { %v3549_v46 = vadd.f32 %v3548_v18, %v3547_v47  ;;  %v12381_v18 = vld [vmem:[#allocation35_spill] sm:$0xff] }
 0xa01   :  { %v3550_v38 = vrot.slane %v3549_v46, 1 }
 0xa03   :  { %v3551_v25 = vadd.f32 %v3550_v38, %v3549_v46 }
 0xa05   :  { %v3552_v20 = vmul.f32 0.0625, %v3551_v25  ;;  %v12385_v25 = vld [vmem:[#allocation16_spill] sm:$0xff] }
 0xa07   :  { %v3553_v55 = vadd.f32 1e-05, %v3552_v20  ;;  %v10299_v20 = vrot.slane %v10281_v0, %v12385_v25 }
 0xa09   :  { %7508 = vrsqrt.f32 %v3553_v55  ;;  %v12386_v55 = vld [vmem:[#allocation19_spill] sm:$0xff] }
 0xa13   :  { %v7509_v52 = vpop.eup %7508 }
 0xa14   :  { %3556 = vrot.lane.b32.xlu0 %v7509_v52, %s7969_s13  ;;  %v3841_v52 = vrot.slane %v10281_v0, %v12386_v55 }
 0xa18   :  { %3575 = vrot.lane.b32.xlu0 %v3573_v10, %s7967_s2 }
 0xa33   :  { %v7093_v29 = vpop.f32.mrb[24].mxu1 }
 0xa34   :  { %v3718_v16 = vpop.f32.mrb[25].mxu1  ;;  %v3727_v4 = vadd.f32 %v7093_v29, %v10299_v20 }
 0xa35   :  { %v7094_v30 = vpop.f32.mrb[26].mxu1  ;;  %v3719_v54 = vadd.f32 %v3718_v16, %v10299_v20 }
 0xa36   :  { %v3721_v2 = vpop.f32.mrb[27].mxu1 }
 0xa3e   :  { %v10265_v49 = vpop.f32.mrb[28].mxu1 }
 0xa3f   :  { %v3734_v22 = vpop.f32.mrb[29].mxu1 }
 0xa40   :  { %v10267_v61 = vpop.f32.mrb[30].mxu1 }
 0xa41   :  { %v10269_v15 = vpop.f32.mrb[31].mxu1 }
 0xa46   :  { %v7101_v37 = vpop.f32.mrb[32].mxu1 }
 0xa47   :  { %v3750_v36 = vpop.f32.mrb[33].mxu1 }
 0xa48   :  { %v7102_v12 = vpop.f32.mrb[34].mxu1 }
 0xa49   :  { %v3753_v14 = vpop.f32.mrb[35].mxu1 }
 0xa4e   :  { %v7105_v13 = vpop.f32.mrb[36].mxu1 }
 0xa4f   :  { %v10271_v48 = vpop.f32.mrb[37].mxu1 }
 0xa50   :  { %v10273_v60 = vpop.f32.mrb[38].mxu1 }
 0xa51   :  { %v10275_v5 = vpop.f32.mrb[39].mxu1 }
 0xa86   :  { %v3557_v19 = vpop.permute.xlu0 %3556 }
 0xa87   :  { %v3559_v8 = vmul.f32 %v10105_v24, %v3557_v19  ;;  %v12380_v24 = vld [vmem:[#allocation18_spill] sm:$0xff] }
 0xa88   :  { %v3857_v44 = vrot.slane %v10281_v0, %v12380_v24 }
 0xa89   :  { %v3563_v26 = vrot.slane %v3559_v8, %v12379_v33  ;;  %v3730_v8 = vadd.f32 %v7094_v30, %v10299_v20 }
 0xa8a   :  { %v3576_v57 = vpop.permute.xlu0 %3575 }
 0xa8b   :  { %3565 = vrot.lane.b32.xlu1 %v3563_v26, %s7967_s2 }
 0xafd   :  { %v3566_v53 = vpop.permute.xlu1 %3565 }
 0xafe   :  { %v3568_v42 = vmul.f32 %v3566_v53, %v3539_v3  ;;  %v3569_v31 = vmul.f32 %v3566_v53, %v3540_v34  ;;  %v12383_v34 = vld [vmem:[#allocation34_spill] sm:$0xff] }
 0xb00   :  { %v3578_v45 = vadd.f32 %v3576_v57, %v3568_v42  ;;  %v3579_v43 = vadd.f32 %v3576_v57, %v3569_v31  ;;  %v7202_v42 = vld [vmem:[#allocation7 + $0x40] sm:$0xff]   ;;  %v3722_v31 = vadd.f32 %v3721_v2, %v10299_v20 }
 0xb01   :  { %7115 = vmatprep.subr.bf16.mxu0 %v7202_v42 }
 0xb02   :  { %v3580_v32 = vmax.f32 %v3578_v45, 0.0  ;;  %v3581_v28 = vmax.f32 %v3579_v43, 0.0  ;;  %v3735_v45 = vadd.f32 %v3734_v22, %v10299_v20  ;;  %v10315_v43 = vadd.f32 %v7101_v37, %v10299_v20  ;;  %v12390_v22 = vld [vmem:[#allocation42_spill] sm:$0xff] }
 0xb04   :  { %3586 = vrot.lane.b32.xlu0 %v3581_v28, %s7969_s13  ;;  %3584 = vrot.lane.b32.xlu1 %v3580_v32, %s7969_s13  ;;  %v12389_v32 = vld [vmem:[#allocation17_spill] sm:$0xff] }
 0xb05   :  { %v3847_v16 = vrot.slane %v10281_v0, %v12389_v32 }
 0xb08   :  { %3859 = vrot.lane.b32.xlu1 %v3857_v44, %s7961_s22 }
 0xb76   :  { %v3587_v7 = vpop.permute.xlu0 %3586  ;;  %v3585_v47 = vpop.permute.xlu1 %3584 }
 0xb77   :  { %v10289_v3 = vadd.f32 %v3587_v7, %v12381_v18  ;;  %v10292_v46 = vadd.f32 %v3585_v47, %v12383_v34  ;;  %v10331_v7 = vadd.f32 %v3750_v36, %v10299_v20  ;;  %v10334_v47 = vadd.f32 %v7102_v12, %v10299_v20 }
 0xb78   :  { %v10337_v18 = vadd.f32 %v3753_v14, %v10299_v20  ;;  %v10340_v34 = vadd.f32 %v7105_v13, %v10299_v20  ;;  %v10351_v14 = vadd.f32 %v10271_v48, %v10299_v20  ;;  %v10355_v13 = vadd.f32 %v10273_v60, %v10299_v20 }
 0xb79   :  { %12382 = vst [vmem:[#allocation26_spill] sm:$0xff] %v10289_v3  ;;  %12384 = vst [vmem:[#allocation29_spill] sm:$0xff] %v10292_v46  ;;  %v3781_v38 = vpack.c.bf16 %v10289_v3, %v10292_v46 }
 0xb7a   :  { %v3860_v10 = vpop.permute.xlu1 %3859 }
 0xb7b   :  { %7112 = vmatmul.mubr.msk.bf16.vlgmr.msra.gmra.mrb[36].mxu0 %vm265_vm1, %v3781_v38  ;;  %v7203_v38 = vld [vmem:[#allocation7 + $0x48] sm:$0xff]  }
 0xb7c   :  { %7116 = vmatpush3.bf16.msra.mxu0 %v7202_v42 }
 0xb7d   :  { %7117 = vmatprep.subr.bf16.mxu0 %v7203_v38 }
 0xb80   :  { %7118 = vmatpush3.bf16.msra.mxu0 %v7203_v38 }
 0xb81   :  { %7163 = vmatprep.subr.bf16.mxu0 %v12375_v23 }
 0xc4e   :  { %v10304_v19 = vpop.f32.mrb[36].mxu0 }
 0xc4f   :  { %12387 = vst [vmem:[#allocation51_spill] sm:$0xff] %v10304_v19  ;;  %v10309_v26 = vadd.f32 %v3841_v52, %v10304_v19  ;;  %v7113_v53 = vpop.f32.mrb[37].mxu0  ;;  %v3862_v57 = vadd.f32 %v3860_v10, %v10304_v19 }
 0xc50   :  { %v10317_v29 = vpop.f32.mrb[38].mxu0  ;;  %v10359_v53 = vadd.f32 %v10275_v5, %v10299_v20 }
 0xc51   :  { %12388 = vst [vmem:[#allocation57_spill] sm:$0xff] %v10317_v29  ;;  %v10322_v30 = vadd.f32 %v3841_v52, %v10317_v29  ;;  %v7114_v28 = vpop.f32.mrb[39].mxu0  ;;  %4174 = vrot.lane.b32.xlu0 %v3862_v57, %s7961_s22  ;;  %v3863_v44 = vadd.f32 %v3860_v10, %v10317_v29  ;;  %v3866_v2 = vcombine.high %v10309_v26, %v10309_v26 }
 0xc52   :  { %v3873_v37 = vrot.slane %v10309_v26, %v12390_v22 }
 0xc53   :  { %4176 = vrot.lane.b32.xlu1 %v3863_v44, %s7961_s22  ;;  %v10344_v52 = vrot.slane %v3866_v2, %v12390_v22  ;;  %v3915_v12 = vcombine.high %v10322_v30, %v10322_v30  ;;  %v3922_v57 = vrot.slane %v10322_v30, %v12390_v22 }
 0xc54   :  { %v3881_v10 = vcombine.high %v3873_v37, %v3873_v37  ;;  %v3889_v36 = vrot.slane %v3873_v37, %v12390_v22 }
 0xc55   :  { %3849 = vrot.lane.b32.xlu0 %v3847_v16, %s7967_s2  ;;  %v10366_v28 = vrot.slane %v10344_v52, %v12390_v22  ;;  %v3929_v2 = vrot.slane %v3915_v12, %v12390_v22  ;;  %v3930_v37 = vcombine.high %v3922_v57, %v3922_v57  ;;  %v3938_v5 = vrot.slane %v3922_v57, %v12390_v22 }
 0xc56   :  { %v3903_v48 = vrot.slane %v3881_v10, %v12390_v22  ;;  %v3911_v44 = vcombine.high %v3889_v36, %v3889_v36  ;;  %v3967_v60 = vrot.slane %v3889_v36, %v12385_v25 }
 0xc57   :  { %v3983_v10 = vrot.slane %v10366_v28, %v12385_v25  ;;  %v3931_v3 = vcombine.high %v3929_v2, %v3929_v2  ;;  %v3945_v36 = vrot.slane %v3929_v2, %v12390_v22  ;;  %v3952_v12 = vrot.slane %v3930_v37, %v12390_v22 }
 0xc58   :  { %v3913_v32 = vcombine.high %v3903_v48, %v3903_v48  ;;  %v3971_v16 = vrot.slane %v3903_v48, %v12385_v25  ;;  %v3975_v55 = vrot.slane %v3911_v44, %v12385_v25  ;;  %v4044_v46 = vadd.f32 %v3967_v60, %v3719_v54 }
 0xc59   :  { %v4048_v42 = vadd.f32 %v3983_v10, %v3735_v45  ;;  %v3959_v44 = vrot.slane %v3931_v3, %v12390_v22  ;;  %v3960_v17 = vcombine.high %v3938_v5, %v3938_v5  ;;  %v3961_v54 = vcombine.high %v3945_v36, %v3945_v36 }
 0xc5a   :  { %v3979_v57 = vrot.slane %v3913_v32, %v12385_v25  ;;  %v4045_v24 = vadd.f32 %v3971_v16, %v3722_v31  ;;  %v4046_v33 = vadd.f32 %v3975_v55, %v3727_v4  ;;  %v10383_v48 = vadd.f32 %v4044_v46, %v10309_v26 }
 0xc5b   :  { %v10393_v31 = vadd.f32 %v4048_v42, %v10309_v26  ;;  %v3962_v4 = vcombine.high %v3952_v12, %v3952_v12  ;;  %v3963_v45 = vcombine.high %v3959_v44, %v3959_v44  ;;  %v4003_v6 = vrot.slane %v3952_v12, %v12385_v25 }
 0xc5c   :  { %v4047_v60 = vadd.f32 %v3979_v57, %v3730_v8  ;;  %v10387_v2 = vadd.f32 %v4045_v24, %v10309_v26  ;;  %v10390_v38 = vadd.f32 %v4046_v33, %v10309_v26  ;;  %v4076_v55 = vsub.f32 0.0, %v10383_v48 }
 0xc5d   :  { %v4506_v46 = vsel %vm265_vm1, %v10383_v48, 0.0  ;;  %v4080_v33 = vsub.f32 0.0, %v10393_v31  ;;  %v4513_v16 = vsel %vm265_vm1, %v10393_v31, 0.0  ;;  %v4007_v35 = vrot.slane %v3960_v17, %v12385_v25 }
 0xc5e   :  { %v10399_v3 = vadd.f32 %v4047_v60, %v10309_v26  ;;  %v4077_v8 = vsub.f32 0.0, %v10387_v2  ;;  %v4078_v24 = vsub.f32 0.0, %v10390_v38  ;;  %v4092_v32 = vmul.f32 1.442695, %v4076_v55 }
 0xc5f   :  { %v4507_v37 = vsel %vm265_vm1, %v10387_v2, 0.0  ;;  %v4509_v42 = vsel %vm265_vm1, %v10390_v38, 0.0  ;;  %v4100_v19 = vmul.f32 1.442695, %v4080_v33  ;;  %v3999_v55 = vrot.slane %v3938_v5, %v12385_v25 }
 0xc60   :  { %v4079_v10 = vsub.f32 0.0, %v10399_v3  ;;  %v4094_v57 = vmul.f32 1.442695, %v4077_v8  ;;  %v4096_v60 = vmul.f32 1.442695, %v4078_v24  ;;  %v4508_v29 = vadd.f32 %v4507_v37, %v4506_v46 }
 0xc61   :  { %7510 = vpow2.f32 %v4092_v32  ;;  %v4511_v23 = vsel %vm265_vm1, %v10399_v3, 0.0  ;;  %v4011_v1 = vrot.slane %v3962_v4, %v12385_v25  ;;  %v4015_v8 = vrot.slane %v3945_v36, %v12385_v25 }
 0xc62   :  { %7512 = vpow2.f32 %v4094_v57  ;;  %v4098_v50 = vmul.f32 1.442695, %v4079_v10  ;;  %v4510_v11 = vadd.f32 %v4509_v42, %v4508_v29  ;;  %v4019_v24 = vrot.slane %v3959_v44, %v12385_v25 }
 0xc63   :  { %7514 = vpow2.f32 %v4096_v60  ;;  %v4023_v33 = vrot.slane %v3961_v54, %v12385_v25  ;;  %v4027_v5 = vrot.slane %v3963_v45, %v12385_v25  ;;  %v4052_v29 = vadd.f32 %v3999_v55, %v10331_v7 }
 0xc64   :  { %7516 = vpow2.f32 %v4098_v50  ;;  %v4512_v46 = vadd.f32 %v4511_v23, %v4510_v11  ;;  %v4053_v12 = vadd.f32 %v4003_v6, %v10337_v18  ;;  %v4054_v17 = vadd.f32 %v4007_v35, %v10315_v43 }
 0xc65   :  { %7518 = vpow2.f32 %v4100_v19  ;;  %v4055_v4 = vadd.f32 %v4011_v1, %v10334_v47  ;;  %v4056_v36 = vadd.f32 %v4015_v8, %v10351_v14  ;;  %v4057_v11 = vadd.f32 %v4019_v24, %v10359_v53 }
 0xc66   :  { %v4514_v32 = vadd.f32 %v4513_v16, %v4512_v46  ;;  %v4058_v50 = vadd.f32 %v4023_v33, %v10340_v34  ;;  %v4059_v23 = vadd.f32 %v4027_v5, %v10355_v13  ;;  %v10430_v19 = vadd.f32 %v4052_v29, %v10322_v30 }
 0xc67   :  { %v10433_v7 = vadd.f32 %v4053_v12, %v10322_v30  ;;  %v10436_v6 = vadd.f32 %v4054_v17, %v10322_v30  ;;  %v10439_v35 = vadd.f32 %v4055_v4, %v10322_v30  ;;  %v10442_v1 = vadd.f32 %v4056_v36, %v10322_v30 }
 0xc68   :  { %v10445_v43 = vadd.f32 %v4058_v50, %v10322_v30  ;;  %v4084_v47 = vsub.f32 0.0, %v10430_v19  ;;  %v12391_v13 = vcombine.high %v10344_v52, %v10344_v52  ;;  %v3743_v54 = vadd.f32 %v10265_v49, %v10299_v20 }
 0xc69   :  { %v4085_v18 = vsub.f32 0.0, %v10433_v7  ;;  %v3746_v45 = vadd.f32 %v10267_v61, %v10299_v20  ;;  %v3738_v16 = vadd.f32 %v10269_v15, %v10299_v20  ;;  %v4086_v57 = vsub.f32 0.0, %v10436_v6 }
 0xc6a   :  { %v4108_v14 = vmul.f32 1.442695, %v4084_v47  ;;  %v3910_v53 = vrot.slane %v12391_v13, %v12390_v22  ;;  %v3912_v8 = vcombine.high %v10366_v28, %v10366_v28  ;;  %v10465_v20 = vadd.f32 %v4057_v11, %v10322_v30 }
 0xc6b   :  { %v7511_v34 = vpop.eup %7510  ;;  %v4110_v52 = vmul.f32 1.442695, %v4085_v18  ;;  %v10469_v12 = vadd.f32 %v4059_v23, %v10322_v30  ;;  %v4112_v36 = vmul.f32 1.442695, %v4086_v57 }
 0xc6c   :  { %v7513_v44 = vpop.eup %7512  ;;  %v4124_v37 = vadd.f32 1.0, %v7511_v34  ;;  %7520 = vpow2.f32 %v4108_v14  ;;  %v3914_v61 = vcombine.high %v3910_v53, %v3910_v53  ;;  %v3987_v24 = vrot.slane %v3910_v53, %v12385_v25 }
 0xc6d   :  { %v7515_v42 = vpop.eup %7514  ;;  %v4125_v10 = vadd.f32 1.0, %v7513_v44  ;;  %v3991_v15 = vrot.slane %v3912_v8, %v12385_v25  ;;  %v4087_v14 = vsub.f32 0.0, %v10439_v35 }
 0xc6e   :  { %v7517_v60 = vpop.eup %7516  ;;  %v4126_v55 = vadd.f32 1.0, %v7515_v42  ;;  %7522 = vrcp.f32 %v4124_v37  ;;  %v3995_v5 = vrot.slane %v3914_v61, %v12385_v25  ;;  %v4049_v29 = vadd.f32 %v3987_v24, %v3738_v16 }
 0xc6f   :  { %v7519_v49 = vpop.eup %7518  ;;  %v4127_v46 = vadd.f32 1.0, %v7517_v60  ;;  %7524 = vrcp.f32 %v4125_v10  ;;  %v4050_v28 = vadd.f32 %v3991_v15, %v3743_v54  ;;  %v4088_v10 = vsub.f32 0.0, %v10442_v1 }
 0xc70   :  { %v4128_v33 = vadd.f32 1.0, %v7519_v49  ;;  %7526 = vrcp.f32 %v4126_v55  ;;  %v4051_v17 = vadd.f32 %v3995_v5, %v3746_v45  ;;  %v10472_v4 = vadd.f32 %v4049_v29, %v10309_v26 }
 0xc71   :  { %7528 = vrcp.f32 %v4127_v46  ;;  %v10475_v50 = vadd.f32 %v4050_v28, %v10309_v26  ;;  %v4114_v8 = vmul.f32 1.442695, %v4087_v14  ;;  %v4521_v49 = vsel %vm265_vm1, %v10430_v19, 0.0 }
 0xc72   :  { %7530 = vrcp.f32 %v4128_v33  ;;  %v10478_v11 = vadd.f32 %v4051_v17, %v10309_v26  ;;  %v4515_v47 = vsel %vm265_vm1, %v10472_v4, 0.0  ;;  %v4081_v30 = vsub.f32 0.0, %v10472_v4 }
 0xc73   :  { %7532 = vpow2.f32 %v4110_v52  ;;  %v4516_v23 = vadd.f32 %v4515_v47, %v4514_v32  ;;  %v4082_v18 = vsub.f32 0.0, %v10475_v50  ;;  %v4517_v13 = vsel %vm265_vm1, %v10475_v50, 0.0 }
 0xc74   :  { %v4102_v53 = vmul.f32 1.442695, %v4081_v30  ;;  %7534 = vpow2.f32 %v4112_v36  ;;  %v4083_v54 = vsub.f32 0.0, %v10478_v11  ;;  %v4519_v32 = vsel %vm265_vm1, %v10478_v11, 0.0 }
 0xc75   :  { %v4518_v26 = vadd.f32 %v4517_v13, %v4516_v23  ;;  %v4104_v45 = vmul.f32 1.442695, %v4082_v18  ;;  %v4523_v24 = vsel %vm265_vm1, %v10433_v7, 0.0  ;;  %v4525_v17 = vsel %vm265_vm1, %v10436_v6, 0.0 }
 0xc76   :  { %v7521_v34 = vpop.eup %7520  ;;  %7536 = vpow2.f32 %v4102_v53  ;;  %v4106_v15 = vmul.f32 1.442695, %v4083_v54  ;;  %v4116_v30 = vmul.f32 1.442695, %v4088_v10  ;;  %v4089_v18 = vsub.f32 0.0, %v10465_v20 }
 0xc77   :  { %v4520_v57 = vadd.f32 %v4519_v32, %v4518_v26  ;;  %7538 = vpow2.f32 %v4104_v45  ;;  %v4132_v28 = vadd.f32 1.0, %v7521_v34  ;;  %v4090_v14 = vsub.f32 0.0, %v10445_v43 }
 0xc78   :  { %v10487_v44 = vpop.eup %7522  ;;  %7540 = vpow2.f32 %v4114_v8  ;;  %v4527_v32 = vsel %vm265_vm1, %v10439_v35, 0.0  ;;  %v4533_v25 = vsel %vm265_vm1, %v10445_v43, 0.0 }
 0xc79   :  { %v10490_v37 = vpop.eup %7524  ;;  %v4308_v42 = vsel %vm265_vm1, %v10487_v44, 0.0  ;;  %v4522_v33 = vadd.f32 %v4521_v49, %v4520_v57  ;;  %7542 = vpow2.f32 %v4106_v15  ;;  %v4529_v57 = vsel %vm265_vm1, %v10442_v1, 0.0 }
 0xc7a   :  { %v10496_v16 = vpop.eup %7526  ;;  %v4309_v60 = vrot.slane %v4308_v42, 4  ;;  %v4315_v55 = vsel %vm265_vm1, %v10490_v37, 0.0  ;;  %7544 = vrcp.f32 %v4132_v28 }
 0xc7b   :  { %v10501_v52 = vpop.eup %7528  ;;  %v4316_v46 = vrot.slane %v4315_v55, 4  ;;  %v4322_v5 = vsel %vm265_vm1, %v10496_v16, 0.0  ;;  %v4524_v23 = vadd.f32 %v4523_v24, %v4522_v33  ;;  %7546 = vpow2.f32 %v4116_v30 }
 0xc7c   :  { %v10505_v61 = vpop.eup %7530  ;;  %v4310_v36 = vadd.f32 %v4309_v60, %v4308_v42  ;;  %v4329_v47 = vsel %vm265_vm1, %v10501_v52, 0.0  ;;  %v4323_v53 = vrot.slane %v4322_v5, 4 }
 0xc7d   :  { %v7533_v29 = vpop.eup %7532  ;;  %v4317_v13 = vadd.f32 %v4316_v46, %v4315_v55  ;;  %v4330_v26 = vrot.slane %v4329_v47, 4  ;;  %v4526_v45 = vadd.f32 %v4525_v17, %v4524_v23  ;;  %v4336_v34 = vsel %vm265_vm1, %v10505_v61, 0.0 }
 0xc7e   :  { %v4133_v54 = vadd.f32 1.0, %v7533_v29  ;;  %v4311_v42 = vrot.slane %v4310_v36, 2  ;;  %v7535_v10 = vpop.eup %7534  ;;  %v4118_v55 = vmul.f32 1.442695, %v4089_v18  ;;  %v4324_v46 = vadd.f32 %v4323_v53, %v4322_v5 }
 0xc7f   :  { %v4528_v60 = vadd.f32 %v4527_v32, %v4526_v45  ;;  %v4318_v49 = vrot.slane %v4317_v13, 2  ;;  %v4331_v24 = vadd.f32 %v4330_v26, %v4329_v47  ;;  %v4337_v33 = vrot.slane %v4336_v34, 4 }
 0xc80   :  { %v7537_v8 = vpop.eup %7536  ;;  %7548 = vrcp.f32 %v4133_v54  ;;  %v4120_v29 = vmul.f32 1.442695, %v4090_v14  ;;  %v4531_v17 = vsel %vm265_vm1, %v10465_v20, 0.0  ;;  %v4312_v22 = vadd.f32 %v4311_v42, %v4310_v36 }
 0xc81   :  { %v4530_v15 = vadd.f32 %v4529_v57, %v4528_v60  ;;  %v7539_v28 = vpop.eup %7538  ;;  %v4129_v23 = vadd.f32 1.0, %v7537_v8  ;;  %v4134_v30 = vadd.f32 1.0, %v7535_v10  ;;  %7550 = vpow2.f32 %v4118_v55 }
 0xc82   :  { %v4319_v18 = vadd.f32 %v4318_v49, %v4317_v13  ;;  %v4325_v32 = vrot.slane %v4324_v46, 2  ;;  %v4332_v5 = vrot.slane %v4331_v24, 2  ;;  %v4338_v47 = vadd.f32 %v4337_v33, %v4336_v34  ;;  %v7541_v14 = vpop.eup %7540 }
 0xc83   :  { %v4532_v45 = vadd.f32 %v4531_v17, %v4530_v15  ;;  %v4130_v26 = vadd.f32 1.0, %v7539_v28  ;;  %7552 = vpow2.f32 %v4120_v29  ;;  %v4535_v54 = vsel %vm265_vm1, %v10469_v12, 0.0  ;;  %v7543_v36 = vpop.eup %7542 }
 0xc84   :  { %7554 = vrcp.f32 %v4129_v23  ;;  %v4313_v57 = vrot.slane %v4312_v22, 1  ;;  %v10529_v10 = vpop.eup %7544  ;;  %v4320_v60 = vrot.slane %v4319_v18, 1  ;;  %v4326_v55 = vadd.f32 %v4325_v32, %v4324_v46 }
 0xc85   :  { %v4534_v53 = vadd.f32 %v4533_v25, %v4532_v45  ;;  %7556 = vrcp.f32 %v4134_v30  ;;  %v4333_v13 = vadd.f32 %v4332_v5, %v4331_v24  ;;  %v4339_v8 = vrot.slane %v4338_v47, 2  ;;  %v7547_v49 = vpop.eup %7546 }
 0xc86   :  { %7558 = vrcp.f32 %v4130_v26  ;;  %v4131_v25 = vadd.f32 1.0, %v7543_v36  ;;  %v4314_v33 = vadd.f32 %v4313_v57, %v4312_v22  ;;  %v4135_v29 = vadd.f32 1.0, %v7541_v14 }
 0xc87   :  { %v4536_v42 = vadd.f32 %v4535_v54, %v4534_v53  ;;  %v4091_v17 = vsub.f32 0.0, %v10469_v12  ;;  %v4364_v23 = vsel %vm265_vm1, %v10529_v10, 0.0  ;;  %v4321_v30 = vadd.f32 %v4320_v60, %v4319_v18 }
 0xc88   :  { %v4327_v45 = vrot.slane %v4326_v55, 1  ;;  %v4334_v53 = vrot.slane %v4333_v13, 1  ;;  %v4340_v46 = vadd.f32 %v4339_v8, %v4338_v47  ;;  %v4136_v32 = vadd.f32 1.0, %v7547_v49 }
 0xc89   :  { %v4537_v34 = vrot.slane %v4536_v42, 4  ;;  %7560 = vrcp.f32 %v4131_v25  ;;  %v4420_v26 = vadd.f32 1e-20, %v4314_v33  ;;  %v4365_v54 = vrot.slane %v4364_v23, 4 }
 0xc8a   :  { %v10531_v15 = vpop.eup %7548  ;;  %7562 = vrcp.f32 %v4135_v29  ;;  %v4122_v36 = vmul.f32 1.442695, %v4091_v17  ;;  %v4335_v18 = vadd.f32 %v4334_v53, %v4333_v13  ;;  %v4341_v60 = vrot.slane %v4340_v46, 1 }
 0xc8b   :  { %v4538_v28 = vadd.f32 %v4537_v34, %v4536_v42  ;;  %v7551_v24 = vpop.eup %7550  ;;  %v4371_v22 = vsel %vm265_vm1, %v10531_v15, 0.0  ;;  %v4328_v34 = vadd.f32 %v4327_v45, %v4326_v55  ;;  %v4421_v63 = vadd.f32 1e-20, %v4321_v30 }
 0xc8c   :  { %7564 = vrcp.f32 %v4136_v32  ;;  %v4137_v49 = vadd.f32 1.0, %v7551_v24  ;;  %v4372_v25 = vrot.slane %v4371_v22, 4  ;;  %v4366_v40 = vadd.f32 %v4365_v54, %v4364_v23 }
 0xc8d   :  { %v4539_v5 = vrot.slane %v4538_v28, 2  ;;  %v7553_v14 = vpop.eup %7552  ;;  %7566 = vrcp.f32 %v4420_v26  ;;  %v4342_v55 = vadd.f32 %v4341_v60, %v4340_v46  ;;  %v4422_v13 = vadd.f32 1e-20, %v4328_v34 }
 0xc8e   :  { %v10538_v42 = vpop.eup %7554  ;;  %v4138_v33 = vadd.f32 1.0, %v7553_v14  ;;  %7568 = vpow2.f32 %v4122_v36  ;;  %v4423_v17 = vadd.f32 1e-20, %v4335_v18  ;;  %v4373_v45 = vadd.f32 %v4372_v25, %v4371_v22 }
 0xc8f   :  { %v4540_v57 = vadd.f32 %v4539_v5, %v4538_v28  ;;  %v10540_v47 = vpop.eup %7556  ;;  %v4343_v28 = vsel %vm265_vm1, %v10538_v42, 0.0  ;;  %7570 = vrcp.f32 %v4421_v63  ;;  %v4367_v32 = vrot.slane %v4366_v40, 2 }
 0xc90   :  { %v10542_v39 = vpop.eup %7558  ;;  %7572 = vrcp.f32 %v4137_v49  ;;  %v4378_v53 = vsel %vm265_vm1, %v10540_v47, 0.0  ;;  %v4344_v24 = vrot.slane %v4343_v28, 4  ;;  %v4424_v18 = vadd.f32 1e-20, %v4342_v55 }
 0xc91   :  { %v4541_v8 = vrot.slane %v4540_v57, 1  ;;  %v4350_v23 = vsel %vm265_vm1, %v10542_v39, 0.0  ;;  %7574 = vrcp.f32 %v4138_v33  ;;  %v4379_v34 = vrot.slane %v4378_v53, 4 }
 0xc92   :  { %7576 = vrcp.f32 %v4422_v13  ;;  %v4345_v33 = vadd.f32 %v4344_v24, %v4343_v28 }
 0xc93   :  { %v4542_v29 = vadd.f32 %v4541_v8, %v4540_v57  ;;  %v10562_v54 = vpop.eup %7560  ;;  %v4351_v8 = vrot.slane %v4350_v23, 4  ;;  %7578 = vrcp.f32 %v4423_v17  ;;  %v4380_v41 = vadd.f32 %v4379_v34, %v4378_v53 }
 0xc94   :  { %v10576_v57 = vpop.eup %7562  ;;  %7580 = vrcp.f32 %v4424_v18 }
 0xc95   :  { %v4543_v30 = vmul.f32 0.0078125, %v4542_v29  ;;  %v4385_v49 = vsel %vm265_vm1, %v10576_v57, 0.0  ;;  %v4352_v27 = vadd.f32 %v4351_v8, %v4350_v23 }
 0xc96   :  { %v4386_v24 = vrot.slane %v4385_v49, 4 }
 0xc97   :  { %v10551_v5 = vsub.f32 %v10383_v48, %v4543_v30  ;;  %v10554_v46 = vsub.f32 %v10387_v2, %v4543_v30  ;;  %v10557_v63 = vsub.f32 %v10390_v38, %v4543_v30  ;;  %v10560_v26 = vsub.f32 %v10399_v3, %v4543_v30 }
 0xc98   :  { %v10565_v22 = vsub.f32 %v10393_v31, %v4543_v30  ;;  %v10568_v14 = vsub.f32 %v10472_v4, %v4543_v30  ;;  %v10571_v48 = vsub.f32 %v10475_v50, %v4543_v30  ;;  %v10574_v2 = vsub.f32 %v10478_v11, %v4543_v30 }
 0xc99   :  { %12392 = vst [vmem:[#allocation33_spill] sm:$0xff] %v10551_v5  ;;  %12393 = vst [vmem:[#allocation28_spill] sm:$0xff] %v10554_v46  ;;  %v10579_v38 = vsub.f32 %v10430_v19, %v4543_v30  ;;  %v10582_v3 = vsub.f32 %v10433_v7, %v4543_v30  ;;  %v10585_v31 = vsub.f32 %v10436_v6, %v4543_v30  ;;  %v10602_v7 = vpop.eup %7564 }
 0xc9a   :  { %12394 = vst [vmem:[#allocation32_spill] sm:$0xff] %v10557_v63  ;;  %12395 = vst [vmem:[#allocation58_spill] sm:$0xff] %v10560_v26  ;;  %v10588_v4 = vsub.f32 %v10439_v35, %v4543_v30  ;;  %v10591_v50 = vsub.f32 %v10442_v1, %v4543_v30  ;;  %v10594_v11 = vsub.f32 %v10465_v20, %v4543_v30  ;;  %v4357_v1 = vsel %vm265_vm1, %v10562_v54, 0.0  ;;  %v10610_v20 = vpop.eup %7566 }
 0xc9b   :  { %12396 = vst [vmem:[#allocation54_spill] sm:$0xff] %v10565_v22  ;;  %12397 = vst [vmem:[#allocation56_spill] sm:$0xff] %v10568_v14  ;;  %v10597_v36 = vsub.f32 %v10445_v43, %v4543_v30  ;;  %v10600_v19 = vsub.f32 %v10469_v12, %v4543_v30  ;;  %v4560_v6 = vmul.f32 %v10551_v5, %v10551_v5  ;;  %v4374_v43 = vrot.slane %v4373_v45, 2  ;;  %v7569_v60 = vpop.eup %7568 }
 0xc9c   :  { %12398 = vst [vmem:[#allocation43_spill] sm:$0xff] %v10571_v48  ;;  %12399 = vst [vmem:[#allocation44_spill] sm:$0xff] %v10574_v2  ;;  %v4561_v35 = vmul.f32 %v10554_v46, %v10554_v46  ;;  %v4562_v12 = vmul.f32 %v10557_v63, %v10557_v63  ;;  %v10616_v25 = vpop.eup %7570  ;;  %v4358_v29 = vrot.slane %v4357_v1, 4  ;;  %v4368_v30 = vadd.f32 %v4367_v32, %v4366_v40 }
 0xc9d   :  { %12400 = vst [vmem:[#allocation45_spill] sm:$0xff] %v10582_v3  ;;  %12401 = vst [vmem:[#allocation46_spill] sm:$0xff] %v10585_v31  ;;  %v4392_v56 = vsel %vm265_vm1, %v10602_v7, 0.0  ;;  %v10620_v55 = vpop.eup %7572  ;;  %v4563_v13 = vmul.f32 %v10560_v26, %v10560_v26  ;;  %v4576_v9 = vsel %vm265_vm1, %v4560_v6, 0.0  ;;  %v4139_v59 = vadd.f32 1.0, %v7569_v60 }
 0xc9e   :  { %12402 = vst [vmem:[#allocation47_spill] sm:$0xff] %v10588_v4  ;;  %12403 = vst [vmem:[#allocation37_spill] sm:$0xff] %v10600_v19  ;;  %v4577_v17 = vsel %vm265_vm1, %v4561_v35, 0.0  ;;  %v10626_v51 = vpop.eup %7574  ;;  %v4375_v28 = vadd.f32 %v4374_v43, %v4373_v45  ;;  %v4564_v40 = vmul.f32 %v10565_v22, %v10565_v22  ;;  %v4579_v32 = vsel %vm265_vm1, %v4562_v12, 0.0 }
 0xc9f   :  { %v4578_v58 = vadd.f32 %v4577_v17, %v4576_v9  ;;  %v4346_v26 = vrot.slane %v4345_v33, 2  ;;  %v4359_v63 = vadd.f32 %v4358_v29, %v4357_v1  ;;  %v4369_v6 = vrot.slane %v4368_v30, 1  ;;  %v10639_v18 = vpop.eup %7576 }
 0xca0   :  { %v4565_v53 = vmul.f32 %v10568_v14, %v10568_v14  ;;  %v4581_v35 = vsel %vm265_vm1, %v4563_v13, 0.0  ;;  %v4381_v9 = vrot.slane %v4380_v41, 2  ;;  %v4393_v34 = vrot.slane %v4392_v56, 4 }
 0xca1   :  { %v4580_v62 = vadd.f32 %v4579_v32, %v4578_v58  ;;  %7582 = vrcp.f32 %v4139_v59  ;;  %v4376_v43 = vrot.slane %v4375_v28, 1  ;;  %v4387_v60 = vadd.f32 %v4386_v24, %v4385_v49  ;;  %v10641_v32 = vpop.eup %7578 }
 0xca2   :  { %v4566_v12 = vmul.f32 %v10571_v48, %v10571_v48  ;;  %v4583_v23 = vsel %vm265_vm1, %v4564_v40, 0.0  ;;  %v4353_v58 = vrot.slane %v4352_v27, 2  ;;  %v4399_v1 = vsel %vm265_vm1, %v10620_v55, 0.0 }
 0xca3   :  { %v4582_v45 = vadd.f32 %v4581_v35, %v4580_v62  ;;  %v4347_v29 = vadd.f32 %v4346_v26, %v4345_v33  ;;  %v4360_v13 = vrot.slane %v4359_v63, 2  ;;  %v4400_v17 = vrot.slane %v4399_v1, 4 }
 0xca4   :  { %v4567_v62 = vmul.f32 %v10574_v2, %v10574_v2  ;;  %v4585_v59 = vsel %vm265_vm1, %v4565_v53, 0.0  ;;  %v4394_v49 = vadd.f32 %v4393_v34, %v4392_v56  ;;  %v4406_v24 = vsel %vm265_vm1, %v10626_v51, 0.0  ;;  %v10651_v53 = vpop.eup %7580 }
 0xca5   :  { %v4584_v8 = vadd.f32 %v4583_v23, %v4582_v45  ;;  %v4382_v35 = vadd.f32 %v4381_v9, %v4380_v41  ;;  %v4401_v48 = vadd.f32 %v4400_v17, %v4399_v1  ;;  %v4407_v14 = vrot.slane %v4406_v24, 4 }
 0xca6   :  { %v4568_v26 = vmul.f32 %v10579_v38, %v10579_v38  ;;  %v4587_v33 = vsel %vm265_vm1, %v4566_v12, 0.0  ;;  %v4354_v45 = vadd.f32 %v4353_v58, %v4352_v27  ;;  %v4370_v23 = vadd.f32 %v4369_v6, %v4368_v30 }
 0xca7   :  { %v4586_v40 = vadd.f32 %v4585_v59, %v4584_v8  ;;  %v4361_v46 = vadd.f32 %v4360_v13, %v4359_v63  ;;  %v4388_v2 = vrot.slane %v4387_v60, 2  ;;  %v4408_v5 = vadd.f32 %v4407_v14, %v4406_v24 }
 0xca8   :  { %v4569_v56 = vmul.f32 %v10582_v3, %v10582_v3  ;;  %v4589_v41 = vsel %vm265_vm1, %v4567_v62, 0.0  ;;  %v4348_v9 = vrot.slane %v4347_v29, 1  ;;  %v4395_v34 = vrot.slane %v4394_v49, 2 }
 0xca9   :  { %v4588_v22 = vadd.f32 %v4587_v33, %v4586_v40  ;;  %v4377_v8 = vadd.f32 %v4376_v43, %v4375_v28  ;;  %v4383_v17 = vrot.slane %v4382_v35, 1  ;;  %v4402_v59 = vrot.slane %v4401_v48, 2 }
 0xcaa   :  { %v4570_v27 = vmul.f32 %v10585_v31, %v10585_v31  ;;  %v4591_v63 = vsel %vm265_vm1, %v4568_v26, 0.0  ;;  %v4355_v30 = vrot.slane %v4354_v45, 1  ;;  %v4409_v14 = vrot.slane %v4408_v5, 2 }
 0xcab   :  { %v4590_v1 = vadd.f32 %v4589_v41, %v4588_v22  ;;  %v10659_v6 = vpop.eup %7582  ;;  %v4571_v12 = vmul.f32 %v10588_v4, %v10588_v4  ;;  %v4362_v13 = vrot.slane %v4361_v46, 1  ;;  %v4389_v62 = vadd.f32 %v4388_v2, %v4387_v60 }
 0xcac   :  { %v4593_v22 = vsel %vm265_vm1, %v4569_v56, 0.0  ;;  %v4349_v28 = vadd.f32 %v4348_v9, %v4347_v29  ;;  %v4396_v43 = vadd.f32 %v4395_v34, %v4394_v49  ;;  %v4413_v24 = vsel %vm265_vm1, %v10659_v6, 0.0 }
 0xcad   :  { %v4592_v58 = vadd.f32 %v4591_v63, %v4590_v1  ;;  %v4384_v33 = vadd.f32 %v4383_v17, %v4382_v35  ;;  %v4403_v26 = vadd.f32 %v4402_v59, %v4401_v48  ;;  %v4414_v41 = vrot.slane %v4413_v24, 4 }
 0xcae   :  { %v4572_v31 = vmul.f32 %v10591_v50, %v10591_v50  ;;  %v4595_v3 = vsel %vm265_vm1, %v4570_v27, 0.0  ;;  %v4356_v4 = vadd.f32 %v4355_v30, %v4354_v45  ;;  %v4410_v1 = vadd.f32 %v4409_v14, %v4408_v5 }
 0xcaf   :  { %v4594_v40 = vadd.f32 %v4593_v22, %v4592_v58  ;;  %v4363_v2 = vadd.f32 %v4362_v13, %v4361_v46  ;;  %v4390_v60 = vrot.slane %v4389_v62, 1  ;;  %v4415_v56 = vadd.f32 %v4414_v41, %v4413_v24 }
 0xcb0   :  { %v4573_v29 = vmul.f32 %v10594_v11, %v10594_v11  ;;  %v4597_v49 = vsel %vm265_vm1, %v4571_v12, 0.0  ;;  %v4425_v9 = vadd.f32 1e-20, %v4349_v28  ;;  %v4397_v35 = vrot.slane %v4396_v43, 1 }
 0xcb1   :  { %v4596_v63 = vadd.f32 %v4595_v3, %v4594_v40  ;;  %v4574_v48 = vmul.f32 %v10597_v36, %v10597_v36  ;;  %v4404_v17 = vrot.slane %v4403_v26, 1  ;;  %v4416_v59 = vrot.slane %v4415_v56, 2 }
 0xcb2   :  { %v4575_v5 = vmul.f32 %v10600_v19, %v10600_v19  ;;  %v4599_v46 = vsel %vm265_vm1, %v4572_v31, 0.0  ;;  %v4426_v3 = vadd.f32 1e-20, %v4356_v4  ;;  %v4411_v45 = vrot.slane %v4410_v1, 1 }
 0xcb3   :  { %v4598_v34 = vadd.f32 %v4597_v49, %v4596_v63  ;;  %v4427_v30 = vadd.f32 1e-20, %v4363_v2  ;;  %v4391_v14 = vadd.f32 %v4390_v60, %v4389_v62  ;;  %v4417_v58 = vadd.f32 %v4416_v59, %v4415_v56 }
 0xcb4   :  { %v4601_v12 = vsel %vm265_vm1, %v4573_v29, 0.0  ;;  %7584 = vrcp.f32 %v4425_v9  ;;  %v4398_v13 = vadd.f32 %v4397_v35, %v4396_v43  ;;  %v4428_v22 = vadd.f32 1e-20, %v4370_v23 }
 0xcb5   :  { %v4600_v27 = vadd.f32 %v4599_v46, %v4598_v34  ;;  %v4405_v24 = vadd.f32 %v4404_v17, %v4403_v26  ;;  %v4418_v40 = vrot.slane %v4417_v58, 1  ;;  %v4429_v41 = vadd.f32 1e-20, %v4377_v8 }
 0xcb6   :  { %v4603_v63 = vsel %vm265_vm1, %v4574_v48, 0.0  ;;  %7586 = vrcp.f32 %v4426_v3  ;;  %v4412_v49 = vadd.f32 %v4411_v45, %v4410_v1  ;;  %v4430_v31 = vadd.f32 1e-20, %v4384_v33  ;;  %v12404_v45 = vld [vmem:[#allocation20_spill] sm:$0xff] }
 0xcb7   :  { %v4602_v28 = vadd.f32 %v4601_v12, %v4600_v27  ;;  %7588 = vrcp.f32 %v4427_v30  ;;  %v4431_v34 = vadd.f32 1e-20, %v4391_v14  ;;  %v4605_v62 = vsel %vm265_vm1, %v4575_v5, 0.0 }
 0xcb8   :  { %v4419_v2 = vadd.f32 %v4418_v40, %v4417_v58  ;;  %v4432_v60 = vadd.f32 1e-20, %v4398_v13  ;;  %7590 = vrcp.f32 %v4428_v22  ;;  %v4433_v43 = vadd.f32 1e-20, %v4405_v24 }
 0xcb9   :  { %v4604_v4 = vadd.f32 %v4603_v63, %v4602_v28  ;;  %7592 = vrcp.f32 %v4429_v41  ;;  %v4434_v23 = vadd.f32 1e-20, %v4412_v49  ;;  %v10693_v27 = vrot.slane %v10281_v0, %v12404_v45 }
 0xcba   :  { %7594 = vrcp.f32 %v4430_v31  ;;  %v4435_v8 = vadd.f32 1e-20, %v4419_v2 }
 0xcbb   :  { %v4606_v56 = vadd.f32 %v4605_v62, %v4604_v4  ;;  %7596 = vrcp.f32 %v4431_v34 }
 0xcbc   :  { %7598 = vrcp.f32 %v4432_v60 }
 0xcbd   :  { %v4607_v26 = vrot.slane %v4606_v56, 4  ;;  %7600 = vrcp.f32 %v4433_v43 }
 0xcbe   :  { %v10680_v33 = vpop.eup %7584  ;;  %7602 = vrcp.f32 %v4434_v23 }
 0xcbf   :  { %v4608_v29 = vadd.f32 %v4607_v26, %v4606_v56  ;;  %7604 = vrcp.f32 %v4435_v8 }
 0xcc0   :  { %v10686_v59 = vpop.eup %7586 }
 0xcc1   :  { %v4609_v3 = vrot.slane %v4608_v29, 2  ;;  %v10695_v30 = vpop.eup %7588 }
 0xcc2   :  { %v10701_v14 = vpop.eup %7590 }
 0xcc3   :  { %v4175_v1 = vpop.permute.xlu0 %4174  ;;  %v10704_v0 = vpop.eup %7592 }
 0xcc4   :  { %v4180_v9 = vmul.f32 %v10487_v44, %v4175_v1  ;;  %v4181_v35 = vmul.f32 %v10490_v37, %v4175_v1  ;;  %v4182_v48 = vmul.f32 %v10496_v16, %v4175_v1  ;;  %v4183_v17 = vmul.f32 %v10501_v52, %v4175_v1  ;;  %v10714_v41 = vpop.eup %7594 }
 0xcc5   :  { %v4184_v5 = vmul.f32 %v10505_v61, %v4175_v1  ;;  %v10689_v46 = vpop.permute.xlu1 %4176  ;;  %v4185_v13 = vmul.f32 %v10538_v42, %v4175_v1  ;;  %v10716_v4 = vpop.eup %7596 }
 0xcc6   :  { %v4196_v44 = vsel %vm265_vm1, %v4180_v9, 0.0  ;;  %v4203_v37 = vsel %vm265_vm1, %v4181_v35, 0.0  ;;  %v4210_v16 = vsel %vm265_vm1, %v4182_v48, 0.0  ;;  %v4217_v52 = vsel %vm265_vm1, %v4183_v17, 0.0 }
 0xcc7   :  { %v4197_v61 = vrot.slane %v4196_v44, 4  ;;  %v4204_v58 = vrot.slane %v4203_v37, 4  ;;  %v4211_v12 = vrot.slane %v4210_v16, 4  ;;  %v4188_v22 = vmul.f32 %v10529_v10, %v10689_v46 }
 0xcc8   :  { %v4189_v28 = vmul.f32 %v10531_v15, %v10689_v46  ;;  %v4190_v24 = vmul.f32 %v10540_v47, %v10689_v46  ;;  %v4191_v40 = vmul.f32 %v10576_v57, %v10689_v46  ;;  %v4218_v42 = vrot.slane %v4217_v52, 4  ;;  %v10724_v47 = vpop.eup %7598 }
 0xcc9   :  { %v4198_v63 = vadd.f32 %v4197_v61, %v4196_v44  ;;  %v4205_v49 = vadd.f32 %v4204_v58, %v4203_v37  ;;  %v4212_v31 = vadd.f32 %v4211_v12, %v4210_v16  ;;  %v4252_v34 = vsel %vm265_vm1, %v4188_v22, 0.0  ;;  %v10726_v43 = vpop.eup %7600 }
 0xcca   :  { %v4259_v10 = vsel %vm265_vm1, %v4189_v28, 0.0  ;;  %v4266_v15 = vsel %vm265_vm1, %v4190_v24, 0.0  ;;  %v10722_v62 = vsel %vm265_vm1, %v4191_v40, 0.0  ;;  %v4253_v60 = vrot.slane %v4252_v34, 4  ;;  %v10734_v35 = vpop.eup %7602 }
 0xccb   :  { %v4199_v57 = vrot.slane %v4198_v63, 2  ;;  %v4206_v2 = vrot.slane %v4205_v49, 2  ;;  %v4260_v56 = vrot.slane %v4259_v10, 4  ;;  %v10730_v23 = vmul.f32 %v10602_v7, %v10689_v46  ;;  %v10743_v12 = vpop.eup %7604 }
 0xccc   :  { %v4267_v26 = vrot.slane %v4266_v15, 4  ;;  %v4186_v9 = vmul.f32 %v10542_v39, %v4175_v1  ;;  %v10736_v48 = vadd.f32 %v4253_v60, %v4252_v34  ;;  %v4610_v44 = vadd.f32 %v4609_v3, %v4608_v29 }
 0xccd   :  { %v10738_v17 = vadd.f32 %v4260_v56, %v4259_v10  ;;  %v4187_v37 = vmul.f32 %v10562_v54, %v4175_v1  ;;  %v4200_v61 = vadd.f32 %v4199_v57, %v4198_v63  ;;  %v4207_v58 = vadd.f32 %v4206_v2, %v4205_v49 }
 0xcce   :  { %v10741_v16 = vadd.f32 %v4267_v26, %v4266_v15  ;;  %v4213_v7 = vrot.slane %v4212_v31, 2  ;;  %v4255_v22 = vrot.slane %v10736_v48, 2  ;;  %v4611_v28 = vrot.slane %v4610_v44, 1 }
 0xccf   :  { %v4262_v39 = vrot.slane %v10738_v17, 2  ;;  %v4219_v24 = vadd.f32 %v4218_v42, %v4217_v52  ;;  %v4201_v40 = vrot.slane %v4200_v61, 1  ;;  %v4208_v34 = vrot.slane %v4207_v58, 1 }
 0xcd0   :  { %v4214_v10 = vadd.f32 %v4213_v7, %v4212_v31  ;;  %v4224_v29 = vsel %vm265_vm1, %v4184_v5, 0.0  ;;  %v4612_v3 = vadd.f32 %v4611_v28, %v4610_v44  ;;  %v4231_v63 = vsel %vm265_vm1, %v4185_v13, 0.0 }
 0xcd1   :  { %v4220_v54 = vrot.slane %v4219_v24, 2  ;;  %v4225_v1 = vrot.slane %v4224_v29, 4  ;;  %v4202_v49 = vadd.f32 %v4201_v40, %v4200_v61  ;;  %v4209_v15 = vadd.f32 %v4208_v34, %v4207_v58 }
 0xcd2   :  { %v4215_v57 = vrot.slane %v4214_v10, 1  ;;  %v4232_v2 = vrot.slane %v4231_v63, 4  ;;  %v4613_v60 = vmul.f32 0.0078125, %v4612_v3  ;;  %v4238_v8 = vsel %vm265_vm1, %v4186_v9, 0.0 }
 0xcd3   :  { %v4221_v56 = vadd.f32 %v4220_v54, %v4219_v24  ;;  %v4226_v26 = vadd.f32 %v4225_v1, %v4224_v29  ;;  %v4239_v45 = vrot.slane %v4238_v8, 4  ;;  %v4245_v31 = vsel %vm265_vm1, %v4187_v37, 0.0 }
 0xcd4   :  { %v4216_v52 = vadd.f32 %v4215_v57, %v4214_v10  ;;  %v4233_v42 = vadd.f32 %v4232_v2, %v4231_v63  ;;  %v4614_v5 = vadd.f32 1e-05, %v4613_v60  ;;  %v4246_v28 = vrot.slane %v4245_v31, 4 }
 0xcd5   :  { %v4222_v44 = vrot.slane %v4221_v56, 1  ;;  %v4227_v7 = vrot.slane %v4226_v26, 2  ;;  %v4240_v13 = vadd.f32 %v4239_v45, %v4238_v8  ;;  %v4437_v61 = vmul.f32 %v10610_v20, %v4202_v49 }
 0xcd6   :  { %v4234_v19 = vrot.slane %v4233_v42, 2  ;;  %v4439_v58 = vmul.f32 %v10616_v25, %v4209_v15  ;;  %7606 = vrsqrt.f32 %v4614_v5  ;;  %v4247_v34 = vadd.f32 %v4246_v28, %v4245_v31 }
 0xcd7   :  { %v4223_v24 = vadd.f32 %v4222_v44, %v4221_v56  ;;  %v4228_v40 = vadd.f32 %v4227_v7, %v4226_v26  ;;  %v4241_v10 = vrot.slane %v4240_v13, 2  ;;  %v4441_v29 = vmul.f32 %v10639_v18, %v4216_v52 }
 0xcd8   :  { %v4235_v9 = vadd.f32 %v4234_v19, %v4233_v42  ;;  %v4484_v37 = vsel %vm1090_vm2, %v4439_v58, %v4437_v61  ;;  %v4248_v54 = vrot.slane %v4247_v34, 2  ;;  %v4193_v45 = vmul.f32 %v10620_v55, %v10689_v46  ;;  %v10779_v58 = vld [vmem:[#allocation10 + $0x18] sm:$0xff] }
 0xcd9   :  { %v4229_v3 = vrot.slane %v4228_v40, 1  ;;  %v4443_v1 = vmul.f32 %v10641_v32, %v4223_v24  ;;  %v4242_v8 = vadd.f32 %v4241_v10, %v4240_v13  ;;  %v4485_v25 = vsel %vm1092_vm3, %v4441_v29, %v4484_v37 }
 0xcda   :  { %v4236_v20 = vrot.slane %v4235_v9, 1  ;;  %v4194_v63 = vmul.f32 %v10626_v51, %v10689_v46  ;;  %v4249_v49 = vadd.f32 %v4248_v54, %v4247_v34  ;;  %v4195_v15 = vmul.f32 %v10659_v6, %v10689_v46 }
 0xcdb   :  { %v4230_v19 = vadd.f32 %v4229_v3, %v4228_v40  ;;  %v4486_v18 = vsel %vm1094_vm4, %v4443_v1, %v4485_v25  ;;  %v4243_v2 = vrot.slane %v4242_v8, 1  ;;  %v4256_v32 = vadd.f32 %v4255_v22, %v10736_v48 }
 0xcdc   :  { %v4237_v57 = vadd.f32 %v4236_v20, %v4235_v9  ;;  %v4263_v55 = vadd.f32 %v4262_v39, %v10738_v17  ;;  %v4250_v60 = vrot.slane %v4249_v49, 1  ;;  %v4269_v26 = vrot.slane %v10741_v16, 2 }
 0xcdd   :  { %v4445_v56 = vmul.f32 %v10651_v53, %v4230_v19  ;;  %v12405_v51 = vrot.slane %v10722_v62, 4  ;;  %v4244_v42 = vadd.f32 %v4243_v2, %v4242_v8  ;;  %v4257_v5 = vrot.slane %v4256_v32, 1  ;;  %v12407_v19 = vld [vmem:[#allocation28_spill] sm:$0xff]  ;;  %v12409_v2 = vld [vmem:[#allocation58_spill] sm:$0xff] }
 0xcde   :  { %v4447_v31 = vmul.f32 %v10680_v33, %v4237_v57  ;;  %v4264_v6 = vrot.slane %v4263_v55, 1  ;;  %v4251_v46 = vadd.f32 %v4250_v60, %v4249_v49  ;;  %v4270_v48 = vadd.f32 %v4269_v26, %v10741_v16 }
 0xcdf   :  { %v4275_v52 = vadd.f32 %v12405_v51, %v10722_v62  ;;  %v4487_v44 = vsel %vm1096_vm5, %v4445_v56, %v4486_v18  ;;  %v4449_v22 = vmul.f32 %v10686_v59, %v4244_v42  ;;  %v4258_v39 = vadd.f32 %v4257_v5, %v4256_v32  ;;  %v12408_v18 = vld [vmem:[#allocation32_spill] sm:$0xff] }
 0xce0   :  { %v4488_v53 = vsel %vm1098_vm6, %v4447_v31, %v4487_v44  ;;  %v4265_v7 = vadd.f32 %v4264_v6, %v4263_v55  ;;  %v7607_v28 = vpop.eup %7606  ;;  %v4451_v62 = vmul.f32 %v10695_v30, %v4251_v46  ;;  %v4271_v13 = vrot.slane %v4270_v48, 1  ;;  %v12410_v55 = vld [vmem:[#allocation54_spill] sm:$0xff] }
 0xce1   :  { %v4276_v17 = vrot.slane %v4275_v52, 2  ;;  %v4280_v33 = vsel %vm265_vm1, %v10730_v23, 0.0  ;;  %v4616_v24 = vmul.f32 %v10779_v58, %v7607_v28  ;;  %v4489_v16 = vsel %vm1100_vm7, %v4449_v22, %v4488_v53 }
 0xce2   :  { %v4281_v40 = vrot.slane %v4280_v33, 4  ;;  %v4287_v59 = vsel %vm265_vm1, %v4193_v45, 0.0  ;;  %v4490_v34 = vsel %vm1102_vm8, %v4451_v62, %v4489_v16  ;;  %v4272_v9 = vadd.f32 %v4271_v13, %v4270_v48  ;;  %v12406_v45 = vld [vmem:[#allocation33_spill] sm:$0xff]  ;;  %v12414_v16 = vld [vmem:[#allocation52_spill] sm:$0xff] }
 0xce3   :  { %v4277_v61 = vadd.f32 %v4276_v17, %v4275_v52  ;;  %v4288_v29 = vrot.slane %v4287_v59, 4  ;;  %v10786_v30 = vrot.slane %v4616_v24, %v12256_v21  ;;  %4498 = vrot.lane.b32.xlu1 %v4490_v34, %s7967_s2  ;;  %v4294_v37 = vsel %vm265_vm1, %v4194_v63, 0.0 }
 0xce4   :  { %v4282_v23 = vadd.f32 %v4281_v40, %v4280_v33  ;;  %v4301_v3 = vsel %vm265_vm1, %v4195_v15, 0.0  ;;  %v4295_v20 = vrot.slane %v4294_v37, 4  ;;  %v12411_v15 = vld [vmem:[#allocation56_spill] sm:$0xff]  ;;  %v12412_v33 = vld [vmem:[#allocation55_spill] sm:$0xff] }
 0xce5   :  { %v4278_v10 = vrot.slane %v4277_v61, 1  ;;  %v4289_v1 = vadd.f32 %v4288_v29, %v4287_v59  ;;  %v4302_v8 = vrot.slane %v4301_v3, 4  ;;  %v4621_v25 = vmul.f32 %v10786_v30, %v12406_v45  ;;  %v12416_v59 = vld [vmem:[#allocation53_spill] sm:$0xff]  ;;  %v12422_v45 = vld [vmem:[#allocation39_spill] sm:$0xff] }
 0xce6   :  { %v4622_v49 = vmul.f32 %v10786_v30, %v12407_v19  ;;  %v4623_v57 = vmul.f32 %v10786_v30, %v12408_v18  ;;  %v4624_v32 = vmul.f32 %v10786_v30, %v12409_v2  ;;  %v4625_v63 = vmul.f32 %v10786_v30, %v12410_v55 }
 0xce7   :  { %v4279_v54 = vadd.f32 %v4278_v10, %v4277_v61  ;;  %v4626_v60 = vmul.f32 %v10786_v30, %v12411_v15  ;;  %v4283_v56 = vrot.slane %v4282_v23, 2  ;;  %v4290_v26 = vrot.slane %v4289_v1, 2  ;;  %v12418_v10 = vld [vmem:[#allocation48_spill] sm:$0xff] }
 0xce8   :  { %v4641_v51 = vadd.f32 %v10693_v27, %v4621_v25  ;;  %v4642_v52 = vadd.f32 %v10693_v27, %v4622_v49  ;;  %v4643_v42 = vadd.f32 %v10693_v27, %v4623_v57  ;;  %v4644_v31 = vadd.f32 %v10693_v27, %v4624_v32 }
 0xce9   :  { %v4645_v5 = vadd.f32 %v10693_v27, %v4625_v63  ;;  %v4646_v6 = vadd.f32 %v10693_v27, %v4626_v60  ;;  %v4284_v46 = vadd.f32 %v4283_v56, %v4282_v23  ;;  %v4291_v44 = vadd.f32 %v4290_v26, %v4289_v1  ;;  %v12420_v23 = vld [vmem:[#allocation49_spill] sm:$0xff] }
 0xcea   :  { %v4720_v48 = vmax.f32 %v4641_v51, 0.0  ;;  %v4721_v17 = vmax.f32 %v4642_v52, 0.0  ;;  %v4722_v22 = vmax.f32 %v4643_v42, 0.0  ;;  %v4723_v53 = vmax.f32 %v4644_v31, 0.0 }
 0xceb   :  { %v4724_v28 = vmax.f32 %v4645_v5, 0.0  ;;  %v4725_v62 = vmax.f32 %v4646_v6, 0.0  ;;  %v4285_v13 = vrot.slane %v4284_v46, 1  ;;  %v4292_v61 = vrot.slane %v4291_v44, 1 }
 0xcec   :  { %v10810_v24 = vadd.f32 %v4720_v48, %v12412_v33  ;;  %v10813_v40 = vadd.f32 %v4721_v17, %v12414_v16  ;;  %v10816_v34 = vadd.f32 %v4722_v22, %v12416_v59  ;;  %v10819_v29 = vadd.f32 %v4723_v53, %v12418_v10  ;;  %v12430_v16 = vld [vmem:[#allocation27_spill] sm:$0xff] }
 0xced   :  { %v10822_v1 = vadd.f32 %v4724_v28, %v12420_v23  ;;  %v10825_v25 = vadd.f32 %v4725_v62, %v12422_v45  ;;  %v4286_v19 = vadd.f32 %v4285_v13, %v4284_v46  ;;  %v4293_v49 = vadd.f32 %v4292_v61, %v4291_v44  ;;  %v12427_v62 = vld [vmem:[#allocation46_spill] sm:$0xff]  ;;  %v12428_v61 = vld [vmem:[#allocation25_spill] sm:$0xff]  ;;  %v12432_v23 = vld [vmem:[#allocation47_spill] sm:$0xff] }
 0xcee   :  { %12413 = vst [vmem:[#allocation36_spill] sm:$0xff] %v10810_v24  ;;  %12415 = vst [vmem:[#allocation35_spill] sm:$0xff] %v10813_v40  ;;  %v4764_v18 = vpack.c.bf16 %v10813_v40, %v10810_v24  ;;  %v4765_v57 = vpack.c.bf16 %v10819_v29, %v10816_v34  ;;  %v4296_v2 = vadd.f32 %v4295_v20, %v4294_v37  ;;  %v12424_v20 = vld [vmem:[#allocation43_spill] sm:$0xff] }
 0xcef   :  { %12417 = vst [vmem:[#allocation34_spill] sm:$0xff] %v10816_v34  ;;  %12419 = vst [vmem:[#allocation33_spill] sm:$0xff] %v10819_v29  ;;  %v4303_v32 = vadd.f32 %v4302_v8, %v4301_v3  ;;  %v4766_v55 = vpack.c.bf16 %v10825_v25, %v10822_v1  ;;  %v4453_v63 = vmul.f32 %v10701_v14, %v4258_v39  ;;  %v12426_v8 = vld [vmem:[#allocation45_spill] sm:$0xff] }
 0xcf0   :  { %12421 = vst [vmem:[#allocation28_spill] sm:$0xff] %v10822_v1  ;;  %12423 = vst [vmem:[#allocation32_spill] sm:$0xff] %v10825_v25  ;;  %v4455_v15 = vmul.f32 %v10704_v0, %v4265_v7  ;;  %v4457_v60 = vmul.f32 %v10714_v41, %v4272_v9  ;;  %7119 = vmatprep.mubr.msk.bf16.mxu0 %vm265_vm1, %v4764_v18  ;;  %v4297_v56 = vrot.slane %v4296_v2, 2  ;;  %v12425_v0 = vld [vmem:[#allocation44_spill] sm:$0xff] }
 0xcf1   :  { %v4304_v26 = vrot.slane %v4303_v32, 2  ;;  %v4459_v51 = vmul.f32 %v10716_v4, %v4279_v54  ;;  %v4461_v52 = vmul.f32 %v10724_v47, %v4286_v19  ;;  %7120 = vmatmul.mubr.msk.bf16.vlgmr.msra.gmra.mrb[40].mxu0 %vm265_vm1, %v4765_v57  ;;  %v4463_v37 = vmul.f32 %v10726_v43, %v4293_v49  ;;  %v12433_v18 = vld [vmem:[#allocation24_spill] sm:$0xff] }
 0xcf2   :  { %v4491_v3 = vsel %vm1090_vm2, %v4455_v15, %v4453_v63  ;;  %v4627_v14 = vmul.f32 %v10786_v30, %v12424_v20  ;;  %v4628_v41 = vmul.f32 %v10786_v30, %v12425_v0  ;;  %7123 = vmatprep.mubr.msk.bf16.mxu0 %vm265_vm1, %v4766_v55  ;;  %v4298_v39 = vadd.f32 %v4297_v56, %v4296_v2  ;;  %v12435_v55 = vld [vmem:[#allocation38_spill] sm:$0xff]  ;;  %v12437_v20 = vld [vmem:[#allocation37_spill] sm:$0xff] }
 0xcf3   :  { %v4305_v7 = vadd.f32 %v4304_v26, %v4303_v32  ;;  %v4492_v4 = vsel %vm1092_vm3, %v4457_v60, %v4491_v3  ;;  %v4629_v47 = vmul.f32 %v10786_v30, %v10579_v38  ;;  %v4630_v42 = vmul.f32 %v10786_v30, %v12426_v8  ;;  %v12440_v0 = vld [vmem:[#allocation41_spill] sm:$0xff] }
 0xcf4   :  { %v4493_v9 = vsel %vm1094_vm4, %v4459_v51, %v4492_v4  ;;  %v4647_v43 = vadd.f32 %v10693_v27, %v4627_v14  ;;  %v4648_v54 = vadd.f32 %v10693_v27, %v4628_v41  ;;  %v4299_v31 = vrot.slane %v4298_v39, 1 }
 0xcf5   :  { %v4306_v5 = vrot.slane %v4305_v7, 1  ;;  %v4494_v6 = vsel %vm1096_vm5, %v4461_v52, %v4493_v9  ;;  %v4649_v46 = vadd.f32 %v10693_v27, %v4629_v47  ;;  %v4650_v38 = vadd.f32 %v10693_v27, %v4630_v42  ;;  %v12442_v9 = vld [vmem:[#allocation21_spill] sm:$0xff] }
 0xcf6   :  { %v4495_v44 = vsel %vm1098_vm6, %v4463_v37, %v4494_v6  ;;  %v4726_v48 = vmax.f32 %v4647_v43, 0.0  ;;  %v4727_v17 = vmax.f32 %v4648_v54, 0.0  ;;  %v4300_v22 = vadd.f32 %v4299_v31, %v4298_v39  ;;  %v12444_v54 = vld [vmem:[#allocation31_spill] sm:$0xff]  ;;  %v12446_v6 = vld [vmem:[#allocation30_spill] sm:$0xff] }
 0xcf7   :  { %v4307_v53 = vadd.f32 %v4306_v5, %v4305_v7  ;;  %v4728_v28 = vmax.f32 %v4649_v46, 0.0  ;;  %v4631_v13 = vmul.f32 %v10786_v30, %v12427_v62  ;;  %v4729_v10 = vmax.f32 %v4650_v38, 0.0  ;;  %v12448_v46 = vld [vmem:[#allocation50_spill] sm:$0xff]  ;;  %v3850_v38 = vpop.permute.xlu0 %3849  ;;  %v12452_v62 = vld [vmem:[#allocation57_spill] sm:$0xff] }
 0xcf8   :  { %v10862_v33 = vadd.f32 %v4726_v48, %v12428_v61  ;;  %v10865_v59 = vadd.f32 %v4727_v17, %v12430_v16  ;;  %v4632_v45 = vmul.f32 %v10786_v30, %v12432_v23  ;;  %v4465_v19 = vmul.f32 %v10734_v35, %v4300_v22 }
 0xcf9   :  { %v4467_v49 = vmul.f32 %v10743_v12, %v4307_v53  ;;  %v10872_v57 = vadd.f32 %v4728_v28, %v12433_v18  ;;  %v4651_v2 = vadd.f32 %v10693_v27, %v4631_v13  ;;  %v10878_v63 = vadd.f32 %v4729_v10, %v12435_v55  ;;  %v12451_v53 = vld [vmem:[#allocation51_spill] sm:$0xff] }
 0xcfa   :  { %12429 = vst [vmem:[#allocation58_spill] sm:$0xff] %v10862_v33  ;;  %12431 = vst [vmem:[#allocation54_spill] sm:$0xff] %v10865_v59  ;;  %v4767_v32 = vpack.c.bf16 %v10865_v59, %v10862_v33  ;;  %v4652_v15 = vadd.f32 %v10693_v27, %v4632_v45  ;;  %v4633_v60 = vmul.f32 %v10786_v30, %v10591_v50  ;;  %v12450_v17 = vmov 0.0  }
 0xcfb   :  { %12434 = vst [vmem:[#allocation56_spill] sm:$0xff] %v10872_v57  ;;  %12436 = vst [vmem:[#allocation55_spill] sm:$0xff] %v10878_v63  ;;  %v4496_v35 = vsel %vm1100_vm7, %v4465_v19, %v4495_v44  ;;  %v4730_v56 = vmax.f32 %v4651_v2, 0.0  ;;  %v4634_v12 = vmul.f32 %v10786_v30, %v10594_v11  ;;  %v4635_v26 = vmul.f32 %v10786_v30, %v10597_v36  ;;  %v12438_v36 = vld [vmem:[#allocation40_spill] sm:$0xff] }
 0xcfc   :  { %v4497_v51 = vsel %vm1102_vm8, %v4467_v49, %v4496_v35  ;;  %7124 = vmatmul.mubr.msk.bf16.gmra.mrb[44].mxu0 %vm265_vm1, %v4767_v32  ;;  %v4768_v52 = vpack.c.bf16 %v10878_v63, %v10872_v57  ;;  %v4731_v37 = vmax.f32 %v4652_v15, 0.0  ;;  %v4653_v3 = vadd.f32 %v10693_v27, %v4633_v60 }
 0xcfd   :  { %4500 = vrot.lane.b32.xlu0 %v4497_v51, %s7967_s2  ;;  %v4654_v50 = vadd.f32 %v10693_v27, %v4634_v12  ;;  %v4636_v11 = vmul.f32 %v10786_v30, %v12437_v20  ;;  %v10899_v14 = vadd.f32 %v4730_v56, %v12438_v36  ;;  %v4655_v7 = vadd.f32 %v10693_v27, %v4635_v26 }
 0xcfe   :  { %7127 = vmatprep.mubr.msk.bf16.mxu0 %vm265_vm1, %v4768_v52  ;;  %v10902_v41 = vadd.f32 %v4731_v37, %v12440_v0  ;;  %v4732_v39 = vmax.f32 %v4653_v3, 0.0  ;;  %v3852_v28 = vadd.f32 %v3850_v38, %v12451_v53  ;;  %v3853_v13 = vadd.f32 %v3850_v38, %v12452_v62 }
 0xcff   :  { %12439 = vst [vmem:[#allocation52_spill] sm:$0xff] %v10899_v14  ;;  %v4733_v4 = vmax.f32 %v4654_v50, 0.0  ;;  %v4656_v47 = vadd.f32 %v10693_v27, %v4636_v11  ;;  %v4734_v42 = vmax.f32 %v4655_v7, 0.0 }
 0xd00   :  { %12441 = vst [vmem:[#allocation53_spill] sm:$0xff] %v10902_v41  ;;  %v10907_v43 = vadd.f32 %v4732_v39, %v12442_v9  ;;  %v4769_v30 = vpack.c.bf16 %v10902_v41, %v10899_v14 }
 0xd01   :  { %v10910_v8 = vadd.f32 %v4733_v4, %v12444_v54  ;;  %v4735_v31 = vmax.f32 %v4656_v47, 0.0  ;;  %v10919_v27 = vadd.f32 %v4734_v42, %v12446_v6  ;;  %v12453_v47 = vld [vmem:[#allocation22_spill] sm:$0xff] }
 0xd02   :  { %12443 = vst [vmem:[#allocation48_spill] sm:$0xff] %v10907_v43  ;;  %v4701_v9 = vrot.slane %v10779_v58, %v12453_v47 }
 0xd03   :  { %12445 = vst [vmem:[#allocation49_spill] sm:$0xff] %v10910_v8  ;;  %v4770_v5 = vpack.c.bf16 %v10910_v8, %v10907_v43  ;;  %12447 = vst [vmem:[#allocation39_spill] sm:$0xff] %v10919_v27  ;;  %v10922_v44 = vadd.f32 %v4735_v31, %v12448_v46 }
 0xd04   :  { %7128 = vmatmul.mubr.msk.bf16.gmra.mrb[48].mxu0 %vm265_vm1, %v4769_v30 }
 0xd05   :  { %7131 = vmatprep.mubr.msk.bf16.mxu0 %vm265_vm1, %v4770_v5  ;;  %12449 = vst [vmem:[#allocation43_spill] sm:$0xff] %v10922_v44  ;;  %v4771_v48 = vpack.c.bf16 %v10922_v44, %v10919_v27 }
 0xd0c   :  { %7132 = vmatmul.mubr.msk.bf16.gmra.mrb[52].mxu0 %vm265_vm1, %v4771_v48 }
 0xd0d   :  { %7167 = vmatprep.mubr.msk.bf16.mxu0 %vm7966_vm0, %v12450_v17 }
 0xd55   :  { %v4499_v22 = vpop.permute.xlu1 %4498 }
 0xd56   :  { %v4504_v61 = vadd.f32 %v4499_v22, %v3852_v28 }
 0xd58   :  { %v4657_v23 = vsel %vm1271_vm9, %v4504_v61, 0.0 }
 0xd6f   :  { %v4501_v16 = vpop.permute.xlu0 %4500 }
 0xd70   :  { %v4505_v10 = vadd.f32 %v4501_v16, %v3853_v13 }
 0xd72   :  { %v4658_v45 = vsel %vm1271_vm9, %v4505_v10, 0.0 }
 0xd73   :  { %v4659_v19 = vadd.f32 %v4658_v45, %v4657_v23  ;;  %v7205_v45 = vld [vmem:[#allocation8 + $0x48] sm:$0xff]  }
 0xd75   :  { %v4660_v49 = vrot.slane %v4659_v19, 4 }
 0xd77   :  { %v4661_v18 = vadd.f32 %v4660_v49, %v4659_v19  ;;  %v12454_v49 = vld [vmem:[#allocation23_spill] sm:$0xff] }
 0xd79   :  { %v4662_v2 = vrot.slane %v4661_v18, 2 }
 0xd7b   :  { %v4663_v32 = vadd.f32 %v4662_v2, %v4661_v18 }
 0xd7d   :  { %v4664_v55 = vrot.slane %v4663_v32, 1 }
 0xd7f   :  { %v4665_v15 = vadd.f32 %v4664_v55, %v4663_v32 }
 0xd81   :  { %v4666_v60 = vmul.f32 0.0625, %v4665_v15 }
 0xd83   :  { %v4667_v35 = vsub.f32 %v4504_v61, %v4666_v60  ;;  %v4668_v56 = vsub.f32 %v4505_v10, %v4666_v60  ;;  %v7204_v10 = vld [vmem:[#allocation8 + $0x40] sm:$0xff]  }
 0xd84   :  { %7136 = vmatpush3.bf16.msra.mxu1 %v7204_v10 }
 0xd85   :  { %v4669_v12 = vmul.f32 %v4667_v35, %v4667_v35  ;;  %v4670_v26 = vmul.f32 %v4668_v56, %v4668_v56  ;;  %7137 = vmatprep.subr.bf16.mxu1 %v12450_v17 }
 0xd87   :  { %v4671_v51 = vsel %vm1271_vm9, %v4669_v12, 0.0  ;;  %v4672_v52 = vsel %vm1271_vm9, %v4670_v26, 0.0 }
 0xd88   :  { %v4673_v37 = vadd.f32 %v4672_v52, %v4671_v51  ;;  %7138 = vmatpush3.bf16.msra.mxu1 %v7205_v45  ;;  %v10955_v52 = vld [vmem:[#allocation10 + $0x20] sm:$0xff] }
 0xd8a   :  { %v4674_v3 = vrot.slane %v4673_v37, 4 }
 0xd8c   :  { %v4675_v50 = vadd.f32 %v4674_v3, %v4673_v37 }
 0xd8e   :  { %v4676_v20 = vrot.slane %v4675_v50, 2 }
 0xd90   :  { %v4677_v11 = vadd.f32 %v4676_v20, %v4675_v50  ;;  %v12456_v20 = vld [vmem:[#allocation26_spill] sm:$0xff] }
 0xd92   :  { %v4678_v36 = vrot.slane %v4677_v11, 1 }
 0xd94   :  { %v4679_v0 = vadd.f32 %v4678_v36, %v4677_v11 }
 0xd96   :  { %v4680_v39 = vmul.f32 0.0625, %v4679_v0  ;;  %v12460_v0 = vld [vmem:[#allocation16_spill] sm:$0xff] }
 0xd98   :  { %v4681_v7 = vadd.f32 1e-05, %v4680_v39  ;;  %v10973_v39 = vrot.slane %v10955_v52, %v12460_v0 }
 0xd9a   :  { %7608 = vrsqrt.f32 %v4681_v7  ;;  %v12461_v7 = vld [vmem:[#allocation19_spill] sm:$0xff] }
 0xda4   :  { %v7609_v4 = vpop.eup %7608 }
 0xda5   :  { %4684 = vrot.lane.b32.xlu1 %v7609_v4, %s7969_s13  ;;  %v4969_v4 = vrot.slane %v10955_v52, %v12461_v7 }
 0xda9   :  { %4703 = vrot.lane.b32.xlu1 %v4701_v9, %s7967_s2 }
 0xdc4   :  { %v7121_v54 = vpop.f32.mrb[40].mxu0 }
 0xdc5   :  { %v4846_v30 = vpop.f32.mrb[41].mxu0  ;;  %v4855_v10 = vadd.f32 %v7121_v54, %v10973_v39 }
 0xdc6   :  { %v7122_v42 = vpop.f32.mrb[42].mxu0  ;;  %v4847_v45 = vadd.f32 %v4846_v30, %v10973_v39 }
 0xdc7   :  { %v4849_v31 = vpop.f32.mrb[43].mxu0 }
 0xdcf   :  { %v10939_v5 = vpop.f32.mrb[44].mxu0 }
 0xdd0   :  { %v4862_v6 = vpop.f32.mrb[45].mxu0 }
 0xdd1   :  { %v10941_v46 = vpop.f32.mrb[46].mxu0 }
 0xdd2   :  { %v10943_v48 = vpop.f32.mrb[47].mxu0 }
 0xdd7   :  { %v7129_v38 = vpop.f32.mrb[48].mxu0 }
 0xdd8   :  { %v4878_v22 = vpop.f32.mrb[49].mxu0 }
 0xdd9   :  { %v7130_v53 = vpop.f32.mrb[50].mxu0 }
 0xdda   :  { %v4881_v28 = vpop.f32.mrb[51].mxu0 }
 0xddf   :  { %v7133_v62 = vpop.f32.mrb[52].mxu0 }
 0xde0   :  { %v10945_v13 = vpop.f32.mrb[53].mxu0 }
 0xde1   :  { %v10947_v61 = vpop.f32.mrb[54].mxu0 }
 0xde2   :  { %v10949_v16 = vpop.f32.mrb[55].mxu0 }
 0xe17   :  { %v4685_v23 = vpop.permute.xlu1 %4684 }
 0xe18   :  { %v4687_v19 = vmul.f32 %v10779_v58, %v4685_v23  ;;  %v12455_v58 = vld [vmem:[#allocation18_spill] sm:$0xff] }
 0xe19   :  { %v4985_v37 = vrot.slane %v10955_v52, %v12455_v58 }
 0xe1a   :  { %v4691_v18 = vrot.slane %v4687_v19, %v12454_v49  ;;  %v4858_v19 = vadd.f32 %v7122_v42, %v10973_v39 }
 0xe1b   :  { %v4704_v32 = vpop.permute.xlu1 %4703 }
 0xe1c   :  { %4693 = vrot.lane.b32.xlu0 %v4691_v18, %s7967_s2 }
 0xe8e   :  { %v4694_v2 = vpop.permute.xlu0 %4693 }
 0xe8f   :  { %v4696_v55 = vmul.f32 %v4694_v2, %v4667_v35  ;;  %v4697_v15 = vmul.f32 %v4694_v2, %v4668_v56  ;;  %v12458_v56 = vld [vmem:[#allocation29_spill] sm:$0xff] }
 0xe91   :  { %v4706_v60 = vadd.f32 %v4704_v32, %v4696_v55  ;;  %v4707_v12 = vadd.f32 %v4704_v32, %v4697_v15  ;;  %v7206_v55 = vld [vmem:[#allocation7 + $0x50] sm:$0xff]   ;;  %v4850_v15 = vadd.f32 %v4849_v31, %v10973_v39 }
 0xe92   :  { %7143 = vmatprep.subr.bf16.mxu1 %v7206_v55 }
 0xe93   :  { %v4708_v26 = vmax.f32 %v4706_v60, 0.0  ;;  %v4709_v51 = vmax.f32 %v4707_v12, 0.0  ;;  %v4863_v60 = vadd.f32 %v4862_v6, %v10973_v39  ;;  %v10989_v12 = vadd.f32 %v7129_v38, %v10973_v39  ;;  %v12465_v6 = vld [vmem:[#allocation42_spill] sm:$0xff] }
 0xe95   :  { %4714 = vrot.lane.b32.xlu1 %v4709_v51, %s7969_s13  ;;  %4712 = vrot.lane.b32.xlu0 %v4708_v26, %s7969_s13  ;;  %v12464_v26 = vld [vmem:[#allocation17_spill] sm:$0xff] }
 0xe96   :  { %v4975_v30 = vrot.slane %v10955_v52, %v12464_v26 }
 0xe99   :  { %4987 = vrot.lane.b32.xlu0 %v4985_v37, %s7961_s22 }
 0xf07   :  { %v4715_v3 = vpop.permute.xlu1 %4714  ;;  %v4713_v50 = vpop.permute.xlu0 %4712 }
 0xf08   :  { %v10963_v35 = vadd.f32 %v4715_v3, %v12456_v20  ;;  %v10966_v11 = vadd.f32 %v4713_v50, %v12458_v56  ;;  %v11005_v3 = vadd.f32 %v4878_v22, %v10973_v39  ;;  %v11008_v50 = vadd.f32 %v7130_v53, %v10973_v39 }
 0xf09   :  { %v11011_v20 = vadd.f32 %v4881_v28, %v10973_v39  ;;  %v11014_v56 = vadd.f32 %v7133_v62, %v10973_v39  ;;  %v11025_v28 = vadd.f32 %v10945_v13, %v10973_v39  ;;  %v11029_v62 = vadd.f32 %v10947_v61, %v10973_v39 }
 0xf0a   :  { %12457 = vst [vmem:[#allocation44_spill] sm:$0xff] %v10963_v35  ;;  %12459 = vst [vmem:[#allocation45_spill] sm:$0xff] %v10966_v11  ;;  %v4909_v36 = vpack.c.bf16 %v10963_v35, %v10966_v11 }
 0xf0b   :  { %v4988_v9 = vpop.permute.xlu0 %4987 }
 0xf0c   :  { %7140 = vmatmul.mubr.msk.bf16.vlgmr.msra.gmra.mrb[40].mxu1 %vm265_vm1, %v4909_v36  ;;  %v7207_v36 = vld [vmem:[#allocation7 + $0x58] sm:$0xff]  }
 0xf0d   :  { %7144 = vmatpush3.bf16.msra.mxu1 %v7206_v55 }
 0xf0e   :  { %7145 = vmatprep.subr.bf16.mxu1 %v7207_v36 }
 0xf11   :  { %7146 = vmatpush3.bf16.msra.mxu1 %v7207_v36 }
 0xfdf   :  { %v10978_v23 = vpop.f32.mrb[40].mxu1 }
 0xfe0   :  { %12462 = vst [vmem:[#allocation46_spill] sm:$0xff] %v10978_v23  ;;  %v10983_v18 = vadd.f32 %v4969_v4, %v10978_v23  ;;  %v7141_v2 = vpop.f32.mrb[41].mxu1  ;;  %v4990_v32 = vadd.f32 %v4988_v9, %v10978_v23 }
 0xfe1   :  { %v10991_v54 = vpop.f32.mrb[42].mxu1  ;;  %v11033_v2 = vadd.f32 %v10949_v16, %v10973_v39 }
 0xfe2   :  { %12463 = vst [vmem:[#allocation25_spill] sm:$0xff] %v10991_v54  ;;  %v10996_v42 = vadd.f32 %v4969_v4, %v10991_v54  ;;  %v7142_v51 = vpop.f32.mrb[43].mxu1  ;;  %5302 = vrot.lane.b32.xlu1 %v4990_v32, %s7961_s22  ;;  %v4991_v37 = vadd.f32 %v4988_v9, %v10991_v54  ;;  %v4994_v31 = vcombine.high %v10983_v18, %v10983_v18 }
 0xfe3   :  { %v5001_v38 = vrot.slane %v10983_v18, %v12465_v6 }
 0xfe4   :  { %5304 = vrot.lane.b32.xlu0 %v4991_v37, %s7961_s22  ;;  %v11018_v4 = vrot.slane %v4994_v31, %v12465_v6  ;;  %v5043_v53 = vcombine.high %v10996_v42, %v10996_v42  ;;  %v5050_v32 = vrot.slane %v10996_v42, %v12465_v6 }
 0xfe5   :  { %v5009_v9 = vcombine.high %v5001_v38, %v5001_v38  ;;  %v5017_v22 = vrot.slane %v5001_v38, %v12465_v6 }
 0xfe6   :  { %4977 = vrot.lane.b32.xlu1 %v4975_v30, %s7967_s2  ;;  %v11040_v51 = vrot.slane %v11018_v4, %v12465_v6  ;;  %v5057_v31 = vrot.slane %v5043_v53, %v12465_v6  ;;  %v5058_v38 = vcombine.high %v5050_v32, %v5050_v32  ;;  %v5066_v16 = vrot.slane %v5050_v32, %v12465_v6 }
 0xfe7   :  { %v5031_v13 = vrot.slane %v5009_v9, %v12465_v6  ;;  %v5039_v37 = vcombine.high %v5017_v22, %v5017_v22  ;;  %v5095_v61 = vrot.slane %v5017_v22, %v12460_v0 }
 0xfe8   :  { %v5111_v9 = vrot.slane %v11040_v51, %v12460_v0  ;;  %v5059_v35 = vcombine.high %v5057_v31, %v5057_v31  ;;  %v5073_v22 = vrot.slane %v5057_v31, %v12465_v6  ;;  %v5080_v53 = vrot.slane %v5058_v38, %v12465_v6 }
 0xfe9   :  { %v5041_v26 = vcombine.high %v5031_v13, %v5031_v13  ;;  %v5099_v30 = vrot.slane %v5031_v13, %v12460_v0  ;;  %v5103_v7 = vrot.slane %v5039_v37, %v12460_v0  ;;  %v5172_v11 = vadd.f32 %v5095_v61, %v4847_v45 }
 0xfea   :  { %v5176_v55 = vadd.f32 %v5111_v9, %v4863_v60  ;;  %v5087_v13 = vrot.slane %v5059_v35, %v12465_v6  ;;  %v5088_v37 = vcombine.high %v5066_v16, %v5066_v16  ;;  %v5089_v47 = vcombine.high %v5073_v22, %v5073_v22 }
 0xfeb   :  { %v5107_v32 = vrot.slane %v5041_v26, %v12460_v0  ;;  %v5173_v58 = vadd.f32 %v5099_v30, %v4850_v15  ;;  %v5174_v49 = vadd.f32 %v5103_v7, %v4855_v10  ;;  %v11056_v17 = vadd.f32 %v5172_v11, %v10983_v18 }
 0xfec   :  { %v11066_v36 = vadd.f32 %v5176_v55, %v10983_v18  ;;  %v5090_v10 = vcombine.high %v5080_v53, %v5080_v53  ;;  %v5091_v15 = vcombine.high %v5087_v13, %v5087_v13  ;;  %v5131_v8 = vrot.slane %v5080_v53, %v12460_v0 }
 0xfed   :  { %v5175_v54 = vadd.f32 %v5107_v32, %v4858_v19  ;;  %v11060_v45 = vadd.f32 %v5173_v58, %v10983_v18  ;;  %v11063_v61 = vadd.f32 %v5174_v49, %v10983_v18  ;;  %v5204_v7 = vsub.f32 0.0, %v11056_v17 }
 0xfee   :  { %v5634_v11 = vsel %vm265_vm1, %v11056_v17, 0.0  ;;  %v5208_v49 = vsub.f32 0.0, %v11066_v36  ;;  %v5641_v38 = vsel %vm265_vm1, %v11066_v36, 0.0  ;;  %v5135_v43 = vrot.slane %v5088_v37, %v12460_v0 }
 0xfef   :  { %v11072_v35 = vadd.f32 %v5175_v54, %v10983_v18  ;;  %v5205_v19 = vsub.f32 0.0, %v11060_v45  ;;  %v5206_v58 = vsub.f32 0.0, %v11063_v61  ;;  %v5220_v60 = vmul.f32 1.442695, %v5204_v7 }
 0xff0   :  { %v5635_v26 = vsel %vm265_vm1, %v11060_v45, 0.0  ;;  %v5637_v31 = vsel %vm265_vm1, %v11063_v61, 0.0  ;;  %v5228_v32 = vmul.f32 1.442695, %v5208_v49  ;;  %v5127_v7 = vrot.slane %v5066_v16, %v12460_v0 }
 0xff1   :  { %v5207_v55 = vsub.f32 0.0, %v11072_v35  ;;  %v5222_v54 = vmul.f32 1.442695, %v5205_v19  ;;  %v5224_v30 = vmul.f32 1.442695, %v5206_v58  ;;  %v5636_v9 = vadd.f32 %v5635_v26, %v5634_v11 }
 0xff2   :  { %7610 = vpow2.f32 %v5220_v60  ;;  %v5639_v23 = vsel %vm265_vm1, %v11072_v35, 0.0  ;;  %v5139_v41 = vrot.slane %v5090_v10, %v12460_v0  ;;  %v5143_v19 = vrot.slane %v5073_v22, %v12460_v0 }
 0xff3   :  { %7612 = vpow2.f32 %v5222_v54  ;;  %v5226_v44 = vmul.f32 1.442695, %v5207_v55  ;;  %v5638_v27 = vadd.f32 %v5637_v31, %v5636_v9  ;;  %v5147_v58 = vrot.slane %v5087_v13, %v12460_v0 }
 0xff4   :  { %7614 = vpow2.f32 %v5224_v30  ;;  %v5151_v49 = vrot.slane %v5089_v47, %v12460_v0  ;;  %v5155_v16 = vrot.slane %v5091_v15, %v12460_v0  ;;  %v5180_v60 = vadd.f32 %v5127_v7, %v11005_v3 }
 0xff5   :  { %7616 = vpow2.f32 %v5226_v44  ;;  %v5640_v11 = vadd.f32 %v5639_v23, %v5638_v27  ;;  %v5181_v53 = vadd.f32 %v5131_v8, %v11011_v20  ;;  %v5182_v37 = vadd.f32 %v5135_v43, %v10989_v12 }
 0xff6   :  { %7618 = vpow2.f32 %v5228_v32  ;;  %v5183_v10 = vadd.f32 %v5139_v41, %v11008_v50  ;;  %v5184_v22 = vadd.f32 %v5143_v19, %v11025_v28  ;;  %v5185_v27 = vadd.f32 %v5147_v58, %v11033_v2 }
 0xff7   :  { %v5642_v26 = vadd.f32 %v5641_v38, %v5640_v11  ;;  %v5186_v44 = vadd.f32 %v5151_v49, %v11014_v56  ;;  %v5187_v47 = vadd.f32 %v5155_v16, %v11029_v62  ;;  %v11103_v23 = vadd.f32 %v5180_v60, %v10996_v42 }
 0xff8   :  { %v11106_v3 = vadd.f32 %v5181_v53, %v10996_v42  ;;  %v11109_v8 = vadd.f32 %v5182_v37, %v10996_v42  ;;  %v11112_v43 = vadd.f32 %v5183_v10, %v10996_v42  ;;  %v11115_v41 = vadd.f32 %v5184_v22, %v10996_v42 }
 0xff9   :  { %v11118_v12 = vadd.f32 %v5186_v44, %v10996_v42  ;;  %v5212_v50 = vsub.f32 0.0, %v11103_v23  ;;  %v12466_v62 = vcombine.high %v11018_v4, %v11018_v4  ;;  %v4871_v15 = vadd.f32 %v10939_v5, %v10973_v39 }
 0xffa   :  { %v5213_v20 = vsub.f32 0.0, %v11106_v3  ;;  %v4874_v31 = vadd.f32 %v10941_v46, %v10973_v39  ;;  %v4866_v54 = vadd.f32 %v10943_v48, %v10973_v39  ;;  %v5214_v9 = vsub.f32 0.0, %v11109_v8 }
 0xffb   :  { %v5236_v28 = vmul.f32 1.442695, %v5212_v50  ;;  %v5038_v2 = vrot.slane %v12466_v62, %v12465_v6  ;;  %v5040_v19 = vcombine.high %v11040_v51, %v11040_v51  ;;  %v11138_v39 = vadd.f32 %v5185_v27, %v10996_v42 }
 0xffc   :  { %v7611_v56 = vpop.eup %7610  ;;  %v5238_v4 = vmul.f32 1.442695, %v5213_v20  ;;  %v11142_v53 = vadd.f32 %v5187_v47, %v10996_v42  ;;  %v5240_v22 = vmul.f32 1.442695, %v5214_v9 }
 0xffd   :  { %v7613_v13 = vpop.eup %7612  ;;  %v5252_v38 = vadd.f32 1.0, %v7611_v56  ;;  %7620 = vpow2.f32 %v5236_v28  ;;  %v5042_v46 = vcombine.high %v5038_v2, %v5038_v2  ;;  %v5115_v58 = vrot.slane %v5038_v2, %v12460_v0 }
 0xffe   :  { %v7615_v55 = vpop.eup %7614  ;;  %v5253_v30 = vadd.f32 1.0, %v7613_v13  ;;  %v5119_v48 = vrot.slane %v5040_v19, %v12460_v0  ;;  %v5215_v28 = vsub.f32 0.0, %v11112_v43 }
 0xfff   :  { %v7617_v32 = vpop.eup %7616  ;;  %v5254_v7 = vadd.f32 1.0, %v7615_v55  ;;  %7622 = vrcp.f32 %v5252_v38  ;;  %v5123_v16 = vrot.slane %v5042_v46, %v12460_v0  ;;  %v5177_v60 = vadd.f32 %v5115_v58, %v4866_v54 }
0x1000   :  { %v7619_v5 = vpop.eup %7618  ;;  %v5255_v11 = vadd.f32 1.0, %v7617_v32  ;;  %7624 = vrcp.f32 %v5253_v30  ;;  %v5178_v51 = vadd.f32 %v5119_v48, %v4871_v15  ;;  %v5216_v30 = vsub.f32 0.0, %v11115_v41 }
0x1001   :  { %v5256_v49 = vadd.f32 1.0, %v7619_v5  ;;  %7626 = vrcp.f32 %v5254_v7  ;;  %v5179_v37 = vadd.f32 %v5123_v16, %v4874_v31  ;;  %v11145_v10 = vadd.f32 %v5177_v60, %v10983_v18 }
0x1002   :  { %7628 = vrcp.f32 %v5255_v11  ;;  %v11148_v44 = vadd.f32 %v5178_v51, %v10983_v18  ;;  %v5242_v19 = vmul.f32 1.442695, %v5215_v28  ;;  %v5649_v5 = vsel %vm265_vm1, %v11103_v23, 0.0 }
0x1003   :  { %7630 = vrcp.f32 %v5256_v49  ;;  %v11151_v27 = vadd.f32 %v5179_v37, %v10983_v18  ;;  %v5643_v50 = vsel %vm265_vm1, %v11145_v10, 0.0  ;;  %v5209_v42 = vsub.f32 0.0, %v11145_v10 }
0x1004   :  { %7632 = vpow2.f32 %v5238_v4  ;;  %v5644_v47 = vadd.f32 %v5643_v50, %v5642_v26  ;;  %v5210_v20 = vsub.f32 0.0, %v11148_v44  ;;  %v5645_v62 = vsel %vm265_vm1, %v11148_v44, 0.0 }
0x1005   :  { %v5230_v2 = vmul.f32 1.442695, %v5209_v42  ;;  %7634 = vpow2.f32 %v5240_v22  ;;  %v5211_v15 = vsub.f32 0.0, %v11151_v27  ;;  %v5647_v26 = vsel %vm265_vm1, %v11151_v27, 0.0 }
0x1006   :  { %v5646_v18 = vadd.f32 %v5645_v62, %v5644_v47  ;;  %v5232_v31 = vmul.f32 1.442695, %v5210_v20  ;;  %v5651_v58 = vsel %vm265_vm1, %v11106_v3, 0.0  ;;  %v5653_v37 = vsel %vm265_vm1, %v11109_v8, 0.0 }
0x1007   :  { %v7621_v56 = vpop.eup %7620  ;;  %7636 = vpow2.f32 %v5230_v2  ;;  %v5234_v48 = vmul.f32 1.442695, %v5211_v15  ;;  %v5244_v42 = vmul.f32 1.442695, %v5216_v30  ;;  %v5217_v20 = vsub.f32 0.0, %v11138_v39 }
0x1008   :  { %v5648_v9 = vadd.f32 %v5647_v26, %v5646_v18  ;;  %7638 = vpow2.f32 %v5232_v31  ;;  %v5260_v51 = vadd.f32 1.0, %v7621_v56  ;;  %v5218_v28 = vsub.f32 0.0, %v11118_v12 }
0x1009   :  { %v11160_v13 = vpop.eup %7622  ;;  %7640 = vpow2.f32 %v5242_v19  ;;  %v5655_v26 = vsel %vm265_vm1, %v11112_v43, 0.0  ;;  %v5661_v0 = vsel %vm265_vm1, %v11118_v12, 0.0 }
0x100a   :  { %v11163_v38 = vpop.eup %7624  ;;  %v5436_v55 = vsel %vm265_vm1, %v11160_v13, 0.0  ;;  %v5650_v49 = vadd.f32 %v5649_v5, %v5648_v9  ;;  %7642 = vpow2.f32 %v5234_v48  ;;  %v5657_v9 = vsel %vm265_vm1, %v11115_v41, 0.0 }
0x100b   :  { %v11169_v54 = vpop.eup %7626  ;;  %v5437_v32 = vrot.slane %v5436_v55, 4  ;;  %v5443_v7 = vsel %vm265_vm1, %v11163_v38, 0.0  ;;  %7644 = vrcp.f32 %v5260_v51 }
0x100c   :  { %v11174_v4 = vpop.eup %7628  ;;  %v5444_v11 = vrot.slane %v5443_v7, 4  ;;  %v5450_v16 = vsel %vm265_vm1, %v11169_v54, 0.0  ;;  %v5652_v47 = vadd.f32 %v5651_v58, %v5650_v49  ;;  %7646 = vpow2.f32 %v5244_v42 }
0x100d   :  { %v11178_v46 = vpop.eup %7630  ;;  %v5438_v22 = vadd.f32 %v5437_v32, %v5436_v55  ;;  %v5457_v50 = vsel %vm265_vm1, %v11174_v4, 0.0  ;;  %v5451_v2 = vrot.slane %v5450_v16, 4 }
0x100e   :  { %v7633_v60 = vpop.eup %7632  ;;  %v5445_v62 = vadd.f32 %v5444_v11, %v5443_v7  ;;  %v5458_v18 = vrot.slane %v5457_v50, 4  ;;  %v5654_v31 = vadd.f32 %v5653_v37, %v5652_v47  ;;  %v5464_v56 = vsel %vm265_vm1, %v11178_v46, 0.0 }
0x100f   :  { %v5261_v15 = vadd.f32 1.0, %v7633_v60  ;;  %v5439_v55 = vrot.slane %v5438_v22, 2  ;;  %v7635_v30 = vpop.eup %7634  ;;  %v5246_v7 = vmul.f32 1.442695, %v5217_v20  ;;  %v5452_v11 = vadd.f32 %v5451_v2, %v5450_v16 }
0x1010   :  { %v5656_v32 = vadd.f32 %v5655_v26, %v5654_v31  ;;  %v5446_v5 = vrot.slane %v5445_v62, 2  ;;  %v5459_v58 = vadd.f32 %v5458_v18, %v5457_v50  ;;  %v5465_v49 = vrot.slane %v5464_v56, 4 }
0x1011   :  { %v7637_v19 = vpop.eup %7636  ;;  %7648 = vrcp.f32 %v5261_v15  ;;  %v5248_v60 = vmul.f32 1.442695, %v5218_v28  ;;  %v5659_v37 = vsel %vm265_vm1, %v11138_v39, 0.0  ;;  %v5440_v6 = vadd.f32 %v5439_v55, %v5438_v22 }
0x1012   :  { %v5658_v48 = vadd.f32 %v5657_v9, %v5656_v32  ;;  %v7639_v51 = vpop.eup %7638  ;;  %v5257_v47 = vadd.f32 1.0, %v7637_v19  ;;  %v5262_v42 = vadd.f32 1.0, %v7635_v30  ;;  %7650 = vpow2.f32 %v5246_v7 }
0x1013   :  { %v5447_v20 = vadd.f32 %v5446_v5, %v5445_v62  ;;  %v5453_v26 = vrot.slane %v5452_v11, 2  ;;  %v5460_v16 = vrot.slane %v5459_v58, 2  ;;  %v5466_v50 = vadd.f32 %v5465_v49, %v5464_v56  ;;  %v7641_v28 = vpop.eup %7640 }
0x1014   :  { %v5660_v31 = vadd.f32 %v5659_v37, %v5658_v48  ;;  %v5258_v18 = vadd.f32 1.0, %v7639_v51  ;;  %7652 = vpow2.f32 %v5248_v60  ;;  %v5663_v15 = vsel %vm265_vm1, %v11142_v53, 0.0  ;;  %v7643_v22 = vpop.eup %7642 }
0x1015   :  { %7654 = vrcp.f32 %v5257_v47  ;;  %v5441_v9 = vrot.slane %v5440_v6, 1  ;;  %v11202_v30 = vpop.eup %7644  ;;  %v5448_v32 = vrot.slane %v5447_v20, 1  ;;  %v5454_v7 = vadd.f32 %v5453_v26, %v5452_v11 }
0x1016   :  { %v5662_v2 = vadd.f32 %v5661_v0, %v5660_v31  ;;  %7656 = vrcp.f32 %v5262_v42  ;;  %v5461_v62 = vadd.f32 %v5460_v16, %v5459_v58  ;;  %v5467_v19 = vrot.slane %v5466_v50, 2  ;;  %v7647_v5 = vpop.eup %7646 }
0x1017   :  { %7658 = vrcp.f32 %v5258_v18  ;;  %v5259_v0 = vadd.f32 1.0, %v7643_v22  ;;  %v5442_v49 = vadd.f32 %v5441_v9, %v5440_v6  ;;  %v5263_v60 = vadd.f32 1.0, %v7641_v28 }
0x1018   :  { %v5664_v55 = vadd.f32 %v5663_v15, %v5662_v2  ;;  %v5219_v37 = vsub.f32 0.0, %v11142_v53  ;;  %v5492_v47 = vsel %vm265_vm1, %v11202_v30, 0.0  ;;  %v5449_v42 = vadd.f32 %v5448_v32, %v5447_v20 }
0x1019   :  { %v5455_v31 = vrot.slane %v5454_v7, 1  ;;  %v5462_v2 = vrot.slane %v5461_v62, 1  ;;  %v5468_v11 = vadd.f32 %v5467_v19, %v5466_v50  ;;  %v5264_v26 = vadd.f32 1.0, %v7647_v5 }
0x101a   :  { %v5665_v56 = vrot.slane %v5664_v55, 4  ;;  %7660 = vrcp.f32 %v5259_v0  ;;  %v5548_v18 = vadd.f32 1e-20, %v5442_v49  ;;  %v5493_v15 = vrot.slane %v5492_v47, 4 }
0x101b   :  { %v11204_v48 = vpop.eup %7648  ;;  %7662 = vrcp.f32 %v5263_v60  ;;  %v5250_v22 = vmul.f32 1.442695, %v5219_v37  ;;  %v5463_v20 = vadd.f32 %v5462_v2, %v5461_v62  ;;  %v5469_v32 = vrot.slane %v5468_v11, 1 }
0x101c   :  { %v5666_v51 = vadd.f32 %v5665_v56, %v5664_v55  ;;  %v7651_v58 = vpop.eup %7650  ;;  %v5499_v6 = vsel %vm265_vm1, %v11204_v48, 0.0  ;;  %v5456_v56 = vadd.f32 %v5455_v31, %v5454_v7  ;;  %v5549_v14 = vadd.f32 1e-20, %v5449_v42 }
0x101d   :  { %7664 = vrcp.f32 %v5264_v26  ;;  %v5265_v5 = vadd.f32 1.0, %v7651_v58  ;;  %v5500_v0 = vrot.slane %v5499_v6, 4  ;;  %v5494_v63 = vadd.f32 %v5493_v15, %v5492_v47 }
0x101e   :  { %v5667_v16 = vrot.slane %v5666_v51, 2  ;;  %v7653_v28 = vpop.eup %7652  ;;  %7666 = vrcp.f32 %v5548_v18  ;;  %v5470_v7 = vadd.f32 %v5469_v32, %v5468_v11  ;;  %v5550_v62 = vadd.f32 1e-20, %v5456_v56 }
0x101f   :  { %v11211_v55 = vpop.eup %7654  ;;  %v5266_v49 = vadd.f32 1.0, %v7653_v28  ;;  %7668 = vpow2.f32 %v5250_v22  ;;  %v5551_v37 = vadd.f32 1e-20, %v5463_v20  ;;  %v5501_v31 = vadd.f32 %v5500_v0, %v5499_v6 }
0x1020   :  { %v5668_v9 = vadd.f32 %v5667_v16, %v5666_v51  ;;  %v11213_v50 = vpop.eup %7656  ;;  %v5471_v51 = vsel %vm265_vm1, %v11211_v55, 0.0  ;;  %7670 = vrcp.f32 %v5549_v14  ;;  %v5495_v26 = vrot.slane %v5494_v63, 2 }
0x1021   :  { %v11215_v57 = vpop.eup %7658  ;;  %7672 = vrcp.f32 %v5265_v5  ;;  %v5506_v2 = vsel %vm265_vm1, %v11213_v50, 0.0  ;;  %v5472_v58 = vrot.slane %v5471_v51, 4  ;;  %v5552_v20 = vadd.f32 1e-20, %v5470_v7 }
0x1022   :  { %v5669_v19 = vrot.slane %v5668_v9, 1  ;;  %v5478_v47 = vsel %vm265_vm1, %v11215_v57, 0.0  ;;  %7674 = vrcp.f32 %v5266_v49  ;;  %v5507_v56 = vrot.slane %v5506_v2, 4 }
0x1023   :  { %7676 = vrcp.f32 %v5550_v62  ;;  %v5473_v49 = vadd.f32 %v5472_v58, %v5471_v51 }
0x1024   :  { %v5670_v60 = vadd.f32 %v5669_v19, %v5668_v9  ;;  %v11235_v15 = vpop.eup %7660  ;;  %v5479_v19 = vrot.slane %v5478_v47, 4  ;;  %7678 = vrcp.f32 %v5551_v37  ;;  %v5508_v25 = vadd.f32 %v5507_v56, %v5506_v2 }
0x1025   :  { %v11249_v9 = vpop.eup %7662  ;;  %7680 = vrcp.f32 %v5552_v20 }
0x1026   :  { %v5671_v42 = vmul.f32 0.0078125, %v5670_v60  ;;  %v5513_v5 = vsel %vm265_vm1, %v11249_v9, 0.0  ;;  %v5480_v40 = vadd.f32 %v5479_v19, %v5478_v47 }
0x1027   :  { %v5514_v58 = vrot.slane %v5513_v5, 4 }
0x1028   :  { %v11224_v16 = vsub.f32 %v11056_v17, %v5671_v42  ;;  %v11227_v11 = vsub.f32 %v11060_v45, %v5671_v42  ;;  %v11230_v14 = vsub.f32 %v11063_v61, %v5671_v42  ;;  %v11233_v18 = vsub.f32 %v11072_v35, %v5671_v42 }
0x1029   :  { %v11238_v6 = vsub.f32 %v11066_v36, %v5671_v42  ;;  %v11241_v28 = vsub.f32 %v11145_v10, %v5671_v42  ;;  %v11244_v17 = vsub.f32 %v11148_v44, %v5671_v42  ;;  %v11247_v45 = vsub.f32 %v11151_v27, %v5671_v42 }
0x102a   :  { %12467 = vst [vmem:[#allocation27_spill] sm:$0xff] %v11224_v16  ;;  %12468 = vst [vmem:[#allocation47_spill] sm:$0xff] %v11227_v11  ;;  %v11252_v61 = vsub.f32 %v11103_v23, %v5671_v42  ;;  %v11255_v35 = vsub.f32 %v11106_v3, %v5671_v42  ;;  %v11258_v36 = vsub.f32 %v11109_v8, %v5671_v42  ;;  %v11275_v3 = vpop.eup %7664 }
0x102b   :  { %12469 = vst [vmem:[#allocation24_spill] sm:$0xff] %v11230_v14  ;;  %12470 = vst [vmem:[#allocation38_spill] sm:$0xff] %v11233_v18  ;;  %v11261_v10 = vsub.f32 %v11112_v43, %v5671_v42  ;;  %v11264_v44 = vsub.f32 %v11115_v41, %v5671_v42  ;;  %v11267_v27 = vsub.f32 %v11138_v39, %v5671_v42  ;;  %v5485_v41 = vsel %vm265_vm1, %v11235_v15, 0.0  ;;  %v11283_v39 = vpop.eup %7666 }
0x102c   :  { %12471 = vst [vmem:[#allocation37_spill] sm:$0xff] %v11238_v6  ;;  %12472 = vst [vmem:[#allocation40_spill] sm:$0xff] %v11241_v28  ;;  %v11270_v22 = vsub.f32 %v11118_v12, %v5671_v42  ;;  %v11273_v23 = vsub.f32 %v11142_v53, %v5671_v42  ;;  %v5688_v8 = vmul.f32 %v11224_v16, %v11224_v16  ;;  %v5502_v12 = vrot.slane %v5501_v31, 2  ;;  %v7669_v32 = vpop.eup %7668 }
0x102d   :  { %12473 = vst [vmem:[#allocation41_spill] sm:$0xff] %v11244_v17  ;;  %12474 = vst [vmem:[#allocation21_spill] sm:$0xff] %v11247_v45  ;;  %v5689_v43 = vmul.f32 %v11227_v11, %v11227_v11  ;;  %v5690_v53 = vmul.f32 %v11230_v14, %v11230_v14  ;;  %v11289_v0 = vpop.eup %7670  ;;  %v5486_v60 = vrot.slane %v5485_v41, 4  ;;  %v5496_v42 = vadd.f32 %v5495_v26, %v5494_v63 }
0x102e   :  { %12475 = vst [vmem:[#allocation31_spill] sm:$0xff] %v11255_v35  ;;  %12476 = vst [vmem:[#allocation30_spill] sm:$0xff] %v11258_v36  ;;  %v5520_v59 = vsel %vm265_vm1, %v11275_v3, 0.0  ;;  %v11293_v7 = vpop.eup %7672  ;;  %v5691_v62 = vmul.f32 %v11233_v18, %v11233_v18  ;;  %v5704_v33 = vsel %vm265_vm1, %v5688_v8, 0.0  ;;  %v5267_v34 = vadd.f32 1.0, %v7669_v32 }
0x102f   :  { %12477 = vst [vmem:[#allocation50_spill] sm:$0xff] %v11261_v10  ;;  %12478 = vst [vmem:[#allocation51_spill] sm:$0xff] %v11273_v23  ;;  %v5705_v37 = vsel %vm265_vm1, %v5689_v43, 0.0  ;;  %v11299_v1 = vpop.eup %7674  ;;  %v5503_v51 = vadd.f32 %v5502_v12, %v5501_v31  ;;  %v5692_v63 = vmul.f32 %v11238_v6, %v11238_v6  ;;  %v5707_v26 = vsel %vm265_vm1, %v5690_v53, 0.0 }
0x1030   :  { %v5706_v29 = vadd.f32 %v5705_v37, %v5704_v33  ;;  %v5474_v18 = vrot.slane %v5473_v49, 2  ;;  %v5487_v14 = vadd.f32 %v5486_v60, %v5485_v41  ;;  %v5497_v8 = vrot.slane %v5496_v42, 1  ;;  %v11312_v20 = vpop.eup %7676 }
0x1031   :  { %v5693_v2 = vmul.f32 %v11241_v28, %v11241_v28  ;;  %v5709_v43 = vsel %vm265_vm1, %v5691_v62, 0.0  ;;  %v5509_v33 = vrot.slane %v5508_v25, 2  ;;  %v5521_v56 = vrot.slane %v5520_v59, 4 }
0x1032   :  { %v5708_v24 = vadd.f32 %v5707_v26, %v5706_v29  ;;  %7682 = vrcp.f32 %v5267_v34  ;;  %v5504_v12 = vrot.slane %v5503_v51, 1  ;;  %v5515_v32 = vadd.f32 %v5514_v58, %v5513_v5  ;;  %v11314_v26 = vpop.eup %7678 }
0x1033   :  { %v5694_v53 = vmul.f32 %v11244_v17, %v11244_v17  ;;  %v5711_v47 = vsel %vm265_vm1, %v5692_v63, 0.0  ;;  %v5481_v29 = vrot.slane %v5480_v40, 2  ;;  %v5527_v41 = vsel %vm265_vm1, %v11293_v7, 0.0 }
0x1034   :  { %v5710_v31 = vadd.f32 %v5709_v43, %v5708_v24  ;;  %v5475_v60 = vadd.f32 %v5474_v18, %v5473_v49  ;;  %v5488_v62 = vrot.slane %v5487_v14, 2  ;;  %v5528_v37 = vrot.slane %v5527_v41, 4 }
0x1035   :  { %v5695_v24 = vmul.f32 %v11247_v45, %v11247_v45  ;;  %v5713_v34 = vsel %vm265_vm1, %v5693_v2, 0.0  ;;  %v5522_v5 = vadd.f32 %v5521_v56, %v5520_v59  ;;  %v5534_v58 = vsel %vm265_vm1, %v11299_v1, 0.0  ;;  %v11324_v2 = vpop.eup %7680 }
0x1036   :  { %v5712_v19 = vadd.f32 %v5711_v47, %v5710_v31  ;;  %v5510_v43 = vadd.f32 %v5509_v33, %v5508_v25  ;;  %v5529_v17 = vadd.f32 %v5528_v37, %v5527_v41  ;;  %v5535_v28 = vrot.slane %v5534_v58, 4 }
0x1037   :  { %v5696_v18 = vmul.f32 %v11252_v61, %v11252_v61  ;;  %v5715_v49 = vsel %vm265_vm1, %v5694_v53, 0.0  ;;  %v5482_v31 = vadd.f32 %v5481_v29, %v5480_v40  ;;  %v5498_v47 = vadd.f32 %v5497_v8, %v5496_v42 }
0x1038   :  { %v5714_v63 = vadd.f32 %v5713_v34, %v5712_v19  ;;  %v5489_v11 = vadd.f32 %v5488_v62, %v5487_v14  ;;  %v5516_v45 = vrot.slane %v5515_v32, 2  ;;  %v5536_v16 = vadd.f32 %v5535_v28, %v5534_v58 }
0x1039   :  { %v5697_v59 = vmul.f32 %v11255_v35, %v11255_v35  ;;  %v5717_v25 = vsel %vm265_vm1, %v5695_v24, 0.0  ;;  %v5476_v33 = vrot.slane %v5475_v60, 1  ;;  %v5523_v56 = vrot.slane %v5522_v5, 2 }
0x103a   :  { %v5716_v6 = vadd.f32 %v5715_v49, %v5714_v63  ;;  %v5505_v19 = vadd.f32 %v5504_v12, %v5503_v51  ;;  %v5511_v37 = vrot.slane %v5510_v43, 1  ;;  %v5530_v34 = vrot.slane %v5529_v17, 2 }
0x103b   :  { %v5698_v40 = vmul.f32 %v11258_v36, %v11258_v36  ;;  %v5719_v14 = vsel %vm265_vm1, %v5696_v18, 0.0  ;;  %v5483_v42 = vrot.slane %v5482_v31, 1  ;;  %v5537_v28 = vrot.slane %v5536_v16, 2 }
0x103c   :  { %v5718_v41 = vadd.f32 %v5717_v25, %v5716_v6  ;;  %v11332_v8 = vpop.eup %7682  ;;  %v5699_v53 = vmul.f32 %v11261_v10, %v11261_v10  ;;  %v5490_v62 = vrot.slane %v5489_v11, 1  ;;  %v5517_v24 = vadd.f32 %v5516_v45, %v5515_v32 }
0x103d   :  { %v5721_v6 = vsel %vm265_vm1, %v5697_v59, 0.0  ;;  %v5477_v51 = vadd.f32 %v5476_v33, %v5475_v60  ;;  %v5524_v12 = vadd.f32 %v5523_v56, %v5522_v5  ;;  %v5541_v58 = vsel %vm265_vm1, %v11332_v8, 0.0 }
0x103e   :  { %v5720_v29 = vadd.f32 %v5719_v14, %v5718_v41  ;;  %v5512_v49 = vadd.f32 %v5511_v37, %v5510_v43  ;;  %v5531_v18 = vadd.f32 %v5530_v34, %v5529_v17  ;;  %v5542_v25 = vrot.slane %v5541_v58, 4 }
0x103f   :  { %v5700_v36 = vmul.f32 %v11264_v44, %v11264_v44  ;;  %v5723_v35 = vsel %vm265_vm1, %v5698_v40, 0.0  ;;  %v5484_v10 = vadd.f32 %v5483_v42, %v5482_v31  ;;  %v5538_v41 = vadd.f32 %v5537_v28, %v5536_v16 }
0x1040   :  { %v5722_v63 = vadd.f32 %v5721_v6, %v5720_v29  ;;  %v5491_v45 = vadd.f32 %v5490_v62, %v5489_v11  ;;  %v5518_v32 = vrot.slane %v5517_v24, 1  ;;  %v5543_v59 = vadd.f32 %v5542_v25, %v5541_v58 }
0x1041   :  { %v5701_v60 = vmul.f32 %v11267_v27, %v11267_v27  ;;  %v5725_v5 = vsel %vm265_vm1, %v5699_v53, 0.0  ;;  %v5553_v33 = vadd.f32 1e-20, %v5477_v51  ;;  %v5525_v43 = vrot.slane %v5524_v12, 1 }
0x1042   :  { %v5724_v14 = vadd.f32 %v5723_v35, %v5722_v63  ;;  %v5702_v17 = vmul.f32 %v11270_v22, %v11270_v22  ;;  %v5532_v37 = vrot.slane %v5531_v18, 1  ;;  %v5544_v34 = vrot.slane %v5543_v59, 2 }
0x1043   :  { %v5703_v16 = vmul.f32 %v11273_v23, %v11273_v23  ;;  %v5727_v11 = vsel %vm265_vm1, %v5700_v36, 0.0  ;;  %v5554_v35 = vadd.f32 1e-20, %v5484_v10  ;;  %v5539_v31 = vrot.slane %v5538_v41, 1 }
0x1044   :  { %v5726_v56 = vadd.f32 %v5725_v5, %v5724_v14  ;;  %v5555_v42 = vadd.f32 1e-20, %v5491_v45  ;;  %v5519_v28 = vadd.f32 %v5518_v32, %v5517_v24  ;;  %v5545_v29 = vadd.f32 %v5544_v34, %v5543_v59 }
0x1045   :  { %v5729_v53 = vsel %vm265_vm1, %v5701_v60, 0.0  ;;  %7684 = vrcp.f32 %v5553_v33  ;;  %v5526_v62 = vadd.f32 %v5525_v43, %v5524_v12  ;;  %v5556_v6 = vadd.f32 1e-20, %v5498_v47 }
0x1046   :  { %v5728_v40 = vadd.f32 %v5727_v11, %v5726_v56  ;;  %v5533_v58 = vadd.f32 %v5532_v37, %v5531_v18  ;;  %v5546_v63 = vrot.slane %v5545_v29, 1  ;;  %v5557_v25 = vadd.f32 1e-20, %v5505_v19 }
0x1047   :  { %v5731_v14 = vsel %vm265_vm1, %v5702_v17, 0.0  ;;  %7686 = vrcp.f32 %v5554_v35  ;;  %v5540_v5 = vadd.f32 %v5539_v31, %v5538_v41  ;;  %v5558_v36 = vadd.f32 1e-20, %v5512_v49  ;;  %v12479_v31 = vld [vmem:[#allocation20_spill] sm:$0xff] }
0x1048   :  { %v5730_v51 = vadd.f32 %v5729_v53, %v5728_v40  ;;  %7688 = vrcp.f32 %v5555_v42  ;;  %v5559_v56 = vadd.f32 1e-20, %v5519_v28  ;;  %v5733_v24 = vsel %vm265_vm1, %v5703_v16, 0.0 }
0x1049   :  { %v5547_v45 = vadd.f32 %v5546_v63, %v5545_v29  ;;  %v5560_v32 = vadd.f32 1e-20, %v5526_v62  ;;  %7690 = vrcp.f32 %v5556_v6  ;;  %v5561_v12 = vadd.f32 1e-20, %v5533_v58 }
0x104a   :  { %v5732_v10 = vadd.f32 %v5731_v14, %v5730_v51  ;;  %7692 = vrcp.f32 %v5557_v25  ;;  %v5562_v47 = vadd.f32 1e-20, %v5540_v5  ;;  %v11366_v40 = vrot.slane %v10955_v52, %v12479_v31 }
0x104b   :  { %7694 = vrcp.f32 %v5558_v36  ;;  %v5563_v19 = vadd.f32 1e-20, %v5547_v45 }
0x104c   :  { %v5734_v59 = vadd.f32 %v5733_v24, %v5732_v10  ;;  %7696 = vrcp.f32 %v5559_v56 }
0x104d   :  { %7698 = vrcp.f32 %v5560_v32 }
0x104e   :  { %v5735_v18 = vrot.slane %v5734_v59, 4  ;;  %7700 = vrcp.f32 %v5561_v12 }
0x104f   :  { %v11353_v49 = vpop.eup %7684  ;;  %7702 = vrcp.f32 %v5562_v47 }
0x1050   :  { %v5736_v60 = vadd.f32 %v5735_v18, %v5734_v59  ;;  %7704 = vrcp.f32 %v5563_v19 }
0x1051   :  { %v11359_v34 = vpop.eup %7686 }
0x1052   :  { %v5737_v35 = vrot.slane %v5736_v60, 2  ;;  %v11368_v42 = vpop.eup %7688 }
0x1053   :  { %v11374_v28 = vpop.eup %7690 }
0x1054   :  { %v5303_v41 = vpop.permute.xlu1 %5302  ;;  %v11377_v52 = vpop.eup %7692  ;;  %v5738_v31 = vadd.f32 %v5737_v35, %v5736_v60 }
0x1055   :  { %v5308_v33 = vmul.f32 %v11160_v13, %v5303_v41  ;;  %v5309_v43 = vmul.f32 %v11163_v38, %v5303_v41  ;;  %v5310_v17 = vmul.f32 %v11169_v54, %v5303_v41  ;;  %v5311_v37 = vmul.f32 %v11174_v4, %v5303_v41  ;;  %v11387_v25 = vpop.eup %7694 }
0x1056   :  { %v5312_v16 = vmul.f32 %v11178_v46, %v5303_v41  ;;  %v11362_v11 = vpop.permute.xlu0 %5304  ;;  %v5313_v62 = vmul.f32 %v11211_v55, %v5303_v41  ;;  %v11389_v10 = vpop.eup %7696 }
0x1057   :  { %v5324_v13 = vsel %vm265_vm1, %v5308_v33, 0.0  ;;  %v5331_v38 = vsel %vm265_vm1, %v5309_v43, 0.0  ;;  %v5338_v54 = vsel %vm265_vm1, %v5310_v17, 0.0  ;;  %v5345_v4 = vsel %vm265_vm1, %v5311_v37, 0.0 }
0x1058   :  { %v5325_v46 = vrot.slane %v5324_v13, 4  ;;  %v5332_v29 = vrot.slane %v5331_v38, 4  ;;  %v5339_v53 = vrot.slane %v5338_v54, 4  ;;  %v5316_v6 = vmul.f32 %v11202_v30, %v11362_v11 }
0x1059   :  { %v5317_v51 = vmul.f32 %v11204_v48, %v11362_v11  ;;  %v5318_v58 = vmul.f32 %v11213_v50, %v11362_v11  ;;  %v5319_v63 = vmul.f32 %v11249_v9, %v11362_v11  ;;  %v5346_v55 = vrot.slane %v5345_v4, 4  ;;  %v11397_v50 = vpop.eup %7698 }
0x105a   :  { %v5326_v14 = vadd.f32 %v5325_v46, %v5324_v13  ;;  %v5333_v5 = vadd.f32 %v5332_v29, %v5331_v38  ;;  %v5340_v36 = vadd.f32 %v5339_v53, %v5338_v54  ;;  %v5380_v56 = vsel %vm265_vm1, %v5316_v6, 0.0  ;;  %v11399_v12 = vpop.eup %7700 }
0x105b   :  { %v5387_v30 = vsel %vm265_vm1, %v5317_v51, 0.0  ;;  %v5394_v48 = vsel %vm265_vm1, %v5318_v58, 0.0  ;;  %v11395_v24 = vsel %vm265_vm1, %v5319_v63, 0.0  ;;  %v5381_v32 = vrot.slane %v5380_v56, 4  ;;  %v11407_v43 = vpop.eup %7702 }
0x105c   :  { %v5327_v9 = vrot.slane %v5326_v14, 2  ;;  %v5334_v45 = vrot.slane %v5333_v5, 2  ;;  %v5388_v59 = vrot.slane %v5387_v30, 4  ;;  %v11403_v47 = vmul.f32 %v11275_v3, %v11362_v11  ;;  %v11416_v29 = vpop.eup %7704 }
0x105d   :  { %v5395_v18 = vrot.slane %v5394_v48, 4  ;;  %v5314_v33 = vmul.f32 %v11215_v57, %v5303_v41  ;;  %v11409_v17 = vadd.f32 %v5381_v32, %v5380_v56  ;;  %v5315_v13 = vmul.f32 %v11235_v15, %v5303_v41 }
0x105e   :  { %v11411_v37 = vadd.f32 %v5388_v59, %v5387_v30  ;;  %v5328_v54 = vadd.f32 %v5327_v9, %v5326_v14  ;;  %v5335_v46 = vadd.f32 %v5334_v45, %v5333_v5  ;;  %v5341_v3 = vrot.slane %v5340_v36, 2 }
0x105f   :  { %v11414_v38 = vadd.f32 %v5395_v18, %v5394_v48  ;;  %v5383_v53 = vrot.slane %v11409_v17, 2  ;;  %v5739_v6 = vrot.slane %v5738_v31, 1  ;;  %v5347_v51 = vadd.f32 %v5346_v55, %v5345_v4 }
0x1060   :  { %v5390_v57 = vrot.slane %v11411_v37, 2  ;;  %v5329_v58 = vrot.slane %v5328_v54, 1  ;;  %v5336_v63 = vrot.slane %v5335_v46, 1  ;;  %v5342_v56 = vadd.f32 %v5341_v3, %v5340_v36 }
0x1061   :  { %v5352_v60 = vsel %vm265_vm1, %v5312_v16, 0.0  ;;  %v5740_v35 = vadd.f32 %v5739_v6, %v5738_v31  ;;  %v5348_v15 = vrot.slane %v5347_v51, 2  ;;  %v5359_v14 = vsel %vm265_vm1, %v5313_v62, 0.0 }
0x1062   :  { %v5353_v41 = vrot.slane %v5352_v60, 4  ;;  %v5330_v5 = vadd.f32 %v5329_v58, %v5328_v54  ;;  %v5337_v30 = vadd.f32 %v5336_v63, %v5335_v46  ;;  %v5343_v48 = vrot.slane %v5342_v56, 1 }
0x1063   :  { %v5360_v9 = vrot.slane %v5359_v14, 4  ;;  %v5741_v45 = vmul.f32 0.0078125, %v5740_v35  ;;  %v5349_v32 = vadd.f32 %v5348_v15, %v5347_v51  ;;  %v5366_v18 = vsel %vm265_vm1, %v5314_v33, 0.0 }
0x1064   :  { %v5354_v59 = vadd.f32 %v5353_v41, %v5352_v60  ;;  %v5344_v4 = vadd.f32 %v5343_v48, %v5342_v56  ;;  %v5367_v19 = vrot.slane %v5366_v18, 4  ;;  %v5373_v36 = vsel %vm265_vm1, %v5315_v13, 0.0 }
0x1065   :  { %v5361_v55 = vadd.f32 %v5360_v9, %v5359_v14  ;;  %v5742_v16 = vadd.f32 1e-05, %v5741_v45  ;;  %v5350_v31 = vrot.slane %v5349_v32, 1  ;;  %v5374_v6 = vrot.slane %v5373_v36, 4 }
0x1066   :  { %v5355_v3 = vrot.slane %v5354_v59, 2  ;;  %v5368_v62 = vadd.f32 %v5367_v19, %v5366_v18  ;;  %v5565_v54 = vmul.f32 %v11283_v39, %v5330_v5  ;;  %v5567_v46 = vmul.f32 %v11289_v0, %v5337_v30 }
0x1067   :  { %v5362_v23 = vrot.slane %v5361_v55, 2  ;;  %7706 = vrsqrt.f32 %v5742_v16  ;;  %v5351_v51 = vadd.f32 %v5350_v31, %v5349_v32  ;;  %v5375_v63 = vadd.f32 %v5374_v6, %v5373_v36 }
0x1068   :  { %v5356_v58 = vadd.f32 %v5355_v3, %v5354_v59  ;;  %v5369_v56 = vrot.slane %v5368_v62, 2  ;;  %v5569_v60 = vmul.f32 %v11312_v20, %v5344_v4  ;;  %v5612_v13 = vsel %vm1090_vm2, %v5567_v46, %v5565_v54  ;;  %v11452_v46 = vld [vmem:[#allocation10 + $0x20] sm:$0xff] }
0x1069   :  { %v5363_v33 = vadd.f32 %v5362_v23, %v5361_v55  ;;  %v5376_v15 = vrot.slane %v5375_v63, 2  ;;  %v5571_v41 = vmul.f32 %v11314_v26, %v5351_v51  ;;  %v5321_v19 = vmul.f32 %v11293_v7, %v11362_v11 }
0x106a   :  { %v5357_v35 = vrot.slane %v5356_v58, 1  ;;  %v5370_v14 = vadd.f32 %v5369_v56, %v5368_v62  ;;  %v5613_v0 = vsel %vm1092_vm3, %v5569_v60, %v5612_v13  ;;  %v5322_v5 = vmul.f32 %v11299_v1, %v11362_v11 }
0x106b   :  { %v5364_v39 = vrot.slane %v5363_v33, 1  ;;  %v5377_v30 = vadd.f32 %v5376_v15, %v5375_v63  ;;  %v5614_v20 = vsel %vm1094_vm4, %v5571_v41, %v5613_v0  ;;  %v5323_v48 = vmul.f32 %v11332_v8, %v11362_v11 }
0x106c   :  { %v5358_v23 = vadd.f32 %v5357_v35, %v5356_v58  ;;  %v5371_v45 = vrot.slane %v5370_v14, 1  ;;  %v5384_v26 = vadd.f32 %v5383_v53, %v11409_v17  ;;  %v5391_v7 = vadd.f32 %v5390_v57, %v11411_v37 }
0x106d   :  { %v5365_v9 = vadd.f32 %v5364_v39, %v5363_v33  ;;  %v5378_v32 = vrot.slane %v5377_v30, 1  ;;  %v5397_v18 = vrot.slane %v11414_v38, 2  ;;  %v12480_v1 = vrot.slane %v11395_v24, 4 }
0x106e   :  { %v5573_v59 = vmul.f32 %v11324_v2, %v5358_v23  ;;  %v5372_v55 = vadd.f32 %v5371_v45, %v5370_v14  ;;  %v5385_v16 = vrot.slane %v5384_v26, 1  ;;  %v5392_v8 = vrot.slane %v5391_v7, 1  ;;  %v12482_v23 = vld [vmem:[#allocation47_spill] sm:$0xff] }
0x106f   :  { %v5403_v4 = vadd.f32 %v12480_v1, %v11395_v24  ;;  %v5575_v36 = vmul.f32 %v11353_v49, %v5365_v9  ;;  %v5379_v11 = vadd.f32 %v5378_v32, %v5377_v30  ;;  %v5398_v17 = vadd.f32 %v5397_v18, %v11414_v38  ;;  %v12484_v9 = vld [vmem:[#allocation38_spill] sm:$0xff] }
0x1070   :  { %v5615_v31 = vsel %vm1096_vm5, %v5573_v59, %v5614_v20  ;;  %v5577_v53 = vmul.f32 %v11359_v34, %v5372_v55  ;;  %v5386_v57 = vadd.f32 %v5385_v16, %v5384_v26  ;;  %v5393_v3 = vadd.f32 %v5392_v8, %v5391_v7  ;;  %v12483_v20 = vld [vmem:[#allocation24_spill] sm:$0xff]  ;;  %v12485_v26 = vld [vmem:[#allocation37_spill] sm:$0xff] }
0x1071   :  { %v5404_v37 = vrot.slane %v5403_v4, 2  ;;  %v5616_v2 = vsel %vm1098_vm6, %v5575_v36, %v5615_v31  ;;  %v7707_v6 = vpop.eup %7706  ;;  %v5579_v24 = vmul.f32 %v11368_v42, %v5379_v11  ;;  %v5399_v62 = vrot.slane %v5398_v17, 1 }
0x1072   :  { %v5408_v49 = vsel %vm265_vm1, %v11403_v47, 0.0  ;;  %v5744_v51 = vmul.f32 %v11452_v46, %v7707_v6  ;;  %v5617_v38 = vsel %vm1100_vm7, %v5577_v53, %v5616_v2  ;;  %v5415_v34 = vsel %vm265_vm1, %v5321_v19, 0.0  ;;  %v12481_v19 = vld [vmem:[#allocation27_spill] sm:$0xff] }
0x1073   :  { %v5405_v54 = vadd.f32 %v5404_v37, %v5403_v4  ;;  %v5409_v58 = vrot.slane %v5408_v49, 4  ;;  %v5618_v63 = vsel %vm1102_vm8, %v5579_v24, %v5617_v38  ;;  %v5400_v33 = vadd.f32 %v5399_v62, %v5398_v17 }
0x1074   :  { %v5416_v60 = vrot.slane %v5415_v34, 4  ;;  %v11459_v42 = vrot.slane %v5744_v51, %v12256_v21  ;;  %5626 = vrot.lane.b32.xlu0 %v5618_v63, %s7967_s2  ;;  %v5422_v13 = vsel %vm265_vm1, %v5322_v5, 0.0  ;;  %v5429_v35 = vsel %vm265_vm1, %v5323_v48, 0.0  ;;  %v12486_v48 = vld [vmem:[#allocation40_spill] sm:$0xff]  ;;  %v12488_v51 = vld [vmem:[#allocation35_spill] sm:$0xff]  ;;  %v12490_v63 = vld [vmem:[#allocation33_spill] sm:$0xff] }
0x1075   :  { %v5406_v56 = vrot.slane %v5405_v54, 1  ;;  %v5410_v47 = vadd.f32 %v5409_v58, %v5408_v49  ;;  %v5423_v39 = vrot.slane %v5422_v13, 4  ;;  %v5430_v14 = vrot.slane %v5429_v35, 4  ;;  %v12489_v58 = vld [vmem:[#allocation34_spill] sm:$0xff] }
0x1076   :  { %v5417_v41 = vadd.f32 %v5416_v60, %v5415_v34  ;;  %v5749_v0 = vmul.f32 %v11459_v42, %v12481_v19  ;;  %v5750_v30 = vmul.f32 %v11459_v42, %v12482_v23  ;;  %v5751_v21 = vmul.f32 %v11459_v42, %v12483_v20  ;;  %v12491_v60 = vld [vmem:[#allocation28_spill] sm:$0xff] }
0x1077   :  { %v5407_v15 = vadd.f32 %v5406_v56, %v5405_v54  ;;  %v5752_v45 = vmul.f32 %v11459_v42, %v12484_v9  ;;  %v5753_v5 = vmul.f32 %v11459_v42, %v12485_v26  ;;  %v5754_v7 = vmul.f32 %v11459_v42, %v12486_v48  ;;  %v12487_v54 = vld [vmem:[#allocation36_spill] sm:$0xff] }
0x1078   :  { %v5411_v32 = vrot.slane %v5410_v47, 2  ;;  %v5418_v59 = vrot.slane %v5417_v41, 2  ;;  %v5769_v18 = vadd.f32 %v11366_v40, %v5749_v0  ;;  %v5770_v1 = vadd.f32 %v11366_v40, %v5750_v30 }
0x1079   :  { %v5771_v4 = vadd.f32 %v11366_v40, %v5751_v21  ;;  %v5772_v55 = vadd.f32 %v11366_v40, %v5752_v45  ;;  %v5773_v36 = vadd.f32 %v11366_v40, %v5753_v5  ;;  %v5774_v16 = vadd.f32 %v11366_v40, %v5754_v7 }
0x107a   :  { %v5412_v8 = vadd.f32 %v5411_v32, %v5410_v47  ;;  %v5419_v11 = vadd.f32 %v5418_v59, %v5417_v41  ;;  %v5848_v31 = vmax.f32 %v5769_v18, 0.0  ;;  %v5849_v17 = vmax.f32 %v5770_v1, 0.0  ;;  %v12492_v47 = vld [vmem:[#allocation32_spill] sm:$0xff] }
0x107b   :  { %v5850_v37 = vmax.f32 %v5771_v4, 0.0  ;;  %v5851_v53 = vmax.f32 %v5772_v55, 0.0  ;;  %v5852_v2 = vmax.f32 %v5773_v36, 0.0  ;;  %v5853_v6 = vmax.f32 %v5774_v16, 0.0 }
0x107c   :  { %v5413_v24 = vrot.slane %v5412_v8, 1  ;;  %v5420_v62 = vrot.slane %v5419_v11, 1  ;;  %v5864_v49 = vadd.f32 %v5848_v31, %v12487_v54  ;;  %v5865_v38 = vadd.f32 %v5849_v17, %v12488_v51  ;;  %v12498_v54 = vld [vmem:[#allocation54_spill] sm:$0xff] }
0x107d   :  { %v5866_v34 = vadd.f32 %v5850_v37, %v12489_v58  ;;  %v5867_v56 = vadd.f32 %v5851_v53, %v12490_v63  ;;  %v5868_v19 = vadd.f32 %v5852_v2, %v12491_v60  ;;  %v5869_v41 = vadd.f32 %v5853_v6, %v12492_v47  ;;  %v12496_v2 = vld [vmem:[#allocation30_spill] sm:$0xff] }
0x107e   :  { %v5414_v0 = vadd.f32 %v5413_v24, %v5412_v8  ;;  %v5421_v23 = vadd.f32 %v5420_v62, %v5419_v11  ;;  %v5892_v30 = vpack.c.bf16 %v5865_v38, %v5864_v49  ;;  %v5424_v21 = vadd.f32 %v5423_v39, %v5422_v13  ;;  %v12493_v39 = vld [vmem:[#allocation41_spill] sm:$0xff]  ;;  %v12497_v24 = vld [vmem:[#allocation58_spill] sm:$0xff] }
0x107f   :  { %v5893_v20 = vpack.c.bf16 %v5867_v56, %v5866_v34  ;;  %v5431_v9 = vadd.f32 %v5430_v14, %v5429_v35  ;;  %v5894_v45 = vpack.c.bf16 %v5869_v41, %v5868_v19  ;;  %v5581_v26 = vmul.f32 %v11374_v28, %v5386_v57  ;;  %v12495_v14 = vld [vmem:[#allocation31_spill] sm:$0xff]  ;;  %v12499_v38 = vld [vmem:[#allocation50_spill] sm:$0xff]  ;;  %v12500_v56 = vld [vmem:[#allocation56_spill] sm:$0xff] }
0x1080   :  { %v5583_v5 = vmul.f32 %v11377_v52, %v5393_v3  ;;  %v5585_v48 = vmul.f32 %v11387_v25, %v5400_v33  ;;  %7147 = vmatprep.mubr.msk.bf16.mxu1 %vm265_vm1, %v5892_v30  ;;  %v5425_v7 = vrot.slane %v5424_v21, 2  ;;  %v5587_v59 = vmul.f32 %v11389_v10, %v5407_v15  ;;  %v12494_v52 = vld [vmem:[#allocation21_spill] sm:$0xff]  ;;  %v12501_v41 = vld [vmem:[#allocation55_spill] sm:$0xff] }
0x1081   :  { %v5432_v32 = vrot.slane %v5431_v9, 2  ;;  %v5589_v18 = vmul.f32 %v11397_v50, %v5414_v0  ;;  %7148 = vmatmul.mubr.msk.bf16.vlgmr.msra.gmra.mrb[44].mxu1 %vm265_vm1, %v5893_v20  ;;  %v5591_v13 = vmul.f32 %v11399_v12, %v5421_v23  ;;  %v5755_v28 = vmul.f32 %v11459_v42, %v12493_v39 }
0x1082   :  { %v5619_v35 = vsel %vm1090_vm2, %v5583_v5, %v5581_v26  ;;  %v5756_v25 = vmul.f32 %v11459_v42, %v12494_v52  ;;  %7151 = vmatprep.mubr.msk.bf16.mxu1 %vm265_vm1, %v5894_v45  ;;  %v5426_v57 = vadd.f32 %v5425_v7, %v5424_v21  ;;  %v5757_v50 = vmul.f32 %v11459_v42, %v11252_v61 }
0x1083   :  { %v5433_v3 = vadd.f32 %v5432_v32, %v5431_v9  ;;  %v5620_v10 = vsel %vm1092_vm3, %v5585_v48, %v5619_v35  ;;  %v5775_v12 = vadd.f32 %v11366_v40, %v5755_v28  ;;  %v5758_v1 = vmul.f32 %v11459_v42, %v12495_v14  ;;  %v12503_v32 = vld [vmem:[#allocation51_spill] sm:$0xff] }
0x1084   :  { %v5621_v33 = vsel %vm1094_vm4, %v5587_v59, %v5620_v10  ;;  %v5776_v15 = vadd.f32 %v11366_v40, %v5756_v25  ;;  %v5427_v4 = vrot.slane %v5426_v57, 1  ;;  %v5777_v16 = vadd.f32 %v11366_v40, %v5757_v50  ;;  %v12505_v25 = vld [vmem:[#allocation48_spill] sm:$0xff] }
0x1085   :  { %v5434_v55 = vrot.slane %v5433_v3, 1  ;;  %v5622_v36 = vsel %vm1096_vm5, %v5589_v18, %v5621_v33  ;;  %v5854_v11 = vmax.f32 %v5775_v12, 0.0  ;;  %v5778_v61 = vadd.f32 %v11366_v40, %v5758_v1  ;;  %v12507_v33 = vld [vmem:[#allocation39_spill] sm:$0xff] }
0x1086   :  { %v5623_v8 = vsel %vm1098_vm6, %v5591_v13, %v5622_v36  ;;  %v5855_v31 = vmax.f32 %v5776_v15, 0.0  ;;  %v5428_v17 = vadd.f32 %v5427_v4, %v5426_v57  ;;  %v5856_v53 = vmax.f32 %v5777_v16, 0.0  ;;  %v12508_v15 = vld [vmem:[#allocation43_spill] sm:$0xff]  ;;  %v12510_v16 = vld [vmem:[#allocation25_spill] sm:$0xff] }
0x1087   :  { %v5435_v37 = vadd.f32 %v5434_v55, %v5433_v3  ;;  %v5759_v6 = vmul.f32 %v11459_v42, %v12496_v2  ;;  %v5870_v62 = vadd.f32 %v5854_v11, %v12497_v24  ;;  %v5857_v51 = vmax.f32 %v5778_v61, 0.0  ;;  %v12506_v3 = vld [vmem:[#allocation49_spill] sm:$0xff]  ;;  %v12509_v55 = vld [vmem:[#allocation46_spill] sm:$0xff] }
0x1088   :  { %v5871_v49 = vadd.f32 %v5855_v31, %v12498_v54  ;;  %v5760_v58 = vmul.f32 %v11459_v42, %v12499_v38  ;;  %v5593_v34 = vmul.f32 %v11407_v43, %v5428_v17  ;;  %v5872_v60 = vadd.f32 %v5856_v53, %v12500_v56 }
0x1089   :  { %v5595_v63 = vmul.f32 %v11416_v29, %v5435_v37  ;;  %v5779_v19 = vadd.f32 %v11366_v40, %v5759_v6  ;;  %v5873_v0 = vadd.f32 %v5857_v51, %v12501_v41  ;;  %v5761_v30 = vmul.f32 %v11459_v42, %v11264_v44  ;;  %v12502_v44 = vld [vmem:[#allocation52_spill] sm:$0xff] }
0x108a   :  { %v5895_v47 = vpack.c.bf16 %v5871_v49, %v5870_v62  ;;  %v5780_v23 = vadd.f32 %v11366_v40, %v5760_v58  ;;  %v5624_v20 = vsel %vm1100_vm7, %v5593_v34, %v5623_v8  ;;  %v5762_v43 = vmul.f32 %v11459_v42, %v11267_v27 }
0x108b   :  { %v5858_v21 = vmax.f32 %v5779_v19, 0.0  ;;  %v5763_v29 = vmul.f32 %v11459_v42, %v11270_v22  ;;  %v5625_v9 = vsel %vm1102_vm8, %v5595_v63, %v5624_v20  ;;  %v5896_v45 = vpack.c.bf16 %v5873_v0, %v5872_v60  ;;  %v12504_v22 = vld [vmem:[#allocation53_spill] sm:$0xff] }
0x108c   :  { %7152 = vmatmul.mubr.msk.bf16.gmra.mrb[48].mxu1 %vm265_vm1, %v5895_v47  ;;  %v5859_v26 = vmax.f32 %v5780_v23, 0.0  ;;  %v5781_v5 = vadd.f32 %v11366_v40, %v5761_v30  ;;  %5628 = vrot.lane.b32.xlu1 %v5625_v9, %s7967_s2  ;;  %v5782_v7 = vadd.f32 %v11366_v40, %v5762_v43  ;;  %v5764_v27 = vmul.f32 %v11459_v42, %v12503_v32  ;;  %v12511_v9 = vld [vmem:[#allocation22_spill] sm:$0xff] }
0x108d   :  { %v5874_v48 = vadd.f32 %v5858_v21, %v12502_v44  ;;  %v5783_v59 = vadd.f32 %v11366_v40, %v5763_v29  ;;  %7155 = vmatprep.mubr.msk.bf16.mxu1 %vm265_vm1, %v5896_v45  ;;  %v5829_v45 = vrot.slane %v11452_v46, %v12511_v9 }
0x108e   :  { %v5875_v18 = vadd.f32 %v5859_v26, %v12504_v22  ;;  %v5860_v13 = vmax.f32 %v5781_v5, 0.0  ;;  %v5861_v35 = vmax.f32 %v5782_v7, 0.0  ;;  %v5784_v39 = vadd.f32 %v11366_v40, %v5764_v27  ;;  %v4978_v40 = vpop.permute.xlu1 %4977 }
0x108f   :  { %v5862_v28 = vmax.f32 %v5783_v59, 0.0  ;;  %v4980_v36 = vadd.f32 %v4978_v40, %v12509_v55  ;;  %v4981_v8 = vadd.f32 %v4978_v40, %v12510_v16 }
0x1090   :  { %v5897_v52 = vpack.c.bf16 %v5875_v18, %v5874_v48  ;;  %v5876_v57 = vadd.f32 %v5860_v13, %v12505_v25  ;;  %v5877_v10 = vadd.f32 %v5861_v35, %v12506_v3  ;;  %v5863_v50 = vmax.f32 %v5784_v39, 0.0 }
0x1091   :  { %v5878_v12 = vadd.f32 %v5862_v28, %v12507_v33  ;;  %v12512_v33 = vmov 0.0  }
0x1092   :  { %v5898_v42 = vpack.c.bf16 %v5877_v10, %v5876_v57  ;;  %v5879_v14 = vadd.f32 %v5863_v50, %v12508_v15  ;;  %v7208_v57 = vld [vmem:[#allocation8 + $0x50] sm:$0xff]   ;;  %v7209_v10 = vld [vmem:[#allocation8 + $0x58] sm:$0xff]  }
0x1093   :  { %7164 = vmatpush3.bf16.msra.mxu0 %v7208_v57 }
0x1094   :  { %7156 = vmatmul.mubr.msk.bf16.gmra.mrb[52].mxu1 %vm265_vm1, %v5897_v52  ;;  %v5899_v1 = vpack.c.bf16 %v5879_v14, %v5878_v12  ;;  %7165 = vmatprep.subr.bf16.mxu0 %v12512_v33  ;;  %v12513_v12 = vld [vmem:[#allocation23_spill] sm:$0xff] }
0x1095   :  { %7159 = vmatprep.mubr.msk.bf16.mxu1 %vm265_vm1, %v5898_v42 }
0x1097   :  { %7166 = vmatpush3.bf16.msra.mxu0 %v7209_v10 }
0x109c   :  { %7160 = vmatmul.mubr.msk.bf16.gmra.mrb[56].mxu1 %vm265_vm1, %v5899_v1 }
0x10e6   :  { %v5627_v4 = vpop.permute.xlu0 %5626 }
0x10e7   :  { %v5632_v11 = vadd.f32 %v5627_v4, %v4980_v36 }
0x10e9   :  { %v5785_v17 = vsel %vm1271_vm9, %v5632_v11, 0.0 }
0x10fe   :  { %v5629_v31 = vpop.permute.xlu1 %5628 }
0x10ff   :  { %v5633_v61 = vadd.f32 %v5629_v31, %v4981_v8  ;;  %v5891_v8 = vld [vmem:[#allocation10 + $0x28] sm:$0xff] }
0x1101   :  { %v5786_v37 = vsel %vm1271_vm9, %v5633_v61, 0.0 }
0x1102   :  { %v5787_v53 = vadd.f32 %v5786_v37, %v5785_v17  ;;  %v12515_v17 = vld [vmem:[#allocation44_spill] sm:$0xff] }
0x1104   :  { %v5788_v2 = vrot.slane %v5787_v53, 4 }
0x1106   :  { %v5789_v6 = vadd.f32 %v5788_v2, %v5787_v53  ;;  %v12517_v53 = vld [vmem:[#allocation45_spill] sm:$0xff] }
0x1108   :  { %v5790_v24 = vrot.slane %v5789_v6, 2 }
0x110a   :  { %v5791_v62 = vadd.f32 %v5790_v24, %v5789_v6  ;;  %v12519_v24 = vld [vmem:[#allocation19_spill] sm:$0xff] }
0x110c   :  { %v5792_v54 = vrot.slane %v5791_v62, 1 }
0x110e   :  { %v5793_v49 = vadd.f32 %v5792_v54, %v5791_v62  ;;  %v6097_v62 = vrot.slane %v5891_v8, %v12519_v24 }
0x1110   :  { %v5794_v51 = vmul.f32 0.0625, %v5793_v49  ;;  %v12520_v49 = vld [vmem:[#allocation16_spill] sm:$0xff] }
0x1112   :  { %v5795_v38 = vsub.f32 %v5632_v11, %v5794_v51  ;;  %v5796_v58 = vsub.f32 %v5633_v61, %v5794_v51  ;;  %v11605_v51 = vrot.slane %v5891_v8, %v12520_v49 }
0x1114   :  { %v5797_v34 = vmul.f32 %v5795_v38, %v5795_v38  ;;  %v5798_v63 = vmul.f32 %v5796_v58, %v5796_v58 }
0x1116   :  { %v5799_v56 = vsel %vm1271_vm9, %v5797_v34, 0.0  ;;  %v5800_v60 = vsel %vm1271_vm9, %v5798_v63, 0.0 }
0x1117   :  { %v5801_v19 = vadd.f32 %v5800_v60, %v5799_v56  ;;  %v12521_v60 = vld [vmem:[#allocation17_spill] sm:$0xff] }
0x1119   :  { %v5802_v47 = vrot.slane %v5801_v19, 4 }
0x111b   :  { %v5803_v41 = vadd.f32 %v5802_v47, %v5801_v19  ;;  %v6103_v19 = vrot.slane %v5891_v8, %v12521_v60 }
0x111d   :  { %v5804_v0 = vrot.slane %v5803_v41, 2 }
0x111f   :  { %v5805_v23 = vadd.f32 %v5804_v0, %v5803_v41 }
0x1121   :  { %v5806_v30 = vrot.slane %v5805_v23, 1 }
0x1123   :  { %v5807_v20 = vadd.f32 %v5806_v30, %v5805_v23  ;;  %v12522_v30 = vld [vmem:[#allocation42_spill] sm:$0xff] }
0x1125   :  { %v5808_v21 = vmul.f32 0.0625, %v5807_v20 }
0x1127   :  { %v5809_v43 = vadd.f32 1e-05, %v5808_v21 }
0x1129   :  { %7708 = vrsqrt.f32 %v5809_v43 }
0x1133   :  { %v7709_v29 = vpop.eup %7708 }
0x1134   :  { %5812 = vrot.lane.b32.xlu0 %v7709_v29, %s7969_s13 }
0x1138   :  { %5831 = vrot.lane.b32.xlu0 %v5829_v45, %s7967_s2 }
0x1154   :  { %v7149_v26 = vpop.f32.mrb[44].mxu1 }
0x1155   :  { %v5974_v5 = vpop.f32.mrb[45].mxu1  ;;  %v5983_v21 = vadd.f32 %v7149_v26, %v11605_v51 }
0x1156   :  { %v7150_v44 = vpop.f32.mrb[46].mxu1  ;;  %v5975_v43 = vadd.f32 %v5974_v5, %v11605_v51 }
0x1157   :  { %v11562_v48 = vpop.f32.mrb[47].mxu1  ;;  %v5986_v29 = vadd.f32 %v7150_v44, %v11605_v51 }
0x115f   :  { %v11564_v7 = vpop.f32.mrb[48].mxu1 }
0x1160   :  { %v11566_v32 = vpop.f32.mrb[49].mxu1 }
0x1161   :  { %v11568_v27 = vpop.f32.mrb[50].mxu1  ;;  %v5991_v26 = vadd.f32 %v11566_v32, %v11605_v51 }
0x1162   :  { %v11570_v59 = vpop.f32.mrb[51].mxu1 }
0x1167   :  { %v7157_v22 = vpop.f32.mrb[52].mxu1 }
0x1168   :  { %v11572_v18 = vpop.f32.mrb[53].mxu1  ;;  %v6015_v5 = vadd.f32 %v7157_v22, %v11605_v51 }
0x1169   :  { %v11574_v13 = vpop.f32.mrb[54].mxu1 }
0x116a   :  { %v11576_v35 = vpop.f32.mrb[55].mxu1 }
0x116f   :  { %v11578_v39 = vpop.f32.mrb[56].mxu1 }
0x1170   :  { %v11580_v28 = vpop.f32.mrb[57].mxu1 }
0x1171   :  { %v11582_v52 = vpop.f32.mrb[58].mxu1 }
0x1172   :  { %v11584_v25 = vpop.f32.mrb[59].mxu1 }
0x11a6   :  { %v5813_v3 = vpop.permute.xlu0 %5812 }
0x11a7   :  { %v5815_v50 = vmul.f32 %v11452_v46, %v5813_v3  ;;  %v12514_v46 = vld [vmem:[#allocation18_spill] sm:$0xff] }
0x11a8   :  { %v6113_v11 = vrot.slane %v5891_v8, %v12514_v46 }
0x11a9   :  { %v5819_v42 = vrot.slane %v5815_v50, %v12513_v12  ;;  %v5978_v50 = vadd.f32 %v11562_v48, %v11605_v51  ;;  %v6007_v48 = vadd.f32 %v11572_v18, %v11605_v51 }
0x11aa   :  { %v5832_v14 = vpop.permute.xlu0 %5831 }
0x11ab   :  { %5821 = vrot.lane.b32.xlu1 %v5819_v42, %s7967_s2 }
0x121d   :  { %v5822_v15 = vpop.permute.xlu1 %5821 }
0x121e   :  { %v5824_v1 = vmul.f32 %v5822_v15, %v5795_v38  ;;  %v5825_v40 = vmul.f32 %v5822_v15, %v5796_v58 }
0x1220   :  { %v5834_v4 = vadd.f32 %v5832_v14, %v5824_v1  ;;  %v5835_v55 = vadd.f32 %v5832_v14, %v5825_v40 }
0x1222   :  { %v5836_v36 = vmax.f32 %v5834_v4, 0.0  ;;  %v5837_v16 = vmax.f32 %v5835_v55, 0.0 }
0x1224   :  { %5842 = vrot.lane.b32.xlu0 %v5837_v16, %s7969_s13  ;;  %5840 = vrot.lane.b32.xlu1 %v5836_v36, %s7969_s13 }
0x1228   :  { %6115 = vrot.lane.b32.xlu1 %v6113_v11, %s7961_s22 }
0x1296   :  { %v5843_v31 = vpop.permute.xlu0 %5842  ;;  %v5841_v61 = vpop.permute.xlu1 %5840 }
0x1297   :  { %v11595_v37 = vadd.f32 %v5843_v31, %v12515_v17  ;;  %v11598_v2 = vadd.f32 %v5841_v61, %v12517_v53 }
0x1299   :  { %12516 = vst [vmem:[#allocation57_spill] sm:$0xff] %v11595_v37  ;;  %12518 = vst [vmem:[#allocation26_spill] sm:$0xff] %v11598_v2  ;;  %v6037_v6 = vpack.c.bf16 %v11595_v37, %v11598_v2 }
0x129a   :  { %v6116_v54 = vpop.permute.xlu1 %6115 }
0x129b   :  { %7168 = vmatmul.mubr.msk.bf16.vlgmr.msra.gmra.mrb[56].mxu0 %vm265_vm1, %v6037_v6 }
0x136e   :  { %v11607_v38 = vpop.f32.mrb[56].mxu0 }
0x136f   :  { %v11610_v58 = vadd.f32 %v6097_v62, %v11607_v38  ;;  %v7169_v34 = vpop.f32.mrb[57].mxu0  ;;  %v6118_v63 = vadd.f32 %v6116_v54, %v11607_v38 }
0x1370   :  { %v11613_v56 = vpop.f32.mrb[58].mxu0 }
0x1371   :  { %v11617_v47 = vadd.f32 %v6097_v62, %v11613_v56  ;;  %v7170_v41 = vpop.f32.mrb[59].mxu0  ;;  %6430 = vrot.lane.b32.xlu0 %v6118_v63, %s7961_s22  ;;  %v6119_v0 = vadd.f32 %v6116_v54, %v11613_v56  ;;  %v6122_v23 = vcombine.high %v11610_v58, %v11610_v58  ;;  %v6129_v20 = vrot.slane %v11610_v58, %v12522_v30 }
0x1373   :  { %6432 = vrot.lane.b32.xlu1 %v6119_v0, %s7961_s22  ;;  %v6136_v45 = vrot.slane %v6122_v23, %v12522_v30  ;;  %v6137_v57 = vcombine.high %v6129_v20, %v6129_v20  ;;  %v6145_v3 = vrot.slane %v6129_v20, %v12522_v30  ;;  %v6171_v10 = vcombine.high %v11617_v47, %v11617_v47  ;;  %s7970_s22 = smov [#allocation11]  }
0x1374   :  { %v6178_v44 = vrot.slane %v11617_v47, %v12522_v30  ;;  %v6018_v20 = vadd.f32 %v11574_v13, %v11605_v51  ;;  %s6832_s15 = sshll.u32 %s7970_s22, 4  ;;  %s6833_s15 = int_to_ptr.vmem [resolvable:$true] %s6832_s15 }
0x1375   :  { %6105 = vrot.lane.b32.xlu0 %v6103_v19, %s7967_s2  ;;  %v6152_v33 = vrot.slane %v6136_v45, %v12522_v30  ;;  %v6159_v42 = vrot.slane %v6137_v57, %v12522_v30  ;;  %v6167_v15 = vcombine.high %v6145_v3, %v6145_v3  ;;  %v6223_v14 = vrot.slane %v6145_v3, %v12520_v49  ;;  %s7926_s16 = scalar_lea.vmem %s6833_s15, 256  ;;  %p7931_p13 = scmp.lt.s32.totalorder %s6833_s15, %s6833_s15 }
0x1376   :  { %v6185_v1 = vrot.slane %v6171_v10, %v12522_v30  ;;  %v6186_v32 = vcombine.high %v6178_v44, %v6178_v44  ;;  %v6194_v22 = vrot.slane %v6178_v44, %v12522_v30  ;;  %v6010_v19 = vadd.f32 %v11576_v35, %v11605_v51  ;;  %p7927_p12 = scmp.ne.s32.totalorder %s6833_s15, %s7926_s16  ;;  %p7932_p0 = scmp.lt.s32.totalorder %s7926_s16, %s7926_s16 }
0x1377   :  { %v6169_v40 = vcombine.high %v6159_v42, %v6159_v42  ;;  %v6227_v4 = vrot.slane %v6159_v42, %v12520_v49  ;;  %v6231_v55 = vrot.slane %v6167_v15, %v12520_v49  ;;  %v6239_v36 = vrot.slane %v6152_v33, %v12520_v49 }
0x1378   :  { %v6300_v16 = vadd.f32 %v6223_v14, %v5975_v43  ;;  %v6201_v8 = vrot.slane %v6185_v1, %v12522_v30  ;;  %v6208_v46 = vrot.slane %v6186_v32, %v12522_v30  ;;  %v6216_v11 = vcombine.high %v6194_v22, %v6194_v22  ;;  %p7933_p1 = por %p7932_p0, %p7931_p13 }
0x1379   :  { %v6235_v18 = vrot.slane %v6169_v40, %v12520_v49  ;;  %v6301_v31 = vadd.f32 %v6227_v4, %v5978_v50  ;;  %v6302_v61 = vadd.f32 %v6231_v55, %v5983_v21  ;;  %v6304_v17 = vadd.f32 %v6239_v36, %v5991_v26 }
0x137a   :  { %v6316_v53 = vadd.f32 %v6300_v16, %v11610_v58  ;;  %v6218_v6 = vcombine.high %v6208_v46, %v6208_v46  ;;  %v6255_v24 = vrot.slane %v6194_v22, %v12520_v49  ;;  %v6259_v62 = vrot.slane %v6208_v46, %v12520_v49  ;;  %p7934_p2 = pnand %p7933_p1, %p7927_p12 }
0x137b   :  { %v6303_v54 = vadd.f32 %v6235_v18, %v5986_v29  ;;  %v6317_v34 = vadd.f32 %v6301_v31, %v11610_v58  ;;  %v6318_v63 = vadd.f32 %v6302_v61, %v11610_v58  ;;  %v11660_v60 = vadd.f32 %v6304_v17, %v11610_v58 }
0x137c   :  { %v6263_v41 = vrot.slane %v6216_v11, %v12520_v49  ;;  %v6267_v0 = vrot.slane %v6218_v6, %v12520_v49  ;;  %v6271_v23 = vrot.slane %v6201_v8, %v12520_v49  ;;  %v6023_v43 = vadd.f32 %v11580_v28, %v11605_v51 }
0x137d   :  { %v6319_v21 = vadd.f32 %v6303_v54, %v11610_v58  ;;  %v6308_v29 = vadd.f32 %v6255_v24, %v6007_v48  ;;  %v6309_v57 = vadd.f32 %v6259_v62, %v6010_v19  ;;  %v6138_v50 = vcombine.high %v6136_v45, %v6136_v45 }
0x137e   :  { %v6310_v3 = vadd.f32 %v6263_v41, %v6015_v5  ;;  %v6311_v10 = vadd.f32 %v6267_v0, %v6018_v20  ;;  %v6312_v35 = vadd.f32 %v6271_v23, %v6023_v43  ;;  %v6168_v28 = vcombine.high %v6152_v33, %v6152_v33 }
0x137f   :  { %v6324_v26 = vadd.f32 %v6308_v29, %v11617_v47  ;;  %v6325_v44 = vadd.f32 %v6309_v57, %v11617_v47  ;;  %v6166_v14 = vrot.slane %v6138_v50, %v12522_v30  ;;  %v5999_v5 = vadd.f32 %v11564_v7, %v11605_v51 }
0x1380   :  { %v6326_v42 = vadd.f32 %v6310_v3, %v11617_v47  ;;  %v6327_v15 = vadd.f32 %v6311_v10, %v11617_v47  ;;  %v11677_v13 = vadd.f32 %v6312_v35, %v11617_v47  ;;  %v5994_v45 = vadd.f32 %v11570_v59, %v11605_v51 }
0x1381   :  { %v6170_v48 = vcombine.high %v6166_v14, %v6166_v14  ;;  %v6243_v32 = vrot.slane %v6166_v14, %v12520_v49  ;;  %v6002_v22 = vadd.f32 %v11568_v27, %v11605_v51  ;;  %v6247_v40 = vrot.slane %v6168_v28, %v12520_v49 }
0x1382   :  { %v6187_v55 = vcombine.high %v6185_v1, %v6185_v1  ;;  %v6217_v16 = vcombine.high %v6201_v8, %v6201_v8  ;;  %v6332_v33 = vsub.f32 0.0, %v6316_v53  ;;  %v6031_v59 = vadd.f32 %v11578_v39, %v11605_v51 }
0x1383   :  { %v6251_v4 = vrot.slane %v6170_v48, %v12520_v49  ;;  %v6305_v36 = vadd.f32 %v6243_v32, %v5994_v45  ;;  %v6306_v46 = vadd.f32 %v6247_v40, %v5999_v5  ;;  %v6034_v6 = vadd.f32 %v11582_v52, %v11605_v51 }
0x1384   :  { %v6215_v7 = vrot.slane %v6187_v55, %v12522_v30  ;;  %v6279_v31 = vrot.slane %v6217_v16, %v12520_v49  ;;  %v6348_v53 = vmul.f32 1.442695, %v6332_v33  ;;  %v6026_v30 = vadd.f32 %v11584_v25, %v11605_v51 }
0x1385   :  { %v6307_v11 = vadd.f32 %v6251_v4, %v6002_v22  ;;  %v6321_v18 = vadd.f32 %v6305_v36, %v11610_v58  ;;  %v6322_v27 = vadd.f32 %v6306_v46, %v11610_v58  ;;  %v6333_v24 = vsub.f32 0.0, %v6317_v34 }
0x1386   :  { %v6219_v17 = vcombine.high %v6215_v7, %v6215_v7  ;;  %v6275_v1 = vrot.slane %v6215_v7, %v12520_v49  ;;  %v6314_v8 = vadd.f32 %v6279_v31, %v6031_v59  ;;  %v6334_v41 = vsub.f32 0.0, %v6318_v63 }
0x1387   :  { %v6323_v61 = vadd.f32 %v6307_v11, %v11610_v58  ;;  %7710 = vpow2.f32 %v6348_v53  ;;  %v6335_v58 = vsub.f32 0.0, %v6319_v21  ;;  %v6336_v20 = vsub.f32 0.0, %v11660_v60 }
0x1388   :  { %v6283_v39 = vrot.slane %v6219_v17, %v12520_v49  ;;  %v6313_v62 = vadd.f32 %v6275_v1, %v6026_v30  ;;  %v6330_v19 = vadd.f32 %v6314_v8, %v11617_v47  ;;  %v6350_v52 = vmul.f32 1.442695, %v6333_v24 }
0x1389   :  { %v6340_v43 = vsub.f32 0.0, %v6324_v26  ;;  %v6352_v29 = vmul.f32 1.442695, %v6334_v41  ;;  %v6341_v25 = vsub.f32 0.0, %v6325_v44  ;;  %v6354_v51 = vmul.f32 1.442695, %v6335_v58 }
0x138a   :  { %v6315_v54 = vadd.f32 %v6283_v39, %v6034_v6  ;;  %v6329_v0 = vadd.f32 %v6313_v62, %v11617_v47  ;;  %v6342_v49 = vsub.f32 0.0, %v6326_v42  ;;  %v6356_v34 = vmul.f32 1.442695, %v6336_v20 }
0x138b   :  { %v6337_v57 = vsub.f32 0.0, %v6321_v18  ;;  %7712 = vpow2.f32 %v6350_v52  ;;  %v6343_v3 = vsub.f32 0.0, %v6327_v15  ;;  %v6364_v10 = vmul.f32 1.442695, %v6340_v43 }
0x138c   :  { %v6331_v23 = vadd.f32 %v6315_v54, %v11617_v47  ;;  %7714 = vpow2.f32 %v6352_v29  ;;  %v6344_v63 = vsub.f32 0.0, %v11677_v13  ;;  %v6366_v21 = vmul.f32 1.442695, %v6341_v25 }
0x138d   :  { %7716 = vpow2.f32 %v6354_v51  ;;  %v6368_v50 = vmul.f32 1.442695, %v6342_v49  ;;  %v6338_v60 = vsub.f32 0.0, %v6322_v27  ;;  %v6358_v35 = vmul.f32 1.442695, %v6337_v57 }
0x138e   :  { %7718 = vpow2.f32 %v6356_v34  ;;  %v6370_v26 = vmul.f32 1.442695, %v6343_v3  ;;  %v6339_v44 = vsub.f32 0.0, %v6323_v61  ;;  %v6372_v42 = vmul.f32 1.442695, %v6344_v63 }
0x138f   :  { %7720 = vpow2.f32 %v6364_v10  ;;  %v6345_v14 = vsub.f32 0.0, %v6329_v0  ;;  %v6346_v15 = vsub.f32 0.0, %v6330_v19  ;;  %v6360_v48 = vmul.f32 1.442695, %v6338_v60 }
0x1390   :  { %7722 = vpow2.f32 %v6366_v21  ;;  %v6362_v13 = vmul.f32 1.442695, %v6339_v44  ;;  %v6347_v5 = vsub.f32 0.0, %v6331_v23 }
0x1391   :  { %v7711_v47 = vpop.eup %7710  ;;  %7724 = vpow2.f32 %v6368_v50  ;;  %v6374_v45 = vmul.f32 1.442695, %v6345_v14  ;;  %v6376_v22 = vmul.f32 1.442695, %v6346_v15 }
0x1392   :  { %v6380_v28 = vadd.f32 1.0, %v7711_v47  ;;  %7726 = vpow2.f32 %v6358_v35  ;;  %v6378_v55 = vmul.f32 1.442695, %v6347_v5 }
0x1393   :  { %7728 = vpow2.f32 %v6370_v26 }
0x1394   :  { %7730 = vpow2.f32 %v6372_v42 }
0x1395   :  { %v7713_v32 = vpop.eup %7712  ;;  %7732 = vrcp.f32 %v6380_v28 }
0x1396   :  { %v7715_v40 = vpop.eup %7714  ;;  %7734 = vpow2.f32 %v6360_v48  ;;  %v6381_v16 = vadd.f32 1.0, %v7713_v32 }
0x1397   :  { %v7717_v4 = vpop.eup %7716  ;;  %7736 = vpow2.f32 %v6362_v13  ;;  %v6382_v11 = vadd.f32 1.0, %v7715_v40 }
0x1398   :  { %v7719_v36 = vpop.eup %7718  ;;  %7738 = vpow2.f32 %v6374_v45  ;;  %v6383_v59 = vadd.f32 1.0, %v7717_v4 }
0x1399   :  { %v7721_v33 = vpop.eup %7720  ;;  %7740 = vpow2.f32 %v6376_v22  ;;  %v6384_v31 = vadd.f32 1.0, %v7719_v36 }
0x139a   :  { %v7723_v46 = vpop.eup %7722  ;;  %7742 = vpow2.f32 %v6378_v55  ;;  %v6388_v61 = vadd.f32 1.0, %v7721_v33 }
0x139b   :  { %v7725_v7 = vpop.eup %7724  ;;  %7744 = vrcp.f32 %v6381_v16  ;;  %v6389_v1 = vadd.f32 1.0, %v7723_v46 }
0x139c   :  { %v7727_v18 = vpop.eup %7726  ;;  %7746 = vrcp.f32 %v6382_v11  ;;  %v6390_v30 = vadd.f32 1.0, %v7725_v7 }
0x139d   :  { %v7729_v27 = vpop.eup %7728  ;;  %7748 = vrcp.f32 %v6383_v59  ;;  %v6385_v53 = vadd.f32 1.0, %v7727_v18 }
0x139e   :  { %v7731_v17 = vpop.eup %7730  ;;  %7750 = vrcp.f32 %v6384_v31  ;;  %v6391_v24 = vadd.f32 1.0, %v7729_v27 }
0x139f   :  { %v11707_v8 = vpop.eup %7732  ;;  %7752 = vrcp.f32 %v6388_v61  ;;  %v6392_v54 = vadd.f32 1.0, %v7731_v17 }
0x13a0   :  { %v7735_v6 = vpop.eup %7734  ;;  %7754 = vrcp.f32 %v6389_v1  ;;  %v6564_v52 = vsel %vm265_vm1, %v11707_v8, 0.0 }
0x13a1   :  { %v7737_v39 = vpop.eup %7736  ;;  %v6386_v41 = vadd.f32 1.0, %v7735_v6  ;;  %7756 = vrcp.f32 %v6385_v53  ;;  %v6565_v49 = vrot.slane %v6564_v52, 4 }
0x13a2   :  { %v7739_v62 = vpop.eup %7738  ;;  %7758 = vrcp.f32 %v6390_v30  ;;  %v6387_v58 = vadd.f32 1.0, %v7737_v39 }
0x13a3   :  { %v7741_v19 = vpop.eup %7740  ;;  %7760 = vrcp.f32 %v6391_v24  ;;  %v6393_v23 = vadd.f32 1.0, %v7739_v62  ;;  %v6566_v60 = vadd.f32 %v6565_v49, %v6564_v52 }
0x13a4   :  { %v7743_v0 = vpop.eup %7742  ;;  %7762 = vrcp.f32 %v6392_v54  ;;  %v6394_v43 = vadd.f32 1.0, %v7741_v19 }
0x13a5   :  { %v11709_v20 = vpop.eup %7744  ;;  %7764 = vrcp.f32 %v6386_v41  ;;  %v6395_v25 = vadd.f32 1.0, %v7743_v0  ;;  %v6567_v22 = vrot.slane %v6566_v60, 2 }
0x13a6   :  { %v11713_v29 = vpop.eup %7746  ;;  %7766 = vrcp.f32 %v6387_v58  ;;  %v6571_v34 = vsel %vm265_vm1, %v11709_v20, 0.0 }
0x13a7   :  { %v11715_v51 = vpop.eup %7748  ;;  %7768 = vrcp.f32 %v6393_v23  ;;  %v6578_v10 = vsel %vm265_vm1, %v11713_v29, 0.0  ;;  %v6572_v21 = vrot.slane %v6571_v34, 4  ;;  %v6568_v1 = vadd.f32 %v6567_v22, %v6566_v60 }
0x13a8   :  { %v11719_v57 = vpop.eup %7750  ;;  %7770 = vrcp.f32 %v6394_v43  ;;  %v6585_v50 = vsel %vm265_vm1, %v11715_v51, 0.0  ;;  %v6579_v44 = vrot.slane %v6578_v10, 4 }
0x13a9   :  { %v11721_v3 = vpop.eup %7752  ;;  %7772 = vrcp.f32 %v6395_v25  ;;  %v6592_v35 = vsel %vm265_vm1, %v11719_v57, 0.0  ;;  %v6586_v28 = vrot.slane %v6585_v50, 4  ;;  %v6573_v13 = vadd.f32 %v6572_v21, %v6571_v34 }
0x13aa   :  { %v11725_v63 = vpop.eup %7754  ;;  %v6620_v42 = vsel %vm265_vm1, %v11721_v3, 0.0  ;;  %v6593_v5 = vrot.slane %v6592_v35, 4  ;;  %v6580_v36 = vadd.f32 %v6579_v44, %v6578_v10 }
0x13ab   :  { %v11729_v47 = vpop.eup %7756  ;;  %v6627_v15 = vsel %vm265_vm1, %v11725_v63, 0.0  ;;  %v6621_v40 = vrot.slane %v6620_v42, 4  ;;  %v6587_v11 = vadd.f32 %v6586_v28, %v6585_v50  ;;  %v6574_v31 = vrot.slane %v6573_v13, 2 }
0x13ac   :  { %v11733_v26 = vpop.eup %7758  ;;  %v6599_v45 = vsel %vm265_vm1, %v11729_v47, 0.0  ;;  %v6628_v16 = vrot.slane %v6627_v15, 4  ;;  %v6594_v27 = vadd.f32 %v6593_v5, %v6592_v35  ;;  %v6581_v24 = vrot.slane %v6580_v36, 2 }
0x13ad   :  { %v11737_v14 = vpop.eup %7760  ;;  %v6634_v4 = vsel %vm265_vm1, %v11733_v26, 0.0  ;;  %v6600_v7 = vrot.slane %v6599_v45, 4  ;;  %v6622_v6 = vadd.f32 %v6621_v40, %v6620_v42  ;;  %v6588_v41 = vrot.slane %v6587_v11, 2 }
0x13ae   :  { %v11741_v48 = vpop.eup %7762  ;;  %v6641_v33 = vsel %vm265_vm1, %v11737_v14, 0.0  ;;  %v6635_v17 = vrot.slane %v6634_v4, 4  ;;  %v6629_v62 = vadd.f32 %v6628_v16, %v6627_v15  ;;  %v6575_v52 = vadd.f32 %v6574_v31, %v6573_v13 }
0x13af   :  { %v11745_v32 = vpop.eup %7764  ;;  %v6648_v59 = vsel %vm265_vm1, %v11741_v48, 0.0  ;;  %v6642_v30 = vrot.slane %v6641_v33, 4  ;;  %v6601_v58 = vadd.f32 %v6600_v7, %v6599_v45  ;;  %v6595_v43 = vrot.slane %v6594_v27, 2 }
0x13b0   :  { %v11749_v55 = vpop.eup %7766  ;;  %v6606_v61 = vsel %vm265_vm1, %v11745_v32, 0.0  ;;  %v6649_v54 = vrot.slane %v6648_v59, 4  ;;  %v6636_v49 = vadd.f32 %v6635_v17, %v6634_v4  ;;  %v6623_v34 = vrot.slane %v6622_v6, 2 }
0x13b1   :  { %v11753_v46 = vpop.eup %7768  ;;  %v6613_v53 = vsel %vm265_vm1, %v11749_v55, 0.0  ;;  %v6607_v0 = vrot.slane %v6606_v61, 4  ;;  %v6643_v10 = vadd.f32 %v6642_v30, %v6641_v33  ;;  %v6582_v60 = vadd.f32 %v6581_v24, %v6580_v36 }
0x13b2   :  { %v11757_v18 = vpop.eup %7770  ;;  %v6655_v19 = vsel %vm265_vm1, %v11753_v46, 0.0  ;;  %v6614_v25 = vrot.slane %v6613_v53, 4  ;;  %v6630_v35 = vrot.slane %v6629_v62, 2  ;;  %v6650_v44 = vadd.f32 %v6649_v54, %v6648_v59 }
0x13b3   :  { %v11763_v39 = vpop.eup %7772  ;;  %v6662_v23 = vsel %vm265_vm1, %v11757_v18, 0.0  ;;  %v6656_v21 = vrot.slane %v6655_v19, 4  ;;  %v6569_v28 = vrot.slane %v6568_v1, 1  ;;  %v6589_v15 = vadd.f32 %v6588_v41, %v6587_v11 }
0x13b4   :  { %v6669_v50 = vsel %vm265_vm1, %v11763_v39, 0.0  ;;  %v6663_v42 = vrot.slane %v6662_v23, 4  ;;  %v6602_v5 = vrot.slane %v6601_v58, 2  ;;  %v6608_v45 = vadd.f32 %v6607_v0, %v6606_v61 }
0x13b5   :  { %v6596_v22 = vadd.f32 %v6595_v43, %v6594_v27  ;;  %v6615_v40 = vadd.f32 %v6614_v25, %v6613_v53  ;;  %v6637_v13 = vrot.slane %v6636_v49, 2  ;;  %v6670_v16 = vrot.slane %v6669_v50, 4 }
0x13b6   :  { %v6576_v7 = vrot.slane %v6575_v52, 1  ;;  %v6624_v4 = vadd.f32 %v6623_v34, %v6622_v6  ;;  %v6644_v31 = vrot.slane %v6643_v10, 2  ;;  %v6657_v33 = vadd.f32 %v6656_v21, %v6655_v19 }
0x13b7   :  { %v6583_v17 = vrot.slane %v6582_v60, 1  ;;  %v6631_v30 = vadd.f32 %v6630_v35, %v6629_v62  ;;  %v6651_v2 = vrot.slane %v6650_v44, 2  ;;  %v6664_v37 = vadd.f32 %v6663_v42, %v6662_v23 }
0x13b8   :  { %v6570_v36 = vadd.f32 %v6569_v28, %v6568_v1  ;;  %v6590_v24 = vrot.slane %v6589_v15, 1  ;;  %v6603_v59 = vadd.f32 %v6602_v5, %v6601_v58  ;;  %v6609_v54 = vrot.slane %v6608_v45, 2 }
0x13b9   :  { %v6597_v12 = vrot.slane %v6596_v22, 1  ;;  %v6616_v11 = vrot.slane %v6615_v40, 2  ;;  %v6638_v41 = vadd.f32 %v6637_v13, %v6636_v49  ;;  %v6671_v61 = vadd.f32 %v6670_v16, %v6669_v50 }
0x13ba   :  { %v6577_v27 = vadd.f32 %v6576_v7, %v6575_v52  ;;  %v6625_v53 = vrot.slane %v6624_v4, 1  ;;  %v6645_v0 = vadd.f32 %v6644_v31, %v6643_v10  ;;  %v6658_v43 = vrot.slane %v6657_v33, 2 }
0x13bb   :  { %v6584_v25 = vadd.f32 %v6583_v17, %v6582_v60  ;;  %v6632_v6 = vrot.slane %v6631_v30, 1  ;;  %v6652_v34 = vadd.f32 %v6651_v2, %v6650_v44  ;;  %v6665_v19 = vrot.slane %v6664_v37, 2 }
0x13bc   :  { %v6591_v21 = vadd.f32 %v6590_v24, %v6589_v15  ;;  %v6604_v62 = vrot.slane %v6603_v59, 1  ;;  %v6610_v35 = vadd.f32 %v6609_v54, %v6608_v45  ;;  %v6676_v23 = vadd.f32 1e-20, %v6570_v36 }
0x13bd   :  { %v6598_v1 = vadd.f32 %v6597_v12, %v6596_v22  ;;  %v6617_v42 = vadd.f32 %v6616_v11, %v6615_v40  ;;  %v6639_v58 = vrot.slane %v6638_v41, 1  ;;  %v6672_v28 = vrot.slane %v6671_v61, 2 }
0x13be   :  { %v6677_v5 = vadd.f32 1e-20, %v6577_v27  ;;  %v6626_v9 = vadd.f32 %v6625_v53, %v6624_v4  ;;  %v6646_v49 = vrot.slane %v6645_v0, 1  ;;  %v6659_v50 = vadd.f32 %v6658_v43, %v6657_v33 }
0x13bf   :  { %v6678_v52 = vadd.f32 1e-20, %v6584_v25  ;;  %v6633_v13 = vadd.f32 %v6632_v6, %v6631_v30  ;;  %v6653_v10 = vrot.slane %v6652_v34, 1  ;;  %v6666_v16 = vadd.f32 %v6665_v19, %v6664_v37 }
0x13c0   :  { %v6605_v60 = vadd.f32 %v6604_v62, %v6603_v59  ;;  %v6611_v7 = vrot.slane %v6610_v35, 1  ;;  %v6679_v2 = vadd.f32 1e-20, %v6591_v21  ;;  %7774 = vrcp.f32 %v6676_v23 }
0x13c1   :  { %v6618_v44 = vrot.slane %v6617_v42, 1  ;;  %v6680_v15 = vadd.f32 1e-20, %v6598_v1  ;;  %v6640_v45 = vadd.f32 %v6639_v58, %v6638_v41  ;;  %v6673_v31 = vadd.f32 %v6672_v28, %v6671_v61 }
0x13c2   :  { %7776 = vrcp.f32 %v6677_v5  ;;  %v6647_v12 = vadd.f32 %v6646_v49, %v6645_v0  ;;  %v6660_v22 = vrot.slane %v6659_v50, 1  ;;  %v6684_v40 = vadd.f32 1e-20, %v6626_v9 }
0x13c3   :  { %7778 = vrcp.f32 %v6678_v52  ;;  %v6654_v4 = vadd.f32 %v6653_v10, %v6652_v34  ;;  %v6667_v17 = vrot.slane %v6666_v16, 1  ;;  %v6685_v33 = vadd.f32 1e-20, %v6633_v13 }
0x13c4   :  { %v6612_v36 = vadd.f32 %v6611_v7, %v6610_v35  ;;  %v6681_v30 = vadd.f32 1e-20, %v6605_v60  ;;  %7780 = vrcp.f32 %v6679_v2  ;;  %v6619_v37 = vadd.f32 %v6618_v44, %v6617_v42 }
0x13c5   :  { %7782 = vrcp.f32 %v6680_v15  ;;  %v6674_v24 = vrot.slane %v6673_v31, 1  ;;  %v6686_v59 = vadd.f32 1e-20, %v6640_v45  ;;  %v6661_v54 = vadd.f32 %v6660_v22, %v6659_v50 }
0x13c6   :  { %v6687_v11 = vadd.f32 1e-20, %v6647_v12  ;;  %7784 = vrcp.f32 %v6684_v40  ;;  %v6668_v41 = vadd.f32 %v6667_v17, %v6666_v16  ;;  %v6688_v61 = vadd.f32 1e-20, %v6654_v4 }
0x13c7   :  { %7786 = vrcp.f32 %v6685_v33  ;;  %v6682_v27 = vadd.f32 1e-20, %v6612_v36  ;;  %v6683_v9 = vadd.f32 1e-20, %v6619_v37  ;;  %v6675_v53 = vadd.f32 %v6674_v24, %v6673_v31 }
0x13c8   :  { %7788 = vrcp.f32 %v6681_v30  ;;  %v6689_v43 = vadd.f32 1e-20, %v6661_v54  ;;  %v6690_v25 = vadd.f32 1e-20, %v6668_v41 }
0x13c9   :  { %7790 = vrcp.f32 %v6686_v59  ;;  %v6691_v19 = vadd.f32 1e-20, %v6675_v53 }
0x13ca   :  { %v11771_v0 = vpop.eup %7774  ;;  %7792 = vrcp.f32 %v6687_v11 }
0x13cb   :  { %7794 = vrcp.f32 %v6688_v61 }
0x13cc   :  { %v11773_v6 = vpop.eup %7776  ;;  %7796 = vrcp.f32 %v6682_v27 }
0x13cd   :  { %v11775_v34 = vpop.eup %7778  ;;  %7798 = vrcp.f32 %v6683_v9 }
0x13ce   :  { %v11777_v21 = vpop.eup %7780  ;;  %7800 = vrcp.f32 %v6689_v43 }
0x13cf   :  { %v11779_v62 = vpop.eup %7782  ;;  %7802 = vrcp.f32 %v6690_v25 }
0x13d0   :  { %v11781_v23 = vpop.eup %7784  ;;  %7804 = vrcp.f32 %v6691_v19 }
0x13d1   :  { %v11787_v5 = vpop.eup %7786 }
0x13d2   :  { %v11793_v13 = vpop.eup %7788 }
0x13e3   :  { %v6431_v35 = vpop.permute.xlu0 %6430 }
0x13e4   :  { %v6436_v1 = vmul.f32 %v11707_v8, %v6431_v35  ;;  %v6437_v42 = vmul.f32 %v11709_v20, %v6431_v35  ;;  %v6438_v58 = vmul.f32 %v11713_v29, %v6431_v35  ;;  %v6439_v28 = vmul.f32 %v11715_v51, %v6431_v35  ;;  %v11799_v51 = vpop.eup %7790 }
0x13e5   :  { %v6440_v49 = vmul.f32 %v11719_v57, %v6431_v35  ;;  %v11790_v50 = vpop.permute.xlu1 %6432  ;;  %v6441_v52 = vmul.f32 %v11729_v47, %v6431_v35  ;;  %v6442_v7 = vmul.f32 %v11745_v32, %v6431_v35  ;;  %v11802_v2 = vpop.eup %7792  ;;  %v6443_v41 = vmul.f32 %v11749_v55, %v6431_v35 }
0x13e6   :  { %v6452_v10 = vsel %vm265_vm1, %v6436_v1, 0.0  ;;  %v6459_v8 = vsel %vm265_vm1, %v6437_v42, 0.0  ;;  %v6466_v20 = vsel %vm265_vm1, %v6438_v58, 0.0  ;;  %v6473_v29 = vsel %vm265_vm1, %v6439_v28, 0.0  ;;  %v11812_v31 = vpop.eup %7794 }
0x13e7   :  { %v6453_v16 = vrot.slane %v6452_v10, 4  ;;  %v6460_v60 = vrot.slane %v6459_v8, 4  ;;  %v6467_v57 = vrot.slane %v6466_v20, 4  ;;  %v6444_v47 = vmul.f32 %v11721_v3, %v11790_v50  ;;  %v11814_v4 = vpop.eup %7796 }
0x13e8   :  { %v6445_v44 = vmul.f32 %v11725_v63, %v11790_v50  ;;  %v6446_v15 = vmul.f32 %v11733_v26, %v11790_v50  ;;  %v6447_v45 = vmul.f32 %v11737_v14, %v11790_v50  ;;  %v6474_v32 = vrot.slane %v6473_v29, 4  ;;  %v11822_v26 = vpop.eup %7798 }
0x13e9   :  { %v6454_v12 = vadd.f32 %v6453_v16, %v6452_v10  ;;  %v6461_v22 = vadd.f32 %v6460_v60, %v6459_v8  ;;  %v6468_v40 = vadd.f32 %v6467_v57, %v6466_v20  ;;  %v6508_v17 = vsel %vm265_vm1, %v6444_v47, 0.0  ;;  %v11824_v24 = vpop.eup %7800 }
0x13ea   :  { %v6515_v3 = vsel %vm265_vm1, %v6445_v44, 0.0  ;;  %v6522_v63 = vsel %vm265_vm1, %v6446_v15, 0.0  ;;  %v11820_v33 = vsel %vm265_vm1, %v6447_v45, 0.0  ;;  %v6509_v30 = vrot.slane %v6508_v17, 4  ;;  %v11832_v61 = vpop.eup %7802 }
0x13eb   :  { %v6455_v14 = vrot.slane %v6454_v12, 2  ;;  %v6462_v36 = vrot.slane %v6461_v22, 2  ;;  %v6516_v37 = vrot.slane %v6515_v3, 4  ;;  %v11828_v59 = vmul.f32 %v11741_v48, %v11790_v50  ;;  %v11835_v58 = vpop.eup %7804 }
0x13ec   :  { %v6523_v54 = vrot.slane %v6522_v63, 4  ;;  %v6530_v11 = vrot.slane %v11820_v33, 4  ;;  %v6510_v27 = vadd.f32 %v6509_v30, %v6508_v17  ;;  %v6469_v19 = vrot.slane %v6468_v40, 2 }
0x13ed   :  { %v6517_v9 = vadd.f32 %v6516_v37, %v6515_v3  ;;  %v6456_v53 = vadd.f32 %v6455_v14, %v6454_v12  ;;  %v6463_v43 = vadd.f32 %v6462_v36, %v6461_v22  ;;  %v6475_v1 = vadd.f32 %v6474_v32, %v6473_v29 }
0x13ee   :  { %v6524_v25 = vadd.f32 %v6523_v54, %v6522_v63  ;;  %v6480_v42 = vsel %vm265_vm1, %v6440_v49, 0.0  ;;  %v6511_v48 = vrot.slane %v6510_v27, 2  ;;  %v6470_v20 = vadd.f32 %v6469_v19, %v6468_v40 }
0x13ef   :  { %v6518_v28 = vrot.slane %v6517_v9, 2  ;;  %v6457_v10 = vrot.slane %v6456_v53, 1  ;;  %v6464_v8 = vrot.slane %v6463_v43, 1  ;;  %v6476_v16 = vrot.slane %v6475_v1, 2 }
0x13f0   :  { %v6481_v55 = vrot.slane %v6480_v42, 4  ;;  %v6487_v35 = vsel %vm265_vm1, %v6441_v52, 0.0  ;;  %v6494_v44 = vsel %vm265_vm1, %v6442_v7, 0.0  ;;  %v6471_v15 = vrot.slane %v6470_v20, 1 }
0x13f1   :  { %v6458_v60 = vadd.f32 %v6457_v10, %v6456_v53  ;;  %v6465_v57 = vadd.f32 %v6464_v8, %v6463_v43  ;;  %v6488_v47 = vrot.slane %v6487_v35, 4  ;;  %v6477_v29 = vadd.f32 %v6476_v16, %v6475_v1 }
0x13f2   :  { %v6482_v45 = vadd.f32 %v6481_v55, %v6480_v42  ;;  %v6495_v49 = vrot.slane %v6494_v44, 4  ;;  %v6501_v22 = vsel %vm265_vm1, %v6443_v41, 0.0  ;;  %v6472_v17 = vadd.f32 %v6471_v15, %v6470_v20 }
0x13f3   :  { %v6489_v12 = vadd.f32 %v6488_v47, %v6487_v35  ;;  %v6693_v32 = vmul.f32 %v11771_v0, %v6458_v60  ;;  %v6695_v40 = vmul.f32 %v11773_v6, %v6465_v57  ;;  %v6478_v3 = vrot.slane %v6477_v29, 1 }
0x13f4   :  { %v6483_v63 = vrot.slane %v6482_v45, 2  ;;  %v6496_v52 = vadd.f32 %v6495_v49, %v6494_v44  ;;  %v6502_v36 = vrot.slane %v6501_v22, 4  ;;  %v6449_v7 = vmul.f32 %v11753_v46, %v11790_v50 }
0x13f5   :  { %v6490_v14 = vrot.slane %v6489_v12, 2  ;;  %v6740_v30 = vsel %vm1090_vm2, %v6695_v40, %v6693_v32  ;;  %v6479_v37 = vadd.f32 %v6478_v3, %v6477_v29  ;;  %v6697_v41 = vmul.f32 %v11775_v34, %v6472_v17 }
0x13f6   :  { %v6484_v54 = vadd.f32 %v6483_v63, %v6482_v45  ;;  %v6497_v53 = vrot.slane %v6496_v52, 2  ;;  %v6503_v0 = vadd.f32 %v6502_v36, %v6501_v22  ;;  %v6450_v6 = vmul.f32 %v11757_v18, %v11790_v50 }
0x13f7   :  { %v6491_v43 = vadd.f32 %v6490_v14, %v6489_v12  ;;  %v6451_v19 = vmul.f32 %v11763_v39, %v11790_v50  ;;  %v6699_v10 = vmul.f32 %v11777_v21, %v6479_v37  ;;  %v6741_v8 = vsel %vm1092_vm3, %v6697_v41, %v6740_v30 }
0x13f8   :  { %v6485_v1 = vrot.slane %v6484_v54, 1  ;;  %v6498_v42 = vadd.f32 %v6497_v53, %v6496_v52  ;;  %v6504_v20 = vrot.slane %v6503_v0, 2  ;;  %v6512_v16 = vadd.f32 %v6511_v48, %v6510_v27 }
0x13f9   :  { %v6492_v46 = vrot.slane %v6491_v43, 1  ;;  %v6519_v55 = vadd.f32 %v6518_v28, %v6517_v9  ;;  %v6742_v60 = vsel %vm1094_vm4, %v6699_v10, %v6741_v8  ;;  %v6525_v57 = vrot.slane %v6524_v25, 2 }
0x13fa   :  { %v6486_v35 = vadd.f32 %v6485_v1, %v6484_v54  ;;  %v6499_v34 = vrot.slane %v6498_v42, 1  ;;  %v6505_v18 = vadd.f32 %v6504_v20, %v6503_v0  ;;  %v6513_v44 = vrot.slane %v6512_v16, 1 }
0x13fb   :  { %v6493_v47 = vadd.f32 %v6492_v46, %v6491_v43  ;;  %v6520_v15 = vrot.slane %v6519_v55, 1  ;;  %v6526_v29 = vadd.f32 %v6525_v57, %v6524_v25  ;;  %v6531_v21 = vadd.f32 %v6530_v11, %v11820_v33 }
0x13fc   :  { %v6500_v39 = vadd.f32 %v6499_v34, %v6498_v42  ;;  %v6701_v50 = vmul.f32 %v11779_v62, %v6486_v35  ;;  %v6506_v45 = vrot.slane %v6505_v18, 1  ;;  %v6514_v9 = vadd.f32 %v6513_v44, %v6512_v16 }
0x13fd   :  { %v6703_v27 = vmul.f32 %v11793_v13, %v6493_v47  ;;  %v6521_v48 = vadd.f32 %v6520_v15, %v6519_v55  ;;  %v6527_v12 = vrot.slane %v6526_v29, 1  ;;  %v6532_v22 = vrot.slane %v6531_v21, 2 }
0x13fe   :  { %v6705_v28 = vmul.f32 %v11814_v4, %v6500_v39  ;;  %v6743_v49 = vsel %vm1096_vm5, %v6701_v50, %v6742_v60  ;;  %v6507_v32 = vadd.f32 %v6506_v45, %v6505_v18  ;;  %v6536_v62 = vsel %vm265_vm1, %v11828_v59, 0.0 }
0x13ff   :  { %v6744_v40 = vsel %vm1098_vm6, %v6703_v27, %v6743_v49  ;;  %v6543_v25 = vsel %vm265_vm1, %v6449_v7, 0.0  ;;  %v6528_v11 = vadd.f32 %v6527_v12, %v6526_v29  ;;  %v6533_v13 = vadd.f32 %v6532_v22, %v6531_v21 }
0x1400   :  { %v6745_v33 = vsel %vm1100_vm7, %v6705_v28, %v6744_v40  ;;  %v6537_v17 = vrot.slane %v6536_v62, 4  ;;  %v6707_v3 = vmul.f32 %v11822_v26, %v6507_v32  ;;  %v6544_v4 = vrot.slane %v6543_v25, 4 }
0x1401   :  { %v6550_v63 = vsel %vm265_vm1, %v6450_v6, 0.0  ;;  %v6557_v52 = vsel %vm265_vm1, %v6451_v19, 0.0  ;;  %v6534_v14 = vrot.slane %v6533_v13, 1  ;;  %v6709_v7 = vmul.f32 %v11781_v23, %v6514_v9  ;;  %v6106_v9 = vpop.permute.xlu0 %6105 }
0x1402   :  { %v6538_v36 = vadd.f32 %v6537_v17, %v6536_v62  ;;  %v6551_v30 = vrot.slane %v6550_v63, 4  ;;  %v6558_v37 = vrot.slane %v6557_v52, 4  ;;  %v6746_v59 = vsel %vm1102_vm8, %v6707_v3, %v6745_v33 }
0x1403   :  { %v6545_v54 = vadd.f32 %v6544_v4, %v6543_v25  ;;  %v6711_v53 = vmul.f32 %v11787_v5, %v6521_v48  ;;  %6754 = vrot.lane.b32.xlu1 %v6746_v59, %s7967_s2  ;;  %v6535_v41 = vadd.f32 %v6534_v14, %v6533_v13  ;;  %v6713_v19 = vmul.f32 %v11799_v51, %v6528_v11 }
0x1404   :  { %v6539_v26 = vrot.slane %v6538_v36, 2  ;;  %v6552_v43 = vadd.f32 %v6551_v30, %v6550_v63  ;;  %v6559_v0 = vadd.f32 %v6558_v37, %v6557_v52 }
0x1405   :  { %v6546_v6 = vrot.slane %v6545_v54, 2  ;;  %v6747_v1 = vsel %vm1090_vm2, %v6711_v53, %v6709_v7  ;;  %v6715_v46 = vmul.f32 %v11802_v2, %v6535_v41 }
0x1406   :  { %v6540_v42 = vadd.f32 %v6539_v26, %v6538_v36  ;;  %v6553_v10 = vrot.slane %v6552_v43, 2  ;;  %v6560_v8 = vrot.slane %v6559_v0, 2  ;;  %v6748_v23 = vsel %vm1092_vm3, %v6713_v19, %v6747_v1  ;;  %v7815_v26 = vld [vmem:[#allocation10 + $0x28] sm:$0xff]  ;;  %v12524_v1 = vld [vmem:[#allocation23_spill] sm:$0xff] }
0x1407   :  { %v6547_v20 = vadd.f32 %v6546_v6, %v6545_v54  ;;  %v6749_v35 = vsel %vm1094_vm4, %v6715_v46, %v6748_v23 }
0x1408   :  { %v6541_v5 = vrot.slane %v6540_v42, 1  ;;  %v6554_v16 = vadd.f32 %v6553_v10, %v6552_v43  ;;  %v6561_v55 = vadd.f32 %v6560_v8, %v6559_v0  ;;  %v12523_v43 = vld [vmem:[#allocation22_spill] sm:$0xff] }
0x1409   :  { %v6548_v34 = vrot.slane %v6547_v20, 1  ;;  %v6806_v0 = vrot.slane %v7815_v26, %v12523_v43 }
0x140a   :  { %v6542_v60 = vadd.f32 %v6541_v5, %v6540_v42  ;;  %v6555_v57 = vrot.slane %v6554_v16, 1  ;;  %v6562_v47 = vrot.slane %v6561_v55, 1 }
0x140b   :  { %v6549_v51 = vadd.f32 %v6548_v34, %v6547_v20 }
0x140c   :  { %v6556_v18 = vadd.f32 %v6555_v57, %v6554_v16  ;;  %v6563_v44 = vadd.f32 %v6562_v47, %v6561_v55  ;;  %v6717_v15 = vmul.f32 %v11812_v31, %v6542_v60  ;;  %v6108_v31 = vadd.f32 %v6106_v9, %v11607_v38  ;;  %v12525_v60 = vld [vmem:[#allocation57_spill] sm:$0xff]  ;;  %v12526_v47 = vld [vmem:[#allocation26_spill] sm:$0xff] }
0x140d   :  { %v6719_v39 = vmul.f32 %v11824_v24, %v6549_v51  ;;  %v6109_v24 = vadd.f32 %v6106_v9, %v11613_v56 }
0x140e   :  { %v6721_v2 = vmul.f32 %v11832_v61, %v6556_v18  ;;  %v6750_v50 = vsel %vm1096_vm5, %v6717_v15, %v6749_v35  ;;  %v6723_v29 = vmul.f32 %v11835_v58, %v6563_v44 }
0x140f   :  { %v6751_v21 = vsel %vm1098_vm6, %v6719_v39, %v6750_v50 }
0x1410   :  { %v6752_v45 = vsel %vm1100_vm7, %v6721_v2, %v6751_v21 }
0x1411   :  { %v6753_v27 = vsel %vm1102_vm8, %v6723_v29, %v6752_v45 }
0x1412   :  { %6756 = vrot.lane.b32.xlu0 %v6753_v27, %s7967_s2 }
0x1475   :  { %v6755_v48 = vpop.permute.xlu1 %6754 }
0x1476   :  { %v6760_v28 = vadd.f32 %v6755_v48, %v6108_v31 }
0x1478   :  { %v6762_v12 = vsel %vm1271_vm9, %v6760_v28, 0.0 }
0x1484   :  { %v6757_v61 = vpop.permute.xlu0 %6756 }
0x1485   :  { %v6761_v49 = vadd.f32 %v6757_v61, %v6109_v24 }
0x1487   :  { %v6763_v58 = vsel %vm1271_vm9, %v6761_v49, 0.0 }
0x1488   :  { %v6764_v22 = vadd.f32 %v6763_v58, %v6762_v12 }
0x148a   :  { %v6765_v32 = vrot.slane %v6764_v22, 4 }
0x148c   :  { %v6766_v40 = vadd.f32 %v6765_v32, %v6764_v22 }
0x148e   :  { %v6767_v62 = vrot.slane %v6766_v40, 2 }
0x1490   :  { %v6768_v25 = vadd.f32 %v6767_v62, %v6766_v40 }
0x1492   :  { %v6769_v33 = vrot.slane %v6768_v25, 1 }
0x1494   :  { %v6770_v11 = vadd.f32 %v6769_v33, %v6768_v25 }
0x1496   :  { %v6771_v13 = vmul.f32 0.0625, %v6770_v11 }
0x1498   :  { %v6772_v17 = vsub.f32 %v6760_v28, %v6771_v13  ;;  %v6773_v3 = vsub.f32 %v6761_v49, %v6771_v13 }
0x149a   :  { %v6774_v38 = vmul.f32 %v6772_v17, %v6772_v17  ;;  %v6775_v4 = vmul.f32 %v6773_v3, %v6773_v3 }
0x149c   :  { %v6776_v56 = vsel %vm1271_vm9, %v6774_v38, 0.0  ;;  %v6777_v63 = vsel %vm1271_vm9, %v6775_v4, 0.0 }
0x149d   :  { %v6778_v52 = vadd.f32 %v6777_v63, %v6776_v56 }
0x149f   :  { %v6779_v14 = vrot.slane %v6778_v52, 4 }
0x14a1   :  { %v6780_v36 = vadd.f32 %v6779_v14, %v6778_v52 }
0x14a3   :  { %v6781_v30 = vrot.slane %v6780_v36, 2 }
0x14a5   :  { %v6782_v37 = vadd.f32 %v6781_v30, %v6780_v36 }
0x14a7   :  { %v6783_v59 = vrot.slane %v6782_v37, 1 }
0x14a9   :  { %v6784_v54 = vadd.f32 %v6783_v59, %v6782_v37 }
0x14ab   :  { %v6785_v7 = vmul.f32 0.0625, %v6784_v54 }
0x14ad   :  { %v6786_v53 = vadd.f32 1e-05, %v6785_v7 }
0x14af   :  { %7806 = vrsqrt.f32 %v6786_v53 }
0x14b9   :  { %v7807_v41 = vpop.eup %7806 }
0x14ba   :  { %6789 = vrot.lane.b32.xlu1 %v7807_v41, %s7969_s13 }
0x14be   :  { %6808 = vrot.lane.b32.xlu1 %v6806_v0, %s7967_s2 }
0x152c   :  { %v6790_v6 = vpop.permute.xlu1 %6789 }
0x152d   :  { %v6792_v19 = vmul.f32 %v7815_v26, %v6790_v6 }
0x152f   :  { %v6796_v42 = vrot.slane %v6792_v19, %v12524_v1 }
0x1530   :  { %v6809_v8 = vpop.permute.xlu1 %6808 }
0x1531   :  { %6798 = vrot.lane.b32.xlu0 %v6796_v42, %s7967_s2 }
0x15a3   :  { %v6799_v10 = vpop.permute.xlu0 %6798 }
0x15a4   :  { %v6801_v46 = vmul.f32 %v6799_v10, %v6772_v17  ;;  %v6802_v20 = vmul.f32 %v6799_v10, %v6773_v3 }
0x15a6   :  { %v6811_v23 = vadd.f32 %v6809_v8, %v6801_v46  ;;  %v6812_v5 = vadd.f32 %v6809_v8, %v6802_v20 }
0x15a8   :  { %v6813_v16 = vmax.f32 %v6811_v23, 0.0  ;;  %v6814_v55 = vmax.f32 %v6812_v5, 0.0 }
0x15aa   :  { %6819 = vrot.lane.b32.xlu1 %v6814_v55, %s7969_s13  ;;  %6817 = vrot.lane.b32.xlu0 %v6813_v16, %s7969_s13 }
0x161c   :  { %v6820_v35 = vpop.permute.xlu1 %6819  ;;  %v6818_v34 = vpop.permute.xlu0 %6817 }
0x161d   :  { %v6824_v57 = vadd.f32 %v6820_v35, %v12525_v60  ;;  %v6823_v51 = vadd.f32 %v6818_v34, %v12526_v47 }
0x161f   :  { %6826 = vst.msk [vmem:[#allocation11 + $0x8] sm:$0xff] %vm265_vm1, %v6824_v57  ;;  %6825 = vst.msk [vmem:[#allocation11] sm:$0xff] %vm265_vm1, %v6823_v51 }
0x1620   :  { %7937 = shalt.err (!%p7934_p2)
}
0x1621   :  { %s7938_s19 = scalar_lea.hbm %s11924_s6, 256 }
0x1622   :  { %p7939_p3 = scmp.ne.s32.totalorder %s11924_s6, %s7938_s19  ;;  %p7942_p4 = scmp.lt.u32.totalorder %s7938_s19, %s11924_s6 }
0x1624   :  { %p7944_p5 = pnand %p7942_p4, %p7939_p3 }
0x1626   :  { %7947 = shalt.err (!%p7944_p5)
}
0x1627   :  { %6838 = dma.vmem_to_hbm [thread:$0]  %s6833_s15, 256, %s11924_s6, [#allocation4], %s7957_s7, %s7957_s7, %s7958_s8  }
0x1628   :  { %7954 = dma.done.wait [#allocation4], 256  }
0x1629   :  { %7955 = vsyncadd [#allocation4], 4294967040 }
0x162a   :  { %6842 = vsyncpa [#allocation3], 1 }
0x162b   :  { %6843 = vsyncpa [#allocation6], 1 }
0x162c   :  { %6844 = vsyncpa [#allocation9], 1 }
0x162d   :  { %6845 = vsyncpa [#allocation4], 1 }

</bundles_post_ra>
